<compile_context>
chip_gen: v7x
topology: tpu7x:2x2x1
jax: 0.10.0
libtpu: 0.0.40
codegen_flags: <defaults>
</compile_context>

<pallas_src>
import functools
import math

import jax
import jax.numpy as jnp
from jax.experimental import pallas as pl
from jax.experimental.pallas import tpu as pltpu


D_MODEL = 128
NHEAD = 4
NUM_LAYERS = 2
DFF = 2048
LSTM_H = 128
LN_EPS = 1e-5


# ----------------------------------------------------------------------------
# Fused whole-model kernel
# ----------------------------------------------------------------------------

def model_kernel(
    # inputs ------------------------------------------------------------
    x_ref, pe_ref,
    embed_w_ref, embed_b_ref,
    qkv_w_ref, qkv_b_ref, out_w_ref, out_b_ref,
    ln1_g_ref, ln1_b_ref,
    ff1_w_ref, ff1_b_ref, ff2_w_ref, ff2_b_ref,
    ln2_g_ref, ln2_b_ref,
    fc_w_ref, fc_b_ref,
    wih_f_ref, b_f_ref, whh_f_ref,
    wih_b_ref, b_b_ref, whh_b_ref,
    lstm_fc_w_ref, lstm_fc_b_ref,
    fusion_ref,
    # outputs -----------------------------------------------------------
    o_ref,
    # scratch -----------------------------------------------------------
    lstm_scr,
    # static config -------------------------------------------------------
    *, B, T, d_model, n_heads, num_layers, H, eps):

    BT = B * T
    Dh = d_model // n_heads
    scale = 1.0 / math.sqrt(Dh)

    def mm(x_f32, w_bf16, b_f32=None):
        """bf16 MXU matmul with f32 accumulation (+ optional f32 bias)."""
        y = jnp.dot(x_f32.astype(jnp.bfloat16), w_bf16,
                    preferred_element_type=jnp.float32)
        if b_f32 is not None:
            y = y + b_f32
        return y

    def layernorm(x, g, b):
        mu = jnp.mean(x, axis=-1, keepdims=True)
        xc = x - mu
        var = jnp.mean(xc * xc, axis=-1, keepdims=True)
        return xc * jax.lax.rsqrt(var + eps) * g + b

    x = x_ref[...]                                          # (BT, d_in) f32

    # ---------------- Transformer branch ----------------
    h = mm(x, embed_w_ref[...], embed_b_ref[...])           # (BT, d_model)
    # positional encoding added in-kernel (pe is (T, d_model))
    h = (h.reshape(B, T, d_model) + pe_ref[...][None, :, :]).reshape(BT, d_model)

    for l in range(num_layers):
        qkv = mm(h, qkv_w_ref[l], qkv_b_ref[l])             # (BT, 3*d_model)
        q = qkv[:, 0:d_model]
        k = qkv[:, d_model:2 * d_model]
        v = qkv[:, 2 * d_model:3 * d_model]

        head_outs = []
        for hh in range(n_heads):                           # static head loop
            sl = slice(hh * Dh, (hh + 1) * Dh)
            qh = q[:, sl].reshape(B, T, Dh)
            kh = k[:, sl].reshape(B, T, Dh)
            vh = v[:, sl].reshape(B, T, Dh)
            # batched q @ k^T: contract last dims, no explicit transpose
            s = jax.lax.dot_general(
                qh.astype(jnp.bfloat16), kh.astype(jnp.bfloat16),
                (((2,), (2,)), ((0,), (0,))),
                preferred_element_type=jnp.float32) * scale       # (B, T, T)
            s = s - jnp.max(s, axis=-1, keepdims=True)            # f32 stats
            p = jnp.exp(s)
            p = p * pl.reciprocal(jnp.sum(p, axis=-1, keepdims=True),
                                  approx=True)
            oh = jax.lax.dot_general(
                p.astype(jnp.bfloat16), vh.astype(jnp.bfloat16),
                (((2,), (1,)), ((0,), (0,))),
                preferred_element_type=jnp.float32)               # (B, T, Dh)
            head_outs.append(oh.reshape(BT, Dh))
        attn = jnp.concatenate(head_outs, axis=-1)                # (BT, d_model)

        attn = mm(attn, out_w_ref[l], out_b_ref[l])
        h = layernorm(h + attn, ln1_g_ref[l], ln1_b_ref[l])       # post-norm

        ff = jnp.maximum(mm(h, ff1_w_ref[l], ff1_b_ref[l]), 0.0)  # (BT, DFF)
        ff = mm(ff, ff2_w_ref[l], ff2_b_ref[l])
        h = layernorm(h + ff, ln2_g_ref[l], ln2_b_ref[l])

    t_out = mm(h, fc_w_ref[...], fc_b_ref[...])                   # (BT, d_in)

    # ---------------- BiLSTM ("Mamba") branch ----------------
    # input-gate projections for all timesteps in two matmuls
    gf = mm(x, wih_f_ref[...], b_f_ref[...]).reshape(B, T, 4 * H)
    gb = mm(x, wih_b_ref[...], b_b_ref[...]).reshape(B, T, 4 * H)

    def gates(pre, c_prev):                 # PyTorch gate order [i, f, g, o]
        i = jax.nn.sigmoid(pre[:, 0 * H:1 * H])
        f = jax.nn.sigmoid(pre[:, 1 * H:2 * H])
        g = jnp.tanh(pre[:, 2 * H:3 * H])
        o = jax.nn.sigmoid(pre[:, 3 * H:4 * H])
        c = f * c_prev + i * g
        return o * jnp.tanh(c), c

    hf = jnp.zeros((B, H), jnp.float32)
    cf = jnp.zeros((B, H), jnp.float32)
    hb = jnp.zeros((B, H), jnp.float32)
    cb = jnp.zeros((B, H), jnp.float32)

    # statically unrolled; the two independent directions are interleaved so
    # their recurrent matmuls / gate transcendentals overlap.
    for t in range(T):
        tb = T - 1 - t
        pre_f = gf[:, t, :] + mm(hf, whh_f_ref[...])
        pre_b = gb[:, tb, :] + mm(hb, whh_b_ref[...])
        hf, cf = gates(pre_f, cf)
        hb, cb = gates(pre_b, cb)
        lstm_scr[:, t, 0:H] = hf
        lstm_scr[:, tb, H:2 * H] = hb

    lstm_out = lstm_scr[...].reshape(BT, 2 * H)                   # (BT, 2H)
    m_out = mm(lstm_out, lstm_fc_w_ref[...], lstm_fc_b_ref[...])  # (BT, d_in)

    # ---------------- Fusion (softmax of fusion weights in-kernel) ----------
    fw = fusion_ref[...]                                          # (1, 2) f32
    fw = fw - jnp.max(fw, axis=-1, keepdims=True)
    e = jnp.exp(fw)
    w = e / jnp.sum(e, axis=-1, keepdims=True)
    w0 = w[0:1, 0:1]
    w1 = w[0:1, 1:2]
    # mamba branch residual (x + mamba_block(x)) folded in here
    o_ref[...] = w0 * t_out + w1 * (x + m_out)


# ----------------------------------------------------------------------------
# Parameters (deterministic synthetic init, kernel-ready layout)
# ----------------------------------------------------------------------------

def positional_encoding(max_len, d_model):
    position = jnp.arange(max_len, dtype=jnp.float32)[:, None]
    div_term = jnp.exp(jnp.arange(0, d_model, 2, dtype=jnp.float32)
                       * (-math.log(10000.0) / d_model))
    pe = jnp.zeros((max_len, d_model), jnp.float32)
    pe = pe.at[:, 0::2].set(jnp.sin(position * div_term))
    pe = pe.at[:, 1::2].set(jnp.cos(position * div_term))
    return pe


def _w(key, shape, fan_in):
    return jax.random.normal(key, shape, jnp.float32) / math.sqrt(fan_in)


def init_params(key, d_in, max_len=64):
    """Kernel-ready params: MXU weights pre-cast to bf16, per-layer tensors
    stacked on a leading axis, biases/LN params kept f32 with a broadcast
    row dim."""
    keys = iter(jax.random.split(key, 64))
    bf = jnp.bfloat16
    L = NUM_LAYERS
    p = {}
    p["pe"] = positional_encoding(max_len, D_MODEL)
    p["embed_w"] = _w(next(keys), (d_in, D_MODEL), d_in).astype(bf)
    p["embed_b"] = jnp.zeros((1, D_MODEL), jnp.float32)

    def stack(make):
        return jnp.stack([make() for _ in range(L)], axis=0)

    p["qkv_w"] = stack(lambda: _w(next(keys), (D_MODEL, 3 * D_MODEL), D_MODEL)).astype(bf)
    p["qkv_b"] = jnp.zeros((L, 1, 3 * D_MODEL), jnp.float32)
    p["out_w"] = stack(lambda: _w(next(keys), (D_MODEL, D_MODEL), D_MODEL)).astype(bf)
    p["out_b"] = jnp.zeros((L, 1, D_MODEL), jnp.float32)
    p["ln1_g"] = jnp.ones((L, 1, D_MODEL), jnp.float32)
    p["ln1_b"] = jnp.zeros((L, 1, D_MODEL), jnp.float32)
    p["ff1_w"] = stack(lambda: _w(next(keys), (D_MODEL, DFF), D_MODEL)).astype(bf)
    p["ff1_b"] = jnp.zeros((L, 1, DFF), jnp.float32)
    p["ff2_w"] = stack(lambda: _w(next(keys), (DFF, D_MODEL), DFF)).astype(bf)
    p["ff2_b"] = jnp.zeros((L, 1, D_MODEL), jnp.float32)
    p["ln2_g"] = jnp.ones((L, 1, D_MODEL), jnp.float32)
    p["ln2_b"] = jnp.zeros((L, 1, D_MODEL), jnp.float32)
    p["fc_w"] = _w(next(keys), (D_MODEL, d_in), D_MODEL).astype(bf)
    p["fc_b"] = jnp.zeros((1, d_in), jnp.float32)
    # BiLSTM branch
    p["wih_f"] = _w(next(keys), (d_in, 4 * LSTM_H), d_in).astype(bf)
    p["whh_f"] = _w(next(keys), (LSTM_H, 4 * LSTM_H), LSTM_H).astype(bf)
    p["b_f"] = jnp.zeros((1, 4 * LSTM_H), jnp.float32)       # b_ih + b_hh folded
    p["wih_b"] = _w(next(keys), (d_in, 4 * LSTM_H), d_in).astype(bf)
    p["whh_b"] = _w(next(keys), (LSTM_H, 4 * LSTM_H), LSTM_H).astype(bf)
    p["b_b"] = jnp.zeros((1, 4 * LSTM_H), jnp.float32)
    p["lstm_fc_w"] = _w(next(keys), (2 * LSTM_H, d_in), 2 * LSTM_H).astype(bf)
    p["lstm_fc_b"] = jnp.zeros((1, d_in), jnp.float32)
    # fusion weights (nn.Parameter(torch.ones(2) / 2)); softmax done in-kernel
    p["fusion_w"] = jnp.ones((1, 2), jnp.float32) / 2.0
    return p


# ----------------------------------------------------------------------------
# Forward pass: one fused pallas_call for the whole model
# ----------------------------------------------------------------------------

def mid_level_forward(params, x):
    B, T, d_in = x.shape
    x2d = x.reshape(B * T, d_in)
    pe = params["pe"][:T]                                     # (T, d_model)

    kernel = functools.partial(
        model_kernel, B=B, T=T, d_model=D_MODEL, n_heads=NHEAD,
        num_layers=NUM_LAYERS, H=LSTM_H, eps=LN_EPS)

    out2d = pl.pallas_call(
        kernel,
        out_shape=jax.ShapeDtypeStruct((B * T, d_in), jnp.float32),
        scratch_shapes=[pltpu.VMEM((B, T, 2 * LSTM_H), jnp.float32)],
    )(
        x2d, pe,
        params["embed_w"], params["embed_b"],
        params["qkv_w"], params["qkv_b"], params["out_w"], params["out_b"],
        params["ln1_g"], params["ln1_b"],
        params["ff1_w"], params["ff1_b"], params["ff2_w"], params["ff2_b"],
        params["ln2_g"], params["ln2_b"],
        params["fc_w"], params["fc_b"],
        params["wih_f"], params["b_f"], params["whh_f"],
        params["wih_b"], params["b_b"], params["whh_b"],
        params["lstm_fc_w"], params["lstm_fc_b"],
        params["fusion_w"],
    )
    return out2d.reshape(B, T, d_in)


# ----------------------------------------------------------------------------
# Main
# ----------------------------------------------------------------------------

if __name__ == "__main__":
    B, T, D_IN = 2, 8, 32
    key = jax.random.PRNGKey(0)
    x_key, p_key = jax.random.split(key)
    x = jax.random.normal(x_key, (B, T, D_IN), jnp.float32)
    params = init_params(p_key, D_IN)

    fwd = jax.jit(mid_level_forward)
    out = fwd(params, x)
    jax.block_until_ready(out)
    assert out.shape == (B, T, D_IN) and out.dtype == jnp.float32
    assert bool(jnp.all(jnp.isfinite(out)))
    print("KERNEL_OK")
</pallas_src>

<mosaic_0001>
module attributes {stable_mosaic.version = 11 : i64} {
  func.func @model_kernel(%arg0: memref<16x32xf32, #tpu.memory_space<vmem>>, %arg1: memref<8x128xf32, #tpu.memory_space<vmem>>, %arg2: memref<32x128xbf16, #tpu.memory_space<vmem>>, %arg3: memref<1x128xf32, #tpu.memory_space<vmem>>, %arg4: memref<2x128x384xbf16, #tpu.memory_space<vmem>>, %arg5: memref<2x1x384xf32, #tpu.memory_space<vmem>>, %arg6: memref<2x128x128xbf16, #tpu.memory_space<vmem>>, %arg7: memref<2x1x128xf32, #tpu.memory_space<vmem>>, %arg8: memref<2x1x128xf32, #tpu.memory_space<vmem>>, %arg9: memref<2x1x128xf32, #tpu.memory_space<vmem>>, %arg10: memref<2x128x2048xbf16, #tpu.memory_space<vmem>>, %arg11: memref<2x1x2048xf32, #tpu.memory_space<vmem>>, %arg12: memref<2x2048x128xbf16, #tpu.memory_space<vmem>>, %arg13: memref<2x1x128xf32, #tpu.memory_space<vmem>>, %arg14: memref<2x1x128xf32, #tpu.memory_space<vmem>>, %arg15: memref<2x1x128xf32, #tpu.memory_space<vmem>>, %arg16: memref<128x32xbf16, #tpu.memory_space<vmem>>, %arg17: memref<1x32xf32, #tpu.memory_space<vmem>>, %arg18: memref<32x512xbf16, #tpu.memory_space<vmem>>, %arg19: memref<1x512xf32, #tpu.memory_space<vmem>>, %arg20: memref<128x512xbf16, #tpu.memory_space<vmem>>, %arg21: memref<32x512xbf16, #tpu.memory_space<vmem>>, %arg22: memref<1x512xf32, #tpu.memory_space<vmem>>, %arg23: memref<128x512xbf16, #tpu.memory_space<vmem>>, %arg24: memref<256x32xbf16, #tpu.memory_space<vmem>>, %arg25: memref<1x32xf32, #tpu.memory_space<vmem>>, %arg26: memref<1x2xf32, #tpu.memory_space<vmem>>, %arg27: memref<16x32xf32, #tpu.memory_space<vmem>>, %arg28: memref<2x8x256xf32, #tpu.memory_space<vmem>>) attributes {dimension_semantics = [], scalar_prefetch = 0 : i64, scratch_operands = 1 : i64, tpu.core_type = #tpu.core_type<tc>} {
    %c0 = arith.constant 0 : index
    %c0_0 = arith.constant 0 : index
    %0 = vector.load %arg0[%c0, %c0_0] : memref<16x32xf32, #tpu.memory_space<vmem>>, vector<16x32xf32>
    %c0_1 = arith.constant 0 : index
    %c0_2 = arith.constant 0 : index
    %1 = vector.load %arg2[%c0_1, %c0_2] : memref<32x128xbf16, #tpu.memory_space<vmem>>, vector<32x128xbf16>
    %c0_3 = arith.constant 0 : index
    %c0_4 = arith.constant 0 : index
    %2 = vector.load %arg3[%c0_3, %c0_4] : memref<1x128xf32, #tpu.memory_space<vmem>>, vector<1x128xf32>
    %3 = arith.truncf %0 : vector<16x32xf32> to vector<16x32xbf16>
    %cst = arith.constant dense<0.000000e+00> : vector<16x128xf32>
    %4 = tpu.matmul %3, %1, %cst {dimension_numbers = #tpu.dot_dimension_numbers<[1], [0], [0], [1], [0, 0, 1, 1], [], []>} : vector<16x32xbf16>, vector<32x128xbf16>, vector<16x128xf32> -> vector<16x128xf32>
    %5 = vector.broadcast %2 : vector<1x128xf32> to vector<16x128xf32>
    %6 = arith.addf %4, %5 : vector<16x128xf32>
    %7 = vector.shape_cast %6 : vector<16x128xf32> to vector<2x8x128xf32>
    %c0_5 = arith.constant 0 : index
    %c0_6 = arith.constant 0 : index
    %8 = vector.load %arg1[%c0_5, %c0_6] : memref<8x128xf32, #tpu.memory_space<vmem>>, vector<8x128xf32>
    %9 = vector.shape_cast %8 : vector<8x128xf32> to vector<1x8x128xf32>
    %10 = vector.broadcast %9 : vector<1x8x128xf32> to vector<2x8x128xf32>
    %11 = arith.addf %7, %10 : vector<2x8x128xf32>
    %12 = vector.shape_cast %11 : vector<2x8x128xf32> to vector<16x128xf32>
    %c0_7 = arith.constant 0 : index
    %c0_8 = arith.constant 0 : index
    %c0_9 = arith.constant 0 : index
    %13 = vector.load %arg4[%c0_7, %c0_8, %c0_9] : memref<2x128x384xbf16, #tpu.memory_space<vmem>>, vector<1x128x384xbf16>
    %14 = vector.shape_cast %13 : vector<1x128x384xbf16> to vector<128x384xbf16>
    %c0_10 = arith.constant 0 : index
    %c0_11 = arith.constant 0 : index
    %c0_12 = arith.constant 0 : index
    %15 = vector.load %arg5[%c0_10, %c0_11, %c0_12] : memref<2x1x384xf32, #tpu.memory_space<vmem>>, vector<1x1x384xf32>
    %16 = vector.shape_cast %15 : vector<1x1x384xf32> to vector<1x384xf32>
    %17 = arith.truncf %12 : vector<16x128xf32> to vector<16x128xbf16>
    %cst_13 = arith.constant dense<0.000000e+00> : vector<16x384xf32>
    %18 = tpu.matmul %17, %14, %cst_13 {dimension_numbers = #tpu.dot_dimension_numbers<[1], [0], [0], [1], [0, 0, 1, 1], [], []>} : vector<16x128xbf16>, vector<128x384xbf16>, vector<16x384xf32> -> vector<16x384xf32>
    %19 = vector.broadcast %16 : vector<1x384xf32> to vector<16x384xf32>
    %20 = arith.addf %18, %19 : vector<16x384xf32>
    %21 = vector.extract_strided_slice %20 {offsets = [0, 0], sizes = [16, 128], strides = [1, 1]} : vector<16x384xf32> to vector<16x128xf32>
    %22 = vector.extract_strided_slice %20 {offsets = [0, 128], sizes = [16, 128], strides = [1, 1]} : vector<16x384xf32> to vector<16x128xf32>
    %23 = vector.extract_strided_slice %20 {offsets = [0, 256], sizes = [16, 128], strides = [1, 1]} : vector<16x384xf32> to vector<16x128xf32>
    %24 = vector.extract_strided_slice %21 {offsets = [0, 0], sizes = [16, 32], strides = [1, 1]} : vector<16x128xf32> to vector<16x32xf32>
    %25 = vector.shape_cast %24 : vector<16x32xf32> to vector<2x8x32xf32>
    %26 = vector.extract_strided_slice %22 {offsets = [0, 0], sizes = [16, 32], strides = [1, 1]} : vector<16x128xf32> to vector<16x32xf32>
    %27 = vector.shape_cast %26 : vector<16x32xf32> to vector<2x8x32xf32>
    %28 = vector.extract_strided_slice %23 {offsets = [0, 0], sizes = [16, 32], strides = [1, 1]} : vector<16x128xf32> to vector<16x32xf32>
    %29 = vector.shape_cast %28 : vector<16x32xf32> to vector<2x8x32xf32>
    %30 = arith.truncf %25 : vector<2x8x32xf32> to vector<2x8x32xbf16>
    %31 = arith.truncf %27 : vector<2x8x32xf32> to vector<2x8x32xbf16>
    %cst_14 = arith.constant dense<0.000000e+00> : vector<2x8x8xf32>
    %32 = tpu.matmul %30, %31, %cst_14 {dimension_numbers = #tpu.dot_dimension_numbers<[2], [2], [1], [1], [0, 0, 0, 1, 1, 1], [0], [0]>} : vector<2x8x32xbf16>, vector<2x8x32xbf16>, vector<2x8x8xf32> -> vector<2x8x8xf32>
    %cst_15 = arith.constant 0.176776692 : f32
    %33 = vector.broadcast %cst_15 : f32 to vector<2x8x8xf32>
    %34 = arith.mulf %32, %33 : vector<2x8x8xf32>
    %cst_16 = arith.constant dense<0xFF800000> : vector<2x8xf32>
    %35 = vector.multi_reduction <maximumf>, %34, %cst_16 [2] : vector<2x8x8xf32> to vector<2x8xf32>
    %36 = vector.shape_cast %35 : vector<2x8xf32> to vector<2x8x1xf32>
    %37 = vector.broadcast %36 : vector<2x8x1xf32> to vector<2x8x8xf32>
    %38 = arith.subf %34, %37 : vector<2x8x8xf32>
    %39 = math.exp %38 : vector<2x8x8xf32>
    %cst_17 = arith.constant dense<0.000000e+00> : vector<2x8xf32>
    %40 = vector.multi_reduction <add>, %39, %cst_17 [2] : vector<2x8x8xf32> to vector<2x8xf32>
    %41 = vector.shape_cast %40 : vector<2x8xf32> to vector<2x8x1xf32>
    %42 = tpu.reciprocal %41 {approx = true} : vector<2x8x1xf32> -> vector<2x8x1xf32>
    %43 = vector.broadcast %42 : vector<2x8x1xf32> to vector<2x8x8xf32>
    %44 = arith.mulf %39, %43 : vector<2x8x8xf32>
    %45 = arith.truncf %44 : vector<2x8x8xf32> to vector<2x8x8xbf16>
    %46 = arith.truncf %29 : vector<2x8x32xf32> to vector<2x8x32xbf16>
    %cst_18 = arith.constant dense<0.000000e+00> : vector<2x8x32xf32>
    %47 = tpu.matmul %45, %46, %cst_18 {dimension_numbers = #tpu.dot_dimension_numbers<[2], [1], [1], [2], [0, 0, 0, 1, 1, 2], [0], [0]>} : vector<2x8x8xbf16>, vector<2x8x32xbf16>, vector<2x8x32xf32> -> vector<2x8x32xf32>
    %48 = vector.shape_cast %47 : vector<2x8x32xf32> to vector<16x32xf32>
    %49 = vector.extract_strided_slice %21 {offsets = [0, 32], sizes = [16, 32], strides = [1, 1]} : vector<16x128xf32> to vector<16x32xf32>
    %50 = vector.shape_cast %49 : vector<16x32xf32> to vector<2x8x32xf32>
    %51 = vector.extract_strided_slice %22 {offsets = [0, 32], sizes = [16, 32], strides = [1, 1]} : vector<16x128xf32> to vector<16x32xf32>
    %52 = vector.shape_cast %51 : vector<16x32xf32> to vector<2x8x32xf32>
    %53 = vector.extract_strided_slice %23 {offsets = [0, 32], sizes = [16, 32], strides = [1, 1]} : vector<16x128xf32> to vector<16x32xf32>
    %54 = vector.shape_cast %53 : vector<16x32xf32> to vector<2x8x32xf32>
    %55 = arith.truncf %50 : vector<2x8x32xf32> to vector<2x8x32xbf16>
    %56 = arith.truncf %52 : vector<2x8x32xf32> to vector<2x8x32xbf16>
    %cst_19 = arith.constant dense<0.000000e+00> : vector<2x8x8xf32>
    %57 = tpu.matmul %55, %56, %cst_19 {dimension_numbers = #tpu.dot_dimension_numbers<[2], [2], [1], [1], [0, 0, 0, 1, 1, 1], [0], [0]>} : vector<2x8x32xbf16>, vector<2x8x32xbf16>, vector<2x8x8xf32> -> vector<2x8x8xf32>
    %cst_20 = arith.constant 0.176776692 : f32
    %58 = vector.broadcast %cst_20 : f32 to vector<2x8x8xf32>
    %59 = arith.mulf %57, %58 : vector<2x8x8xf32>
    %cst_21 = arith.constant dense<0xFF800000> : vector<2x8xf32>
    %60 = vector.multi_reduction <maximumf>, %59, %cst_21 [2] : vector<2x8x8xf32> to vector<2x8xf32>
    %61 = vector.shape_cast %60 : vector<2x8xf32> to vector<2x8x1xf32>
    %62 = vector.broadcast %61 : vector<2x8x1xf32> to vector<2x8x8xf32>
    %63 = arith.subf %59, %62 : vector<2x8x8xf32>
    %64 = math.exp %63 : vector<2x8x8xf32>
    %cst_22 = arith.constant dense<0.000000e+00> : vector<2x8xf32>
    %65 = vector.multi_reduction <add>, %64, %cst_22 [2] : vector<2x8x8xf32> to vector<2x8xf32>
    %66 = vector.shape_cast %65 : vector<2x8xf32> to vector<2x8x1xf32>
    %67 = tpu.reciprocal %66 {approx = true} : vector<2x8x1xf32> -> vector<2x8x1xf32>
    %68 = vector.broadcast %67 : vector<2x8x1xf32> to vector<2x8x8xf32>
    %69 = arith.mulf %64, %68 : vector<2x8x8xf32>
    %70 = arith.truncf %69 : vector<2x8x8xf32> to vector<2x8x8xbf16>
    %71 = arith.truncf %54 : vector<2x8x32xf32> to vector<2x8x32xbf16>
    %cst_23 = arith.constant dense<0.000000e+00> : vector<2x8x32xf32>
    %72 = tpu.matmul %70, %71, %cst_23 {dimension_numbers = #tpu.dot_dimension_numbers<[2], [1], [1], [2], [0, 0, 0, 1, 1, 2], [0], [0]>} : vector<2x8x8xbf16>, vector<2x8x32xbf16>, vector<2x8x32xf32> -> vector<2x8x32xf32>
    %73 = vector.shape_cast %72 : vector<2x8x32xf32> to vector<16x32xf32>
    %74 = vector.extract_strided_slice %21 {offsets = [0, 64], sizes = [16, 32], strides = [1, 1]} : vector<16x128xf32> to vector<16x32xf32>
    %75 = vector.shape_cast %74 : vector<16x32xf32> to vector<2x8x32xf32>
    %76 = vector.extract_strided_slice %22 {offsets = [0, 64], sizes = [16, 32], strides = [1, 1]} : vector<16x128xf32> to vector<16x32xf32>
    %77 = vector.shape_cast %76 : vector<16x32xf32> to vector<2x8x32xf32>
    %78 = vector.extract_strided_slice %23 {offsets = [0, 64], sizes = [16, 32], strides = [1, 1]} : vector<16x128xf32> to vector<16x32xf32>
    %79 = vector.shape_cast %78 : vector<16x32xf32> to vector<2x8x32xf32>
    %80 = arith.truncf %75 : vector<2x8x32xf32> to vector<2x8x32xbf16>
    %81 = arith.truncf %77 : vector<2x8x32xf32> to vector<2x8x32xbf16>
    %cst_24 = arith.constant dense<0.000000e+00> : vector<2x8x8xf32>
    %82 = tpu.matmul %80, %81, %cst_24 {dimension_numbers = #tpu.dot_dimension_numbers<[2], [2], [1], [1], [0, 0, 0, 1, 1, 1], [0], [0]>} : vector<2x8x32xbf16>, vector<2x8x32xbf16>, vector<2x8x8xf32> -> vector<2x8x8xf32>
    %cst_25 = arith.constant 0.176776692 : f32
    %83 = vector.broadcast %cst_25 : f32 to vector<2x8x8xf32>
    %84 = arith.mulf %82, %83 : vector<2x8x8xf32>
    %cst_26 = arith.constant dense<0xFF800000> : vector<2x8xf32>
    %85 = vector.multi_reduction <maximumf>, %84, %cst_26 [2] : vector<2x8x8xf32> to vector<2x8xf32>
    %86 = vector.shape_cast %85 : vector<2x8xf32> to vector<2x8x1xf32>
    %87 = vector.broadcast %86 : vector<2x8x1xf32> to vector<2x8x8xf32>
    %88 = arith.subf %84, %87 : vector<2x8x8xf32>
    %89 = math.exp %88 : vector<2x8x8xf32>
    %cst_27 = arith.constant dense<0.000000e+00> : vector<2x8xf32>
    %90 = vector.multi_reduction <add>, %89, %cst_27 [2] : vector<2x8x8xf32> to vector<2x8xf32>
    %91 = vector.shape_cast %90 : vector<2x8xf32> to vector<2x8x1xf32>
    %92 = tpu.reciprocal %91 {approx = true} : vector<2x8x1xf32> -> vector<2x8x1xf32>
    %93 = vector.broadcast %92 : vector<2x8x1xf32> to vector<2x8x8xf32>
    %94 = arith.mulf %89, %93 : vector<2x8x8xf32>
    %95 = arith.truncf %94 : vector<2x8x8xf32> to vector<2x8x8xbf16>
    %96 = arith.truncf %79 : vector<2x8x32xf32> to vector<2x8x32xbf16>
    %cst_28 = arith.constant dense<0.000000e+00> : vector<2x8x32xf32>
    %97 = tpu.matmul %95, %96, %cst_28 {dimension_numbers = #tpu.dot_dimension_numbers<[2], [1], [1], [2], [0, 0, 0, 1, 1, 2], [0], [0]>} : vector<2x8x8xbf16>, vector<2x8x32xbf16>, vector<2x8x32xf32> -> vector<2x8x32xf32>
    %98 = vector.shape_cast %97 : vector<2x8x32xf32> to vector<16x32xf32>
    %99 = vector.extract_strided_slice %21 {offsets = [0, 96], sizes = [16, 32], strides = [1, 1]} : vector<16x128xf32> to vector<16x32xf32>
    %100 = vector.shape_cast %99 : vector<16x32xf32> to vector<2x8x32xf32>
    %101 = vector.extract_strided_slice %22 {offsets = [0, 96], sizes = [16, 32], strides = [1, 1]} : vector<16x128xf32> to vector<16x32xf32>
    %102 = vector.shape_cast %101 : vector<16x32xf32> to vector<2x8x32xf32>
    %103 = vector.extract_strided_slice %23 {offsets = [0, 96], sizes = [16, 32], strides = [1, 1]} : vector<16x128xf32> to vector<16x32xf32>
    %104 = vector.shape_cast %103 : vector<16x32xf32> to vector<2x8x32xf32>
    %105 = arith.truncf %100 : vector<2x8x32xf32> to vector<2x8x32xbf16>
    %106 = arith.truncf %102 : vector<2x8x32xf32> to vector<2x8x32xbf16>
    %cst_29 = arith.constant dense<0.000000e+00> : vector<2x8x8xf32>
    %107 = tpu.matmul %105, %106, %cst_29 {dimension_numbers = #tpu.dot_dimension_numbers<[2], [2], [1], [1], [0, 0, 0, 1, 1, 1], [0], [0]>} : vector<2x8x32xbf16>, vector<2x8x32xbf16>, vector<2x8x8xf32> -> vector<2x8x8xf32>
    %cst_30 = arith.constant 0.176776692 : f32
    %108 = vector.broadcast %cst_30 : f32 to vector<2x8x8xf32>
    %109 = arith.mulf %107, %108 : vector<2x8x8xf32>
    %cst_31 = arith.constant dense<0xFF800000> : vector<2x8xf32>
    %110 = vector.multi_reduction <maximumf>, %109, %cst_31 [2] : vector<2x8x8xf32> to vector<2x8xf32>
    %111 = vector.shape_cast %110 : vector<2x8xf32> to vector<2x8x1xf32>
    %112 = vector.broadcast %111 : vector<2x8x1xf32> to vector<2x8x8xf32>
    %113 = arith.subf %109, %112 : vector<2x8x8xf32>
    %114 = math.exp %113 : vector<2x8x8xf32>
    %cst_32 = arith.constant dense<0.000000e+00> : vector<2x8xf32>
    %115 = vector.multi_reduction <add>, %114, %cst_32 [2] : vector<2x8x8xf32> to vector<2x8xf32>
    %116 = vector.shape_cast %115 : vector<2x8xf32> to vector<2x8x1xf32>
    %117 = tpu.reciprocal %116 {approx = true} : vector<2x8x1xf32> -> vector<2x8x1xf32>
    %118 = vector.broadcast %117 : vector<2x8x1xf32> to vector<2x8x8xf32>
    %119 = arith.mulf %114, %118 : vector<2x8x8xf32>
    %120 = arith.truncf %119 : vector<2x8x8xf32> to vector<2x8x8xbf16>
    %121 = arith.truncf %104 : vector<2x8x32xf32> to vector<2x8x32xbf16>
    %cst_33 = arith.constant dense<0.000000e+00> : vector<2x8x32xf32>
    %122 = tpu.matmul %120, %121, %cst_33 {dimension_numbers = #tpu.dot_dimension_numbers<[2], [1], [1], [2], [0, 0, 0, 1, 1, 2], [0], [0]>} : vector<2x8x8xbf16>, vector<2x8x32xbf16>, vector<2x8x32xf32> -> vector<2x8x32xf32>
    %123 = vector.shape_cast %122 : vector<2x8x32xf32> to vector<16x32xf32>
    %124 = tpu.concatenate %48, %73, %98, %123 in 1 : vector<16x32xf32>, vector<16x32xf32>, vector<16x32xf32>, vector<16x32xf32> -> vector<16x128xf32>
    %c0_34 = arith.constant 0 : index
    %c0_35 = arith.constant 0 : index
    %c0_36 = arith.constant 0 : index
    %125 = vector.load %arg6[%c0_34, %c0_35, %c0_36] : memref<2x128x128xbf16, #tpu.memory_space<vmem>>, vector<1x128x128xbf16>
    %126 = vector.shape_cast %125 : vector<1x128x128xbf16> to vector<128x128xbf16>
    %c0_37 = arith.constant 0 : index
    %c0_38 = arith.constant 0 : index
    %c0_39 = arith.constant 0 : index
    %127 = vector.load %arg7[%c0_37, %c0_38, %c0_39] : memref<2x1x128xf32, #tpu.memory_space<vmem>>, vector<1x1x128xf32>
    %128 = vector.shape_cast %127 : vector<1x1x128xf32> to vector<1x128xf32>
    %129 = arith.truncf %124 : vector<16x128xf32> to vector<16x128xbf16>
    %cst_40 = arith.constant dense<0.000000e+00> : vector<16x128xf32>
    %130 = tpu.matmul %129, %126, %cst_40 {dimension_numbers = #tpu.dot_dimension_numbers<[1], [0], [0], [1], [0, 0, 1, 1], [], []>} : vector<16x128xbf16>, vector<128x128xbf16>, vector<16x128xf32> -> vector<16x128xf32>
    %131 = vector.broadcast %128 : vector<1x128xf32> to vector<16x128xf32>
    %132 = arith.addf %130, %131 : vector<16x128xf32>
    %133 = arith.addf %12, %132 : vector<16x128xf32>
    %c0_41 = arith.constant 0 : index
    %c0_42 = arith.constant 0 : index
    %c0_43 = arith.constant 0 : index
    %134 = vector.load %arg8[%c0_41, %c0_42, %c0_43] : memref<2x1x128xf32, #tpu.memory_space<vmem>>, vector<1x1x128xf32>
    %135 = vector.shape_cast %134 : vector<1x1x128xf32> to vector<1x128xf32>
    %c0_44 = arith.constant 0 : index
    %c0_45 = arith.constant 0 : index
    %c0_46 = arith.constant 0 : index
    %136 = vector.load %arg9[%c0_44, %c0_45, %c0_46] : memref<2x1x128xf32, #tpu.memory_space<vmem>>, vector<1x1x128xf32>
    %137 = vector.shape_cast %136 : vector<1x1x128xf32> to vector<1x128xf32>
    %cst_47 = arith.constant dense<0.000000e+00> : vector<16xf32>
    %138 = vector.multi_reduction <add>, %133, %cst_47 [1] : vector<16x128xf32> to vector<16xf32>
    %139 = vector.shape_cast %138 : vector<16xf32> to vector<16x1xf32>
    %cst_48 = arith.constant 1.280000e+02 : f32
    %140 = vector.broadcast %cst_48 : f32 to vector<16x1xf32>
    %141 = arith.divf %139, %140 : vector<16x1xf32>
    %142 = vector.broadcast %141 : vector<16x1xf32> to vector<16x128xf32>
    %143 = arith.subf %133, %142 : vector<16x128xf32>
    %144 = arith.mulf %143, %143 : vector<16x128xf32>
    %cst_49 = arith.constant dense<0.000000e+00> : vector<16xf32>
    %145 = vector.multi_reduction <add>, %144, %cst_49 [1] : vector<16x128xf32> to vector<16xf32>
    %146 = vector.shape_cast %145 : vector<16xf32> to vector<16x1xf32>
    %cst_50 = arith.constant 1.280000e+02 : f32
    %147 = vector.broadcast %cst_50 : f32 to vector<16x1xf32>
    %148 = arith.divf %146, %147 : vector<16x1xf32>
    %cst_51 = arith.constant 9.99999974E-6 : f32
    %149 = vector.broadcast %cst_51 : f32 to vector<16x1xf32>
    %150 = arith.addf %148, %149 : vector<16x1xf32>
    %151 = math.rsqrt %150 : vector<16x1xf32>
    %152 = vector.broadcast %151 : vector<16x1xf32> to vector<16x128xf32>
    %153 = arith.mulf %143, %152 : vector<16x128xf32>
    %154 = vector.broadcast %135 : vector<1x128xf32> to vector<16x128xf32>
    %155 = arith.mulf %153, %154 : vector<16x128xf32>
    %156 = vector.broadcast %137 : vector<1x128xf32> to vector<16x128xf32>
    %157 = arith.addf %155, %156 : vector<16x128xf32>
    %c0_52 = arith.constant 0 : index
    %c0_53 = arith.constant 0 : index
    %c0_54 = arith.constant 0 : index
    %158 = vector.load %arg10[%c0_52, %c0_53, %c0_54] : memref<2x128x2048xbf16, #tpu.memory_space<vmem>>, vector<1x128x2048xbf16>
    %159 = vector.shape_cast %158 : vector<1x128x2048xbf16> to vector<128x2048xbf16>
    %c0_55 = arith.constant 0 : index
    %c0_56 = arith.constant 0 : index
    %c0_57 = arith.constant 0 : index
    %160 = vector.load %arg11[%c0_55, %c0_56, %c0_57] : memref<2x1x2048xf32, #tpu.memory_space<vmem>>, vector<1x1x2048xf32>
    %161 = vector.shape_cast %160 : vector<1x1x2048xf32> to vector<1x2048xf32>
    %162 = arith.truncf %157 : vector<16x128xf32> to vector<16x128xbf16>
    %cst_58 = arith.constant dense<0.000000e+00> : vector<16x2048xf32>
    %163 = tpu.matmul %162, %159, %cst_58 {dimension_numbers = #tpu.dot_dimension_numbers<[1], [0], [0], [1], [0, 0, 1, 1], [], []>} : vector<16x128xbf16>, vector<128x2048xbf16>, vector<16x2048xf32> -> vector<16x2048xf32>
    %164 = vector.broadcast %161 : vector<1x2048xf32> to vector<16x2048xf32>
    %165 = arith.addf %163, %164 : vector<16x2048xf32>
    %cst_59 = arith.constant 0.000000e+00 : f32
    %166 = vector.broadcast %cst_59 : f32 to vector<16x2048xf32>
    %167 = arith.maximumf %165, %166 : vector<16x2048xf32>
    %c0_60 = arith.constant 0 : index
    %c0_61 = arith.constant 0 : index
    %c0_62 = arith.constant 0 : index
    %168 = vector.load %arg12[%c0_60, %c0_61, %c0_62] : memref<2x2048x128xbf16, #tpu.memory_space<vmem>>, vector<1x2048x128xbf16>
    %169 = vector.shape_cast %168 : vector<1x2048x128xbf16> to vector<2048x128xbf16>
    %c0_63 = arith.constant 0 : index
    %c0_64 = arith.constant 0 : index
    %c0_65 = arith.constant 0 : index
    %170 = vector.load %arg13[%c0_63, %c0_64, %c0_65] : memref<2x1x128xf32, #tpu.memory_space<vmem>>, vector<1x1x128xf32>
    %171 = vector.shape_cast %170 : vector<1x1x128xf32> to vector<1x128xf32>
    %172 = arith.truncf %167 : vector<16x2048xf32> to vector<16x2048xbf16>
    %cst_66 = arith.constant dense<0.000000e+00> : vector<16x128xf32>
    %173 = tpu.matmul %172, %169, %cst_66 {dimension_numbers = #tpu.dot_dimension_numbers<[1], [0], [0], [1], [0, 0, 1, 1], [], []>} : vector<16x2048xbf16>, vector<2048x128xbf16>, vector<16x128xf32> -> vector<16x128xf32>
    %174 = vector.broadcast %171 : vector<1x128xf32> to vector<16x128xf32>
    %175 = arith.addf %173, %174 : vector<16x128xf32>
    %176 = arith.addf %157, %175 : vector<16x128xf32>
    %c0_67 = arith.constant 0 : index
    %c0_68 = arith.constant 0 : index
    %c0_69 = arith.constant 0 : index
    %177 = vector.load %arg14[%c0_67, %c0_68, %c0_69] : memref<2x1x128xf32, #tpu.memory_space<vmem>>, vector<1x1x128xf32>
    %178 = vector.shape_cast %177 : vector<1x1x128xf32> to vector<1x128xf32>
    %c0_70 = arith.constant 0 : index
    %c0_71 = arith.constant 0 : index
    %c0_72 = arith.constant 0 : index
    %179 = vector.load %arg15[%c0_70, %c0_71, %c0_72] : memref<2x1x128xf32, #tpu.memory_space<vmem>>, vector<1x1x128xf32>
    %180 = vector.shape_cast %179 : vector<1x1x128xf32> to vector<1x128xf32>
    %cst_73 = arith.constant dense<0.000000e+00> : vector<16xf32>
    %181 = vector.multi_reduction <add>, %176, %cst_73 [1] : vector<16x128xf32> to vector<16xf32>
    %182 = vector.shape_cast %181 : vector<16xf32> to vector<16x1xf32>
    %cst_74 = arith.constant 1.280000e+02 : f32
    %183 = vector.broadcast %cst_74 : f32 to vector<16x1xf32>
    %184 = arith.divf %182, %183 : vector<16x1xf32>
    %185 = vector.broadcast %184 : vector<16x1xf32> to vector<16x128xf32>
    %186 = arith.subf %176, %185 : vector<16x128xf32>
    %187 = arith.mulf %186, %186 : vector<16x128xf32>
    %cst_75 = arith.constant dense<0.000000e+00> : vector<16xf32>
    %188 = vector.multi_reduction <add>, %187, %cst_75 [1] : vector<16x128xf32> to vector<16xf32>
    %189 = vector.shape_cast %188 : vector<16xf32> to vector<16x1xf32>
    %cst_76 = arith.constant 1.280000e+02 : f32
    %190 = vector.broadcast %cst_76 : f32 to vector<16x1xf32>
    %191 = arith.divf %189, %190 : vector<16x1xf32>
    %cst_77 = arith.constant 9.99999974E-6 : f32
    %192 = vector.broadcast %cst_77 : f32 to vector<16x1xf32>
    %193 = arith.addf %191, %192 : vector<16x1xf32>
    %194 = math.rsqrt %193 : vector<16x1xf32>
    %195 = vector.broadcast %194 : vector<16x1xf32> to vector<16x128xf32>
    %196 = arith.mulf %186, %195 : vector<16x128xf32>
    %197 = vector.broadcast %178 : vector<1x128xf32> to vector<16x128xf32>
    %198 = arith.mulf %196, %197 : vector<16x128xf32>
    %199 = vector.broadcast %180 : vector<1x128xf32> to vector<16x128xf32>
    %200 = arith.addf %198, %199 : vector<16x128xf32>
    %c1 = arith.constant 1 : index
    %c0_78 = arith.constant 0 : index
    %c0_79 = arith.constant 0 : index
    %201 = vector.load %arg4[%c1, %c0_78, %c0_79] : memref<2x128x384xbf16, #tpu.memory_space<vmem>>, vector<1x128x384xbf16>
    %202 = vector.shape_cast %201 : vector<1x128x384xbf16> to vector<128x384xbf16>
    %c1_80 = arith.constant 1 : index
    %c0_81 = arith.constant 0 : index
    %c0_82 = arith.constant 0 : index
    %203 = vector.load %arg5[%c1_80, %c0_81, %c0_82] : memref<2x1x384xf32, #tpu.memory_space<vmem>>, vector<1x1x384xf32>
    %204 = vector.shape_cast %203 : vector<1x1x384xf32> to vector<1x384xf32>
    %205 = arith.truncf %200 : vector<16x128xf32> to vector<16x128xbf16>
    %cst_83 = arith.constant dense<0.000000e+00> : vector<16x384xf32>
    %206 = tpu.matmul %205, %202, %cst_83 {dimension_numbers = #tpu.dot_dimension_numbers<[1], [0], [0], [1], [0, 0, 1, 1], [], []>} : vector<16x128xbf16>, vector<128x384xbf16>, vector<16x384xf32> -> vector<16x384xf32>
    %207 = vector.broadcast %204 : vector<1x384xf32> to vector<16x384xf32>
    %208 = arith.addf %206, %207 : vector<16x384xf32>
    %209 = vector.extract_strided_slice %208 {offsets = [0, 0], sizes = [16, 128], strides = [1, 1]} : vector<16x384xf32> to vector<16x128xf32>
    %210 = vector.extract_strided_slice %208 {offsets = [0, 128], sizes = [16, 128], strides = [1, 1]} : vector<16x384xf32> to vector<16x128xf32>
    %211 = vector.extract_strided_slice %208 {offsets = [0, 256], sizes = [16, 128], strides = [1, 1]} : vector<16x384xf32> to vector<16x128xf32>
    %212 = vector.extract_strided_slice %209 {offsets = [0, 0], sizes = [16, 32], strides = [1, 1]} : vector<16x128xf32> to vector<16x32xf32>
    %213 = vector.shape_cast %212 : vector<16x32xf32> to vector<2x8x32xf32>
    %214 = vector.extract_strided_slice %210 {offsets = [0, 0], sizes = [16, 32], strides = [1, 1]} : vector<16x128xf32> to vector<16x32xf32>
    %215 = vector.shape_cast %214 : vector<16x32xf32> to vector<2x8x32xf32>
    %216 = vector.extract_strided_slice %211 {offsets = [0, 0], sizes = [16, 32], strides = [1, 1]} : vector<16x128xf32> to vector<16x32xf32>
    %217 = vector.shape_cast %216 : vector<16x32xf32> to vector<2x8x32xf32>
    %218 = arith.truncf %213 : vector<2x8x32xf32> to vector<2x8x32xbf16>
    %219 = arith.truncf %215 : vector<2x8x32xf32> to vector<2x8x32xbf16>
    %cst_84 = arith.constant dense<0.000000e+00> : vector<2x8x8xf32>
    %220 = tpu.matmul %218, %219, %cst_84 {dimension_numbers = #tpu.dot_dimension_numbers<[2], [2], [1], [1], [0, 0, 0, 1, 1, 1], [0], [0]>} : vector<2x8x32xbf16>, vector<2x8x32xbf16>, vector<2x8x8xf32> -> vector<2x8x8xf32>
    %cst_85 = arith.constant 0.176776692 : f32
    %221 = vector.broadcast %cst_85 : f32 to vector<2x8x8xf32>
    %222 = arith.mulf %220, %221 : vector<2x8x8xf32>
    %cst_86 = arith.constant dense<0xFF800000> : vector<2x8xf32>
    %223 = vector.multi_reduction <maximumf>, %222, %cst_86 [2] : vector<2x8x8xf32> to vector<2x8xf32>
    %224 = vector.shape_cast %223 : vector<2x8xf32> to vector<2x8x1xf32>
    %225 = vector.broadcast %224 : vector<2x8x1xf32> to vector<2x8x8xf32>
    %226 = arith.subf %222, %225 : vector<2x8x8xf32>
    %227 = math.exp %226 : vector<2x8x8xf32>
    %cst_87 = arith.constant dense<0.000000e+00> : vector<2x8xf32>
    %228 = vector.multi_reduction <add>, %227, %cst_87 [2] : vector<2x8x8xf32> to vector<2x8xf32>
    %229 = vector.shape_cast %228 : vector<2x8xf32> to vector<2x8x1xf32>
    %230 = tpu.reciprocal %229 {approx = true} : vector<2x8x1xf32> -> vector<2x8x1xf32>
    %231 = vector.broadcast %230 : vector<2x8x1xf32> to vector<2x8x8xf32>
    %232 = arith.mulf %227, %231 : vector<2x8x8xf32>
    %233 = arith.truncf %232 : vector<2x8x8xf32> to vector<2x8x8xbf16>
    %234 = arith.truncf %217 : vector<2x8x32xf32> to vector<2x8x32xbf16>
    %cst_88 = arith.constant dense<0.000000e+00> : vector<2x8x32xf32>
    %235 = tpu.matmul %233, %234, %cst_88 {dimension_numbers = #tpu.dot_dimension_numbers<[2], [1], [1], [2], [0, 0, 0, 1, 1, 2], [0], [0]>} : vector<2x8x8xbf16>, vector<2x8x32xbf16>, vector<2x8x32xf32> -> vector<2x8x32xf32>
    %236 = vector.shape_cast %235 : vector<2x8x32xf32> to vector<16x32xf32>
    %237 = vector.extract_strided_slice %209 {offsets = [0, 32], sizes = [16, 32], strides = [1, 1]} : vector<16x128xf32> to vector<16x32xf32>
    %238 = vector.shape_cast %237 : vector<16x32xf32> to vector<2x8x32xf32>
    %239 = vector.extract_strided_slice %210 {offsets = [0, 32], sizes = [16, 32], strides = [1, 1]} : vector<16x128xf32> to vector<16x32xf32>
    %240 = vector.shape_cast %239 : vector<16x32xf32> to vector<2x8x32xf32>
    %241 = vector.extract_strided_slice %211 {offsets = [0, 32], sizes = [16, 32], strides = [1, 1]} : vector<16x128xf32> to vector<16x32xf32>
    %242 = vector.shape_cast %241 : vector<16x32xf32> to vector<2x8x32xf32>
    %243 = arith.truncf %238 : vector<2x8x32xf32> to vector<2x8x32xbf16>
    %244 = arith.truncf %240 : vector<2x8x32xf32> to vector<2x8x32xbf16>
    %cst_89 = arith.constant dense<0.000000e+00> : vector<2x8x8xf32>
    %245 = tpu.matmul %243, %244, %cst_89 {dimension_numbers = #tpu.dot_dimension_numbers<[2], [2], [1], [1], [0, 0, 0, 1, 1, 1], [0], [0]>} : vector<2x8x32xbf16>, vector<2x8x32xbf16>, vector<2x8x8xf32> -> vector<2x8x8xf32>
    %cst_90 = arith.constant 0.176776692 : f32
    %246 = vector.broadcast %cst_90 : f32 to vector<2x8x8xf32>
    %247 = arith.mulf %245, %246 : vector<2x8x8xf32>
    %cst_91 = arith.constant dense<0xFF800000> : vector<2x8xf32>
    %248 = vector.multi_reduction <maximumf>, %247, %cst_91 [2] : vector<2x8x8xf32> to vector<2x8xf32>
    %249 = vector.shape_cast %248 : vector<2x8xf32> to vector<2x8x1xf32>
    %250 = vector.broadcast %249 : vector<2x8x1xf32> to vector<2x8x8xf32>
    %251 = arith.subf %247, %250 : vector<2x8x8xf32>
    %252 = math.exp %251 : vector<2x8x8xf32>
    %cst_92 = arith.constant dense<0.000000e+00> : vector<2x8xf32>
    %253 = vector.multi_reduction <add>, %252, %cst_92 [2] : vector<2x8x8xf32> to vector<2x8xf32>
    %254 = vector.shape_cast %253 : vector<2x8xf32> to vector<2x8x1xf32>
    %255 = tpu.reciprocal %254 {approx = true} : vector<2x8x1xf32> -> vector<2x8x1xf32>
    %256 = vector.broadcast %255 : vector<2x8x1xf32> to vector<2x8x8xf32>
    %257 = arith.mulf %252, %256 : vector<2x8x8xf32>
    %258 = arith.truncf %257 : vector<2x8x8xf32> to vector<2x8x8xbf16>
    %259 = arith.truncf %242 : vector<2x8x32xf32> to vector<2x8x32xbf16>
    %cst_93 = arith.constant dense<0.000000e+00> : vector<2x8x32xf32>
    %260 = tpu.matmul %258, %259, %cst_93 {dimension_numbers = #tpu.dot_dimension_numbers<[2], [1], [1], [2], [0, 0, 0, 1, 1, 2], [0], [0]>} : vector<2x8x8xbf16>, vector<2x8x32xbf16>, vector<2x8x32xf32> -> vector<2x8x32xf32>
    %261 = vector.shape_cast %260 : vector<2x8x32xf32> to vector<16x32xf32>
    %262 = vector.extract_strided_slice %209 {offsets = [0, 64], sizes = [16, 32], strides = [1, 1]} : vector<16x128xf32> to vector<16x32xf32>
    %263 = vector.shape_cast %262 : vector<16x32xf32> to vector<2x8x32xf32>
    %264 = vector.extract_strided_slice %210 {offsets = [0, 64], sizes = [16, 32], strides = [1, 1]} : vector<16x128xf32> to vector<16x32xf32>
    %265 = vector.shape_cast %264 : vector<16x32xf32> to vector<2x8x32xf32>
    %266 = vector.extract_strided_slice %211 {offsets = [0, 64], sizes = [16, 32], strides = [1, 1]} : vector<16x128xf32> to vector<16x32xf32>
    %267 = vector.shape_cast %266 : vector<16x32xf32> to vector<2x8x32xf32>
    %268 = arith.truncf %263 : vector<2x8x32xf32> to vector<2x8x32xbf16>
    %269 = arith.truncf %265 : vector<2x8x32xf32> to vector<2x8x32xbf16>
    %cst_94 = arith.constant dense<0.000000e+00> : vector<2x8x8xf32>
    %270 = tpu.matmul %268, %269, %cst_94 {dimension_numbers = #tpu.dot_dimension_numbers<[2], [2], [1], [1], [0, 0, 0, 1, 1, 1], [0], [0]>} : vector<2x8x32xbf16>, vector<2x8x32xbf16>, vector<2x8x8xf32> -> vector<2x8x8xf32>
    %cst_95 = arith.constant 0.176776692 : f32
    %271 = vector.broadcast %cst_95 : f32 to vector<2x8x8xf32>
    %272 = arith.mulf %270, %271 : vector<2x8x8xf32>
    %cst_96 = arith.constant dense<0xFF800000> : vector<2x8xf32>
    %273 = vector.multi_reduction <maximumf>, %272, %cst_96 [2] : vector<2x8x8xf32> to vector<2x8xf32>
    %274 = vector.shape_cast %273 : vector<2x8xf32> to vector<2x8x1xf32>
    %275 = vector.broadcast %274 : vector<2x8x1xf32> to vector<2x8x8xf32>
    %276 = arith.subf %272, %275 : vector<2x8x8xf32>
    %277 = math.exp %276 : vector<2x8x8xf32>
    %cst_97 = arith.constant dense<0.000000e+00> : vector<2x8xf32>
    %278 = vector.multi_reduction <add>, %277, %cst_97 [2] : vector<2x8x8xf32> to vector<2x8xf32>
    %279 = vector.shape_cast %278 : vector<2x8xf32> to vector<2x8x1xf32>
    %280 = tpu.reciprocal %279 {approx = true} : vector<2x8x1xf32> -> vector<2x8x1xf32>
    %281 = vector.broadcast %280 : vector<2x8x1xf32> to vector<2x8x8xf32>
    %282 = arith.mulf %277, %281 : vector<2x8x8xf32>
    %283 = arith.truncf %282 : vector<2x8x8xf32> to vector<2x8x8xbf16>
    %284 = arith.truncf %267 : vector<2x8x32xf32> to vector<2x8x32xbf16>
    %cst_98 = arith.constant dense<0.000000e+00> : vector<2x8x32xf32>
    %285 = tpu.matmul %283, %284, %cst_98 {dimension_numbers = #tpu.dot_dimension_numbers<[2], [1], [1], [2], [0, 0, 0, 1, 1, 2], [0], [0]>} : vector<2x8x8xbf16>, vector<2x8x32xbf16>, vector<2x8x32xf32> -> vector<2x8x32xf32>
    %286 = vector.shape_cast %285 : vector<2x8x32xf32> to vector<16x32xf32>
    %287 = vector.extract_strided_slice %209 {offsets = [0, 96], sizes = [16, 32], strides = [1, 1]} : vector<16x128xf32> to vector<16x32xf32>
    %288 = vector.shape_cast %287 : vector<16x32xf32> to vector<2x8x32xf32>
    %289 = vector.extract_strided_slice %210 {offsets = [0, 96], sizes = [16, 32], strides = [1, 1]} : vector<16x128xf32> to vector<16x32xf32>
    %290 = vector.shape_cast %289 : vector<16x32xf32> to vector<2x8x32xf32>
    %291 = vector.extract_strided_slice %211 {offsets = [0, 96], sizes = [16, 32], strides = [1, 1]} : vector<16x128xf32> to vector<16x32xf32>
    %292 = vector.shape_cast %291 : vector<16x32xf32> to vector<2x8x32xf32>
    %293 = arith.truncf %288 : vector<2x8x32xf32> to vector<2x8x32xbf16>
    %294 = arith.truncf %290 : vector<2x8x32xf32> to vector<2x8x32xbf16>
    %cst_99 = arith.constant dense<0.000000e+00> : vector<2x8x8xf32>
    %295 = tpu.matmul %293, %294, %cst_99 {dimension_numbers = #tpu.dot_dimension_numbers<[2], [2], [1], [1], [0, 0, 0, 1, 1, 1], [0], [0]>} : vector<2x8x32xbf16>, vector<2x8x32xbf16>, vector<2x8x8xf32> -> vector<2x8x8xf32>
    %cst_100 = arith.constant 0.176776692 : f32
    %296 = vector.broadcast %cst_100 : f32 to vector<2x8x8xf32>
    %297 = arith.mulf %295, %296 : vector<2x8x8xf32>
    %cst_101 = arith.constant dense<0xFF800000> : vector<2x8xf32>
    %298 = vector.multi_reduction <maximumf>, %297, %cst_101 [2] : vector<2x8x8xf32> to vector<2x8xf32>
    %299 = vector.shape_cast %298 : vector<2x8xf32> to vector<2x8x1xf32>
    %300 = vector.broadcast %299 : vector<2x8x1xf32> to vector<2x8x8xf32>
    %301 = arith.subf %297, %300 : vector<2x8x8xf32>
    %302 = math.exp %301 : vector<2x8x8xf32>
    %cst_102 = arith.constant dense<0.000000e+00> : vector<2x8xf32>
    %303 = vector.multi_reduction <add>, %302, %cst_102 [2] : vector<2x8x8xf32> to vector<2x8xf32>
    %304 = vector.shape_cast %303 : vector<2x8xf32> to vector<2x8x1xf32>
    %305 = tpu.reciprocal %304 {approx = true} : vector<2x8x1xf32> -> vector<2x8x1xf32>
    %306 = vector.broadcast %305 : vector<2x8x1xf32> to vector<2x8x8xf32>
    %307 = arith.mulf %302, %306 : vector<2x8x8xf32>
    %308 = arith.truncf %307 : vector<2x8x8xf32> to vector<2x8x8xbf16>
    %309 = arith.truncf %292 : vector<2x8x32xf32> to vector<2x8x32xbf16>
    %cst_103 = arith.constant dense<0.000000e+00> : vector<2x8x32xf32>
    %310 = tpu.matmul %308, %309, %cst_103 {dimension_numbers = #tpu.dot_dimension_numbers<[2], [1], [1], [2], [0, 0, 0, 1, 1, 2], [0], [0]>} : vector<2x8x8xbf16>, vector<2x8x32xbf16>, vector<2x8x32xf32> -> vector<2x8x32xf32>
    %311 = vector.shape_cast %310 : vector<2x8x32xf32> to vector<16x32xf32>
    %312 = tpu.concatenate %236, %261, %286, %311 in 1 : vector<16x32xf32>, vector<16x32xf32>, vector<16x32xf32>, vector<16x32xf32> -> vector<16x128xf32>
    %c1_104 = arith.constant 1 : index
    %c0_105 = arith.constant 0 : index
    %c0_106 = arith.constant 0 : index
    %313 = vector.load %arg6[%c1_104, %c0_105, %c0_106] : memref<2x128x128xbf16, #tpu.memory_space<vmem>>, vector<1x128x128xbf16>
    %314 = vector.shape_cast %313 : vector<1x128x128xbf16> to vector<128x128xbf16>
    %c1_107 = arith.constant 1 : index
    %c0_108 = arith.constant 0 : index
    %c0_109 = arith.constant 0 : index
    %315 = vector.load %arg7[%c1_107, %c0_108, %c0_109] : memref<2x1x128xf32, #tpu.memory_space<vmem>>, vector<1x1x128xf32>
    %316 = vector.shape_cast %315 : vector<1x1x128xf32> to vector<1x128xf32>
    %317 = arith.truncf %312 : vector<16x128xf32> to vector<16x128xbf16>
    %cst_110 = arith.constant dense<0.000000e+00> : vector<16x128xf32>
    %318 = tpu.matmul %317, %314, %cst_110 {dimension_numbers = #tpu.dot_dimension_numbers<[1], [0], [0], [1], [0, 0, 1, 1], [], []>} : vector<16x128xbf16>, vector<128x128xbf16>, vector<16x128xf32> -> vector<16x128xf32>
    %319 = vector.broadcast %316 : vector<1x128xf32> to vector<16x128xf32>
    %320 = arith.addf %318, %319 : vector<16x128xf32>
    %321 = arith.addf %200, %320 : vector<16x128xf32>
    %c1_111 = arith.constant 1 : index
    %c0_112 = arith.constant 0 : index
    %c0_113 = arith.constant 0 : index
    %322 = vector.load %arg8[%c1_111, %c0_112, %c0_113] : memref<2x1x128xf32, #tpu.memory_space<vmem>>, vector<1x1x128xf32>
    %323 = vector.shape_cast %322 : vector<1x1x128xf32> to vector<1x128xf32>
    %c1_114 = arith.constant 1 : index
    %c0_115 = arith.constant 0 : index
    %c0_116 = arith.constant 0 : index
    %324 = vector.load %arg9[%c1_114, %c0_115, %c0_116] : memref<2x1x128xf32, #tpu.memory_space<vmem>>, vector<1x1x128xf32>
    %325 = vector.shape_cast %324 : vector<1x1x128xf32> to vector<1x128xf32>
    %cst_117 = arith.constant dense<0.000000e+00> : vector<16xf32>
    %326 = vector.multi_reduction <add>, %321, %cst_117 [1] : vector<16x128xf32> to vector<16xf32>
    %327 = vector.shape_cast %326 : vector<16xf32> to vector<16x1xf32>
    %cst_118 = arith.constant 1.280000e+02 : f32
    %328 = vector.broadcast %cst_118 : f32 to vector<16x1xf32>
    %329 = arith.divf %327, %328 : vector<16x1xf32>
    %330 = vector.broadcast %329 : vector<16x1xf32> to vector<16x128xf32>
    %331 = arith.subf %321, %330 : vector<16x128xf32>
    %332 = arith.mulf %331, %331 : vector<16x128xf32>
    %cst_119 = arith.constant dense<0.000000e+00> : vector<16xf32>
    %333 = vector.multi_reduction <add>, %332, %cst_119 [1] : vector<16x128xf32> to vector<16xf32>
    %334 = vector.shape_cast %333 : vector<16xf32> to vector<16x1xf32>
    %cst_120 = arith.constant 1.280000e+02 : f32
    %335 = vector.broadcast %cst_120 : f32 to vector<16x1xf32>
    %336 = arith.divf %334, %335 : vector<16x1xf32>
    %cst_121 = arith.constant 9.99999974E-6 : f32
    %337 = vector.broadcast %cst_121 : f32 to vector<16x1xf32>
    %338 = arith.addf %336, %337 : vector<16x1xf32>
    %339 = math.rsqrt %338 : vector<16x1xf32>
    %340 = vector.broadcast %339 : vector<16x1xf32> to vector<16x128xf32>
    %341 = arith.mulf %331, %340 : vector<16x128xf32>
    %342 = vector.broadcast %323 : vector<1x128xf32> to vector<16x128xf32>
    %343 = arith.mulf %341, %342 : vector<16x128xf32>
    %344 = vector.broadcast %325 : vector<1x128xf32> to vector<16x128xf32>
    %345 = arith.addf %343, %344 : vector<16x128xf32>
    %c1_122 = arith.constant 1 : index
    %c0_123 = arith.constant 0 : index
    %c0_124 = arith.constant 0 : index
    %346 = vector.load %arg10[%c1_122, %c0_123, %c0_124] : memref<2x128x2048xbf16, #tpu.memory_space<vmem>>, vector<1x128x2048xbf16>
    %347 = vector.shape_cast %346 : vector<1x128x2048xbf16> to vector<128x2048xbf16>
    %c1_125 = arith.constant 1 : index
    %c0_126 = arith.constant 0 : index
    %c0_127 = arith.constant 0 : index
    %348 = vector.load %arg11[%c1_125, %c0_126, %c0_127] : memref<2x1x2048xf32, #tpu.memory_space<vmem>>, vector<1x1x2048xf32>
    %349 = vector.shape_cast %348 : vector<1x1x2048xf32> to vector<1x2048xf32>
    %350 = arith.truncf %345 : vector<16x128xf32> to vector<16x128xbf16>
    %cst_128 = arith.constant dense<0.000000e+00> : vector<16x2048xf32>
    %351 = tpu.matmul %350, %347, %cst_128 {dimension_numbers = #tpu.dot_dimension_numbers<[1], [0], [0], [1], [0, 0, 1, 1], [], []>} : vector<16x128xbf16>, vector<128x2048xbf16>, vector<16x2048xf32> -> vector<16x2048xf32>
    %352 = vector.broadcast %349 : vector<1x2048xf32> to vector<16x2048xf32>
    %353 = arith.addf %351, %352 : vector<16x2048xf32>
    %cst_129 = arith.constant 0.000000e+00 : f32
    %354 = vector.broadcast %cst_129 : f32 to vector<16x2048xf32>
    %355 = arith.maximumf %353, %354 : vector<16x2048xf32>
    %c1_130 = arith.constant 1 : index
    %c0_131 = arith.constant 0 : index
    %c0_132 = arith.constant 0 : index
    %356 = vector.load %arg12[%c1_130, %c0_131, %c0_132] : memref<2x2048x128xbf16, #tpu.memory_space<vmem>>, vector<1x2048x128xbf16>
    %357 = vector.shape_cast %356 : vector<1x2048x128xbf16> to vector<2048x128xbf16>
    %c1_133 = arith.constant 1 : index
    %c0_134 = arith.constant 0 : index
    %c0_135 = arith.constant 0 : index
    %358 = vector.load %arg13[%c1_133, %c0_134, %c0_135] : memref<2x1x128xf32, #tpu.memory_space<vmem>>, vector<1x1x128xf32>
    %359 = vector.shape_cast %358 : vector<1x1x128xf32> to vector<1x128xf32>
    %360 = arith.truncf %355 : vector<16x2048xf32> to vector<16x2048xbf16>
    %cst_136 = arith.constant dense<0.000000e+00> : vector<16x128xf32>
    %361 = tpu.matmul %360, %357, %cst_136 {dimension_numbers = #tpu.dot_dimension_numbers<[1], [0], [0], [1], [0, 0, 1, 1], [], []>} : vector<16x2048xbf16>, vector<2048x128xbf16>, vector<16x128xf32> -> vector<16x128xf32>
    %362 = vector.broadcast %359 : vector<1x128xf32> to vector<16x128xf32>
    %363 = arith.addf %361, %362 : vector<16x128xf32>
    %364 = arith.addf %345, %363 : vector<16x128xf32>
    %c1_137 = arith.constant 1 : index
    %c0_138 = arith.constant 0 : index
    %c0_139 = arith.constant 0 : index
    %365 = vector.load %arg14[%c1_137, %c0_138, %c0_139] : memref<2x1x128xf32, #tpu.memory_space<vmem>>, vector<1x1x128xf32>
    %366 = vector.shape_cast %365 : vector<1x1x128xf32> to vector<1x128xf32>
    %c1_140 = arith.constant 1 : index
    %c0_141 = arith.constant 0 : index
    %c0_142 = arith.constant 0 : index
    %367 = vector.load %arg15[%c1_140, %c0_141, %c0_142] : memref<2x1x128xf32, #tpu.memory_space<vmem>>, vector<1x1x128xf32>
    %368 = vector.shape_cast %367 : vector<1x1x128xf32> to vector<1x128xf32>
    %cst_143 = arith.constant dense<0.000000e+00> : vector<16xf32>
    %369 = vector.multi_reduction <add>, %364, %cst_143 [1] : vector<16x128xf32> to vector<16xf32>
    %370 = vector.shape_cast %369 : vector<16xf32> to vector<16x1xf32>
    %cst_144 = arith.constant 1.280000e+02 : f32
    %371 = vector.broadcast %cst_144 : f32 to vector<16x1xf32>
    %372 = arith.divf %370, %371 : vector<16x1xf32>
    %373 = vector.broadcast %372 : vector<16x1xf32> to vector<16x128xf32>
    %374 = arith.subf %364, %373 : vector<16x128xf32>
    %375 = arith.mulf %374, %374 : vector<16x128xf32>
    %cst_145 = arith.constant dense<0.000000e+00> : vector<16xf32>
    %376 = vector.multi_reduction <add>, %375, %cst_145 [1] : vector<16x128xf32> to vector<16xf32>
    %377 = vector.shape_cast %376 : vector<16xf32> to vector<16x1xf32>
    %cst_146 = arith.constant 1.280000e+02 : f32
    %378 = vector.broadcast %cst_146 : f32 to vector<16x1xf32>
    %379 = arith.divf %377, %378 : vector<16x1xf32>
    %cst_147 = arith.constant 9.99999974E-6 : f32
    %380 = vector.broadcast %cst_147 : f32 to vector<16x1xf32>
    %381 = arith.addf %379, %380 : vector<16x1xf32>
    %382 = math.rsqrt %381 : vector<16x1xf32>
    %383 = vector.broadcast %382 : vector<16x1xf32> to vector<16x128xf32>
    %384 = arith.mulf %374, %383 : vector<16x128xf32>
    %385 = vector.broadcast %366 : vector<1x128xf32> to vector<16x128xf32>
    %386 = arith.mulf %384, %385 : vector<16x128xf32>
    %387 = vector.broadcast %368 : vector<1x128xf32> to vector<16x128xf32>
    %388 = arith.addf %386, %387 : vector<16x128xf32>
    %c0_148 = arith.constant 0 : index
    %c0_149 = arith.constant 0 : index
    %389 = vector.load %arg16[%c0_148, %c0_149] : memref<128x32xbf16, #tpu.memory_space<vmem>>, vector<128x32xbf16>
    %c0_150 = arith.constant 0 : index
    %c0_151 = arith.constant 0 : index
    %390 = vector.load %arg17[%c0_150, %c0_151] : memref<1x32xf32, #tpu.memory_space<vmem>>, vector<1x32xf32>
    %391 = arith.truncf %388 : vector<16x128xf32> to vector<16x128xbf16>
    %cst_152 = arith.constant dense<0.000000e+00> : vector<16x32xf32>
    %392 = tpu.matmul %391, %389, %cst_152 {dimension_numbers = #tpu.dot_dimension_numbers<[1], [0], [0], [1], [0, 0, 1, 1], [], []>} : vector<16x128xbf16>, vector<128x32xbf16>, vector<16x32xf32> -> vector<16x32xf32>
    %393 = vector.broadcast %390 : vector<1x32xf32> to vector<16x32xf32>
    %394 = arith.addf %392, %393 : vector<16x32xf32>
    %c0_153 = arith.constant 0 : index
    %c0_154 = arith.constant 0 : index
    %395 = vector.load %arg18[%c0_153, %c0_154] : memref<32x512xbf16, #tpu.memory_space<vmem>>, vector<32x512xbf16>
    %c0_155 = arith.constant 0 : index
    %c0_156 = arith.constant 0 : index
    %396 = vector.load %arg19[%c0_155, %c0_156] : memref<1x512xf32, #tpu.memory_space<vmem>>, vector<1x512xf32>
    %397 = arith.truncf %0 : vector<16x32xf32> to vector<16x32xbf16>
    %cst_157 = arith.constant dense<0.000000e+00> : vector<16x512xf32>
    %398 = tpu.matmul %397, %395, %cst_157 {dimension_numbers = #tpu.dot_dimension_numbers<[1], [0], [0], [1], [0, 0, 1, 1], [], []>} : vector<16x32xbf16>, vector<32x512xbf16>, vector<16x512xf32> -> vector<16x512xf32>
    %399 = vector.broadcast %396 : vector<1x512xf32> to vector<16x512xf32>
    %400 = arith.addf %398, %399 : vector<16x512xf32>
    %401 = vector.shape_cast %400 : vector<16x512xf32> to vector<2x8x512xf32>
    %c0_158 = arith.constant 0 : index
    %c0_159 = arith.constant 0 : index
    %402 = vector.load %arg21[%c0_158, %c0_159] : memref<32x512xbf16, #tpu.memory_space<vmem>>, vector<32x512xbf16>
    %c0_160 = arith.constant 0 : index
    %c0_161 = arith.constant 0 : index
    %403 = vector.load %arg22[%c0_160, %c0_161] : memref<1x512xf32, #tpu.memory_space<vmem>>, vector<1x512xf32>
    %404 = arith.truncf %0 : vector<16x32xf32> to vector<16x32xbf16>
    %cst_162 = arith.constant dense<0.000000e+00> : vector<16x512xf32>
    %405 = tpu.matmul %404, %402, %cst_162 {dimension_numbers = #tpu.dot_dimension_numbers<[1], [0], [0], [1], [0, 0, 1, 1], [], []>} : vector<16x32xbf16>, vector<32x512xbf16>, vector<16x512xf32> -> vector<16x512xf32>
    %406 = vector.broadcast %403 : vector<1x512xf32> to vector<16x512xf32>
    %407 = arith.addf %405, %406 : vector<16x512xf32>
    %408 = vector.shape_cast %407 : vector<16x512xf32> to vector<2x8x512xf32>
    %cst_163 = arith.constant 0.000000e+00 : f32
    %409 = vector.broadcast %cst_163 : f32 to vector<2x128xf32>
    %cst_164 = arith.constant 0.000000e+00 : f32
    %410 = vector.broadcast %cst_164 : f32 to vector<2x128xf32>
    %cst_165 = arith.constant 0.000000e+00 : f32
    %411 = vector.broadcast %cst_165 : f32 to vector<2x128xf32>
    %cst_166 = arith.constant 0.000000e+00 : f32
    %412 = vector.broadcast %cst_166 : f32 to vector<2x128xf32>
    %413 = vector.extract_strided_slice %401 {offsets = [0, 0, 0], sizes = [2, 1, 512], strides = [1, 1, 1]} : vector<2x8x512xf32> to vector<2x1x512xf32>
    %414 = vector.shape_cast %413 : vector<2x1x512xf32> to vector<2x512xf32>
    %c0_167 = arith.constant 0 : index
    %c0_168 = arith.constant 0 : index
    %415 = vector.load %arg20[%c0_167, %c0_168] : memref<128x512xbf16, #tpu.memory_space<vmem>>, vector<128x512xbf16>
    %416 = arith.truncf %409 : vector<2x128xf32> to vector<2x128xbf16>
    %cst_169 = arith.constant dense<0.000000e+00> : vector<2x512xf32>
    %417 = tpu.matmul %416, %415, %cst_169 {dimension_numbers = #tpu.dot_dimension_numbers<[1], [0], [0], [1], [0, 0, 1, 1], [], []>} : vector<2x128xbf16>, vector<128x512xbf16>, vector<2x512xf32> -> vector<2x512xf32>
    %418 = arith.addf %414, %417 : vector<2x512xf32>
    %419 = vector.extract_strided_slice %408 {offsets = [0, 7, 0], sizes = [2, 1, 512], strides = [1, 1, 1]} : vector<2x8x512xf32> to vector<2x1x512xf32>
    %420 = vector.shape_cast %419 : vector<2x1x512xf32> to vector<2x512xf32>
    %c0_170 = arith.constant 0 : index
    %c0_171 = arith.constant 0 : index
    %421 = vector.load %arg23[%c0_170, %c0_171] : memref<128x512xbf16, #tpu.memory_space<vmem>>, vector<128x512xbf16>
    %422 = arith.truncf %411 : vector<2x128xf32> to vector<2x128xbf16>
    %cst_172 = arith.constant dense<0.000000e+00> : vector<2x512xf32>
    %423 = tpu.matmul %422, %421, %cst_172 {dimension_numbers = #tpu.dot_dimension_numbers<[1], [0], [0], [1], [0, 0, 1, 1], [], []>} : vector<2x128xbf16>, vector<128x512xbf16>, vector<2x512xf32> -> vector<2x512xf32>
    %424 = arith.addf %420, %423 : vector<2x512xf32>
    %425 = vector.extract_strided_slice %418 {offsets = [0, 0], sizes = [2, 128], strides = [1, 1]} : vector<2x512xf32> to vector<2x128xf32>
    %426 = arith.negf %425 : vector<2x128xf32>
    %427 = math.exp %426 : vector<2x128xf32>
    %cst_173 = arith.constant 1.000000e+00 : f32
    %428 = vector.broadcast %cst_173 : f32 to vector<2x128xf32>
    %429 = arith.addf %428, %427 : vector<2x128xf32>
    %430 = arith.divf %428, %429 : vector<2x128xf32>
    %431 = vector.extract_strided_slice %418 {offsets = [0, 128], sizes = [2, 128], strides = [1, 1]} : vector<2x512xf32> to vector<2x128xf32>
    %432 = arith.negf %431 : vector<2x128xf32>
    %433 = math.exp %432 : vector<2x128xf32>
    %cst_174 = arith.constant 1.000000e+00 : f32
    %434 = vector.broadcast %cst_174 : f32 to vector<2x128xf32>
    %435 = arith.addf %434, %433 : vector<2x128xf32>
    %436 = arith.divf %434, %435 : vector<2x128xf32>
    %437 = vector.extract_strided_slice %418 {offsets = [0, 256], sizes = [2, 128], strides = [1, 1]} : vector<2x512xf32> to vector<2x128xf32>
    %438 = math.tanh %437 : vector<2x128xf32>
    %439 = vector.extract_strided_slice %418 {offsets = [0, 384], sizes = [2, 128], strides = [1, 1]} : vector<2x512xf32> to vector<2x128xf32>
    %440 = arith.negf %439 : vector<2x128xf32>
    %441 = math.exp %440 : vector<2x128xf32>
    %cst_175 = arith.constant 1.000000e+00 : f32
    %442 = vector.broadcast %cst_175 : f32 to vector<2x128xf32>
    %443 = arith.addf %442, %441 : vector<2x128xf32>
    %444 = arith.divf %442, %443 : vector<2x128xf32>
    %445 = arith.mulf %436, %410 : vector<2x128xf32>
    %446 = arith.mulf %430, %438 : vector<2x128xf32>
    %447 = arith.addf %445, %446 : vector<2x128xf32>
    %448 = math.tanh %447 : vector<2x128xf32>
    %449 = arith.mulf %444, %448 : vector<2x128xf32>
    %450 = vector.extract_strided_slice %424 {offsets = [0, 0], sizes = [2, 128], strides = [1, 1]} : vector<2x512xf32> to vector<2x128xf32>
    %451 = arith.negf %450 : vector<2x128xf32>
    %452 = math.exp %451 : vector<2x128xf32>
    %cst_176 = arith.constant 1.000000e+00 : f32
    %453 = vector.broadcast %cst_176 : f32 to vector<2x128xf32>
    %454 = arith.addf %453, %452 : vector<2x128xf32>
    %455 = arith.divf %453, %454 : vector<2x128xf32>
    %456 = vector.extract_strided_slice %424 {offsets = [0, 128], sizes = [2, 128], strides = [1, 1]} : vector<2x512xf32> to vector<2x128xf32>
    %457 = arith.negf %456 : vector<2x128xf32>
    %458 = math.exp %457 : vector<2x128xf32>
    %cst_177 = arith.constant 1.000000e+00 : f32
    %459 = vector.broadcast %cst_177 : f32 to vector<2x128xf32>
    %460 = arith.addf %459, %458 : vector<2x128xf32>
    %461 = arith.divf %459, %460 : vector<2x128xf32>
    %462 = vector.extract_strided_slice %424 {offsets = [0, 256], sizes = [2, 128], strides = [1, 1]} : vector<2x512xf32> to vector<2x128xf32>
    %463 = math.tanh %462 : vector<2x128xf32>
    %464 = vector.extract_strided_slice %424 {offsets = [0, 384], sizes = [2, 128], strides = [1, 1]} : vector<2x512xf32> to vector<2x128xf32>
    %465 = arith.negf %464 : vector<2x128xf32>
    %466 = math.exp %465 : vector<2x128xf32>
    %cst_178 = arith.constant 1.000000e+00 : f32
    %467 = vector.broadcast %cst_178 : f32 to vector<2x128xf32>
    %468 = arith.addf %467, %466 : vector<2x128xf32>
    %469 = arith.divf %467, %468 : vector<2x128xf32>
    %470 = arith.mulf %461, %412 : vector<2x128xf32>
    %471 = arith.mulf %455, %463 : vector<2x128xf32>
    %472 = arith.addf %470, %471 : vector<2x128xf32>
    %473 = math.tanh %472 : vector<2x128xf32>
    %474 = arith.mulf %469, %473 : vector<2x128xf32>
    %c0_179 = arith.constant 0 : index
    %c0_180 = arith.constant 0 : index
    %c0_181 = arith.constant 0 : index
    %475 = vector.load %arg28[%c0_179, %c0_180, %c0_181] : memref<2x8x256xf32, #tpu.memory_space<vmem>>, vector<2x1x128xf32>
    %476 = vector.shape_cast %475 : vector<2x1x128xf32> to vector<2x128xf32>
    %477 = vector.shape_cast %449 : vector<2x128xf32> to vector<2x1x128xf32>
    tpu.vector_store %arg28[%c0_179, %c0_180, %c0_181], %477 {strides = array<i32>} : memref<2x8x256xf32, #tpu.memory_space<vmem>>, vector<2x1x128xf32>,
    %c0_182 = arith.constant 0 : index
    %c7 = arith.constant 7 : index
    %c128 = arith.constant 128 : index
    %478 = vector.load %arg28[%c0_182, %c7, %c128] : memref<2x8x256xf32, #tpu.memory_space<vmem>>, vector<2x1x128xf32>
    %479 = vector.shape_cast %478 : vector<2x1x128xf32> to vector<2x128xf32>
    %480 = vector.shape_cast %474 : vector<2x128xf32> to vector<2x1x128xf32>
    tpu.vector_store %arg28[%c0_182, %c7, %c128], %480 {strides = array<i32>} : memref<2x8x256xf32, #tpu.memory_space<vmem>>, vector<2x1x128xf32>,
    %481 = vector.extract_strided_slice %401 {offsets = [0, 1, 0], sizes = [2, 1, 512], strides = [1, 1, 1]} : vector<2x8x512xf32> to vector<2x1x512xf32>
    %482 = vector.shape_cast %481 : vector<2x1x512xf32> to vector<2x512xf32>
    %c0_183 = arith.constant 0 : index
    %c0_184 = arith.constant 0 : index
    %483 = vector.load %arg20[%c0_183, %c0_184] : memref<128x512xbf16, #tpu.memory_space<vmem>>, vector<128x512xbf16>
    %484 = arith.truncf %449 : vector<2x128xf32> to vector<2x128xbf16>
    %cst_185 = arith.constant dense<0.000000e+00> : vector<2x512xf32>
    %485 = tpu.matmul %484, %483, %cst_185 {dimension_numbers = #tpu.dot_dimension_numbers<[1], [0], [0], [1], [0, 0, 1, 1], [], []>} : vector<2x128xbf16>, vector<128x512xbf16>, vector<2x512xf32> -> vector<2x512xf32>
    %486 = arith.addf %482, %485 : vector<2x512xf32>
    %487 = vector.extract_strided_slice %408 {offsets = [0, 6, 0], sizes = [2, 1, 512], strides = [1, 1, 1]} : vector<2x8x512xf32> to vector<2x1x512xf32>
    %488 = vector.shape_cast %487 : vector<2x1x512xf32> to vector<2x512xf32>
    %c0_186 = arith.constant 0 : index
    %c0_187 = arith.constant 0 : index
    %489 = vector.load %arg23[%c0_186, %c0_187] : memref<128x512xbf16, #tpu.memory_space<vmem>>, vector<128x512xbf16>
    %490 = arith.truncf %474 : vector<2x128xf32> to vector<2x128xbf16>
    %cst_188 = arith.constant dense<0.000000e+00> : vector<2x512xf32>
    %491 = tpu.matmul %490, %489, %cst_188 {dimension_numbers = #tpu.dot_dimension_numbers<[1], [0], [0], [1], [0, 0, 1, 1], [], []>} : vector<2x128xbf16>, vector<128x512xbf16>, vector<2x512xf32> -> vector<2x512xf32>
    %492 = arith.addf %488, %491 : vector<2x512xf32>
    %493 = vector.extract_strided_slice %486 {offsets = [0, 0], sizes = [2, 128], strides = [1, 1]} : vector<2x512xf32> to vector<2x128xf32>
    %494 = arith.negf %493 : vector<2x128xf32>
    %495 = math.exp %494 : vector<2x128xf32>
    %cst_189 = arith.constant 1.000000e+00 : f32
    %496 = vector.broadcast %cst_189 : f32 to vector<2x128xf32>
    %497 = arith.addf %496, %495 : vector<2x128xf32>
    %498 = arith.divf %496, %497 : vector<2x128xf32>
    %499 = vector.extract_strided_slice %486 {offsets = [0, 128], sizes = [2, 128], strides = [1, 1]} : vector<2x512xf32> to vector<2x128xf32>
    %500 = arith.negf %499 : vector<2x128xf32>
    %501 = math.exp %500 : vector<2x128xf32>
    %cst_190 = arith.constant 1.000000e+00 : f32
    %502 = vector.broadcast %cst_190 : f32 to vector<2x128xf32>
    %503 = arith.addf %502, %501 : vector<2x128xf32>
    %504 = arith.divf %502, %503 : vector<2x128xf32>
    %505 = vector.extract_strided_slice %486 {offsets = [0, 256], sizes = [2, 128], strides = [1, 1]} : vector<2x512xf32> to vector<2x128xf32>
    %506 = math.tanh %505 : vector<2x128xf32>
    %507 = vector.extract_strided_slice %486 {offsets = [0, 384], sizes = [2, 128], strides = [1, 1]} : vector<2x512xf32> to vector<2x128xf32>
    %508 = arith.negf %507 : vector<2x128xf32>
    %509 = math.exp %508 : vector<2x128xf32>
    %cst_191 = arith.constant 1.000000e+00 : f32
    %510 = vector.broadcast %cst_191 : f32 to vector<2x128xf32>
    %511 = arith.addf %510, %509 : vector<2x128xf32>
    %512 = arith.divf %510, %511 : vector<2x128xf32>
    %513 = arith.mulf %504, %447 : vector<2x128xf32>
    %514 = arith.mulf %498, %506 : vector<2x128xf32>
    %515 = arith.addf %513, %514 : vector<2x128xf32>
    %516 = math.tanh %515 : vector<2x128xf32>
    %517 = arith.mulf %512, %516 : vector<2x128xf32>
    %518 = vector.extract_strided_slice %492 {offsets = [0, 0], sizes = [2, 128], strides = [1, 1]} : vector<2x512xf32> to vector<2x128xf32>
    %519 = arith.negf %518 : vector<2x128xf32>
    %520 = math.exp %519 : vector<2x128xf32>
    %cst_192 = arith.constant 1.000000e+00 : f32
    %521 = vector.broadcast %cst_192 : f32 to vector<2x128xf32>
    %522 = arith.addf %521, %520 : vector<2x128xf32>
    %523 = arith.divf %521, %522 : vector<2x128xf32>
    %524 = vector.extract_strided_slice %492 {offsets = [0, 128], sizes = [2, 128], strides = [1, 1]} : vector<2x512xf32> to vector<2x128xf32>
    %525 = arith.negf %524 : vector<2x128xf32>
    %526 = math.exp %525 : vector<2x128xf32>
    %cst_193 = arith.constant 1.000000e+00 : f32
    %527 = vector.broadcast %cst_193 : f32 to vector<2x128xf32>
    %528 = arith.addf %527, %526 : vector<2x128xf32>
    %529 = arith.divf %527, %528 : vector<2x128xf32>
    %530 = vector.extract_strided_slice %492 {offsets = [0, 256], sizes = [2, 128], strides = [1, 1]} : vector<2x512xf32> to vector<2x128xf32>
    %531 = math.tanh %530 : vector<2x128xf32>
    %532 = vector.extract_strided_slice %492 {offsets = [0, 384], sizes = [2, 128], strides = [1, 1]} : vector<2x512xf32> to vector<2x128xf32>
    %533 = arith.negf %532 : vector<2x128xf32>
    %534 = math.exp %533 : vector<2x128xf32>
    %cst_194 = arith.constant 1.000000e+00 : f32
    %535 = vector.broadcast %cst_194 : f32 to vector<2x128xf32>
    %536 = arith.addf %535, %534 : vector<2x128xf32>
    %537 = arith.divf %535, %536 : vector<2x128xf32>
    %538 = arith.mulf %529, %472 : vector<2x128xf32>
    %539 = arith.mulf %523, %531 : vector<2x128xf32>
    %540 = arith.addf %538, %539 : vector<2x128xf32>
    %541 = math.tanh %540 : vector<2x128xf32>
    %542 = arith.mulf %537, %541 : vector<2x128xf32>
    %c0_195 = arith.constant 0 : index
    %c1_196 = arith.constant 1 : index
    %c0_197 = arith.constant 0 : index
    %543 = vector.load %arg28[%c0_195, %c1_196, %c0_197] : memref<2x8x256xf32, #tpu.memory_space<vmem>>, vector<2x1x128xf32>
    %544 = vector.shape_cast %543 : vector<2x1x128xf32> to vector<2x128xf32>
    %545 = vector.shape_cast %517 : vector<2x128xf32> to vector<2x1x128xf32>
    tpu.vector_store %arg28[%c0_195, %c1_196, %c0_197], %545 {strides = array<i32>} : memref<2x8x256xf32, #tpu.memory_space<vmem>>, vector<2x1x128xf32>,
    %c0_198 = arith.constant 0 : index
    %c6 = arith.constant 6 : index
    %c128_199 = arith.constant 128 : index
    %546 = vector.load %arg28[%c0_198, %c6, %c128_199] : memref<2x8x256xf32, #tpu.memory_space<vmem>>, vector<2x1x128xf32>
    %547 = vector.shape_cast %546 : vector<2x1x128xf32> to vector<2x128xf32>
    %548 = vector.shape_cast %542 : vector<2x128xf32> to vector<2x1x128xf32>
    tpu.vector_store %arg28[%c0_198, %c6, %c128_199], %548 {strides = array<i32>} : memref<2x8x256xf32, #tpu.memory_space<vmem>>, vector<2x1x128xf32>,
    %549 = vector.extract_strided_slice %401 {offsets = [0, 2, 0], sizes = [2, 1, 512], strides = [1, 1, 1]} : vector<2x8x512xf32> to vector<2x1x512xf32>
    %550 = vector.shape_cast %549 : vector<2x1x512xf32> to vector<2x512xf32>
    %c0_200 = arith.constant 0 : index
    %c0_201 = arith.constant 0 : index
    %551 = vector.load %arg20[%c0_200, %c0_201] : memref<128x512xbf16, #tpu.memory_space<vmem>>, vector<128x512xbf16>
    %552 = arith.truncf %517 : vector<2x128xf32> to vector<2x128xbf16>
    %cst_202 = arith.constant dense<0.000000e+00> : vector<2x512xf32>
    %553 = tpu.matmul %552, %551, %cst_202 {dimension_numbers = #tpu.dot_dimension_numbers<[1], [0], [0], [1], [0, 0, 1, 1], [], []>} : vector<2x128xbf16>, vector<128x512xbf16>, vector<2x512xf32> -> vector<2x512xf32>
    %554 = arith.addf %550, %553 : vector<2x512xf32>
    %555 = vector.extract_strided_slice %408 {offsets = [0, 5, 0], sizes = [2, 1, 512], strides = [1, 1, 1]} : vector<2x8x512xf32> to vector<2x1x512xf32>
    %556 = vector.shape_cast %555 : vector<2x1x512xf32> to vector<2x512xf32>
    %c0_203 = arith.constant 0 : index
    %c0_204 = arith.constant 0 : index
    %557 = vector.load %arg23[%c0_203, %c0_204] : memref<128x512xbf16, #tpu.memory_space<vmem>>, vector<128x512xbf16>
    %558 = arith.truncf %542 : vector<2x128xf32> to vector<2x128xbf16>
    %cst_205 = arith.constant dense<0.000000e+00> : vector<2x512xf32>
    %559 = tpu.matmul %558, %557, %cst_205 {dimension_numbers = #tpu.dot_dimension_numbers<[1], [0], [0], [1], [0, 0, 1, 1], [], []>} : vector<2x128xbf16>, vector<128x512xbf16>, vector<2x512xf32> -> vector<2x512xf32>
    %560 = arith.addf %556, %559 : vector<2x512xf32>
    %561 = vector.extract_strided_slice %554 {offsets = [0, 0], sizes = [2, 128], strides = [1, 1]} : vector<2x512xf32> to vector<2x128xf32>
    %562 = arith.negf %561 : vector<2x128xf32>
    %563 = math.exp %562 : vector<2x128xf32>
    %cst_206 = arith.constant 1.000000e+00 : f32
    %564 = vector.broadcast %cst_206 : f32 to vector<2x128xf32>
    %565 = arith.addf %564, %563 : vector<2x128xf32>
    %566 = arith.divf %564, %565 : vector<2x128xf32>
    %567 = vector.extract_strided_slice %554 {offsets = [0, 128], sizes = [2, 128], strides = [1, 1]} : vector<2x512xf32> to vector<2x128xf32>
    %568 = arith.negf %567 : vector<2x128xf32>
    %569 = math.exp %568 : vector<2x128xf32>
    %cst_207 = arith.constant 1.000000e+00 : f32
    %570 = vector.broadcast %cst_207 : f32 to vector<2x128xf32>
    %571 = arith.addf %570, %569 : vector<2x128xf32>
    %572 = arith.divf %570, %571 : vector<2x128xf32>
    %573 = vector.extract_strided_slice %554 {offsets = [0, 256], sizes = [2, 128], strides = [1, 1]} : vector<2x512xf32> to vector<2x128xf32>
    %574 = math.tanh %573 : vector<2x128xf32>
    %575 = vector.extract_strided_slice %554 {offsets = [0, 384], sizes = [2, 128], strides = [1, 1]} : vector<2x512xf32> to vector<2x128xf32>
    %576 = arith.negf %575 : vector<2x128xf32>
    %577 = math.exp %576 : vector<2x128xf32>
    %cst_208 = arith.constant 1.000000e+00 : f32
    %578 = vector.broadcast %cst_208 : f32 to vector<2x128xf32>
    %579 = arith.addf %578, %577 : vector<2x128xf32>
    %580 = arith.divf %578, %579 : vector<2x128xf32>
    %581 = arith.mulf %572, %515 : vector<2x128xf32>
    %582 = arith.mulf %566, %574 : vector<2x128xf32>
    %583 = arith.addf %581, %582 : vector<2x128xf32>
    %584 = math.tanh %583 : vector<2x128xf32>
    %585 = arith.mulf %580, %584 : vector<2x128xf32>
    %586 = vector.extract_strided_slice %560 {offsets = [0, 0], sizes = [2, 128], strides = [1, 1]} : vector<2x512xf32> to vector<2x128xf32>
    %587 = arith.negf %586 : vector<2x128xf32>
    %588 = math.exp %587 : vector<2x128xf32>
    %cst_209 = arith.constant 1.000000e+00 : f32
    %589 = vector.broadcast %cst_209 : f32 to vector<2x128xf32>
    %590 = arith.addf %589, %588 : vector<2x128xf32>
    %591 = arith.divf %589, %590 : vector<2x128xf32>
    %592 = vector.extract_strided_slice %560 {offsets = [0, 128], sizes = [2, 128], strides = [1, 1]} : vector<2x512xf32> to vector<2x128xf32>
    %593 = arith.negf %592 : vector<2x128xf32>
    %594 = math.exp %593 : vector<2x128xf32>
    %cst_210 = arith.constant 1.000000e+00 : f32
    %595 = vector.broadcast %cst_210 : f32 to vector<2x128xf32>
    %596 = arith.addf %595, %594 : vector<2x128xf32>
    %597 = arith.divf %595, %596 : vector<2x128xf32>
    %598 = vector.extract_strided_slice %560 {offsets = [0, 256], sizes = [2, 128], strides = [1, 1]} : vector<2x512xf32> to vector<2x128xf32>
    %599 = math.tanh %598 : vector<2x128xf32>
    %600 = vector.extract_strided_slice %560 {offsets = [0, 384], sizes = [2, 128], strides = [1, 1]} : vector<2x512xf32> to vector<2x128xf32>
    %601 = arith.negf %600 : vector<2x128xf32>
    %602 = math.exp %601 : vector<2x128xf32>
    %cst_211 = arith.constant 1.000000e+00 : f32
    %603 = vector.broadcast %cst_211 : f32 to vector<2x128xf32>
    %604 = arith.addf %603, %602 : vector<2x128xf32>
    %605 = arith.divf %603, %604 : vector<2x128xf32>
    %606 = arith.mulf %597, %540 : vector<2x128xf32>
    %607 = arith.mulf %591, %599 : vector<2x128xf32>
    %608 = arith.addf %606, %607 : vector<2x128xf32>
    %609 = math.tanh %608 : vector<2x128xf32>
    %610 = arith.mulf %605, %609 : vector<2x128xf32>
    %c0_212 = arith.constant 0 : index
    %c2 = arith.constant 2 : index
    %c0_213 = arith.constant 0 : index
    %611 = vector.load %arg28[%c0_212, %c2, %c0_213] : memref<2x8x256xf32, #tpu.memory_space<vmem>>, vector<2x1x128xf32>
    %612 = vector.shape_cast %611 : vector<2x1x128xf32> to vector<2x128xf32>
    %613 = vector.shape_cast %585 : vector<2x128xf32> to vector<2x1x128xf32>
    tpu.vector_store %arg28[%c0_212, %c2, %c0_213], %613 {strides = array<i32>} : memref<2x8x256xf32, #tpu.memory_space<vmem>>, vector<2x1x128xf32>,
    %c0_214 = arith.constant 0 : index
    %c5 = arith.constant 5 : index
    %c128_215 = arith.constant 128 : index
    %614 = vector.load %arg28[%c0_214, %c5, %c128_215] : memref<2x8x256xf32, #tpu.memory_space<vmem>>, vector<2x1x128xf32>
    %615 = vector.shape_cast %614 : vector<2x1x128xf32> to vector<2x128xf32>
    %616 = vector.shape_cast %610 : vector<2x128xf32> to vector<2x1x128xf32>
    tpu.vector_store %arg28[%c0_214, %c5, %c128_215], %616 {strides = array<i32>} : memref<2x8x256xf32, #tpu.memory_space<vmem>>, vector<2x1x128xf32>,
    %617 = vector.extract_strided_slice %401 {offsets = [0, 3, 0], sizes = [2, 1, 512], strides = [1, 1, 1]} : vector<2x8x512xf32> to vector<2x1x512xf32>
    %618 = vector.shape_cast %617 : vector<2x1x512xf32> to vector<2x512xf32>
    %c0_216 = arith.constant 0 : index
    %c0_217 = arith.constant 0 : index
    %619 = vector.load %arg20[%c0_216, %c0_217] : memref<128x512xbf16, #tpu.memory_space<vmem>>, vector<128x512xbf16>
    %620 = arith.truncf %585 : vector<2x128xf32> to vector<2x128xbf16>
    %cst_218 = arith.constant dense<0.000000e+00> : vector<2x512xf32>
    %621 = tpu.matmul %620, %619, %cst_218 {dimension_numbers = #tpu.dot_dimension_numbers<[1], [0], [0], [1], [0, 0, 1, 1], [], []>} : vector<2x128xbf16>, vector<128x512xbf16>, vector<2x512xf32> -> vector<2x512xf32>
    %622 = arith.addf %618, %621 : vector<2x512xf32>
    %623 = vector.extract_strided_slice %408 {offsets = [0, 4, 0], sizes = [2, 1, 512], strides = [1, 1, 1]} : vector<2x8x512xf32> to vector<2x1x512xf32>
    %624 = vector.shape_cast %623 : vector<2x1x512xf32> to vector<2x512xf32>
    %c0_219 = arith.constant 0 : index
    %c0_220 = arith.constant 0 : index
    %625 = vector.load %arg23[%c0_219, %c0_220] : memref<128x512xbf16, #tpu.memory_space<vmem>>, vector<128x512xbf16>
    %626 = arith.truncf %610 : vector<2x128xf32> to vector<2x128xbf16>
    %cst_221 = arith.constant dense<0.000000e+00> : vector<2x512xf32>
    %627 = tpu.matmul %626, %625, %cst_221 {dimension_numbers = #tpu.dot_dimension_numbers<[1], [0], [0], [1], [0, 0, 1, 1], [], []>} : vector<2x128xbf16>, vector<128x512xbf16>, vector<2x512xf32> -> vector<2x512xf32>
    %628 = arith.addf %624, %627 : vector<2x512xf32>
    %629 = vector.extract_strided_slice %622 {offsets = [0, 0], sizes = [2, 128], strides = [1, 1]} : vector<2x512xf32> to vector<2x128xf32>
    %630 = arith.negf %629 : vector<2x128xf32>
    %631 = math.exp %630 : vector<2x128xf32>
    %cst_222 = arith.constant 1.000000e+00 : f32
    %632 = vector.broadcast %cst_222 : f32 to vector<2x128xf32>
    %633 = arith.addf %632, %631 : vector<2x128xf32>
    %634 = arith.divf %632, %633 : vector<2x128xf32>
    %635 = vector.extract_strided_slice %622 {offsets = [0, 128], sizes = [2, 128], strides = [1, 1]} : vector<2x512xf32> to vector<2x128xf32>
    %636 = arith.negf %635 : vector<2x128xf32>
    %637 = math.exp %636 : vector<2x128xf32>
    %cst_223 = arith.constant 1.000000e+00 : f32
    %638 = vector.broadcast %cst_223 : f32 to vector<2x128xf32>
    %639 = arith.addf %638, %637 : vector<2x128xf32>
    %640 = arith.divf %638, %639 : vector<2x128xf32>
    %641 = vector.extract_strided_slice %622 {offsets = [0, 256], sizes = [2, 128], strides = [1, 1]} : vector<2x512xf32> to vector<2x128xf32>
    %642 = math.tanh %641 : vector<2x128xf32>
    %643 = vector.extract_strided_slice %622 {offsets = [0, 384], sizes = [2, 128], strides = [1, 1]} : vector<2x512xf32> to vector<2x128xf32>
    %644 = arith.negf %643 : vector<2x128xf32>
    %645 = math.exp %644 : vector<2x128xf32>
    %cst_224 = arith.constant 1.000000e+00 : f32
    %646 = vector.broadcast %cst_224 : f32 to vector<2x128xf32>
    %647 = arith.addf %646, %645 : vector<2x128xf32>
    %648 = arith.divf %646, %647 : vector<2x128xf32>
    %649 = arith.mulf %640, %583 : vector<2x128xf32>
    %650 = arith.mulf %634, %642 : vector<2x128xf32>
    %651 = arith.addf %649, %650 : vector<2x128xf32>
    %652 = math.tanh %651 : vector<2x128xf32>
    %653 = arith.mulf %648, %652 : vector<2x128xf32>
    %654 = vector.extract_strided_slice %628 {offsets = [0, 0], sizes = [2, 128], strides = [1, 1]} : vector<2x512xf32> to vector<2x128xf32>
    %655 = arith.negf %654 : vector<2x128xf32>
    %656 = math.exp %655 : vector<2x128xf32>
    %cst_225 = arith.constant 1.000000e+00 : f32
    %657 = vector.broadcast %cst_225 : f32 to vector<2x128xf32>
    %658 = arith.addf %657, %656 : vector<2x128xf32>
    %659 = arith.divf %657, %658 : vector<2x128xf32>
    %660 = vector.extract_strided_slice %628 {offsets = [0, 128], sizes = [2, 128], strides = [1, 1]} : vector<2x512xf32> to vector<2x128xf32>
    %661 = arith.negf %660 : vector<2x128xf32>
    %662 = math.exp %661 : vector<2x128xf32>
    %cst_226 = arith.constant 1.000000e+00 : f32
    %663 = vector.broadcast %cst_226 : f32 to vector<2x128xf32>
    %664 = arith.addf %663, %662 : vector<2x128xf32>
    %665 = arith.divf %663, %664 : vector<2x128xf32>
    %666 = vector.extract_strided_slice %628 {offsets = [0, 256], sizes = [2, 128], strides = [1, 1]} : vector<2x512xf32> to vector<2x128xf32>
    %667 = math.tanh %666 : vector<2x128xf32>
    %668 = vector.extract_strided_slice %628 {offsets = [0, 384], sizes = [2, 128], strides = [1, 1]} : vector<2x512xf32> to vector<2x128xf32>
    %669 = arith.negf %668 : vector<2x128xf32>
    %670 = math.exp %669 : vector<2x128xf32>
    %cst_227 = arith.constant 1.000000e+00 : f32
    %671 = vector.broadcast %cst_227 : f32 to vector<2x128xf32>
    %672 = arith.addf %671, %670 : vector<2x128xf32>
    %673 = arith.divf %671, %672 : vector<2x128xf32>
    %674 = arith.mulf %665, %608 : vector<2x128xf32>
    %675 = arith.mulf %659, %667 : vector<2x128xf32>
    %676 = arith.addf %674, %675 : vector<2x128xf32>
    %677 = math.tanh %676 : vector<2x128xf32>
    %678 = arith.mulf %673, %677 : vector<2x128xf32>
    %c0_228 = arith.constant 0 : index
    %c3 = arith.constant 3 : index
    %c0_229 = arith.constant 0 : index
    %679 = vector.load %arg28[%c0_228, %c3, %c0_229] : memref<2x8x256xf32, #tpu.memory_space<vmem>>, vector<2x1x128xf32>
    %680 = vector.shape_cast %679 : vector<2x1x128xf32> to vector<2x128xf32>
    %681 = vector.shape_cast %653 : vector<2x128xf32> to vector<2x1x128xf32>
    tpu.vector_store %arg28[%c0_228, %c3, %c0_229], %681 {strides = array<i32>} : memref<2x8x256xf32, #tpu.memory_space<vmem>>, vector<2x1x128xf32>,
    %c0_230 = arith.constant 0 : index
    %c4 = arith.constant 4 : index
    %c128_231 = arith.constant 128 : index
    %682 = vector.load %arg28[%c0_230, %c4, %c128_231] : memref<2x8x256xf32, #tpu.memory_space<vmem>>, vector<2x1x128xf32>
    %683 = vector.shape_cast %682 : vector<2x1x128xf32> to vector<2x128xf32>
    %684 = vector.shape_cast %678 : vector<2x128xf32> to vector<2x1x128xf32>
    tpu.vector_store %arg28[%c0_230, %c4, %c128_231], %684 {strides = array<i32>} : memref<2x8x256xf32, #tpu.memory_space<vmem>>, vector<2x1x128xf32>,
    %685 = vector.extract_strided_slice %401 {offsets = [0, 4, 0], sizes = [2, 1, 512], strides = [1, 1, 1]} : vector<2x8x512xf32> to vector<2x1x512xf32>
    %686 = vector.shape_cast %685 : vector<2x1x512xf32> to vector<2x512xf32>
    %c0_232 = arith.constant 0 : index
    %c0_233 = arith.constant 0 : index
    %687 = vector.load %arg20[%c0_232, %c0_233] : memref<128x512xbf16, #tpu.memory_space<vmem>>, vector<128x512xbf16>
    %688 = arith.truncf %653 : vector<2x128xf32> to vector<2x128xbf16>
    %cst_234 = arith.constant dense<0.000000e+00> : vector<2x512xf32>
    %689 = tpu.matmul %688, %687, %cst_234 {dimension_numbers = #tpu.dot_dimension_numbers<[1], [0], [0], [1], [0, 0, 1, 1], [], []>} : vector<2x128xbf16>, vector<128x512xbf16>, vector<2x512xf32> -> vector<2x512xf32>
    %690 = arith.addf %686, %689 : vector<2x512xf32>
    %691 = vector.extract_strided_slice %408 {offsets = [0, 3, 0], sizes = [2, 1, 512], strides = [1, 1, 1]} : vector<2x8x512xf32> to vector<2x1x512xf32>
    %692 = vector.shape_cast %691 : vector<2x1x512xf32> to vector<2x512xf32>
    %c0_235 = arith.constant 0 : index
    %c0_236 = arith.constant 0 : index
    %693 = vector.load %arg23[%c0_235, %c0_236] : memref<128x512xbf16, #tpu.memory_space<vmem>>, vector<128x512xbf16>
    %694 = arith.truncf %678 : vector<2x128xf32> to vector<2x128xbf16>
    %cst_237 = arith.constant dense<0.000000e+00> : vector<2x512xf32>
    %695 = tpu.matmul %694, %693, %cst_237 {dimension_numbers = #tpu.dot_dimension_numbers<[1], [0], [0], [1], [0, 0, 1, 1], [], []>} : vector<2x128xbf16>, vector<128x512xbf16>, vector<2x512xf32> -> vector<2x512xf32>
    %696 = arith.addf %692, %695 : vector<2x512xf32>
    %697 = vector.extract_strided_slice %690 {offsets = [0, 0], sizes = [2, 128], strides = [1, 1]} : vector<2x512xf32> to vector<2x128xf32>
    %698 = arith.negf %697 : vector<2x128xf32>
    %699 = math.exp %698 : vector<2x128xf32>
    %cst_238 = arith.constant 1.000000e+00 : f32
    %700 = vector.broadcast %cst_238 : f32 to vector<2x128xf32>
    %701 = arith.addf %700, %699 : vector<2x128xf32>
    %702 = arith.divf %700, %701 : vector<2x128xf32>
    %703 = vector.extract_strided_slice %690 {offsets = [0, 128], sizes = [2, 128], strides = [1, 1]} : vector<2x512xf32> to vector<2x128xf32>
    %704 = arith.negf %703 : vector<2x128xf32>
    %705 = math.exp %704 : vector<2x128xf32>
    %cst_239 = arith.constant 1.000000e+00 : f32
    %706 = vector.broadcast %cst_239 : f32 to vector<2x128xf32>
    %707 = arith.addf %706, %705 : vector<2x128xf32>
    %708 = arith.divf %706, %707 : vector<2x128xf32>
    %709 = vector.extract_strided_slice %690 {offsets = [0, 256], sizes = [2, 128], strides = [1, 1]} : vector<2x512xf32> to vector<2x128xf32>
    %710 = math.tanh %709 : vector<2x128xf32>
    %711 = vector.extract_strided_slice %690 {offsets = [0, 384], sizes = [2, 128], strides = [1, 1]} : vector<2x512xf32> to vector<2x128xf32>
    %712 = arith.negf %711 : vector<2x128xf32>
    %713 = math.exp %712 : vector<2x128xf32>
    %cst_240 = arith.constant 1.000000e+00 : f32
    %714 = vector.broadcast %cst_240 : f32 to vector<2x128xf32>
    %715 = arith.addf %714, %713 : vector<2x128xf32>
    %716 = arith.divf %714, %715 : vector<2x128xf32>
    %717 = arith.mulf %708, %651 : vector<2x128xf32>
    %718 = arith.mulf %702, %710 : vector<2x128xf32>
    %719 = arith.addf %717, %718 : vector<2x128xf32>
    %720 = math.tanh %719 : vector<2x128xf32>
    %721 = arith.mulf %716, %720 : vector<2x128xf32>
    %722 = vector.extract_strided_slice %696 {offsets = [0, 0], sizes = [2, 128], strides = [1, 1]} : vector<2x512xf32> to vector<2x128xf32>
    %723 = arith.negf %722 : vector<2x128xf32>
    %724 = math.exp %723 : vector<2x128xf32>
    %cst_241 = arith.constant 1.000000e+00 : f32
    %725 = vector.broadcast %cst_241 : f32 to vector<2x128xf32>
    %726 = arith.addf %725, %724 : vector<2x128xf32>
    %727 = arith.divf %725, %726 : vector<2x128xf32>
    %728 = vector.extract_strided_slice %696 {offsets = [0, 128], sizes = [2, 128], strides = [1, 1]} : vector<2x512xf32> to vector<2x128xf32>
    %729 = arith.negf %728 : vector<2x128xf32>
    %730 = math.exp %729 : vector<2x128xf32>
    %cst_242 = arith.constant 1.000000e+00 : f32
    %731 = vector.broadcast %cst_242 : f32 to vector<2x128xf32>
    %732 = arith.addf %731, %730 : vector<2x128xf32>
    %733 = arith.divf %731, %732 : vector<2x128xf32>
    %734 = vector.extract_strided_slice %696 {offsets = [0, 256], sizes = [2, 128], strides = [1, 1]} : vector<2x512xf32> to vector<2x128xf32>
    %735 = math.tanh %734 : vector<2x128xf32>
    %736 = vector.extract_strided_slice %696 {offsets = [0, 384], sizes = [2, 128], strides = [1, 1]} : vector<2x512xf32> to vector<2x128xf32>
    %737 = arith.negf %736 : vector<2x128xf32>
    %738 = math.exp %737 : vector<2x128xf32>
    %cst_243 = arith.constant 1.000000e+00 : f32
    %739 = vector.broadcast %cst_243 : f32 to vector<2x128xf32>
    %740 = arith.addf %739, %738 : vector<2x128xf32>
    %741 = arith.divf %739, %740 : vector<2x128xf32>
    %742 = arith.mulf %733, %676 : vector<2x128xf32>
    %743 = arith.mulf %727, %735 : vector<2x128xf32>
    %744 = arith.addf %742, %743 : vector<2x128xf32>
    %745 = math.tanh %744 : vector<2x128xf32>
    %746 = arith.mulf %741, %745 : vector<2x128xf32>
    %c0_244 = arith.constant 0 : index
    %c4_245 = arith.constant 4 : index
    %c0_246 = arith.constant 0 : index
    %747 = vector.load %arg28[%c0_244, %c4_245, %c0_246] : memref<2x8x256xf32, #tpu.memory_space<vmem>>, vector<2x1x128xf32>
    %748 = vector.shape_cast %747 : vector<2x1x128xf32> to vector<2x128xf32>
    %749 = vector.shape_cast %721 : vector<2x128xf32> to vector<2x1x128xf32>
    tpu.vector_store %arg28[%c0_244, %c4_245, %c0_246], %749 {strides = array<i32>} : memref<2x8x256xf32, #tpu.memory_space<vmem>>, vector<2x1x128xf32>,
    %c0_247 = arith.constant 0 : index
    %c3_248 = arith.constant 3 : index
    %c128_249 = arith.constant 128 : index
    %750 = vector.load %arg28[%c0_247, %c3_248, %c128_249] : memref<2x8x256xf32, #tpu.memory_space<vmem>>, vector<2x1x128xf32>
    %751 = vector.shape_cast %750 : vector<2x1x128xf32> to vector<2x128xf32>
    %752 = vector.shape_cast %746 : vector<2x128xf32> to vector<2x1x128xf32>
    tpu.vector_store %arg28[%c0_247, %c3_248, %c128_249], %752 {strides = array<i32>} : memref<2x8x256xf32, #tpu.memory_space<vmem>>, vector<2x1x128xf32>,
    %753 = vector.extract_strided_slice %401 {offsets = [0, 5, 0], sizes = [2, 1, 512], strides = [1, 1, 1]} : vector<2x8x512xf32> to vector<2x1x512xf32>
    %754 = vector.shape_cast %753 : vector<2x1x512xf32> to vector<2x512xf32>
    %c0_250 = arith.constant 0 : index
    %c0_251 = arith.constant 0 : index
    %755 = vector.load %arg20[%c0_250, %c0_251] : memref<128x512xbf16, #tpu.memory_space<vmem>>, vector<128x512xbf16>
    %756 = arith.truncf %721 : vector<2x128xf32> to vector<2x128xbf16>
    %cst_252 = arith.constant dense<0.000000e+00> : vector<2x512xf32>
    %757 = tpu.matmul %756, %755, %cst_252 {dimension_numbers = #tpu.dot_dimension_numbers<[1], [0], [0], [1], [0, 0, 1, 1], [], []>} : vector<2x128xbf16>, vector<128x512xbf16>, vector<2x512xf32> -> vector<2x512xf32>
    %758 = arith.addf %754, %757 : vector<2x512xf32>
    %759 = vector.extract_strided_slice %408 {offsets = [0, 2, 0], sizes = [2, 1, 512], strides = [1, 1, 1]} : vector<2x8x512xf32> to vector<2x1x512xf32>
    %760 = vector.shape_cast %759 : vector<2x1x512xf32> to vector<2x512xf32>
    %c0_253 = arith.constant 0 : index
    %c0_254 = arith.constant 0 : index
    %761 = vector.load %arg23[%c0_253, %c0_254] : memref<128x512xbf16, #tpu.memory_space<vmem>>, vector<128x512xbf16>
    %762 = arith.truncf %746 : vector<2x128xf32> to vector<2x128xbf16>
    %cst_255 = arith.constant dense<0.000000e+00> : vector<2x512xf32>
    %763 = tpu.matmul %762, %761, %cst_255 {dimension_numbers = #tpu.dot_dimension_numbers<[1], [0], [0], [1], [0, 0, 1, 1], [], []>} : vector<2x128xbf16>, vector<128x512xbf16>, vector<2x512xf32> -> vector<2x512xf32>
    %764 = arith.addf %760, %763 : vector<2x512xf32>
    %765 = vector.extract_strided_slice %758 {offsets = [0, 0], sizes = [2, 128], strides = [1, 1]} : vector<2x512xf32> to vector<2x128xf32>
    %766 = arith.negf %765 : vector<2x128xf32>
    %767 = math.exp %766 : vector<2x128xf32>
    %cst_256 = arith.constant 1.000000e+00 : f32
    %768 = vector.broadcast %cst_256 : f32 to vector<2x128xf32>
    %769 = arith.addf %768, %767 : vector<2x128xf32>
    %770 = arith.divf %768, %769 : vector<2x128xf32>
    %771 = vector.extract_strided_slice %758 {offsets = [0, 128], sizes = [2, 128], strides = [1, 1]} : vector<2x512xf32> to vector<2x128xf32>
    %772 = arith.negf %771 : vector<2x128xf32>
    %773 = math.exp %772 : vector<2x128xf32>
    %cst_257 = arith.constant 1.000000e+00 : f32
    %774 = vector.broadcast %cst_257 : f32 to vector<2x128xf32>
    %775 = arith.addf %774, %773 : vector<2x128xf32>
    %776 = arith.divf %774, %775 : vector<2x128xf32>
    %777 = vector.extract_strided_slice %758 {offsets = [0, 256], sizes = [2, 128], strides = [1, 1]} : vector<2x512xf32> to vector<2x128xf32>
    %778 = math.tanh %777 : vector<2x128xf32>
    %779 = vector.extract_strided_slice %758 {offsets = [0, 384], sizes = [2, 128], strides = [1, 1]} : vector<2x512xf32> to vector<2x128xf32>
    %780 = arith.negf %779 : vector<2x128xf32>
    %781 = math.exp %780 : vector<2x128xf32>
    %cst_258 = arith.constant 1.000000e+00 : f32
    %782 = vector.broadcast %cst_258 : f32 to vector<2x128xf32>
    %783 = arith.addf %782, %781 : vector<2x128xf32>
    %784 = arith.divf %782, %783 : vector<2x128xf32>
    %785 = arith.mulf %776, %719 : vector<2x128xf32>
    %786 = arith.mulf %770, %778 : vector<2x128xf32>
    %787 = arith.addf %785, %786 : vector<2x128xf32>
    %788 = math.tanh %787 : vector<2x128xf32>
    %789 = arith.mulf %784, %788 : vector<2x128xf32>
    %790 = vector.extract_strided_slice %764 {offsets = [0, 0], sizes = [2, 128], strides = [1, 1]} : vector<2x512xf32> to vector<2x128xf32>
    %791 = arith.negf %790 : vector<2x128xf32>
    %792 = math.exp %791 : vector<2x128xf32>
    %cst_259 = arith.constant 1.000000e+00 : f32
    %793 = vector.broadcast %cst_259 : f32 to vector<2x128xf32>
    %794 = arith.addf %793, %792 : vector<2x128xf32>
    %795 = arith.divf %793, %794 : vector<2x128xf32>
    %796 = vector.extract_strided_slice %764 {offsets = [0, 128], sizes = [2, 128], strides = [1, 1]} : vector<2x512xf32> to vector<2x128xf32>
    %797 = arith.negf %796 : vector<2x128xf32>
    %798 = math.exp %797 : vector<2x128xf32>
    %cst_260 = arith.constant 1.000000e+00 : f32
    %799 = vector.broadcast %cst_260 : f32 to vector<2x128xf32>
    %800 = arith.addf %799, %798 : vector<2x128xf32>
    %801 = arith.divf %799, %800 : vector<2x128xf32>
    %802 = vector.extract_strided_slice %764 {offsets = [0, 256], sizes = [2, 128], strides = [1, 1]} : vector<2x512xf32> to vector<2x128xf32>
    %803 = math.tanh %802 : vector<2x128xf32>
    %804 = vector.extract_strided_slice %764 {offsets = [0, 384], sizes = [2, 128], strides = [1, 1]} : vector<2x512xf32> to vector<2x128xf32>
    %805 = arith.negf %804 : vector<2x128xf32>
    %806 = math.exp %805 : vector<2x128xf32>
    %cst_261 = arith.constant 1.000000e+00 : f32
    %807 = vector.broadcast %cst_261 : f32 to vector<2x128xf32>
    %808 = arith.addf %807, %806 : vector<2x128xf32>
    %809 = arith.divf %807, %808 : vector<2x128xf32>
    %810 = arith.mulf %801, %744 : vector<2x128xf32>
    %811 = arith.mulf %795, %803 : vector<2x128xf32>
    %812 = arith.addf %810, %811 : vector<2x128xf32>
    %813 = math.tanh %812 : vector<2x128xf32>
    %814 = arith.mulf %809, %813 : vector<2x128xf32>
    %c0_262 = arith.constant 0 : index
    %c5_263 = arith.constant 5 : index
    %c0_264 = arith.constant 0 : index
    %815 = vector.load %arg28[%c0_262, %c5_263, %c0_264] : memref<2x8x256xf32, #tpu.memory_space<vmem>>, vector<2x1x128xf32>
    %816 = vector.shape_cast %815 : vector<2x1x128xf32> to vector<2x128xf32>
    %817 = vector.shape_cast %789 : vector<2x128xf32> to vector<2x1x128xf32>
    tpu.vector_store %arg28[%c0_262, %c5_263, %c0_264], %817 {strides = array<i32>} : memref<2x8x256xf32, #tpu.memory_space<vmem>>, vector<2x1x128xf32>,
    %c0_265 = arith.constant 0 : index
    %c2_266 = arith.constant 2 : index
    %c128_267 = arith.constant 128 : index
    %818 = vector.load %arg28[%c0_265, %c2_266, %c128_267] : memref<2x8x256xf32, #tpu.memory_space<vmem>>, vector<2x1x128xf32>
    %819 = vector.shape_cast %818 : vector<2x1x128xf32> to vector<2x128xf32>
    %820 = vector.shape_cast %814 : vector<2x128xf32> to vector<2x1x128xf32>
    tpu.vector_store %arg28[%c0_265, %c2_266, %c128_267], %820 {strides = array<i32>} : memref<2x8x256xf32, #tpu.memory_space<vmem>>, vector<2x1x128xf32>,
    %821 = vector.extract_strided_slice %401 {offsets = [0, 6, 0], sizes = [2, 1, 512], strides = [1, 1, 1]} : vector<2x8x512xf32> to vector<2x1x512xf32>
    %822 = vector.shape_cast %821 : vector<2x1x512xf32> to vector<2x512xf32>
    %c0_268 = arith.constant 0 : index
    %c0_269 = arith.constant 0 : index
    %823 = vector.load %arg20[%c0_268, %c0_269] : memref<128x512xbf16, #tpu.memory_space<vmem>>, vector<128x512xbf16>
    %824 = arith.truncf %789 : vector<2x128xf32> to vector<2x128xbf16>
    %cst_270 = arith.constant dense<0.000000e+00> : vector<2x512xf32>
    %825 = tpu.matmul %824, %823, %cst_270 {dimension_numbers = #tpu.dot_dimension_numbers<[1], [0], [0], [1], [0, 0, 1, 1], [], []>} : vector<2x128xbf16>, vector<128x512xbf16>, vector<2x512xf32> -> vector<2x512xf32>
    %826 = arith.addf %822, %825 : vector<2x512xf32>
    %827 = vector.extract_strided_slice %408 {offsets = [0, 1, 0], sizes = [2, 1, 512], strides = [1, 1, 1]} : vector<2x8x512xf32> to vector<2x1x512xf32>
    %828 = vector.shape_cast %827 : vector<2x1x512xf32> to vector<2x512xf32>
    %c0_271 = arith.constant 0 : index
    %c0_272 = arith.constant 0 : index
    %829 = vector.load %arg23[%c0_271, %c0_272] : memref<128x512xbf16, #tpu.memory_space<vmem>>, vector<128x512xbf16>
    %830 = arith.truncf %814 : vector<2x128xf32> to vector<2x128xbf16>
    %cst_273 = arith.constant dense<0.000000e+00> : vector<2x512xf32>
    %831 = tpu.matmul %830, %829, %cst_273 {dimension_numbers = #tpu.dot_dimension_numbers<[1], [0], [0], [1], [0, 0, 1, 1], [], []>} : vector<2x128xbf16>, vector<128x512xbf16>, vector<2x512xf32> -> vector<2x512xf32>
    %832 = arith.addf %828, %831 : vector<2x512xf32>
    %833 = vector.extract_strided_slice %826 {offsets = [0, 0], sizes = [2, 128], strides = [1, 1]} : vector<2x512xf32> to vector<2x128xf32>
    %834 = arith.negf %833 : vector<2x128xf32>
    %835 = math.exp %834 : vector<2x128xf32>
    %cst_274 = arith.constant 1.000000e+00 : f32
    %836 = vector.broadcast %cst_274 : f32 to vector<2x128xf32>
    %837 = arith.addf %836, %835 : vector<2x128xf32>
    %838 = arith.divf %836, %837 : vector<2x128xf32>
    %839 = vector.extract_strided_slice %826 {offsets = [0, 128], sizes = [2, 128], strides = [1, 1]} : vector<2x512xf32> to vector<2x128xf32>
    %840 = arith.negf %839 : vector<2x128xf32>
    %841 = math.exp %840 : vector<2x128xf32>
    %cst_275 = arith.constant 1.000000e+00 : f32
    %842 = vector.broadcast %cst_275 : f32 to vector<2x128xf32>
    %843 = arith.addf %842, %841 : vector<2x128xf32>
    %844 = arith.divf %842, %843 : vector<2x128xf32>
    %845 = vector.extract_strided_slice %826 {offsets = [0, 256], sizes = [2, 128], strides = [1, 1]} : vector<2x512xf32> to vector<2x128xf32>
    %846 = math.tanh %845 : vector<2x128xf32>
    %847 = vector.extract_strided_slice %826 {offsets = [0, 384], sizes = [2, 128], strides = [1, 1]} : vector<2x512xf32> to vector<2x128xf32>
    %848 = arith.negf %847 : vector<2x128xf32>
    %849 = math.exp %848 : vector<2x128xf32>
    %cst_276 = arith.constant 1.000000e+00 : f32
    %850 = vector.broadcast %cst_276 : f32 to vector<2x128xf32>
    %851 = arith.addf %850, %849 : vector<2x128xf32>
    %852 = arith.divf %850, %851 : vector<2x128xf32>
    %853 = arith.mulf %844, %787 : vector<2x128xf32>
    %854 = arith.mulf %838, %846 : vector<2x128xf32>
    %855 = arith.addf %853, %854 : vector<2x128xf32>
    %856 = math.tanh %855 : vector<2x128xf32>
    %857 = arith.mulf %852, %856 : vector<2x128xf32>
    %858 = vector.extract_strided_slice %832 {offsets = [0, 0], sizes = [2, 128], strides = [1, 1]} : vector<2x512xf32> to vector<2x128xf32>
    %859 = arith.negf %858 : vector<2x128xf32>
    %860 = math.exp %859 : vector<2x128xf32>
    %cst_277 = arith.constant 1.000000e+00 : f32
    %861 = vector.broadcast %cst_277 : f32 to vector<2x128xf32>
    %862 = arith.addf %861, %860 : vector<2x128xf32>
    %863 = arith.divf %861, %862 : vector<2x128xf32>
    %864 = vector.extract_strided_slice %832 {offsets = [0, 128], sizes = [2, 128], strides = [1, 1]} : vector<2x512xf32> to vector<2x128xf32>
    %865 = arith.negf %864 : vector<2x128xf32>
    %866 = math.exp %865 : vector<2x128xf32>
    %cst_278 = arith.constant 1.000000e+00 : f32
    %867 = vector.broadcast %cst_278 : f32 to vector<2x128xf32>
    %868 = arith.addf %867, %866 : vector<2x128xf32>
    %869 = arith.divf %867, %868 : vector<2x128xf32>
    %870 = vector.extract_strided_slice %832 {offsets = [0, 256], sizes = [2, 128], strides = [1, 1]} : vector<2x512xf32> to vector<2x128xf32>
    %871 = math.tanh %870 : vector<2x128xf32>
    %872 = vector.extract_strided_slice %832 {offsets = [0, 384], sizes = [2, 128], strides = [1, 1]} : vector<2x512xf32> to vector<2x128xf32>
    %873 = arith.negf %872 : vector<2x128xf32>
    %874 = math.exp %873 : vector<2x128xf32>
    %cst_279 = arith.constant 1.000000e+00 : f32
    %875 = vector.broadcast %cst_279 : f32 to vector<2x128xf32>
    %876 = arith.addf %875, %874 : vector<2x128xf32>
    %877 = arith.divf %875, %876 : vector<2x128xf32>
    %878 = arith.mulf %869, %812 : vector<2x128xf32>
    %879 = arith.mulf %863, %871 : vector<2x128xf32>
    %880 = arith.addf %878, %879 : vector<2x128xf32>
    %881 = math.tanh %880 : vector<2x128xf32>
    %882 = arith.mulf %877, %881 : vector<2x128xf32>
    %c0_280 = arith.constant 0 : index
    %c6_281 = arith.constant 6 : index
    %c0_282 = arith.constant 0 : index
    %883 = vector.load %arg28[%c0_280, %c6_281, %c0_282] : memref<2x8x256xf32, #tpu.memory_space<vmem>>, vector<2x1x128xf32>
    %884 = vector.shape_cast %883 : vector<2x1x128xf32> to vector<2x128xf32>
    %885 = vector.shape_cast %857 : vector<2x128xf32> to vector<2x1x128xf32>
    tpu.vector_store %arg28[%c0_280, %c6_281, %c0_282], %885 {strides = array<i32>} : memref<2x8x256xf32, #tpu.memory_space<vmem>>, vector<2x1x128xf32>,
    %c0_283 = arith.constant 0 : index
    %c1_284 = arith.constant 1 : index
    %c128_285 = arith.constant 128 : index
    %886 = vector.load %arg28[%c0_283, %c1_284, %c128_285] : memref<2x8x256xf32, #tpu.memory_space<vmem>>, vector<2x1x128xf32>
    %887 = vector.shape_cast %886 : vector<2x1x128xf32> to vector<2x128xf32>
    %888 = vector.shape_cast %882 : vector<2x128xf32> to vector<2x1x128xf32>
    tpu.vector_store %arg28[%c0_283, %c1_284, %c128_285], %888 {strides = array<i32>} : memref<2x8x256xf32, #tpu.memory_space<vmem>>, vector<2x1x128xf32>,
    %889 = vector.extract_strided_slice %401 {offsets = [0, 7, 0], sizes = [2, 1, 512], strides = [1, 1, 1]} : vector<2x8x512xf32> to vector<2x1x512xf32>
    %890 = vector.shape_cast %889 : vector<2x1x512xf32> to vector<2x512xf32>
    %c0_286 = arith.constant 0 : index
    %c0_287 = arith.constant 0 : index
    %891 = vector.load %arg20[%c0_286, %c0_287] : memref<128x512xbf16, #tpu.memory_space<vmem>>, vector<128x512xbf16>
    %892 = arith.truncf %857 : vector<2x128xf32> to vector<2x128xbf16>
    %cst_288 = arith.constant dense<0.000000e+00> : vector<2x512xf32>
    %893 = tpu.matmul %892, %891, %cst_288 {dimension_numbers = #tpu.dot_dimension_numbers<[1], [0], [0], [1], [0, 0, 1, 1], [], []>} : vector<2x128xbf16>, vector<128x512xbf16>, vector<2x512xf32> -> vector<2x512xf32>
    %894 = arith.addf %890, %893 : vector<2x512xf32>
    %895 = vector.extract_strided_slice %408 {offsets = [0, 0, 0], sizes = [2, 1, 512], strides = [1, 1, 1]} : vector<2x8x512xf32> to vector<2x1x512xf32>
    %896 = vector.shape_cast %895 : vector<2x1x512xf32> to vector<2x512xf32>
    %c0_289 = arith.constant 0 : index
    %c0_290 = arith.constant 0 : index
    %897 = vector.load %arg23[%c0_289, %c0_290] : memref<128x512xbf16, #tpu.memory_space<vmem>>, vector<128x512xbf16>
    %898 = arith.truncf %882 : vector<2x128xf32> to vector<2x128xbf16>
    %cst_291 = arith.constant dense<0.000000e+00> : vector<2x512xf32>
    %899 = tpu.matmul %898, %897, %cst_291 {dimension_numbers = #tpu.dot_dimension_numbers<[1], [0], [0], [1], [0, 0, 1, 1], [], []>} : vector<2x128xbf16>, vector<128x512xbf16>, vector<2x512xf32> -> vector<2x512xf32>
    %900 = arith.addf %896, %899 : vector<2x512xf32>
    %901 = vector.extract_strided_slice %894 {offsets = [0, 0], sizes = [2, 128], strides = [1, 1]} : vector<2x512xf32> to vector<2x128xf32>
    %902 = arith.negf %901 : vector<2x128xf32>
    %903 = math.exp %902 : vector<2x128xf32>
    %cst_292 = arith.constant 1.000000e+00 : f32
    %904 = vector.broadcast %cst_292 : f32 to vector<2x128xf32>
    %905 = arith.addf %904, %903 : vector<2x128xf32>
    %906 = arith.divf %904, %905 : vector<2x128xf32>
    %907 = vector.extract_strided_slice %894 {offsets = [0, 128], sizes = [2, 128], strides = [1, 1]} : vector<2x512xf32> to vector<2x128xf32>
    %908 = arith.negf %907 : vector<2x128xf32>
    %909 = math.exp %908 : vector<2x128xf32>
    %cst_293 = arith.constant 1.000000e+00 : f32
    %910 = vector.broadcast %cst_293 : f32 to vector<2x128xf32>
    %911 = arith.addf %910, %909 : vector<2x128xf32>
    %912 = arith.divf %910, %911 : vector<2x128xf32>
    %913 = vector.extract_strided_slice %894 {offsets = [0, 256], sizes = [2, 128], strides = [1, 1]} : vector<2x512xf32> to vector<2x128xf32>
    %914 = math.tanh %913 : vector<2x128xf32>
    %915 = vector.extract_strided_slice %894 {offsets = [0, 384], sizes = [2, 128], strides = [1, 1]} : vector<2x512xf32> to vector<2x128xf32>
    %916 = arith.negf %915 : vector<2x128xf32>
    %917 = math.exp %916 : vector<2x128xf32>
    %cst_294 = arith.constant 1.000000e+00 : f32
    %918 = vector.broadcast %cst_294 : f32 to vector<2x128xf32>
    %919 = arith.addf %918, %917 : vector<2x128xf32>
    %920 = arith.divf %918, %919 : vector<2x128xf32>
    %921 = arith.mulf %912, %855 : vector<2x128xf32>
    %922 = arith.mulf %906, %914 : vector<2x128xf32>
    %923 = arith.addf %921, %922 : vector<2x128xf32>
    %924 = math.tanh %923 : vector<2x128xf32>
    %925 = arith.mulf %920, %924 : vector<2x128xf32>
    %926 = vector.extract_strided_slice %900 {offsets = [0, 0], sizes = [2, 128], strides = [1, 1]} : vector<2x512xf32> to vector<2x128xf32>
    %927 = arith.negf %926 : vector<2x128xf32>
    %928 = math.exp %927 : vector<2x128xf32>
    %cst_295 = arith.constant 1.000000e+00 : f32
    %929 = vector.broadcast %cst_295 : f32 to vector<2x128xf32>
    %930 = arith.addf %929, %928 : vector<2x128xf32>
    %931 = arith.divf %929, %930 : vector<2x128xf32>
    %932 = vector.extract_strided_slice %900 {offsets = [0, 128], sizes = [2, 128], strides = [1, 1]} : vector<2x512xf32> to vector<2x128xf32>
    %933 = arith.negf %932 : vector<2x128xf32>
    %934 = math.exp %933 : vector<2x128xf32>
    %cst_296 = arith.constant 1.000000e+00 : f32
    %935 = vector.broadcast %cst_296 : f32 to vector<2x128xf32>
    %936 = arith.addf %935, %934 : vector<2x128xf32>
    %937 = arith.divf %935, %936 : vector<2x128xf32>
    %938 = vector.extract_strided_slice %900 {offsets = [0, 256], sizes = [2, 128], strides = [1, 1]} : vector<2x512xf32> to vector<2x128xf32>
    %939 = math.tanh %938 : vector<2x128xf32>
    %940 = vector.extract_strided_slice %900 {offsets = [0, 384], sizes = [2, 128], strides = [1, 1]} : vector<2x512xf32> to vector<2x128xf32>
    %941 = arith.negf %940 : vector<2x128xf32>
    %942 = math.exp %941 : vector<2x128xf32>
    %cst_297 = arith.constant 1.000000e+00 : f32
    %943 = vector.broadcast %cst_297 : f32 to vector<2x128xf32>
    %944 = arith.addf %943, %942 : vector<2x128xf32>
    %945 = arith.divf %943, %944 : vector<2x128xf32>
    %946 = arith.mulf %937, %880 : vector<2x128xf32>
    %947 = arith.mulf %931, %939 : vector<2x128xf32>
    %948 = arith.addf %946, %947 : vector<2x128xf32>
    %949 = math.tanh %948 : vector<2x128xf32>
    %950 = arith.mulf %945, %949 : vector<2x128xf32>
    %c0_298 = arith.constant 0 : index
    %c7_299 = arith.constant 7 : index
    %c0_300 = arith.constant 0 : index
    %951 = vector.load %arg28[%c0_298, %c7_299, %c0_300] : memref<2x8x256xf32, #tpu.memory_space<vmem>>, vector<2x1x128xf32>
    %952 = vector.shape_cast %951 : vector<2x1x128xf32> to vector<2x128xf32>
    %953 = vector.shape_cast %925 : vector<2x128xf32> to vector<2x1x128xf32>
    tpu.vector_store %arg28[%c0_298, %c7_299, %c0_300], %953 {strides = array<i32>} : memref<2x8x256xf32, #tpu.memory_space<vmem>>, vector<2x1x128xf32>,
    %c0_301 = arith.constant 0 : index
    %c0_302 = arith.constant 0 : index
    %c128_303 = arith.constant 128 : index
    %954 = vector.load %arg28[%c0_301, %c0_302, %c128_303] : memref<2x8x256xf32, #tpu.memory_space<vmem>>, vector<2x1x128xf32>
    %955 = vector.shape_cast %954 : vector<2x1x128xf32> to vector<2x128xf32>
    %956 = vector.shape_cast %950 : vector<2x128xf32> to vector<2x1x128xf32>
    tpu.vector_store %arg28[%c0_301, %c0_302, %c128_303], %956 {strides = array<i32>} : memref<2x8x256xf32, #tpu.memory_space<vmem>>, vector<2x1x128xf32>,
    %c0_304 = arith.constant 0 : index
    %c0_305 = arith.constant 0 : index
    %c0_306 = arith.constant 0 : index
    %957 = vector.load %arg28[%c0_304, %c0_305, %c0_306] : memref<2x8x256xf32, #tpu.memory_space<vmem>>, vector<2x8x256xf32>
    %958 = vector.shape_cast %957 : vector<2x8x256xf32> to vector<16x256xf32>
    %c0_307 = arith.constant 0 : index
    %c0_308 = arith.constant 0 : index
    %959 = vector.load %arg24[%c0_307, %c0_308] : memref<256x32xbf16, #tpu.memory_space<vmem>>, vector<256x32xbf16>
    %c0_309 = arith.constant 0 : index
    %c0_310 = arith.constant 0 : index
    %960 = vector.load %arg25[%c0_309, %c0_310] : memref<1x32xf32, #tpu.memory_space<vmem>>, vector<1x32xf32>
    %961 = arith.truncf %958 : vector<16x256xf32> to vector<16x256xbf16>
    %cst_311 = arith.constant dense<0.000000e+00> : vector<16x32xf32>
    %962 = tpu.matmul %961, %959, %cst_311 {dimension_numbers = #tpu.dot_dimension_numbers<[1], [0], [0], [1], [0, 0, 1, 1], [], []>} : vector<16x256xbf16>, vector<256x32xbf16>, vector<16x32xf32> -> vector<16x32xf32>
    %963 = vector.broadcast %960 : vector<1x32xf32> to vector<16x32xf32>
    %964 = arith.addf %962, %963 : vector<16x32xf32>
    %c0_312 = arith.constant 0 : index
    %c0_313 = arith.constant 0 : index
    %965 = vector.load %arg26[%c0_312, %c0_313] : memref<1x2xf32, #tpu.memory_space<vmem>>, vector<1x2xf32>
    %cst_314 = arith.constant dense<0xFF800000> : vector<1xf32>
    %966 = vector.multi_reduction <maximumf>, %965, %cst_314 [1] : vector<1x2xf32> to vector<1xf32>
    %967 = vector.shape_cast %966 : vector<1xf32> to vector<1x1xf32>
    %968 = vector.broadcast %967 : vector<1x1xf32> to vector<1x2xf32>
    %969 = arith.subf %965, %968 : vector<1x2xf32>
    %970 = math.exp %969 : vector<1x2xf32>
    %cst_315 = arith.constant dense<0.000000e+00> : vector<1xf32>
    %971 = vector.multi_reduction <add>, %970, %cst_315 [1] : vector<1x2xf32> to vector<1xf32>
    %972 = vector.shape_cast %971 : vector<1xf32> to vector<1x1xf32>
    %973 = vector.broadcast %972 : vector<1x1xf32> to vector<1x2xf32>
    %974 = arith.divf %970, %973 : vector<1x2xf32>
    %975 = vector.extract_strided_slice %974 {offsets = [0, 0], sizes = [1, 1], strides = [1, 1]} : vector<1x2xf32> to vector<1x1xf32>
    %976 = vector.extract_strided_slice %974 {offsets = [0, 1], sizes = [1, 1], strides = [1, 1]} : vector<1x2xf32> to vector<1x1xf32>
    %977 = vector.broadcast %975 : vector<1x1xf32> to vector<16x32xf32>
    %978 = arith.mulf %977, %394 : vector<16x32xf32>
    %979 = arith.addf %0, %964 : vector<16x32xf32>
    %980 = vector.broadcast %976 : vector<1x1xf32> to vector<16x32xf32>
    %981 = arith.mulf %980, %979 : vector<16x32xf32>
    %982 = arith.addf %978, %981 : vector<16x32xf32>
    %c0_316 = arith.constant 0 : index
    %c0_317 = arith.constant 0 : index
    %983 = vector.load %arg27[%c0_316, %c0_317] : memref<16x32xf32, #tpu.memory_space<vmem>>, vector<16x32xf32>
    tpu.vector_store %arg27[%c0_316, %c0_317], %982 {strides = array<i32>} : memref<16x32xf32, #tpu.memory_space<vmem>>, vector<16x32xf32>,
    return
  }
}

</mosaic_0001>

<bundles_post_ra>
// kernel: mid_level_forward.1
= control target key start
LH: loop header
LB: loop body
LE: loop exit
PB: predicated region body
PF: predicated region fallthrough
CT: control target
= control target key end

     0   :  { %s21985_s0 = inlined_call_operand.vmem [shape: f32[16,32], index: 0, kind: input, shape index: {}]   ;;  %s21986_s1 = inlined_call_operand.vmem [shape: f32[8,128], index: 1, kind: input, shape index: {}]   ;;  %s21987_s2 = inlined_call_operand.hbm [shape: bf16[32,128], index: 2, kind: input, shape index: {}]   ;;  %s21988_s3 = inlined_call_operand.hbm [shape: f32[1,128], index: 3, kind: input, shape index: {}]   ;;  %s21989_s4 = inlined_call_operand.hbm [shape: bf16[2,128,384], index: 4, kind: input, shape index: {}]   ;;  %s21990_s5 = inlined_call_operand.hbm [shape: f32[2,1,384], index: 5, kind: input, shape index: {}]   ;;  %s21991_s6 = inlined_call_operand.hbm [shape: bf16[2,128,128], index: 6, kind: input, shape index: {}]   ;;  %s21992_s7 = inlined_call_operand.vmem [shape: f32[2,1,128], index: 7, kind: input, shape index: {}]   ;;  %s21993_s8 = inlined_call_operand.hbm [shape: f32[2,1,128], index: 8, kind: input, shape index: {}]   ;;  %s21994_s9 = inlined_call_operand.hbm [shape: f32[2,1,128], index: 9, kind: input, shape index: {}]   ;;  %s21995_s10 = inlined_call_operand.hbm [shape: bf16[2,128,2048], index: 10, kind: input, shape index: {}]   ;;  %s21996_s11 = inlined_call_operand.hbm [shape: f32[2,1,2048], index: 11, kind: input, shape index: {}]   ;;  %s21997_s12 = inlined_call_operand.hbm [shape: bf16[2,2048,128], index: 12, kind: input, shape index: {}]   ;;  %s21998_s13 = inlined_call_operand.hbm [shape: f32[2,1,128], index: 13, kind: input, shape index: {}]   ;;  %s21999_s14 = inlined_call_operand.hbm [shape: f32[2,1,128], index: 14, kind: input, shape index: {}]   ;;  %s22000_s15 = inlined_call_operand.hbm [shape: f32[2,1,128], index: 15, kind: input, shape index: {}]   ;;  %s22001_s16 = inlined_call_operand.vmem [shape: bf16[128,32], index: 16, kind: input, shape index: {}]   ;;  %s22002_s17 = inlined_call_operand.hbm [shape: f32[1,32], index: 17, kind: input, shape index: {}]   ;;  %s22003_s18 = inlined_call_operand.vmem [shape: bf16[32,512], index: 18, kind: input, shape index: {}]   ;;  %s22004_s19 = inlined_call_operand.hbm [shape: f32[1,512], index: 19, kind: input, shape index: {}]   ;;  %s22005_s20 = inlined_call_operand.vmem [shape: bf16[128,512], index: 20, kind: input, shape index: {}]   ;;  %s22006_s21 = inlined_call_operand.hbm [shape: bf16[32,512], index: 21, kind: input, shape index: {}]   ;;  %s22007_s22 = inlined_call_operand.hbm [shape: f32[1,512], index: 22, kind: input, shape index: {}]   ;;  %s22008_s23 = inlined_call_operand.hbm [shape: bf16[128,512], index: 23, kind: input, shape index: {}]   ;;  %s22009_s24 = inlined_call_operand.vmem [shape: bf16[256,32], index: 24, kind: input, shape index: {}]   ;;  %s22010_s25 = inlined_call_operand.hbm [shape: f32[1,32], index: 25, kind: input, shape index: {}]   ;;  %s22011_s26 = inlined_call_operand.hbm [shape: f32[1,2], index: 26, kind: input, shape index: {}]   ;;  %s22012_s27 = inlined_call_operand.hbm [shape: f32[16,32], index: 27, kind: output, shape index: {}]  }
   0x1   :  { %22116 = sst [smem:[#allocation77_spill]] %s21985_s0 }
   0x2   :  { %22117 = sst [smem:[#allocation78_spill]] %s21986_s1 }
   0x3   :  { %22118 = sst [smem:[#allocation79_spill]] %s21987_s2 }
   0x4   :  { %22119 = sst [smem:[#allocation80_spill]] %s21988_s3 }
   0x5   :  { %22120 = sst [smem:[#allocation81_spill]] %s21989_s4 }
   0x6   :  { %22121 = sst [smem:[#allocation82_spill]] %s21990_s5 }
   0x7   :  { %22122 = sst [smem:[#allocation83_spill]] %s21991_s6 }
   0x8   :  { %22123 = sst [smem:[#allocation84_spill]] %s21992_s7 }
   0x9   :  { %22124 = sst [smem:[#allocation85_spill]] %s21993_s8 }
   0xa   :  { %22125 = sst [smem:[#allocation86_spill]] %s21994_s9 }
   0xb   :  { %22126 = sst [smem:[#allocation87_spill]] %s21995_s10 }
   0xc   :  { %22127 = sst [smem:[#allocation88_spill]] %s21996_s11 }
   0xd   :  { %22128 = sst [smem:[#allocation89_spill]] %s22009_s24 }
   0xe   :  { %22129 = sst [smem:[#allocation90_spill]] %s22012_s27 }
   0xf   :  { %32 = vsyncpa [#allocation4], 0 }
  0x10   :  { %33 = vsyncpa [#allocation7], 0 }
  0x11   :  { %34 = vsyncpa [#allocation10], 0 }
  0x12   :  { %35 = vsyncpa [#allocation13], 0 }
  0x13   :  { %36 = vsyncpa [#allocation16], 0 }
  0x14   :  { %37 = vsyncpa [#allocation19], 0 }
  0x15   :  { %38 = vsyncpa [#allocation22], 0 }
  0x16   :  { %39 = vsyncpa [#allocation25], 0 }
  0x17   :  { %40 = vsyncpa [#allocation28], 0 }
  0x18   :  { %41 = vsyncpa [#allocation31], 0 }
  0x19   :  { %42 = vsyncpa [#allocation34], 0 }
  0x1a   :  { %43 = vsyncpa [#allocation5], 0  ;;  %s19018_s7 = smov [#allocation6]   ;;  %s19019_s8 = smov [#allocation9]  }
  0x1b   :  { %s66_s4 = sshll.u32 %s19018_s7, 4  ;;  %s87_s30 = sshll.u32 %s19019_s8, 4  ;;  %s67_s4 = int_to_ptr.vmem [resolvable:$true] %s66_s4  ;;  %s19197_s30 = int_to_ptr.vmem [resolvable:$true] %s87_s30 }
  0x1c   :  { %s22130_s28 = sld [smem:[#allocation80_spill]] }
  0x22   :  { %s18532_s0 = scalar_lea.hbm %s22130_s28, 16 }
  0x23   :  { %p18533_p0 = scmp.ne.s32.totalorder %s22130_s28, %s18532_s0  ;;  %p18536_p1 = scmp.lt.u32.totalorder %s18532_s0, %s22130_s28 }
  0x25   :  { %p18538_p2 = pnand %p18536_p1, %p18533_p0 }
  0x27   :  { %18541 = shalt.err (!%p18538_p2)
}
  0x28   :  { %s18542_s11 = scalar_lea.vmem %s67_s4, 16  ;;  %s18546_s2 = scalar_lea.vmem %s67_s4, 32 }
  0x29   :  { %p18543_p3 = scmp.ne.s32.totalorder %s67_s4, %s18542_s11  ;;  %p18547_p4 = scmp.lt.s32.totalorder %s67_s4, %s67_s4 }
  0x2a   :  { %p18548_p5 = scmp.lt.s32.totalorder %s18546_s2, %s18542_s11 }
  0x2c   :  { %p18549_p6 = por %p18548_p5, %p18547_p4 }
  0x2e   :  { %p18550_p7 = pnand %p18549_p6, %p18543_p3 }
  0x30   :  { %18553 = shalt.err (!%p18550_p7)
}
  0x31   :  { %69 = dma.hbm_to_vmem [thread:$0]  %s22130_s28, 16, %s67_s4, [#allocation7]  }
  0x32   :  { %s22131_s5 = sld [smem:[#allocation82_spill]] }
  0x38   :  { %s18554_s10 = scalar_lea.hbm %s22131_s5, 96 }
  0x39   :  { %p18555_p8 = scmp.ne.s32.totalorder %s22131_s5, %s18554_s10  ;;  %p18558_p9 = scmp.lt.u32.totalorder %s18554_s10, %s22131_s5 }
  0x3b   :  { %p18560_p10 = pnand %p18558_p9, %p18555_p8 }
  0x3d   :  { %18563 = shalt.err (!%p18560_p10)
}
  0x3e   :  { %s18564_s11 = scalar_lea.vmem %s19197_s30, 96  ;;  %p18569_p12 = scmp.lt.s32.totalorder %s19197_s30, %s19197_s30 }
  0x3f   :  { %p18565_p11 = scmp.ne.s32.totalorder %s19197_s30, %s18564_s11  ;;  %p18570_p13 = scmp.lt.s32.totalorder %s18564_s11, %s18564_s11 }
  0x41   :  { %p18571_p0 = por %p18570_p13, %p18569_p12 }
  0x43   :  { %p18572_p1 = pnand %p18571_p0, %p18565_p11 }
  0x45   :  { %18575 = shalt.err (!%p18572_p1)
}
  0x46   :  { %s19020_s4 = smov 48   ;;  %s19021_s28 = smov 3  }
  0x47   :  { %93 = dma.hbm_to_vmem [thread:$0]  %s22131_s5, 96, %s19197_s30, [#allocation10], %s19020_s4, %s19020_s4, %s19021_s28  }
  0x48   :  { %s19022_s7 = smov [#allocation12]   ;;  %s22132_s29 = sld [smem:[#allocation85_spill]] }
  0x49   :  { %s113_s8 = sshll.u32 %s19022_s7, 4  ;;  %s114_s8 = int_to_ptr.vmem [resolvable:$true] %s113_s8 }
  0x4e   :  { %s18576_s0 = scalar_lea.hbm %s22132_s29, 32 }
  0x4f   :  { %p18577_p2 = scmp.ne.s32.totalorder %s22132_s29, %s18576_s0  ;;  %p18580_p3 = scmp.lt.u32.totalorder %s18576_s0, %s22132_s29 }
  0x51   :  { %p18582_p4 = pnand %p18580_p3, %p18577_p2 }
  0x53   :  { %18585 = shalt.err (!%p18582_p4)
}
  0x54   :  { %s18586_s24 = scalar_lea.vmem %s114_s8, 32  ;;  %p18591_p6 = scmp.lt.s32.totalorder %s114_s8, %s114_s8 }
  0x55   :  { %p18587_p5 = scmp.ne.s32.totalorder %s114_s8, %s18586_s24  ;;  %p18592_p7 = scmp.lt.s32.totalorder %s18586_s24, %s18586_s24 }
  0x57   :  { %p18593_p8 = por %p18592_p7, %p18591_p6 }
  0x59   :  { %p18594_p9 = pnand %p18593_p8, %p18587_p5 }
  0x5b   :  { %18597 = shalt.err (!%p18594_p9)
}
  0x5c   :  { %s22026_s30 = smov 16   ;;  %s22028_s5 = smov 1  }
  0x5d   :  { %119 = dma.hbm_to_vmem [thread:$0]  %s22132_s29, 32, %s114_s8, [#allocation13], %s22026_s30, %s22026_s30, %s22028_s5  }
  0x5e   :  { %s19025_s27 = smov [#allocation15]   ;;  %s22133_s9 = sld [smem:[#allocation87_spill]] }
  0x5f   :  { %s137_s2 = sshll.u32 %s19025_s27, 4  ;;  %s138_s2 = int_to_ptr.vmem [resolvable:$true] %s137_s2 }
  0x64   :  { %s18598_s10 = scalar_lea.hbm %s22133_s9, 32768 }
  0x65   :  { %p18599_p10 = scmp.ne.s32.totalorder %s22133_s9, %s18598_s10  ;;  %p18602_p11 = scmp.lt.u32.totalorder %s18598_s10, %s22133_s9 }
  0x67   :  { %p18604_p12 = pnand %p18602_p11, %p18599_p10 }
  0x69   :  { %18607 = shalt.err (!%p18604_p12)
}
  0x6a   :  { %s18608_s11 = scalar_lea.vmem %s138_s2, 32768  ;;  %p18613_p0 = scmp.lt.s32.totalorder %s138_s2, %s138_s2 }
  0x6b   :  { %p18609_p13 = scmp.ne.s32.totalorder %s138_s2, %s18608_s11  ;;  %p18614_p1 = scmp.lt.s32.totalorder %s18608_s11, %s18608_s11 }
  0x6d   :  { %p18615_p2 = por %p18614_p1, %p18613_p0 }
  0x6f   :  { %p18616_p3 = pnand %p18615_p2, %p18609_p13 }
  0x71   :  { %18619 = shalt.err (!%p18616_p3)
}
  0x72   :  { %s19026_s8 = smov 1024   ;;  %s19027_s29 = smov 64  }
  0x73   :  { %143 = dma.hbm_to_vmem [thread:$0]  %s22133_s9, 32768, %s138_s2, [#allocation16], %s19026_s8, %s19026_s8, %s19027_s29  }
  0x74   :  { %s19028_s27 = smov [#allocation18]   ;;  %s19029_s7 = smov [#allocation21]  }
  0x75   :  { %s161_s3 = sshll.u32 %s19028_s27, 4  ;;  %s185_s10 = sshll.u32 %s19029_s7, 4  ;;  %s162_s3 = int_to_ptr.vmem [resolvable:$true] %s161_s3  ;;  %s186_s10 = int_to_ptr.vmem [resolvable:$true] %s185_s10 }
  0x76   :  { %s18620_s1 = scalar_lea.hbm %s21997_s12, 32768 }
  0x77   :  { %p18621_p4 = scmp.ne.s32.totalorder %s21997_s12, %s18620_s1  ;;  %p18624_p5 = scmp.lt.u32.totalorder %s18620_s1, %s21997_s12 }
  0x79   :  { %p18626_p6 = pnand %p18624_p5, %p18621_p4 }
  0x7b   :  { %18629 = shalt.err (!%p18626_p6)
}
  0x7c   :  { %s18630_s2 = scalar_lea.vmem %s162_s3, 32768  ;;  %p18635_p8 = scmp.lt.s32.totalorder %s162_s3, %s162_s3 }
  0x7d   :  { %p18631_p7 = scmp.ne.s32.totalorder %s162_s3, %s18630_s2  ;;  %p18636_p9 = scmp.lt.s32.totalorder %s18630_s2, %s18630_s2 }
  0x7f   :  { %p18637_p10 = por %p18636_p9, %p18635_p8 }
  0x81   :  { %p18638_p11 = pnand %p18637_p10, %p18631_p7 }
  0x83   :  { %18641 = shalt.err (!%p18638_p11)
}
  0x84   :  { %s19030_s9 = smov 4   ;;  %s18642_s28 = scalar_lea.hbm %s21999_s14, 32 }
  0x85   :  { %167 = dma.hbm_to_vmem [thread:$0]  %s21997_s12, 32768, %s162_s3, [#allocation19], %s19027_s29, %s19027_s29, %s19030_s9  }
  0x86   :  { %p18643_p12 = scmp.ne.s32.totalorder %s21999_s14, %s18642_s28  ;;  %p18646_p13 = scmp.lt.u32.totalorder %s18642_s28, %s21999_s14 }
  0x88   :  { %p18648_p0 = pnand %p18646_p13, %p18643_p12 }
  0x8a   :  { %18651 = shalt.err (!%p18648_p0)
}
  0x8b   :  { %s18652_s1 = scalar_lea.vmem %s186_s10, 32  ;;  %p18657_p2 = scmp.lt.s32.totalorder %s186_s10, %s186_s10 }
  0x8c   :  { %p18653_p1 = scmp.ne.s32.totalorder %s186_s10, %s18652_s1  ;;  %p18658_p3 = scmp.lt.s32.totalorder %s18652_s1, %s18652_s1 }
  0x8e   :  { %p18659_p4 = por %p18658_p3, %p18657_p2 }
  0x90   :  { %p18660_p5 = pnand %p18659_p4, %p18653_p1 }
  0x92   :  { %18663 = shalt.err (!%p18660_p5)
}
  0x93   :  { %s22134_s12 = smov 1   ;;  %s22135_s3 = smov 16  }
  0x94   :  { %191 = dma.hbm_to_vmem [thread:$0]  %s21999_s14, 32, %s186_s10, [#allocation22], %s22135_s3, %s22135_s3, %s22134_s12  }
  0x95   :  { %s19031_s2 = smov [#allocation24]   ;;  %s18664_s5 = scalar_lea.hbm %s22002_s17, 16 }
  0x96   :  { %s212_s8 = sshll.u32 %s19031_s2, 4  ;;  %p18665_p6 = scmp.ne.s32.totalorder %s22002_s17, %s18664_s5  ;;  %s213_s8 = int_to_ptr.vmem [resolvable:$true] %s212_s8 }
  0x97   :  { %p18668_p7 = scmp.lt.u32.totalorder %s18664_s5, %s22002_s17 }
  0x99   :  { %p18670_p8 = pnand %p18668_p7, %p18665_p6 }
  0x9b   :  { %18673 = shalt.err (!%p18670_p8)
}
  0x9c   :  { %s18674_s0 = scalar_lea.vmem %s213_s8, 16  ;;  %s18678_s14 = scalar_lea.vmem %s213_s8, 32 }
  0x9d   :  { %p18675_p9 = scmp.ne.s32.totalorder %s213_s8, %s18674_s0  ;;  %p18679_p10 = scmp.lt.s32.totalorder %s213_s8, %s213_s8 }
  0x9e   :  { %p18680_p11 = scmp.lt.s32.totalorder %s18678_s14, %s18674_s0 }
  0xa0   :  { %p18681_p12 = por %p18680_p11, %p18679_p10 }
  0xa2   :  { %p18682_p13 = pnand %p18681_p12, %p18675_p9 }
  0xa4   :  { %18685 = shalt.err (!%p18682_p13)
}
  0xa5   :  { %215 = dma.hbm_to_vmem [thread:$0]  %s22002_s17, 16, %s213_s8, [#allocation25]  }
  0xa6   :  { %s19032_s6 = smov [#allocation27]   ;;  %s19033_s2 = smov [#allocation30]  }
  0xa7   :  { %s235_s11 = sshll.u32 %s19032_s6, 4  ;;  %s257_s4 = sshll.u32 %s19033_s2, 4  ;;  %s236_s11 = int_to_ptr.vmem [resolvable:$true] %s235_s11  ;;  %s258_s4 = int_to_ptr.vmem [resolvable:$true] %s257_s4 }
  0xa8   :  { %s18686_s28 = scalar_lea.hbm %s22006_s21, 1024 }
  0xa9   :  { %p18687_p0 = scmp.ne.s32.totalorder %s22006_s21, %s18686_s28  ;;  %p18690_p1 = scmp.lt.u32.totalorder %s18686_s28, %s22006_s21 }
  0xab   :  { %p18692_p2 = pnand %p18690_p1, %p18687_p0 }
  0xad   :  { %18695 = shalt.err (!%p18692_p2)
}
  0xae   :  { %s18696_s17 = scalar_lea.vmem %s236_s11, 1024  ;;  %p18701_p4 = scmp.lt.s32.totalorder %s236_s11, %s236_s11 }
  0xaf   :  { %p18697_p3 = scmp.ne.s32.totalorder %s236_s11, %s18696_s17  ;;  %p18702_p5 = scmp.lt.s32.totalorder %s18696_s17, %s18696_s17 }
  0xb1   :  { %p18703_p6 = por %p18702_p5, %p18701_p4 }
  0xb3   :  { %p18704_p7 = pnand %p18703_p6, %p18697_p3 }
  0xb5   :  { %18707 = shalt.err (!%p18704_p7)
}
  0xb6   :  { %s22030_s8 = smov 256   ;;  %s18708_s2 = scalar_lea.hbm %s22008_s23, 4096 }
  0xb7   :  { %241 = dma.hbm_to_vmem [thread:$0]  %s22006_s21, 1024, %s236_s11, [#allocation28], %s22030_s8, %s22030_s8, %s22135_s3  }
  0xb8   :  { %p18709_p8 = scmp.ne.s32.totalorder %s22008_s23, %s18708_s2  ;;  %p18712_p9 = scmp.lt.u32.totalorder %s18708_s2, %s22008_s23 }
  0xba   :  { %p18714_p10 = pnand %p18712_p9, %p18709_p8 }
  0xbc   :  { %18717 = shalt.err (!%p18714_p10)
}
  0xbd   :  { %s18718_s7 = scalar_lea.vmem %s258_s4, 4096  ;;  %p18723_p12 = scmp.lt.s32.totalorder %s258_s4, %s258_s4 }
  0xbe   :  { %p18719_p11 = scmp.ne.s32.totalorder %s258_s4, %s18718_s7  ;;  %p18724_p13 = scmp.lt.s32.totalorder %s18718_s7, %s18718_s7 }
  0xc0   :  { %p18725_p0 = por %p18724_p13, %p18723_p12 }
  0xc2   :  { %p18726_p1 = pnand %p18725_p0, %p18719_p11 }
  0xc4   :  { %18729 = shalt.err (!%p18726_p1)
}
  0xc5   :  { %263 = dma.hbm_to_vmem [thread:$0]  %s22008_s23, 4096, %s258_s4, [#allocation31], %s22030_s8, %s22030_s8, %s22135_s3  }
  0xc6   :  { %s19035_s24 = smov [#allocation3]   ;;  %s19036_s17 = smov [#allocation8]  }
  0xc7   :  { %s53_s0 = sshll.u32 %s19035_s24, 4  ;;  %s75_s14 = sshll.u32 %s19036_s17, 4  ;;  %s54_s0 = int_to_ptr.vmem [resolvable:$true] %s53_s0  ;;  %s76_s14 = int_to_ptr.vmem [resolvable:$true] %s75_s14 }
  0xc8   :  { %s22136_s6 = sld [smem:[#allocation79_spill]] }
  0xce   :  { %s18730_s2 = scalar_lea.hbm %s22136_s6, 256 }
  0xcf   :  { %p18731_p2 = scmp.ne.s32.totalorder %s22136_s6, %s18730_s2  ;;  %p18734_p3 = scmp.lt.u32.totalorder %s18730_s2, %s22136_s6 }
  0xd1   :  { %p18736_p4 = pnand %p18734_p3, %p18731_p2 }
  0xd3   :  { %18739 = shalt.err (!%p18736_p4)
}
  0xd4   :  { %s18740_s23 = scalar_lea.vmem %s54_s0, 256  ;;  %p18745_p6 = scmp.lt.s32.totalorder %s54_s0, %s54_s0 }
  0xd5   :  { %p18741_p5 = scmp.ne.s32.totalorder %s54_s0, %s18740_s23  ;;  %p18746_p7 = scmp.lt.s32.totalorder %s18740_s23, %s18740_s23 }
  0xd7   :  { %p18747_p8 = por %p18746_p7, %p18745_p6 }
  0xd9   :  { %p18748_p9 = pnand %p18747_p8, %p18741_p5 }
  0xdb   :  { %18751 = shalt.err (!%p18748_p9)
}
  0xdc   :  { %59 = dma.hbm_to_vmem [thread:$0]  %s22136_s6, 256, %s54_s0, [#allocation4], %s19027_s29, %s19027_s29, %s19030_s9  }
  0xdd   :  { %s22137_s24 = sld [smem:[#allocation81_spill]] }
  0xe3   :  { %s18752_s17 = scalar_lea.hbm %s22137_s24, 6144 }
  0xe4   :  { %p18753_p10 = scmp.ne.s32.totalorder %s22137_s24, %s18752_s17  ;;  %p18756_p11 = scmp.lt.u32.totalorder %s18752_s17, %s22137_s24 }
  0xe6   :  { %p18758_p12 = pnand %p18756_p11, %p18753_p10 }
  0xe8   :  { %18761 = shalt.err (!%p18758_p12)
}
  0xe9   :  { %s18762_s5 = scalar_lea.vmem %s76_s14, 6144  ;;  %p18767_p0 = scmp.lt.s32.totalorder %s76_s14, %s76_s14 }
  0xea   :  { %p18763_p13 = scmp.ne.s32.totalorder %s76_s14, %s18762_s5  ;;  %p18768_p1 = scmp.lt.s32.totalorder %s18762_s5, %s18762_s5 }
  0xec   :  { %p18769_p2 = por %p18768_p1, %p18767_p0 }
  0xee   :  { %p18770_p3 = pnand %p18769_p2, %p18763_p13 }
  0xf0   :  { %18773 = shalt.err (!%p18770_p3)
}
  0xf1   :  { %s19037_s0 = smov 192   ;;  %s19038_s6 = smov 12  }
  0xf2   :  { %81 = dma.hbm_to_vmem [thread:$0]  %s22137_s24, 6144, %s76_s14, [#allocation7], %s19037_s0, %s19037_s0, %s19038_s6  }
  0xf3   :  { %s19039_s23 = smov [#allocation11]   ;;  %s19040_s7 = smov [#allocation14]  }
  0xf4   :  { %s99_s4 = sshll.u32 %s19039_s23, 4  ;;  %s125_s21 = sshll.u32 %s19040_s7, 4  ;;  %s100_s4 = int_to_ptr.vmem [resolvable:$true] %s99_s4  ;;  %s126_s21 = int_to_ptr.vmem [resolvable:$true] %s125_s21 }
  0xf5   :  { %s22138_s10 = sld [smem:[#allocation83_spill]] }
  0xfb   :  { %s18774_s1 = scalar_lea.hbm %s22138_s10, 2048 }
  0xfc   :  { %p18775_p4 = scmp.ne.s32.totalorder %s22138_s10, %s18774_s1  ;;  %p18778_p5 = scmp.lt.u32.totalorder %s18774_s1, %s22138_s10 }
  0xfe   :  { %p18780_p6 = pnand %p18778_p5, %p18775_p4 }
 0x100   :  { %18783 = shalt.err (!%p18780_p6)
}
 0x101   :  { %s18784_s14 = scalar_lea.vmem %s100_s4, 2048  ;;  %p18789_p8 = scmp.lt.s32.totalorder %s100_s4, %s100_s4 }
 0x102   :  { %p18785_p7 = scmp.ne.s32.totalorder %s100_s4, %s18784_s14  ;;  %p18790_p9 = scmp.lt.s32.totalorder %s18784_s14, %s18784_s14 }
 0x104   :  { %p18791_p10 = por %p18790_p9, %p18789_p8 }
 0x106   :  { %p18792_p11 = pnand %p18791_p10, %p18785_p7 }
 0x108   :  { %18795 = shalt.err (!%p18792_p11)
}
 0x109   :  { %105 = dma.hbm_to_vmem [thread:$0]  %s22138_s10, 2048, %s100_s4, [#allocation10], %s19027_s29, %s19027_s29, %s19030_s9  }
 0x10a   :  { %s22139_s28 = sld [smem:[#allocation86_spill]] }
 0x110   :  { %s18796_s27 = scalar_lea.hbm %s22139_s28, 32 }
 0x111   :  { %p18797_p12 = scmp.ne.s32.totalorder %s22139_s28, %s18796_s27  ;;  %p18800_p13 = scmp.lt.u32.totalorder %s18796_s27, %s22139_s28 }
 0x113   :  { %p18802_p0 = pnand %p18800_p13, %p18797_p12 }
 0x115   :  { %18805 = shalt.err (!%p18802_p0)
}
 0x116   :  { %s18806_s1 = scalar_lea.vmem %s126_s21, 32  ;;  %p18811_p2 = scmp.lt.s32.totalorder %s126_s21, %s126_s21 }
 0x117   :  { %p18807_p1 = scmp.ne.s32.totalorder %s126_s21, %s18806_s1  ;;  %p18812_p3 = scmp.lt.s32.totalorder %s18806_s1, %s18806_s1 }
 0x119   :  { %p18813_p4 = por %p18812_p3, %p18811_p2 }
 0x11b   :  { %p18814_p5 = pnand %p18813_p4, %p18807_p1 }
 0x11d   :  { %18817 = shalt.err (!%p18814_p5)
}
 0x11e   :  { %131 = dma.hbm_to_vmem [thread:$0]  %s22139_s28, 32, %s126_s21, [#allocation13], %s22135_s3, %s22135_s3, %s22134_s12  }
 0x11f   :  { %s19041_s10 = smov [#allocation17]   ;;  %s19042_s30 = smov [#allocation20]  }
 0x120   :  { %s149_s2 = sshll.u32 %s19041_s10, 4  ;;  %s173_s5 = sshll.u32 %s19042_s30, 4  ;;  %s150_s2 = int_to_ptr.vmem [resolvable:$true] %s149_s2  ;;  %s174_s5 = int_to_ptr.vmem [resolvable:$true] %s173_s5 }
 0x121   :  { %s22140_s0 = sld [smem:[#allocation88_spill]] }
 0x127   :  { %s18818_s6 = scalar_lea.hbm %s22140_s0, 512 }
 0x128   :  { %p18819_p6 = scmp.ne.s32.totalorder %s22140_s0, %s18818_s6  ;;  %p18822_p7 = scmp.lt.u32.totalorder %s18818_s6, %s22140_s0 }
 0x12a   :  { %p18824_p8 = pnand %p18822_p7, %p18819_p6 }
 0x12c   :  { %18827 = shalt.err (!%p18824_p8)
}
 0x12d   :  { %s18828_s21 = scalar_lea.vmem %s150_s2, 512  ;;  %p18833_p10 = scmp.lt.s32.totalorder %s150_s2, %s150_s2 }
 0x12e   :  { %p18829_p9 = scmp.ne.s32.totalorder %s150_s2, %s18828_s21  ;;  %p18834_p11 = scmp.lt.s32.totalorder %s18828_s21, %s18828_s21 }
 0x130   :  { %p18835_p12 = por %p18834_p11, %p18833_p10 }
 0x132   :  { %p18836_p13 = pnand %p18835_p12, %p18829_p9 }
 0x134   :  { %18839 = shalt.err (!%p18836_p13)
}
 0x135   :  { %s22141_s28 = smov 256   ;;  %s18840_s4 = scalar_lea.hbm %s21998_s13, 32 }
 0x136   :  { %155 = dma.hbm_to_vmem [thread:$0]  %s22140_s0, 512, %s150_s2, [#allocation16], %s22141_s28, %s22141_s28, %s22135_s3  }
 0x137   :  { %p18841_p0 = scmp.ne.s32.totalorder %s21998_s13, %s18840_s4  ;;  %p18844_p1 = scmp.lt.u32.totalorder %s18840_s4, %s21998_s13 }
 0x139   :  { %p18846_p2 = pnand %p18844_p1, %p18841_p0 }
 0x13b   :  { %18849 = shalt.err (!%p18846_p2)
}
 0x13c   :  { %s18850_s6 = scalar_lea.vmem %s174_s5, 32  ;;  %p18855_p4 = scmp.lt.s32.totalorder %s174_s5, %s174_s5 }
 0x13d   :  { %p18851_p3 = scmp.ne.s32.totalorder %s174_s5, %s18850_s6  ;;  %p18856_p5 = scmp.lt.s32.totalorder %s18850_s6, %s18850_s6 }
 0x13f   :  { %p18857_p6 = por %p18856_p5, %p18855_p4 }
 0x141   :  { %p18858_p7 = pnand %p18857_p6, %p18851_p3 }
 0x143   :  { %18861 = shalt.err (!%p18858_p7)
}
 0x144   :  { %179 = dma.hbm_to_vmem [thread:$0]  %s21998_s13, 32, %s174_s5, [#allocation19], %s22135_s3, %s22135_s3, %s22134_s12  }
 0x145   :  { %s19043_s8 = smov [#allocation23]   ;;  %s19044_s23 = smov [#allocation26]  }
 0x146   :  { %s197_s27 = sshll.u32 %s19043_s8, 4  ;;  %s224_s7 = sshll.u32 %s19044_s23, 4  ;;  %s198_s27 = int_to_ptr.vmem [resolvable:$true] %s197_s27  ;;  %s225_s7 = int_to_ptr.vmem [resolvable:$true] %s224_s7 }
 0x147   :  { %s18862_s11 = scalar_lea.hbm %s22000_s15, 32 }
 0x148   :  { %p18863_p8 = scmp.ne.s32.totalorder %s22000_s15, %s18862_s11  ;;  %p18866_p9 = scmp.lt.u32.totalorder %s18862_s11, %s22000_s15 }
 0x14a   :  { %p18868_p10 = pnand %p18866_p9, %p18863_p8 }
 0x14c   :  { %18871 = shalt.err (!%p18868_p10)
}
 0x14d   :  { %s18872_s13 = scalar_lea.vmem %s198_s27, 32  ;;  %p18877_p12 = scmp.lt.s32.totalorder %s198_s27, %s198_s27 }
 0x14e   :  { %p18873_p11 = scmp.ne.s32.totalorder %s198_s27, %s18872_s13  ;;  %p18878_p13 = scmp.lt.s32.totalorder %s18872_s13, %s18872_s13 }
 0x150   :  { %p18879_p0 = por %p18878_p13, %p18877_p12 }
 0x152   :  { %p18880_p1 = pnand %p18879_p0, %p18873_p11 }
 0x154   :  { %18883 = shalt.err (!%p18880_p1)
}
 0x155   :  { %203 = dma.hbm_to_vmem [thread:$0]  %s22000_s15, 32, %s198_s27, [#allocation22], %s22135_s3, %s22135_s3, %s22134_s12  }
 0x156   :  { %s18884_s24 = scalar_lea.hbm %s22004_s19, 64 }
 0x157   :  { %p18885_p2 = scmp.ne.s32.totalorder %s22004_s19, %s18884_s24  ;;  %p18888_p3 = scmp.lt.u32.totalorder %s18884_s24, %s22004_s19 }
 0x159   :  { %p18890_p4 = pnand %p18888_p3, %p18885_p2 }
 0x15b   :  { %18893 = shalt.err (!%p18890_p4)
}
 0x15c   :  { %s18894_s23 = scalar_lea.vmem %s225_s7, 64  ;;  %p18899_p6 = scmp.lt.s32.totalorder %s225_s7, %s225_s7 }
 0x15d   :  { %p18895_p5 = scmp.ne.s32.totalorder %s225_s7, %s18894_s23  ;;  %p18900_p7 = scmp.lt.s32.totalorder %s18894_s23, %s18894_s23 }
 0x15f   :  { %p18901_p8 = por %p18900_p7, %p18899_p6 }
 0x161   :  { %p18902_p9 = pnand %p18901_p8, %p18895_p5 }
 0x163   :  { %18905 = shalt.err (!%p18902_p9)
}
 0x164   :  { %227 = dma.hbm_to_vmem [thread:$0]  %s22004_s19, 64, %s225_s7, [#allocation25]  }
 0x165   :  { %s19045_s3 = smov [#allocation29]   ;;  %s19046_s21 = smov [#allocation32]  }
 0x166   :  { %s248_s27 = sshll.u32 %s19045_s3, 4  ;;  %s272_s28 = sshll.u32 %s19046_s21, 4  ;;  %s249_s27 = int_to_ptr.vmem [resolvable:$true] %s248_s27  ;;  %s273_s28 = int_to_ptr.vmem [resolvable:$true] %s272_s28 }
 0x167   :  { %s18906_s1 = scalar_lea.hbm %s22007_s22, 64 }
 0x168   :  { %p18907_p10 = scmp.ne.s32.totalorder %s22007_s22, %s18906_s1  ;;  %p18910_p11 = scmp.lt.u32.totalorder %s18906_s1, %s22007_s22 }
 0x16a   :  { %p18912_p12 = pnand %p18910_p11, %p18907_p10 }
 0x16c   :  { %18915 = shalt.err (!%p18912_p12)
}
 0x16d   :  { %s18916_s19 = scalar_lea.vmem %s249_s27, 64  ;;  %p18921_p0 = scmp.lt.s32.totalorder %s249_s27, %s249_s27 }
 0x16e   :  { %p18917_p13 = scmp.ne.s32.totalorder %s249_s27, %s18916_s19  ;;  %p18922_p1 = scmp.lt.s32.totalorder %s18916_s19, %s18916_s19 }
 0x170   :  { %p18923_p2 = por %p18922_p1, %p18921_p0 }
 0x172   :  { %p18924_p3 = pnand %p18923_p2, %p18917_p13 }
 0x174   :  { %18927 = shalt.err (!%p18924_p3)
}
 0x175   :  { %251 = dma.hbm_to_vmem [thread:$0]  %s22007_s22, 64, %s249_s27, [#allocation28]  }
 0x176   :  { %s18928_s24 = scalar_lea.hbm %s22010_s25, 16 }
 0x177   :  { %p18929_p4 = scmp.ne.s32.totalorder %s22010_s25, %s18928_s24  ;;  %p18932_p5 = scmp.lt.u32.totalorder %s18928_s24, %s22010_s25 }
 0x179   :  { %p18934_p6 = pnand %p18932_p5, %p18929_p4 }
 0x17b   :  { %18937 = shalt.err (!%p18934_p6)
}
 0x17c   :  { %s18938_s23 = scalar_lea.vmem %s273_s28, 16  ;;  %s18942_s15 = scalar_lea.vmem %s273_s28, 32 }
 0x17d   :  { %p18939_p7 = scmp.ne.s32.totalorder %s273_s28, %s18938_s23  ;;  %p18943_p8 = scmp.lt.s32.totalorder %s273_s28, %s273_s28 }
 0x17e   :  { %p18944_p9 = scmp.lt.s32.totalorder %s18942_s15, %s18938_s23 }
 0x180   :  { %p18945_p10 = por %p18944_p9, %p18943_p8 }
 0x182   :  { %p18946_p11 = pnand %p18945_p10, %p18939_p7 }
 0x184   :  { %18949 = shalt.err (!%p18946_p11)
}
 0x185   :  { %275 = dma.hbm_to_vmem [thread:$0]  %s22010_s25, 16, %s273_s28, [#allocation31]  }
 0x186   :  { %s19047_s3 = smov [#allocation33]   ;;  %s18950_s17 = scalar_lea.hbm %s22011_s26, 16 }
 0x187   :  { %s282_s27 = sshll.u32 %s19047_s3, 4  ;;  %p18951_p12 = scmp.ne.s32.totalorder %s22011_s26, %s18950_s17  ;;  %s283_s27 = int_to_ptr.vmem [resolvable:$true] %s282_s27 }
 0x188   :  { %p18954_p13 = scmp.lt.u32.totalorder %s18950_s17, %s22011_s26 }
 0x18a   :  { %p18956_p0 = pnand %p18954_p13, %p18951_p12 }
 0x18c   :  { %18959 = shalt.err (!%p18956_p0)
}
 0x18d   :  { %s18960_s5 = scalar_lea.vmem %s283_s27, 16  ;;  %s18964_s25 = scalar_lea.vmem %s283_s27, 32 }
 0x18e   :  { %p18961_p1 = scmp.ne.s32.totalorder %s283_s27, %s18960_s5  ;;  %p18965_p2 = scmp.lt.s32.totalorder %s283_s27, %s283_s27 }
 0x18f   :  { %p18966_p3 = scmp.lt.s32.totalorder %s18964_s25, %s18960_s5 }
 0x191   :  { %p18967_p4 = por %p18966_p3, %p18965_p2 }
 0x193   :  { %p18968_p5 = pnand %p18967_p4, %p18961_p1 }
 0x195   :  { %18971 = shalt.err (!%p18968_p5)
}
 0x196   :  { %285 = dma.hbm_to_vmem [thread:$0]  %s22011_s26, 16, %s283_s27, [#allocation34]  }
 0x197   :  { %18994 = dma.done.wait [#allocation4], 256  }
 0x198   :  { %18995 = vsyncadd [#allocation4], 4294967040 }
 0x199   :  { %18996 = dma.done.wait [#allocation7], 6160  }
 0x19a   :  { %18997 = vsyncadd [#allocation7], 4294961136 }
 0x19b   :  { %18998 = dma.done.wait [#allocation10], 2144  }
 0x19c   :  { %18999 = vsyncadd [#allocation10], 4294965152 }
 0x19d   :  { %19000 = dma.done.wait [#allocation13], 64  }
 0x19e   :  { %19001 = vsyncadd [#allocation13], 4294967232 }
 0x19f   :  { %19002 = dma.done.wait [#allocation16], 33280  }
 0x1a0   :  { %19003 = vsyncadd [#allocation16], 4294934016 }
 0x1a1   :  { %19004 = dma.done.wait [#allocation19], 32800  }
 0x1a2   :  { %19005 = vsyncadd [#allocation19], 4294934496 }
 0x1a3   :  { %19006 = dma.done.wait [#allocation22], 64  }
 0x1a4   :  { %19007 = vsyncadd [#allocation22], 4294967232 }
 0x1a5   :  { %19008 = dma.done.wait [#allocation25], 80  }
 0x1a6   :  { %19009 = vsyncadd [#allocation25], 4294967216 }
 0x1a7   :  { %19010 = dma.done.wait [#allocation28], 1088  }
 0x1a8   :  { %19011 = vsyncadd [#allocation28], 4294966208 }
 0x1a9   :  { %19012 = dma.done.wait [#allocation31], 4112  }
 0x1aa   :  { %19013 = vsyncadd [#allocation31], 4294963184 }
 0x1ab   :  { %19014 = dma.done.wait [#allocation34], 16  }
 0x1ac   :  { %19015 = vsyncadd [#allocation34], 4294967280  ;;  %v19048_v0 = vmov 0.0   ;;  %vm19049_vm0 = vmmov 0   ;;  %v17143_v1 = vld [vmem:[#allocation3] sm:$0xff]   ;;  %v17144_v2 = vld [vmem:[#allocation3 + $0x8] sm:$0xff]   ;;  %v456_v42 = vlaneseq }
 0x1ad   :  { %16771 = vmatprep.subr.bf16.mxu0 %v19048_v0  ;;  %16775 = vmatprep.mubr.msk.bf16.mxu0 %vm19049_vm0, %v19048_v0  ;;  %s22142_s10 = sld [smem:[#allocation77_spill]]  ;;  %v17145_v5 = vld [vmem:[#allocation8 + $0x4] ss:$12 sps:$4 sm:$0xff]   ;;  %v17147_v6 = vld [vmem:[#allocation8] ss:$12 sps:$4 sm:$0xff]   ;;  %vm373_vm1 = vcmask 261120  }
 0x1ae   :  { %16772 = vmatpush3.bf16.msra.mxu0 %v17143_v1  ;;  %v17148_v7 = vld [vmem:[#allocation8 + $0x8] ss:$12 sps:$4 sm:$0xff]   ;;  %599 = vmatprep.subr.bf16.mxu1 %v17145_v5  ;;  %v17151_v10 = vld [vmem:[#allocation8 + $0x18] ss:$12 sps:$4 sm:$0xff]   ;;  %v17152_v12 = vld [vmem:[#allocation8 + $0x20] ss:$12 sps:$4 sm:$0xff]  }
 0x1af   :  { %16773 = vmatprep.subr.bf16.mxu0 %v19048_v0  ;;  %v17149_v9 = vld [vmem:[#allocation8 + $0x1c] ss:$12 sps:$4 sm:$0xff]   ;;  %600 = vmatpush1.bf16.msra.mxu1 %v17147_v6  ;;  %v17153_v11 = vld [vmem:[#allocation8 + $0x34] ss:$12 sps:$4 sm:$0xff]   ;;  %v17157_v14 = vld [vmem:[#allocation8 + $0x4c] ss:$12 sps:$4 sm:$0xff]  }
 0x1b0   :  { %601 = vmatprep.subr.bf16.mxu1 %v17149_v9  ;;  %v17155_v13 = vld [vmem:[#allocation8 + $0x30] ss:$12 sps:$4 sm:$0xff]   ;;  %v17156_v15 = vld [vmem:[#allocation8 + $0x38] ss:$12 sps:$4 sm:$0xff]   ;;  %v17159_v16 = vld [vmem:[#allocation8 + $0x48] ss:$12 sps:$4 sm:$0xff]  }
 0x1b1   :  { %v17161_v17 = vld [vmem:[#allocation8 + $0x64] ss:$12 sps:$4 sm:$0xff]   ;;  %v17163_v19 = vld [vmem:[#allocation8 + $0x60] ss:$12 sps:$4 sm:$0xff]   ;;  %v17165_v20 = vld [vmem:[#allocation8 + $0x7c] ss:$12 sps:$4 sm:$0xff]  }
 0x1b2   :  { %16774 = vmatpush3.bf16.msra.mxu0 %v17144_v2  ;;  %v17160_v18 = vld [vmem:[#allocation8 + $0x50] ss:$12 sps:$4 sm:$0xff]   ;;  %v17164_v21 = vld [vmem:[#allocation8 + $0x68] ss:$12 sps:$4 sm:$0xff]   ;;  %v17167_v22 = vld [vmem:[#allocation8 + $0x78] ss:$12 sps:$4 sm:$0xff]  }
 0x1b3   :  { %v347_v3 = vld [vmem:[%s22142_s10] sm:$0xff]  ;;  %v348_v4 = vld [vmem:[%s22142_s10 + $0x8] sm:$0xff]  ;;  %16779 = vmatprep.subr.bf16.mxu0 %v19048_v0  ;;  %602 = vmatpush1.bf16.msra.mxu1 %v17151_v10  ;;  %v22031_v30 = vmov 0   ;;  %v15006_v31 = vld [vmem:[#allocation6] ss:$0 sm:$0xff]  ;;  %s22143_s2 = sld [smem:[#allocation78_spill]] }
 0x1b4   :  { %v19488_v8 = vpack.c.bf16 %v348_v4, %v347_v3  ;;  %603 = vmatprep.subr.bf16.mxu1 %v17153_v11  ;;  %v17168_v23 = vld [vmem:[#allocation8 + $0x80] ss:$12 sps:$4 sm:$0xff]   ;;  %v17171_v25 = vld [vmem:[#allocation8 + $0x90] ss:$12 sps:$4 sm:$0xff]   ;;  %v17172_v26 = vld [vmem:[#allocation8 + $0x98] ss:$12 sps:$4 sm:$0xff]   ;;  %631 = vmatprep.mubr.bf16.mxu1 %v22031_v30 }
 0x1b5   :  { %v17169_v24 = vld [vmem:[#allocation8 + $0x94] ss:$12 sps:$4 sm:$0xff]   ;;  %v17173_v27 = vld [vmem:[#allocation8 + $0xac] ss:$12 sps:$4 sm:$0xff]   ;;  %v17176_v29 = vld [vmem:[#allocation8 + $0xb0] ss:$12 sps:$4 sm:$0xff]   ;;  %17140 = vset.pattern.permute.xlu0 %v22031_v30 }
 0x1b6   :  { %16776 = vmatmul.mubr.msk.bf16.vlgmr.msra.gmra.mrb[0].mxu0 %vm373_vm1, %v19488_v8  ;;  %v17175_v28 = vld [vmem:[#allocation8 + $0xa8] ss:$12 sps:$4 sm:$0xff]   ;;  %v19519_v43 = vshrl.u32 %v456_v42, 7  ;;  %v453_v45 = vld [vmem:[#allocation9] sm:$0x7]  ;;  %vm811_vm2 = vcmask 1043456  }
 0x1b7   :  { %16780 = vmatpush3.bf16.msra.mxu0 %v17148_v7  ;;  %16795 = vmatprep.mubr.msk.bf16.mxu0 %vm19049_vm0, %v19048_v0  ;;  %s19051_s0 = smov 96   ;;  %vm781_vm3 = vcmask 64512   ;;  %s19052_s8 = smov 32   ;;  %vm1599_vm4 = vcmask 523264   ;;  %vm1602_vm5 = vcmask 785408   ;;  %vm14944_vm6 = vcmask 8192  }
 0x1b8   :  { %16781 = vmatprep.subr.bf16.mxu0 %v19048_v0  ;;  %604 = vmatpush1.bf16.msra.mxu1 %v17155_v13  ;;  %v19522_v44 = vsub.s32 2, %v19519_v43  ;;  %v19525_v46 = vsub.s32 1, %v19519_v43  ;;  %v19530_v49 = vsub.s32 0, %v19519_v43  ;;  %s22144_s22 = sld [smem:[#allocation84_spill]]  ;;  %vm9570_vm7 = vcmask 1041409   ;;  %s22301_s11 = sld [smem:[#allocation89_spill]] }
 0x1b9   :  { %605 = vmatprep.subr.bf16.mxu1 %v17157_v14  ;;  %v418_v33 = vld [vmem:[%s22143_s2] sm:$0xff]  ;;  %s19054_s4 = smov [#allocation35]  }
 0x1ba   :  { %v467_v47 = vrot.slane %v453_v45, %v19522_v44  ;;  %v463_v48 = vrot.slane %v453_v45, %v19525_v46  ;;  %v459_v61 = vrot.slane %v453_v45, %v19530_v49  ;;  %s14984_s13 = sshll.u32 %s19054_s4, 4  ;;  %s14985_s13 = int_to_ptr.vmem [resolvable:$true] %s14984_s13 }
 0x1bb   :  { %16782 = vmatpush3.bf16.msra.mxu0 %v17152_v12  ;;  %s18972_s5 = scalar_lea.vmem %s14985_s13, 256  ;;  %p18977_p7 = scmp.lt.s32.totalorder %s14985_s13, %s14985_s13 }
 0x1bc   :  { %16783 = vmatprep.subr.bf16.mxu0 %v19048_v0  ;;  %606 = vmatpush1.bf16.msra.mxu1 %v17159_v16  ;;  %p18973_p6 = scmp.ne.s32.totalorder %s14985_s13, %s18972_s5  ;;  %p18978_p8 = scmp.lt.s32.totalorder %s18972_s5, %s18972_s5 }
 0x1bd   :  { %607 = vmatprep.subr.bf16.mxu1 %v17161_v17 }
 0x1be   :  { %p18979_p9 = por %p18978_p8, %p18977_p7 }
 0x1bf   :  { %16784 = vmatpush3.bf16.msra.mxu0 %v17156_v15 }
 0x1c0   :  { %16785 = vmatprep.subr.bf16.mxu0 %v19048_v0  ;;  %608 = vmatpush1.bf16.msra.mxu1 %v17163_v19  ;;  %p18980_p10 = pnand %p18979_p9, %p18973_p6 }
 0x1c1   :  { %609 = vmatprep.subr.bf16.mxu1 %v17165_v20 }
 0x1c3   :  { %16786 = vmatpush3.bf16.msra.mxu0 %v17160_v18 }
 0x1c4   :  { %16787 = vmatprep.subr.bf16.mxu0 %v19048_v0  ;;  %610 = vmatpush1.bf16.msra.mxu1 %v17167_v22 }
 0x1c5   :  { %611 = vmatprep.subr.bf16.mxu1 %v17169_v24 }
 0x1c7   :  { %16788 = vmatpush3.bf16.msra.mxu0 %v17164_v21 }
 0x1c8   :  { %16789 = vmatprep.subr.bf16.mxu0 %v19048_v0  ;;  %612 = vmatpush1.bf16.msra.mxu1 %v17171_v25 }
 0x1c9   :  { %613 = vmatprep.subr.bf16.mxu1 %v17173_v27 }
 0x1cb   :  { %16790 = vmatpush3.bf16.msra.mxu0 %v17168_v23 }
 0x1cc   :  { %16791 = vmatprep.subr.bf16.mxu0 %v19048_v0  ;;  %614 = vmatpush1.bf16.msra.mxu1 %v17175_v28 }
 0x1cd   :  { %16811 = vmatprep.subr.bf16.mxu1 %v19048_v0 }
 0x1cf   :  { %16792 = vmatpush3.bf16.msra.mxu0 %v17172_v26 }
 0x1d0   :  { %16793 = vmatprep.subr.bf16.mxu0 %v19048_v0 }
 0x1d3   :  { %16794 = vmatpush3.bf16.msra.mxu0 %v17176_v29 }
 0x1d4   :  { %16799 = vmatprep.subr.bf16.mxu0 %v19048_v0 }
 0x289   :  { %v411_v32 = vpop.f32.mrb[0].mxu0 }
 0x28a   :  { %v412_v34 = vadd.f32 %v15006_v31, %v411_v32  ;;  %v16777_v35 = vpop.f32.mrb[1].mxu0 }
 0x28b   :  { %v414_v36 = vpop.f32.mrb[2].mxu0 }
 0x28c   :  { %v415_v37 = vadd.f32 %v15006_v31, %v414_v36  ;;  %v16778_v38 = vpop.f32.mrb[3].mxu0  ;;  %v19509_v39 = vadd.f32 %v418_v33, %v412_v34 }
 0x28e   :  { %v19511_v40 = vadd.f32 %v418_v33, %v415_v37 }
 0x290   :  { %v454_v41 = vpack.c.bf16 %v19511_v40, %v19509_v39 }
 0x292   :  { %632 = vmatmul.mubr.bf16.vlgmr.msra.gmra.mrb[0].mxu1 %v454_v41  ;;  %16796 = vmatmul.mubr.bf16.vlgmr.msra.gmra.mrb[4].mxu0 %v454_v41 }
 0x293   :  { %16801 = vmatprep.mubr.msk.bf16.mxu0 %vm19049_vm0, %v19048_v0  ;;  %16813 = vmatprep.mubr.msk.bf16.mxu1 %vm19049_vm0, %v19048_v0 }
 0x365   :  { %v633_v50 = vpop.f32.mrb[0].mxu1  ;;  %v676_v51 = vpop.f32.mrb[4].mxu0 }
 0x366   :  { %v677_v52 = vadd.f32 %v676_v51, %v467_v47  ;;  %v635_v53 = vpop.f32.mrb[1].mxu1  ;;  %v16797_v54 = vpop.f32.mrb[5].mxu0  ;;  %v634_v4 = vadd.f32 %v633_v50, %v459_v61 }
 0x367   :  { %v636_v55 = vadd.f32 %v635_v53, %v463_v48  ;;  %v637_v56 = vpop.f32.mrb[2].mxu1  ;;  %v679_v57 = vpop.f32.mrb[6].mxu0 }
 0x368   :  { %v19532_v58 = vpack.c.bf16 %v677_v52, %v677_v52  ;;  %v639_v59 = vpop.f32.mrb[3].mxu1  ;;  %v16798_v60 = vpop.f32.mrb[7].mxu0  ;;  %v19547_v5 = vpack.c.bf16 %v634_v4, %v634_v4  ;;  %v680_v6 = vadd.f32 %v679_v57, %v467_v47  ;;  %v638_v9 = vadd.f32 %v637_v56, %v459_v61 }
 0x369   :  { %v19535_v62 = vpack.c.bf16 %v636_v55, %v636_v55  ;;  %v640_v63 = vadd.f32 %v639_v59, %v463_v48 }
 0x36a   :  { %v813_v1 = vsel %vm811_vm2, %v19532_v58, 0  ;;  %v19556_v10 = vpack.c.bf16 %v680_v6, %v680_v6  ;;  %v19558_v11 = vpack.c.bf16 %v638_v9, %v638_v9 }
 0x36b   :  { %v19539_v2 = vpack.c.bf16 %v640_v63, %v640_v63  ;;  %16812 = vmatpush3.bf16.msra.mxu1 %v813_v1  ;;  %v691_v3 = vsel %vm373_vm1, %v19535_v62, 0 }
 0x36c   :  { %16800 = vmatpush3.bf16.xpose.msra.mxu0 %v691_v3  ;;  %16823 = vmatprep.subr.bf16.mxu1 %v19048_v0  ;;  %v859_v12 = vsel %vm811_vm2, %v19556_v10, 0 }
 0x36d   :  { %957 = vrot.lane.b32.xlu1 %v19539_v2, %s19051_s0  ;;  %16805 = vmatprep.subr.bf16.mxu0 %v19048_v0  ;;  %v737_v7 = vsel %vm373_vm1, %v19539_v2, 0 }
 0x373   :  { %16802 = vmatmul.mubr.msk.bf16.vlgmr.msra.gmra.mrb[8].mxu0 %vm373_vm1, %v19547_v5 }
 0x374   :  { %16806 = vmatpush3.bf16.xpose.msra.mxu0 %v737_v7  ;;  %16807 = vmatprep.mubr.msk.bf16.mxu0 %vm19049_vm0, %v19048_v0 }
 0x375   :  { %16817 = vmatprep.subr.bf16.mxu0 %v19048_v0 }
 0x37b   :  { %16808 = vmatmul.mubr.msk.bf16.vlgmr.msra.gmra.mrb[12].mxu0 %vm373_vm1, %v19558_v11 }
 0x37c   :  { %16818 = vmatpush3.bf16.msra.mxu0 %v859_v12  ;;  %16819 = vmatprep.mubr.msk.bf16.mxu0 %vm19049_vm0, %v19048_v0 }
 0x37d   :  { %16829 = vmatprep.subr.bf16.mxu0 %v19048_v0 }
 0x3df   :  { %v958_v36 = vpop.permute.xlu1 %957 }
 0x3e0   :  { %v963_v54 = vsel %vm373_vm1, %v958_v36, 0 }
 0x446   :  { %v727_v13 = vpop.f32.mrb[8].mxu0 }
 0x447   :  { %v779_v14 = vmul.f32 0.17677669, %v727_v13  ;;  %v16803_v15 = vpop.f32.mrb[9].mxu0 }
 0x448   :  { %v730_v16 = vpop.f32.mrb[10].mxu0 }
 0x449   :  { %v16804_v17 = vpop.f32.mrb[11].mxu0  ;;  %v782_v18 = vsel %vm781_vm3, %v779_v14, -inf }
 0x44a   :  { %783 = vmax.xlane.f32.xlu0 %v782_v18 }
 0x44e   :  { %v773_v19 = vpop.f32.mrb[12].mxu0 }
 0x44f   :  { %v780_v20 = vmul.f32 0.17677669, %v773_v19  ;;  %v16809_v21 = vpop.f32.mrb[13].mxu0 }
 0x450   :  { %v776_v22 = vpop.f32.mrb[14].mxu0 }
 0x451   :  { %v16810_v23 = vpop.f32.mrb[15].mxu0  ;;  %v785_v24 = vsel %vm781_vm3, %v780_v20, -inf }
 0x452   :  { %786 = vmax.xlane.f32.xlu0 %v785_v24 }
 0x468   :  { %905 = vrot.lane.b32.xlu0 %v19535_v62, %s19051_s0 }
 0x4d7   :  { %v784_v25 = vpop.xlane.xlu0 %783 }
 0x4d8   :  { %v788_v26 = vsub.f32 %v779_v14, %v784_v25 }
 0x4da   :  { %v790_v27 = vmul.f32 1.442695, %v788_v26 }
 0x4dc   :  { %17934 = vpow2.f32 %v790_v27 }
 0x4df   :  { %v787_v28 = vpop.xlane.xlu0 %786 }
 0x4e0   :  { %v789_v29 = vsub.f32 %v780_v20, %v787_v28 }
 0x4e2   :  { %v792_v31 = vmul.f32 1.442695, %v789_v29 }
 0x4e3   :  { %v906_v45 = vpop.permute.xlu0 %905 }
 0x4e4   :  { %17936 = vpow2.f32 %v792_v31  ;;  %v911_v48 = vsel %vm373_vm1, %v906_v45, 0 }
 0x4e6   :  { %v17935_v32 = vpop.eup %17934 }
 0x4e7   :  { %v794_v33 = vsel %vm781_vm3, %v17935_v32, 0.0 }
 0x4e8   :  { %795 = vadd.xlane.f32.xlu1 %v794_v33 }
 0x4ee   :  { %v17937_v34 = vpop.eup %17936 }
 0x4ef   :  { %v797_v35 = vsel %vm781_vm3, %v17937_v34, 0.0 }
 0x4f0   :  { %798 = vadd.xlane.f32.xlu1 %v797_v35 }
 0x501   :  { %902 = vrot.lane.b32.xlu1 %v19547_v5, %s19051_s0 }
 0x505   :  { %954 = vrot.lane.b32.xlu1 %v19558_v11, %s19051_s0 }
 0x575   :  { %v796_v37 = vpop.xlane.xlu1 %795 }
 0x576   :  { %17938 = vrcp.f32 %v796_v37 }
 0x57d   :  { %v799_v38 = vpop.xlane.xlu1 %798 }
 0x57e   :  { %17940 = vrcp.f32 %v799_v38 }
 0x580   :  { %v17939_v41 = vpop.eup %17938 }
 0x581   :  { %v802_v42 = vmul.f32 %v17939_v41, %v17935_v32  ;;  %v903_v53 = vpop.permute.xlu1 %902 }
 0x583   :  { %v804_v47 = vpack.c.bf16 %v802_v42, %v802_v42 }
 0x585   :  { %16814 = vmatmul.mubr.msk.bf16.vlgmr.msra.gmra.mrb[4].mxu1 %vm781_vm3, %v804_v47  ;;  %v955_v55 = vpop.permute.xlu1 %954 }
 0x586   :  { %16824 = vmatpush3.bf16.xpose.msra.mxu1 %v911_v48  ;;  %16825 = vmatprep.mubr.msk.bf16.mxu1 %vm19049_vm0, %v19048_v0 }
 0x587   :  { %16835 = vmatprep.subr.bf16.mxu1 %v19048_v0 }
 0x588   :  { %v17941_v50 = vpop.eup %17940 }
 0x589   :  { %v803_v51 = vmul.f32 %v17941_v50, %v17937_v34 }
 0x58b   :  { %v805_v52 = vpack.c.bf16 %v803_v51, %v803_v51 }
 0x58d   :  { %16820 = vmatmul.mubr.msk.bf16.vlgmr.msra.gmra.mrb[16].mxu0 %vm781_vm3, %v805_v52  ;;  %16826 = vmatmul.mubr.msk.bf16.vlgmr.msra.gmra.mrb[8].mxu1 %vm373_vm1, %v903_v53 }
 0x58e   :  { %16830 = vmatpush3.bf16.xpose.msra.mxu0 %v963_v54  ;;  %16831 = vmatprep.mubr.msk.bf16.mxu0 %vm19049_vm0, %v19048_v0 }
 0x58f   :  { %16841 = vmatprep.subr.bf16.mxu0 %v19048_v0  ;;  %16837 = vmatprep.mubr.msk.bf16.mxu1 %vm19049_vm0, %v19048_v0 }
 0x595   :  { %16832 = vmatmul.mubr.msk.bf16.vlgmr.msra.gmra.mrb[20].mxu0 %vm373_vm1, %v955_v55 }
 0x596   :  { %16843 = vmatprep.mubr.msk.bf16.mxu0 %vm19049_vm0, %v19048_v0 }
 0x658   :  { %v19593_v56 = vpop.f32.mrb[4].mxu1 }
 0x659   :  { %v16815_v57 = vpop.f32.mrb[5].mxu1 }
 0x65a   :  { %v852_v59 = vpop.f32.mrb[6].mxu1 }
 0x65b   :  { %v16816_v60 = vpop.f32.mrb[7].mxu1 }
 0x660   :  { %v19595_v61 = vpop.f32.mrb[16].mxu0  ;;  %v947_v63 = vpop.f32.mrb[8].mxu1 }
 0x661   :  { %v1005_v1 = vmul.f32 0.17677669, %v947_v63  ;;  %v16821_v3 = vpop.f32.mrb[17].mxu0  ;;  %v16827_v4 = vpop.f32.mrb[9].mxu1 }
 0x662   :  { %v898_v6 = vpop.f32.mrb[18].mxu0  ;;  %v950_v7 = vpop.f32.mrb[10].mxu1 }
 0x663   :  { %v16822_v9 = vpop.f32.mrb[19].mxu0  ;;  %v16828_v12 = vpop.f32.mrb[11].mxu1  ;;  %v1007_v13 = vsel %vm781_vm3, %v1005_v1, -inf }
 0x664   :  { %1008 = vmax.xlane.f32.xlu0 %v1007_v13 }
 0x668   :  { %v999_v14 = vpop.f32.mrb[20].mxu0 }
 0x669   :  { %v1006_v15 = vmul.f32 0.17677669, %v999_v14  ;;  %v16833_v16 = vpop.f32.mrb[21].mxu0 }
 0x66a   :  { %v1002_v17 = vpop.f32.mrb[22].mxu0 }
 0x66b   :  { %v16834_v18 = vpop.f32.mrb[23].mxu0  ;;  %v1010_v19 = vsel %vm781_vm3, %v1006_v15, -inf }
 0x66c   :  { %1011 = vmax.xlane.f32.xlu1 %v1010_v19 }
 0x67d   :  { %1081 = vrot.lane.b32.xlu1 %v19556_v10, %s19051_s0 }
 0x681   :  { %1131 = vrot.lane.b32.xlu1 %v19535_v62, %s19027_s29 }
 0x685   :  { %1181 = vrot.lane.b32.xlu1 %v19539_v2, %s19027_s29 }
 0x689   :  { %1179 = vrot.lane.b32.xlu1 %v19558_v11, %s19027_s29 }
 0x6f1   :  { %v1009_v20 = vpop.xlane.xlu0 %1008 }
 0x6f2   :  { %v1013_v21 = vsub.f32 %v1005_v1, %v1009_v20 }
 0x6f4   :  { %v1015_v22 = vmul.f32 1.442695, %v1013_v21 }
 0x6f6   :  { %17942 = vpow2.f32 %v1015_v22 }
 0x6f9   :  { %v1012_v23 = vpop.xlane.xlu1 %1011 }
 0x6fa   :  { %v1014_v24 = vsub.f32 %v1006_v15, %v1012_v23 }
 0x6fc   :  { %v1017_v25 = vmul.f32 1.442695, %v1014_v24 }
 0x6fd   :  { %v1082_v26 = vpop.permute.xlu1 %1081 }
 0x6fe   :  { %17944 = vpow2.f32 %v1017_v25  ;;  %v1087_v27 = vsel %vm811_vm2, %v1082_v26, 0 }
 0x6ff   :  { %16842 = vmatpush3.bf16.msra.mxu0 %v1087_v27 }
 0x700   :  { %v17943_v28 = vpop.eup %17942  ;;  %16853 = vmatprep.subr.bf16.mxu0 %v19048_v0 }
 0x701   :  { %v1019_v29 = vsel %vm781_vm3, %v17943_v28, 0.0  ;;  %v1132_v42 = vpop.permute.xlu1 %1131 }
 0x702   :  { %1020 = vadd.xlane.f32.xlu0 %v1019_v29  ;;  %v1137_v50 = vsel %vm373_vm1, %v1132_v42, 0 }
 0x705   :  { %v1182_v48 = vpop.permute.xlu1 %1181 }
 0x706   :  { %v1187_v52 = vsel %vm373_vm1, %v1182_v48, 0 }
 0x708   :  { %v17945_v31 = vpop.eup %17944 }
 0x709   :  { %v1022_v32 = vsel %vm781_vm3, %v17945_v31, 0.0  ;;  %v1180_v54 = vpop.permute.xlu1 %1179 }
 0x70a   :  { %1023 = vadd.xlane.f32.xlu0 %v1022_v32 }
 0x720   :  { %1032 = vrot.lane.b32.xlu0 %v19532_v58, %s19051_s0 }
 0x724   :  { %1129 = vrot.lane.b32.xlu0 %v19547_v5, %s19027_s29 }
 0x78f   :  { %v1021_v33 = vpop.xlane.xlu0 %1020 }
 0x790   :  { %17946 = vrcp.f32 %v1021_v33 }
 0x797   :  { %v1024_v34 = vpop.xlane.xlu0 %1023 }
 0x798   :  { %17948 = vrcp.f32 %v1024_v34 }
 0x79a   :  { %v17947_v35 = vpop.eup %17946 }
 0x79b   :  { %v1027_v36 = vmul.f32 %v17947_v35, %v17943_v28  ;;  %v1033_v37 = vpop.permute.xlu0 %1032 }
 0x79c   :  { %v1038_v38 = vsel %vm811_vm2, %v1033_v37, 0 }
 0x79d   :  { %16836 = vmatpush3.bf16.msra.mxu1 %v1038_v38  ;;  %v1029_v41 = vpack.c.bf16 %v1027_v36, %v1027_v36 }
 0x79e   :  { %16847 = vmatprep.subr.bf16.mxu1 %v19048_v0 }
 0x79f   :  { %v1130_v53 = vpop.permute.xlu0 %1129 }
 0x7a0   :  { %16838 = vmatmul.mubr.msk.bf16.vlgmr.msra.gmra.mrb[12].mxu1 %vm781_vm3, %v1029_v41 }
 0x7a1   :  { %16849 = vmatprep.mubr.msk.bf16.mxu1 %vm19049_vm0, %v19048_v0 }
 0x7a2   :  { %v17949_v45 = vpop.eup %17948 }
 0x7a3   :  { %v1028_v47 = vmul.f32 %v17949_v45, %v17945_v31 }
 0x7a5   :  { %v1030_v51 = vpack.c.bf16 %v1028_v47, %v1028_v47 }
 0x7a6   :  { %16848 = vmatpush3.bf16.xpose.msra.mxu1 %v1137_v50 }
 0x7a7   :  { %16844 = vmatmul.mubr.msk.bf16.vlgmr.msra.gmra.mrb[24].mxu0 %vm781_vm3, %v1030_v51  ;;  %16859 = vmatprep.subr.bf16.mxu1 %v19048_v0 }
 0x7a8   :  { %16854 = vmatpush3.bf16.xpose.msra.mxu0 %v1187_v52  ;;  %16855 = vmatprep.mubr.msk.bf16.mxu0 %vm19049_vm0, %v19048_v0 }
 0x7a9   :  { %16865 = vmatprep.subr.bf16.mxu0 %v19048_v0 }
 0x7ad   :  { %16850 = vmatmul.mubr.msk.bf16.vlgmr.msra.gmra.mrb[16].mxu1 %vm373_vm1, %v1130_v53 }
 0x7ae   :  { %16861 = vmatprep.mubr.msk.bf16.mxu1 %vm19049_vm0, %v19048_v0 }
 0x7af   :  { %16856 = vmatmul.mubr.msk.bf16.vlgmr.msra.gmra.mrb[28].mxu0 %vm373_vm1, %v1180_v54 }
 0x7b0   :  { %16867 = vmatprep.mubr.msk.bf16.mxu0 %vm19049_vm0, %v19048_v0 }
 0x873   :  { %v19633_v55 = vpop.f32.mrb[12].mxu1 }
 0x874   :  { %v16839_v57 = vpop.f32.mrb[13].mxu1 }
 0x875   :  { %v1077_v59 = vpop.f32.mrb[14].mxu1 }
 0x876   :  { %v16840_v60 = vpop.f32.mrb[15].mxu1 }
 0x87a   :  { %v19635_v63 = vpop.f32.mrb[24].mxu0 }
 0x87b   :  { %v17110_v1 = vpack.i.bf16 %v19635_v63, %v19633_v55  ;;  %v16845_v3 = vpop.f32.mrb[25].mxu0 }
 0x87c   :  { %v1126_v4 = vpop.f32.mrb[26].mxu0 }
 0x87d   :  { %v16846_v6 = vpop.f32.mrb[27].mxu0 }
 0x880   :  { %v1173_v7 = vpop.f32.mrb[16].mxu1 }
 0x881   :  { %v1229_v9 = vmul.f32 0.17677669, %v1173_v7  ;;  %v16851_v12 = vpop.f32.mrb[17].mxu1 }
 0x882   :  { %v1176_v13 = vpop.f32.mrb[18].mxu1  ;;  %v1223_v14 = vpop.f32.mrb[28].mxu0 }
 0x883   :  { %v1230_v15 = vmul.f32 0.17677669, %v1223_v14  ;;  %v16852_v16 = vpop.f32.mrb[19].mxu1  ;;  %v16857_v17 = vpop.f32.mrb[29].mxu0  ;;  %v1231_v18 = vsel %vm781_vm3, %v1229_v9, -inf }
 0x884   :  { %1232 = vmax.xlane.f32.xlu0 %v1231_v18  ;;  %v1226_v19 = vpop.f32.mrb[30].mxu0 }
 0x885   :  { %v16858_v20 = vpop.f32.mrb[31].mxu0  ;;  %v1234_v21 = vsel %vm781_vm3, %v1230_v15, -inf }
 0x886   :  { %1235 = vmax.xlane.f32.xlu1 %v1234_v21 }
 0x897   :  { %1303 = vrot.lane.b32.xlu1 %v19556_v10, %s19027_s29 }
 0x89b   :  { %1353 = vrot.lane.b32.xlu1 %v19535_v62, %s19052_s8 }
 0x89f   :  { %1403 = vrot.lane.b32.xlu1 %v19539_v2, %s19052_s8 }
 0x8a3   :  { %1401 = vrot.lane.b32.xlu1 %v19558_v11, %s19052_s8 }
 0x911   :  { %v1233_v22 = vpop.xlane.xlu0 %1232 }
 0x912   :  { %v1237_v23 = vsub.f32 %v1229_v9, %v1233_v22 }
 0x913   :  { %v1236_v24 = vpop.xlane.xlu1 %1235 }
 0x914   :  { %v1239_v25 = vmul.f32 1.442695, %v1237_v23  ;;  %v1238_v26 = vsub.f32 %v1230_v15, %v1236_v24 }
 0x916   :  { %17950 = vpow2.f32 %v1239_v25  ;;  %v1241_v27 = vmul.f32 1.442695, %v1238_v26 }
 0x917   :  { %v1304_v28 = vpop.permute.xlu1 %1303 }
 0x918   :  { %17952 = vpow2.f32 %v1241_v27  ;;  %v1309_v29 = vsel %vm811_vm2, %v1304_v28, 0 }
 0x919   :  { %16866 = vmatpush3.bf16.msra.mxu0 %v1309_v29 }
 0x91a   :  { %16877 = vmatprep.subr.bf16.mxu0 %v19048_v0 }
 0x91b   :  { %v1354_v37 = vpop.permute.xlu1 %1353 }
 0x91f   :  { %v1404_v47 = vpop.permute.xlu1 %1403 }
 0x920   :  { %v17951_v62 = vpop.eup %17950  ;;  %v1409_v50 = vsel %vm373_vm1, %v1404_v47, 0  ;;  %v17181_v47 = vld [vmem:[#allocation11 + $0x20] sm:$0xff]  }
 0x921   :  { %v1243_v2 = vsel %vm781_vm3, %v17951_v62, 0.0 }
 0x922   :  { %v17953_v31 = vpop.eup %17952  ;;  %1244 = vadd.xlane.f32.xlu0 %v1243_v2 }
 0x923   :  { %v1246_v11 = vsel %vm781_vm3, %v17953_v31, 0.0  ;;  %v1402_v52 = vpop.permute.xlu1 %1401 }
 0x926   :  { %1247 = vadd.xlane.f32.xlu0 %v1246_v11 }
 0x93c   :  { %1255 = vrot.lane.b32.xlu0 %v19532_v58, %s19027_s29 }
 0x940   :  { %1351 = vrot.lane.b32.xlu0 %v19547_v5, %s19052_s8  ;;  %v1359_v5 = vsel %vm373_vm1, %v1354_v37, 0 }
 0x9af   :  { %v1245_v32 = vpop.xlane.xlu0 %1244 }
 0x9b0   :  { %17954 = vrcp.f32 %v1245_v32 }
 0x9b3   :  { %v1248_v33 = vpop.xlane.xlu0 %1247 }
 0x9b4   :  { %17956 = vrcp.f32 %v1248_v33 }
 0x9b7   :  { %v1256_v34 = vpop.permute.xlu0 %1255 }
 0x9b8   :  { %v1261_v35 = vsel %vm811_vm2, %v1256_v34, 0 }
 0x9b9   :  { %16860 = vmatpush3.bf16.msra.mxu1 %v1261_v35 }
 0x9ba   :  { %v17955_v36 = vpop.eup %17954  ;;  %16871 = vmatprep.subr.bf16.mxu1 %v19048_v0 }
 0x9bb   :  { %v1251_v38 = vmul.f32 %v17955_v36, %v17951_v62  ;;  %v1352_v51 = vpop.permute.xlu0 %1351 }
 0x9bd   :  { %v1253_v41 = vpack.c.bf16 %v1251_v38, %v1251_v38  ;;  %v17177_v38 = vld [vmem:[#allocation11] sm:$0xff]  }
 0x9be   :  { %v17957_v42 = vpop.eup %17956 }
 0x9bf   :  { %v1252_v45 = vmul.f32 %v17957_v42, %v17953_v31  ;;  %16862 = vmatmul.mubr.msk.bf16.vlgmr.msra.gmra.mrb[20].mxu1 %vm781_vm3, %v1253_v41  ;;  %v17178_v41 = vld [vmem:[#allocation11 + $0x8] sm:$0xff]   ;;  %v17179_v42 = vld [vmem:[#allocation11 + $0x10] sm:$0xff]  }
 0x9c0   :  { %16873 = vmatprep.mubr.msk.bf16.mxu1 %vm19049_vm0, %v19048_v0 }
 0x9c1   :  { %v1254_v48 = vpack.c.bf16 %v1252_v45, %v1252_v45  ;;  %v17180_v45 = vld [vmem:[#allocation11 + $0x18] sm:$0xff]  }
 0x9c2   :  { %16872 = vmatpush3.bf16.xpose.msra.mxu1 %v1359_v5  ;;  %v17182_v5 = vld [vmem:[#allocation11 + $0x28] sm:$0xff]  }
 0x9c3   :  { %16868 = vmatmul.mubr.msk.bf16.vlgmr.msra.gmra.mrb[32].mxu0 %vm781_vm3, %v1254_v48  ;;  %16883 = vmatprep.subr.bf16.mxu1 %v19048_v0  ;;  %v17183_v48 = vld [vmem:[#allocation11 + $0x30] sm:$0xff]  }
 0x9c4   :  { %16878 = vmatpush3.bf16.xpose.msra.mxu0 %v1409_v50  ;;  %16879 = vmatprep.mubr.msk.bf16.mxu0 %vm19049_vm0, %v19048_v0  ;;  %v17184_v50 = vld [vmem:[#allocation11 + $0x38] sm:$0xff]  }
 0x9c5   :  { %16889 = vmatprep.subr.bf16.mxu0 %v19048_v0 }
 0x9c9   :  { %16874 = vmatmul.mubr.msk.bf16.vlgmr.msra.gmra.mrb[24].mxu1 %vm373_vm1, %v1352_v51 }
 0x9ca   :  { %16885 = vmatprep.mubr.msk.bf16.mxu1 %vm19049_vm0, %v19048_v0 }
 0x9cb   :  { %16880 = vmatmul.mubr.msk.bf16.vlgmr.msra.gmra.mrb[36].mxu0 %vm373_vm1, %v1402_v52 }
 0x9cc   :  { %16891 = vmatprep.mubr.msk.bf16.mxu0 %vm19049_vm0, %v19048_v0 }
 0xa92   :  { %v1297_v53 = vpop.f32.mrb[20].mxu1 }
 0xa93   :  { %v16863_v54 = vpop.f32.mrb[21].mxu1 }
 0xa94   :  { %v1300_v57 = vpop.f32.mrb[22].mxu1 }
 0xa95   :  { %v16864_v59 = vpop.f32.mrb[23].mxu1 }
 0xa96   :  { %v1345_v60 = vpop.f32.mrb[32].mxu0 }
 0xa97   :  { %v17115_v3 = vpack.i.bf16 %v1345_v60, %v1297_v53  ;;  %v16869_v4 = vpop.f32.mrb[33].mxu0 }
 0xa98   :  { %v1348_v6 = vpop.f32.mrb[34].mxu0 }
 0xa99   :  { %v16870_v7 = vpop.f32.mrb[35].mxu0 }
 0xa9c   :  { %v1395_v9 = vpop.f32.mrb[24].mxu1 }
 0xa9d   :  { %v1451_v12 = vmul.f32 0.17677669, %v1395_v9  ;;  %v16875_v13 = vpop.f32.mrb[25].mxu1 }
 0xa9e   :  { %v1398_v14 = vpop.f32.mrb[26].mxu1  ;;  %v1445_v15 = vpop.f32.mrb[36].mxu0 }
 0xa9f   :  { %v1452_v16 = vmul.f32 0.17677669, %v1445_v15  ;;  %v16876_v17 = vpop.f32.mrb[27].mxu1  ;;  %v16881_v18 = vpop.f32.mrb[37].mxu0  ;;  %v1453_v19 = vsel %vm781_vm3, %v1451_v12, -inf }
 0xaa0   :  { %1454 = vmax.xlane.f32.xlu0 %v1453_v19  ;;  %v1448_v20 = vpop.f32.mrb[38].mxu0 }
 0xaa1   :  { %v16882_v21 = vpop.f32.mrb[39].mxu0  ;;  %v1456_v22 = vsel %vm781_vm3, %v1452_v16, -inf }
 0xaa2   :  { %1457 = vmax.xlane.f32.xlu1 %v1456_v22 }
 0xab3   :  { %1525 = vrot.lane.b32.xlu1 %v19556_v10, %s19052_s8 }
 0xab7   :  { %17111 = vrot.lane.b32.xlu1 %v17110_v1, %s19052_s8 }
 0xabb   :  { %17116 = vrot.lane.b32.xlu1 %v17115_v3, %s19027_s29 }
 0xb2d   :  { %v1455_v23 = vpop.xlane.xlu0 %1454 }
 0xb2e   :  { %v1459_v24 = vsub.f32 %v1451_v12, %v1455_v23 }
 0xb2f   :  { %v1458_v25 = vpop.xlane.xlu1 %1457 }
 0xb30   :  { %v1461_v26 = vmul.f32 1.442695, %v1459_v24  ;;  %v1460_v27 = vsub.f32 %v1452_v16, %v1458_v25 }
 0xb32   :  { %17958 = vpow2.f32 %v1461_v26  ;;  %v1463_v28 = vmul.f32 1.442695, %v1460_v27 }
 0xb33   :  { %v1526_v29 = vpop.permute.xlu1 %1525 }
 0xb34   :  { %17960 = vpow2.f32 %v1463_v28  ;;  %v1531_v62 = vsel %vm811_vm2, %v1526_v29, 0 }
 0xb35   :  { %16890 = vmatpush3.bf16.msra.mxu0 %v1531_v62 }
 0xb37   :  { %v17112_v6 = vpop.permute.xlu1 %17111 }
 0xb38   :  { %v17114_v9 = vunpack.i.h.bf16 %v17112_v6  ;;  %v17113_v12 = vunpack.i.l.bf16 %v17112_v6  ;;  %v1809_v6 = vld [vmem:[#allocation15 + $0x180] sm:$0xff] }
 0xb3a   :  { %v1598_v16 = vsel %vm373_vm1, %v19595_v61, %v17114_v9  ;;  %v1597_v17 = vsel %vm373_vm1, %v19593_v56, %v17113_v12  ;;  %v15050_v61 = vld [vmem:[%s22144_s22] ss:$0 sm:$0xff]  ;;  %v1810_v9 = vld [vmem:[#allocation15 + $0x188] sm:$0xff] }
 0xb3b   :  { %v17117_v7 = vpop.permute.xlu1 %17116 }
 0xb3c   :  { %v17959_v10 = vpop.eup %17958  ;;  %v17119_v13 = vunpack.i.h.bf16 %v17117_v7  ;;  %v17118_v14 = vunpack.i.l.bf16 %v17117_v7  ;;  %v1817_v7 = vld [vmem:[#allocation15 + $0x1c0] sm:$0xff] }
 0xb3d   :  { %v1465_v2 = vsel %vm781_vm3, %v17959_v10, 0.0  ;;  %v15110_v12 = vcombine.high %v1809_v6, %v1817_v7 }
 0xb3e   :  { %v17961_v31 = vpop.eup %17960  ;;  %1466 = vadd.xlane.f32.xlu0 %v1465_v2  ;;  %v1600_v20 = vsel %vm1599_vm4, %v1597_v17, %v17118_v14  ;;  %v1601_v21 = vsel %vm1599_vm4, %v1598_v16, %v17119_v13  ;;  %v1761_v2 = vld [vmem:[#allocation15] sm:$0xff]  ;;  %v1818_v13 = vld [vmem:[#allocation15 + $0x1c8] sm:$0xff]  ;;  %v15109_v14 = vcombine.low %v1809_v6, %v1817_v7  ;;  %v15059_v7 = vld [vmem:[#allocation12] ss:$0 sm:$0xff] }
 0xb3f   :  { %v1468_v55 = vsel %vm781_vm3, %v17961_v31, 0.0  ;;  %v15112_v16 = vcombine.high %v1810_v9, %v1818_v13  ;;  %v1825_v17 = vld [vmem:[#allocation15 + $0x200] sm:$0xff] }
 0xb42   :  { %1469 = vadd.xlane.f32.xlu0 %v1468_v55  ;;  %v1762_v55 = vld [vmem:[#allocation15 + $0x8] sm:$0xff] }
 0xb58   :  { %1477 = vrot.lane.b32.xlu0 %v19532_v58, %s19052_s8 }
 0xbcb   :  { %v1467_v63 = vpop.xlane.xlu0 %1466 }
 0xbcc   :  { %17962 = vrcp.f32 %v1467_v63 }
 0xbcf   :  { %v1470_v1 = vpop.xlane.xlu0 %1469 }
 0xbd0   :  { %17964 = vrcp.f32 %v1470_v1 }
 0xbd3   :  { %v1478_v11 = vpop.permute.xlu0 %1477 }
 0xbd4   :  { %v1483_v32 = vsel %vm811_vm2, %v1478_v11, 0  ;;  %v1770_v11 = vld [vmem:[#allocation15 + $0x48] sm:$0xff] }
 0xbd5   :  { %16884 = vmatpush3.bf16.msra.mxu1 %v1483_v32  ;;  %v1777_v32 = vld [vmem:[#allocation15 + $0x80] sm:$0xff] }
 0xbd6   :  { %v17963_v33 = vpop.eup %17962  ;;  %16895 = vmatprep.subr.bf16.mxu1 %v19048_v0 }
 0xbd7   :  { %v1473_v34 = vmul.f32 %v17963_v33, %v17959_v10  ;;  %v1785_v33 = vld [vmem:[#allocation15 + $0xc0] sm:$0xff] }
 0xbd9   :  { %v1475_v35 = vpack.c.bf16 %v1473_v34, %v1473_v34  ;;  %v15063_v34 = vcombine.low %v1762_v55, %v1770_v11 }
 0xbda   :  { %v17965_v36 = vpop.eup %17964 }
 0xbdb   :  { %v1474_v37 = vmul.f32 %v17965_v36, %v17961_v31  ;;  %16886 = vmatmul.mubr.msk.bf16.vlgmr.msra.gmra.mrb[28].mxu1 %vm781_vm3, %v1475_v35  ;;  %v1769_v31 = vld [vmem:[#allocation15 + $0x40] sm:$0xff]  ;;  %v15064_v35 = vcombine.high %v1762_v55, %v1770_v11  ;;  %v15078_v36 = vcombine.high %v1777_v32, %v1785_v33 }
 0xbdc   :  { %16911 = vmatprep.mubr.msk.bf16.mxu1 %vm19049_vm0, %v19048_v0  ;;  %16896 = vmatpush3.bf16.msra.mxu1 %v17177_v38  ;;  %v15061_v63 = vcombine.low %v1761_v2, %v1769_v31  ;;  %v15062_v1 = vcombine.high %v1761_v2, %v1769_v31  ;;  %v1865_v2 = vld [vmem:[#allocation15 + $0x340] sm:$0xff]  ;;  %v1858_v31 = vld [vmem:[#allocation15 + $0x308] sm:$0xff] }
 0xbdd   :  { %v1476_v58 = vpack.c.bf16 %v1474_v37, %v1474_v37  ;;  %16897 = vmatprep.subr.bf16.mxu1 %v19048_v0  ;;  %v1778_v37 = vld [vmem:[#allocation15 + $0x88] sm:$0xff] }
 0xbde   :  { %2614 = vmatprep.subr.bf16.mxu0 %v15062_v1 }
 0xbdf   :  { %16892 = vmatmul.mubr.msk.bf16.vlgmr.msra.gmra.mrb[40].mxu0 %vm781_vm3, %v1476_v58  ;;  %v1786_v58 = vld [vmem:[#allocation15 + $0xc8] sm:$0xff] }
 0xbe0   :  { %2646 = vmatprep.mubr.bf16.mxu0 %v22031_v30  ;;  %16898 = vmatpush3.bf16.msra.mxu1 %v17178_v41  ;;  %v15080_v38 = vcombine.high %v1778_v37, %v1786_v58 }
 0xbe1   :  { %16899 = vmatprep.subr.bf16.mxu1 %v19048_v0  ;;  %2615 = vmatpush1.bf16.msra.mxu0 %v15061_v63  ;;  %v1866_v63 = vld [vmem:[#allocation15 + $0x348] sm:$0xff] }
 0xbe2   :  { %2616 = vmatprep.subr.bf16.mxu0 %v15078_v36  ;;  %v15159_v11 = vcombine.low %v1858_v31, %v1866_v63 }
 0xbe4   :  { %16900 = vmatpush3.bf16.msra.mxu1 %v17179_v42 }
 0xbe5   :  { %16901 = vmatprep.subr.bf16.mxu1 %v19048_v0 }
 0xbe8   :  { %16902 = vmatpush3.bf16.msra.mxu1 %v17180_v45 }
 0xbe9   :  { %16903 = vmatprep.subr.bf16.mxu1 %v19048_v0 }
 0xbec   :  { %16904 = vmatpush3.bf16.msra.mxu1 %v17181_v47 }
 0xbed   :  { %16905 = vmatprep.subr.bf16.mxu1 %v19048_v0 }
 0xbf0   :  { %16906 = vmatpush3.bf16.msra.mxu1 %v17182_v5 }
 0xbf1   :  { %16907 = vmatprep.subr.bf16.mxu1 %v19048_v0 }
 0xbf4   :  { %16908 = vmatpush3.bf16.msra.mxu1 %v17183_v48 }
 0xbf5   :  { %16909 = vmatprep.subr.bf16.mxu1 %v19048_v0 }
 0xbf8   :  { %16910 = vmatpush3.bf16.msra.mxu1 %v17184_v50 }
 0xbf9   :  { %2657 = vmatprep.subr.bf16.mxu1 %v15064_v35  ;;  %v1874_v35 = vld [vmem:[#allocation15 + $0x388] sm:$0xff] }
 0xcae   :  { %v1519_v51 = vpop.f32.mrb[28].mxu1 }
 0xcaf   :  { %v16887_v52 = vpop.f32.mrb[29].mxu1 }
 0xcb0   :  { %v1522_v53 = vpop.f32.mrb[30].mxu1  ;;  %v1793_v52 = vld [vmem:[#allocation15 + $0x100] sm:$0xff] }
 0xcb1   :  { %v16888_v54 = vpop.f32.mrb[31].mxu1  ;;  %v1801_v53 = vld [vmem:[#allocation15 + $0x140] sm:$0xff] }
 0xcb2   :  { %v1567_v57 = vpop.f32.mrb[40].mxu0  ;;  %v1794_v54 = vld [vmem:[#allocation15 + $0x108] sm:$0xff] }
 0xcb3   :  { %v17120_v59 = vpack.i.bf16 %v1567_v57, %v1519_v51  ;;  %v16893_v60 = vpop.f32.mrb[41].mxu0  ;;  %v15094_v57 = vcombine.high %v1793_v52, %v1801_v53 }
 0xcb4   :  { %v1570_v3 = vpop.f32.mrb[42].mxu0  ;;  %v15093_v60 = vcombine.low %v1793_v52, %v1801_v53 }
 0xcb5   :  { %17121 = vrot.lane.b32.xlu0 %v17120_v59, %s19051_s0  ;;  %v16894_v4 = vpop.f32.mrb[43].mxu0  ;;  %v1802_v59 = vld [vmem:[#allocation15 + $0x148] sm:$0xff] }
 0xcb6   :  { %v15095_v3 = vcombine.low %v1794_v54, %v1802_v59  ;;  %v15096_v4 = vcombine.high %v1794_v54, %v1802_v59 }
 0xd27   :  { %v17122_v15 = vpop.permute.xlu0 %17121 }
 0xd28   :  { %v17124_v18 = vunpack.i.h.bf16 %v17122_v15  ;;  %v17123_v19 = vunpack.i.l.bf16 %v17122_v15  ;;  %v15111_v15 = vcombine.low %v1810_v9, %v1818_v13 }
 0xd2a   :  { %v1604_v22 = vsel %vm1602_vm5, %v1601_v21, %v17124_v18  ;;  %v1603_v23 = vsel %vm1602_vm5, %v1600_v20, %v17123_v19  ;;  %v1833_v18 = vld [vmem:[#allocation15 + $0x240] sm:$0xff]  ;;  %v1826_v19 = vld [vmem:[#allocation15 + $0x208] sm:$0xff] }
 0xd2b   :  { %v1622_v24 = vpack.c.bf16 %v1604_v22, %v1603_v23  ;;  %v15126_v20 = vcombine.high %v1825_v17, %v1833_v18  ;;  %v1834_v21 = vld [vmem:[#allocation15 + $0x248] sm:$0xff]  ;;  %v15125_v22 = vcombine.low %v1825_v17, %v1833_v18  ;;  %v1787_v17 = vld [vmem:[#allocation15 + $0xd0] sm:$0xff]  ;;  %v1780_v18 = vld [vmem:[#allocation15 + $0x98] sm:$0xff] }
 0xd2c   :  { %v15127_v23 = vcombine.low %v1826_v19, %v1834_v21 }
 0xd2d   :  { %16912 = vmatmul.mubr.bf16.vlgmr.msra.gmra.mrb[32].mxu1 %v1622_v24  ;;  %v15128_v24 = vcombine.high %v1826_v19, %v1834_v21  ;;  %v1788_v19 = vld [vmem:[#allocation15 + $0xd8] sm:$0xff] }
 0xd2e   :  { %2689 = vmatprep.mubr.bf16.mxu1 %v22031_v30  ;;  %2658 = vmatpush1.bf16.msra.mxu1 %v15063_v34  ;;  %v1881_v34 = vld [vmem:[#allocation15 + $0x3c0] sm:$0xff] }
 0xd2f   :  { %2659 = vmatprep.subr.bf16.mxu1 %v15080_v38 }
 0xe00   :  { %v1711_v25 = vpop.f32.mrb[32].mxu1 }
 0xe01   :  { %v1712_v56 = vadd.f32 %v15050_v61, %v1711_v25  ;;  %v16913_v26 = vpop.f32.mrb[33].mxu1  ;;  %v1849_v25 = vld [vmem:[#allocation15 + $0x2c0] sm:$0xff] }
 0xe02   :  { %v1714_v27 = vpop.f32.mrb[34].mxu1 }
 0xe03   :  { %v1715_v28 = vadd.f32 %v15050_v61, %v1714_v27  ;;  %v16914_v29 = vpop.f32.mrb[35].mxu1  ;;  %v1718_v62 = vadd.f32 %v1712_v56, %v19509_v39  ;;  %v15077_v39 = vcombine.low %v1777_v32, %v1785_v33  ;;  %v1841_v61 = vld [vmem:[#allocation15 + $0x280] sm:$0xff]  ;;  %v1842_v56 = vld [vmem:[#allocation15 + $0x288] sm:$0xff]  ;;  %v15160_v32 = vcombine.high %v1858_v31, %v1866_v63 }
 0xe04   :  { %v15142_v26 = vcombine.high %v1841_v61, %v1849_v25  ;;  %v1850_v27 = vld [vmem:[#allocation15 + $0x2c8] sm:$0xff]  ;;  %v1873_v33 = vld [vmem:[#allocation15 + $0x380] sm:$0xff] }
 0xe05   :  { %1722 = vadd.xlane.f32.xlu1 %v1718_v62  ;;  %v1719_v10 = vadd.f32 %v1715_v28, %v19511_v40  ;;  %v15079_v40 = vcombine.low %v1778_v37, %v1786_v58  ;;  %2617 = vmatpush1.bf16.msra.mxu0 %v15077_v39  ;;  %v15141_v28 = vcombine.low %v1841_v61, %v1849_v25  ;;  %v1882_v37 = vld [vmem:[#allocation15 + $0x3c8] sm:$0xff]  ;;  %v1803_v61 = vld [vmem:[#allocation15 + $0x150] sm:$0xff]  ;;  %v1796_v25 = vld [vmem:[#allocation15 + $0x118] sm:$0xff] }
 0xe06   :  { %2618 = vmatprep.subr.bf16.mxu0 %v15094_v57  ;;  %v15143_v29 = vcombine.low %v1842_v56, %v1850_v27  ;;  %v15174_v36 = vcombine.high %v1873_v33, %v1881_v34  ;;  %v15173_v58 = vcombine.low %v1873_v33, %v1881_v34  ;;  %v15175_v38 = vcombine.low %v1874_v35, %v1882_v37  ;;  %v1828_v33 = vld [vmem:[#allocation15 + $0x218] sm:$0xff] }
 0xe07   :  { %1724 = vadd.xlane.f32.xlu0 %v1719_v10  ;;  %2660 = vmatpush1.bf16.msra.mxu1 %v15079_v40  ;;  %v15176_v39 = vcombine.high %v1874_v35, %v1882_v37  ;;  %v1763_v40 = vld [vmem:[#allocation15 + $0x10] sm:$0xff]  ;;  %v1836_v34 = vld [vmem:[#allocation15 + $0x258] sm:$0xff] }
 0xe08   :  { %2661 = vmatprep.subr.bf16.mxu1 %v15096_v4 }
 0xe09   :  { %2619 = vmatpush1.bf16.msra.mxu0 %v15093_v60 }
 0xe0a   :  { %2620 = vmatprep.subr.bf16.mxu0 %v15110_v12 }
 0xe0b   :  { %2662 = vmatpush1.bf16.msra.mxu1 %v15095_v3 }
 0xe0c   :  { %2663 = vmatprep.subr.bf16.mxu1 %v15112_v16  ;;  %v1779_v16 = vld [vmem:[#allocation15 + $0x90] sm:$0xff] }
 0xe0d   :  { %2621 = vmatpush1.bf16.msra.mxu0 %v15109_v14  ;;  %v15060_v14 = vld [vmem:[#allocation14] ss:$0 sm:$0xff] }
 0xe0e   :  { %2622 = vmatprep.subr.bf16.mxu0 %v15126_v20 }
 0xe0f   :  { %2664 = vmatpush1.bf16.msra.mxu1 %v15111_v15 }
 0xe10   :  { %2665 = vmatprep.subr.bf16.mxu1 %v15128_v24  ;;  %v1795_v24 = vld [vmem:[#allocation15 + $0x110] sm:$0xff] }
 0xe11   :  { %2623 = vmatpush1.bf16.msra.mxu0 %v15125_v22  ;;  %v15097_v31 = vcombine.low %v1795_v24, %v1803_v61 }
 0xe12   :  { %2624 = vmatprep.subr.bf16.mxu0 %v15142_v26  ;;  %v15083_v26 = vcombine.low %v1780_v18, %v1788_v19 }
 0xe13   :  { %2666 = vmatpush1.bf16.msra.mxu1 %v15127_v23  ;;  %v15084_v23 = vcombine.high %v1780_v18, %v1788_v19  ;;  %v1766_v18 = vld [vmem:[#allocation15 + $0x28] sm:$0xff] }
 0xe14   :  { %v1774_v19 = vld [vmem:[#allocation15 + $0x68] sm:$0xff] }
 0xe15   :  { %2625 = vmatpush1.bf16.msra.mxu0 %v15141_v28 }
 0xe92   :  { %v1723_v41 = vpop.xlane.xlu1 %1722 }
 0xe93   :  { %v1727_v42 = vmul.f32 0.0078125, %v1723_v41  ;;  %v1771_v41 = vld [vmem:[#allocation15 + $0x50] sm:$0xff] }
 0xe94   :  { %v1725_v45 = vpop.xlane.xlu0 %1724 }
 0xe95   :  { %v19718_v47 = vsub.f32 %v1718_v62, %v1727_v42  ;;  %v1728_v5 = vmul.f32 0.0078125, %v1725_v45  ;;  %v15144_v62 = vcombine.high %v1842_v56, %v1850_v27  ;;  %v1764_v42 = vld [vmem:[#allocation15 + $0x18] sm:$0xff]  ;;  %v15065_v45 = vcombine.low %v1763_v40, %v1771_v41 }
 0xe96   :  { %v15081_v56 = vcombine.low %v1779_v16, %v1787_v17  ;;  %v15098_v27 = vcombine.high %v1795_v24, %v1803_v61  ;;  %v15072_v61 = vcombine.high %v1766_v18, %v1774_v19 }
 0xe97   :  { %v19720_v48 = vsub.f32 %v1719_v10, %v1728_v5  ;;  %v1731_v50 = vmul.f32 %v19718_v47, %v19718_v47  ;;  %2667 = vmatprep.subr.bf16.mxu1 %v15144_v62  ;;  %v1857_v10 = vld [vmem:[#allocation15 + $0x300] sm:$0xff]  ;;  %v15066_v5 = vcombine.high %v1763_v40, %v1771_v41  ;;  %v1819_v62 = vld [vmem:[#allocation15 + $0x1d0] sm:$0xff]  ;;  %v1844_v40 = vld [vmem:[#allocation15 + $0x298] sm:$0xff] }
 0xe98   :  { %2668 = vmatpush1.bf16.msra.mxu1 %v15143_v29  ;;  %v15158_v55 = vcombine.high %v1857_v10, %v1865_v2  ;;  %v15157_v1 = vcombine.low %v1857_v10, %v1865_v2  ;;  %v1811_v29 = vld [vmem:[#allocation15 + $0x190] sm:$0xff]  ;;  %v1812_v10 = vld [vmem:[#allocation15 + $0x198] sm:$0xff] }
 0xe99   :  { %1733 = vadd.xlane.f32.xlu0 %v1731_v50  ;;  %v1732_v51 = vmul.f32 %v19720_v48, %v19720_v48  ;;  %2669 = vmatprep.subr.bf16.mxu1 %v15160_v32  ;;  %v1772_v50 = vld [vmem:[#allocation15 + $0x58] sm:$0xff]  ;;  %v15114_v63 = vcombine.high %v1811_v29, %v1819_v62  ;;  %v1835_v32 = vld [vmem:[#allocation15 + $0x250] sm:$0xff]  ;;  %v15113_v35 = vcombine.low %v1811_v29, %v1819_v62 }
 0xe9a   :  { %2626 = vmatprep.subr.bf16.mxu0 %v15158_v55  ;;  %v15068_v52 = vcombine.high %v1764_v42, %v1772_v50  ;;  %v1820_v2 = vld [vmem:[#allocation15 + $0x1d8] sm:$0xff] }
 0xe9b   :  { %2627 = vmatpush1.bf16.msra.mxu0 %v15157_v1  ;;  %v15116_v1 = vcombine.high %v1812_v10, %v1820_v2  ;;  %v1852_v41 = vld [vmem:[#allocation15 + $0x2d8] sm:$0xff] }
 0xe9c   :  { %2670 = vmatpush1.bf16.msra.mxu1 %v15159_v11  ;;  %2628 = vmatprep.subr.bf16.mxu0 %v15174_v36  ;;  %v1827_v11 = vld [vmem:[#allocation15 + $0x210] sm:$0xff]  ;;  %v15115_v36 = vcombine.low %v1812_v10, %v1820_v2  ;;  %v1797_v10 = vld [vmem:[#allocation15 + $0x120] sm:$0xff] }
 0xe9d   :  { %1735 = vadd.xlane.f32.xlu0 %v1732_v51  ;;  %2671 = vmatprep.subr.bf16.mxu1 %v15176_v39  ;;  %v15067_v51 = vcombine.low %v1764_v42, %v1772_v50  ;;  %v15130_v37 = vcombine.high %v1827_v11, %v1835_v32  ;;  %v1851_v39 = vld [vmem:[#allocation15 + $0x2d0] sm:$0xff]  ;;  %v15129_v42 = vcombine.low %v1827_v11, %v1835_v32  ;;  %v1805_v2 = vld [vmem:[#allocation15 + $0x160] sm:$0xff] }
 0xe9e   :  { %v15148_v50 = vcombine.high %v1844_v40, %v1852_v41  ;;  %v15102_v11 = vcombine.high %v1797_v10, %v1805_v2 }
 0xe9f   :  { %2629 = vmatpush1.bf16.msra.mxu0 %v15173_v58  ;;  %v15132_v58 = vcombine.high %v1828_v33, %v1836_v34 }
 0xea0   :  { %2672 = vmatpush1.bf16.msra.mxu1 %v15175_v38  ;;  %2700 = vmatprep.subr.bf16.mxu0 %v15066_v5  ;;  %v1843_v38 = vld [vmem:[#allocation15 + $0x290] sm:$0xff] }
 0xea1   :  { %2743 = vmatprep.subr.bf16.mxu1 %v15068_v52  ;;  %v15146_v5 = vcombine.high %v1843_v38, %v1851_v39  ;;  %v1867_v52 = vld [vmem:[#allocation15 + $0x350] sm:$0xff] }
 0xf26   :  { %v1734_v53 = vpop.xlane.xlu0 %1733 }
 0xf27   :  { %v1737_v54 = vmul.f32 0.0078125, %v1734_v53  ;;  %v1860_v53 = vld [vmem:[#allocation15 + $0x318] sm:$0xff] }
 0xf29   :  { %v1739_v57 = vadd.f32 1e-05, %v1737_v54  ;;  %v1868_v54 = vld [vmem:[#allocation15 + $0x358] sm:$0xff] }
 0xf2a   :  { %v1736_v59 = vpop.xlane.xlu0 %1735 }
 0xf2b   :  { %17966 = vrsqrt.f32 %v1739_v57  ;;  %v1738_v60 = vmul.f32 0.0078125, %v1736_v59  ;;  %v15145_v57 = vcombine.low %v1843_v38, %v1851_v39  ;;  %v15147_v59 = vcombine.low %v1844_v40, %v1852_v41  ;;  %v1829_v40 = vld [vmem:[#allocation15 + $0x220] sm:$0xff] }
 0xf2c   :  { %v1837_v41 = vld [vmem:[#allocation15 + $0x260] sm:$0xff] }
 0xf2d   :  { %v1740_v3 = vadd.f32 1e-05, %v1738_v60 }
 0xf2f   :  { %17968 = vrsqrt.f32 %v1740_v3  ;;  %v15164_v3 = vcombine.high %v1860_v53, %v1868_v54 }
 0xf35   :  { %v17967_v4 = vpop.eup %17966 }
 0xf36   :  { %v1743_v6 = vmul.f32 %v17967_v4, %v19718_v47  ;;  %v15082_v47 = vcombine.high %v1779_v16, %v1787_v17  ;;  %v1875_v4 = vld [vmem:[#allocation15 + $0x390] sm:$0xff]  ;;  %v1765_v16 = vld [vmem:[#allocation15 + $0x20] sm:$0xff] }
 0xf37   :  { %v1773_v17 = vld [vmem:[#allocation15 + $0x60] sm:$0xff] }
 0xf38   :  { %v1751_v12 = vmul.f32 %v15059_v7, %v1743_v6  ;;  %v1883_v6 = vld [vmem:[#allocation15 + $0x3d0] sm:$0xff]  ;;  %v15070_v24 = vcombine.high %v1765_v16, %v1773_v17 }
 0xf39   :  { %v17969_v9 = vpop.eup %17968 }
 0xf3a   :  { %v1744_v13 = vmul.f32 %v17969_v9, %v19720_v48  ;;  %v19728_v20 = vadd.f32 %v15060_v14, %v1751_v12  ;;  %v1804_v48 = vld [vmem:[#allocation15 + $0x158] sm:$0xff] }
 0xf3b   :  { %v15100_v28 = vcombine.high %v1796_v25, %v1804_v48  ;;  %v15099_v55 = vcombine.low %v1796_v25, %v1804_v48  ;;  %v1884_v9 = vld [vmem:[#allocation15 + $0x3d8] sm:$0xff]  ;;  %v1781_v25 = vld [vmem:[#allocation15 + $0xa0] sm:$0xff] }
 0xf3c   :  { %v1752_v15 = vmul.f32 %v15059_v7, %v1744_v13  ;;  %v1876_v7 = vld [vmem:[#allocation15 + $0x398] sm:$0xff]  ;;  %v15163_v13 = vcombine.low %v1860_v53, %v1868_v54  ;;  %v1789_v48 = vld [vmem:[#allocation15 + $0xe0] sm:$0xff] }
 0xf3d   :  { %v15086_v29 = vcombine.high %v1781_v25, %v1789_v48  ;;  %v1845_v53 = vld [vmem:[#allocation15 + $0x2a0] sm:$0xff] }
 0xf3e   :  { %v19730_v21 = vadd.f32 %v15060_v14, %v1752_v15  ;;  %v15178_v14 = vcombine.high %v1875_v4, %v1883_v6  ;;  %v15180_v15 = vcombine.high %v1876_v7, %v1884_v9  ;;  %v1853_v54 = vld [vmem:[#allocation15 + $0x2e0] sm:$0xff] }
 0xf40   :  { %v19734_v22 = vpack.c.bf16 %v19730_v21, %v19728_v20 }
 0xf42   :  { %2647 = vmatmul.mubr.bf16.vlgmr.msra.gmra.mrb[44].mxu0 %v19734_v22  ;;  %2690 = vmatmul.mubr.bf16.vlgmr.msra.gmra.mrb[36].mxu1 %v19734_v22 }
 0xf43   :  { %2701 = vmatpush1.bf16.msra.mxu0 %v15065_v45  ;;  %2744 = vmatpush1.bf16.msra.mxu1 %v15067_v51  ;;  %v15131_v45 = vcombine.low %v1828_v33, %v1836_v34  ;;  %v1859_v51 = vld [vmem:[#allocation15 + $0x310] sm:$0xff]  ;;  %v1813_v33 = vld [vmem:[#allocation15 + $0x1a0] sm:$0xff] }
 0xf44   :  { %2702 = vmatprep.subr.bf16.mxu0 %v15082_v47  ;;  %2745 = vmatprep.subr.bf16.mxu1 %v15084_v23  ;;  %v15162_v60 = vcombine.high %v1859_v51, %v1867_v52  ;;  %v15161_v12 = vcombine.low %v1859_v51, %v1867_v52  ;;  %v15177_v47 = vcombine.low %v1875_v4, %v1883_v6  ;;  %v1821_v34 = vld [vmem:[#allocation15 + $0x1e0] sm:$0xff] }
 0xf45   :  { %2732 = vmatprep.mubr.bf16.mxu0 %v22031_v30  ;;  %2775 = vmatprep.mubr.bf16.mxu1 %v22031_v30  ;;  %v15179_v23 = vcombine.low %v1876_v7, %v1884_v9  ;;  %v15118_v38 = vcombine.high %v1813_v33, %v1821_v34  ;;  %v15134_v51 = vcombine.high %v1829_v40, %v1837_v41  ;;  %v1861_v7 = vld [vmem:[#allocation15 + $0x320] sm:$0xff] }
 0xf46   :  { %v15150_v4 = vcombine.high %v1845_v53, %v1853_v54  ;;  %v1869_v9 = vld [vmem:[#allocation15 + $0x360] sm:$0xff] }
 0xf47   :  { %2703 = vmatpush1.bf16.msra.mxu0 %v15081_v56  ;;  %2746 = vmatpush1.bf16.msra.mxu1 %v15083_v26  ;;  %v1782_v56 = vld [vmem:[#allocation15 + $0xa8] sm:$0xff] }
 0xf48   :  { %2704 = vmatprep.subr.bf16.mxu0 %v15098_v27  ;;  %2747 = vmatprep.subr.bf16.mxu1 %v15100_v28  ;;  %v1790_v26 = vld [vmem:[#allocation15 + $0xe8] sm:$0xff]  ;;  %v15069_v27 = vcombine.low %v1765_v16, %v1773_v17  ;;  %v15071_v28 = vcombine.low %v1766_v18, %v1774_v19  ;;  %v15166_v16 = vcombine.high %v1861_v7, %v1869_v9  ;;  %v1877_v18 = vld [vmem:[#allocation15 + $0x3a0] sm:$0xff] }
 0xf49   :  { %v15088_v62 = vcombine.high %v1782_v56, %v1790_v26  ;;  %v1885_v19 = vld [vmem:[#allocation15 + $0x3e0] sm:$0xff] }
 0xf4b   :  { %2705 = vmatpush1.bf16.msra.mxu0 %v15097_v31  ;;  %2748 = vmatpush1.bf16.msra.mxu1 %v15099_v55  ;;  %v1798_v31 = vld [vmem:[#allocation15 + $0x128] sm:$0xff] }
 0xf4c   :  { %2706 = vmatprep.subr.bf16.mxu0 %v15114_v63  ;;  %2749 = vmatprep.subr.bf16.mxu1 %v15116_v1  ;;  %v1806_v55 = vld [vmem:[#allocation15 + $0x168] sm:$0xff]  ;;  %v15085_v63 = vcombine.low %v1781_v25, %v1789_v48  ;;  %v15087_v1 = vcombine.low %v1782_v56, %v1790_v26  ;;  %v15182_v25 = vcombine.high %v1877_v18, %v1885_v19  ;;  %v1767_v56 = vld [vmem:[#allocation15 + $0x30] sm:$0xff] }
 0xf4d   :  { %v15104_v32 = vcombine.high %v1798_v31, %v1806_v55  ;;  %v1775_v26 = vld [vmem:[#allocation15 + $0x70] sm:$0xff] }
 0xf4f   :  { %2707 = vmatpush1.bf16.msra.mxu0 %v15113_v35  ;;  %2750 = vmatpush1.bf16.msra.mxu1 %v15115_v36  ;;  %v1814_v35 = vld [vmem:[#allocation15 + $0x1a8] sm:$0xff] }
 0xf50   :  { %2708 = vmatprep.subr.bf16.mxu0 %v15130_v37  ;;  %2751 = vmatprep.subr.bf16.mxu1 %v15132_v58  ;;  %v1822_v36 = vld [vmem:[#allocation15 + $0x1e8] sm:$0xff]  ;;  %v15101_v37 = vcombine.low %v1797_v10, %v1805_v2  ;;  %v15103_v58 = vcombine.low %v1798_v31, %v1806_v55  ;;  %v15074_v10 = vcombine.high %v1767_v56, %v1775_v26  ;;  %v1783_v31 = vld [vmem:[#allocation15 + $0xb0] sm:$0xff] }
 0xf51   :  { %v15120_v39 = vcombine.high %v1814_v35, %v1822_v36  ;;  %v1791_v55 = vld [vmem:[#allocation15 + $0xf0] sm:$0xff] }
 0xf53   :  { %2709 = vmatpush1.bf16.msra.mxu0 %v15129_v42  ;;  %2752 = vmatpush1.bf16.msra.mxu1 %v15131_v45  ;;  %v1830_v42 = vld [vmem:[#allocation15 + $0x228] sm:$0xff] }
 0xf54   :  { %2710 = vmatprep.subr.bf16.mxu0 %v15146_v5  ;;  %2753 = vmatprep.subr.bf16.mxu1 %v15148_v50  ;;  %v1838_v45 = vld [vmem:[#allocation15 + $0x268] sm:$0xff]  ;;  %v15117_v5 = vcombine.low %v1813_v33, %v1821_v34  ;;  %v15119_v50 = vcombine.low %v1814_v35, %v1822_v36  ;;  %v15090_v33 = vcombine.high %v1783_v31, %v1791_v55  ;;  %v1799_v35 = vld [vmem:[#allocation15 + $0x130] sm:$0xff] }
 0xf55   :  { %v15136_v52 = vcombine.high %v1830_v42, %v1838_v45  ;;  %v1807_v36 = vld [vmem:[#allocation15 + $0x170] sm:$0xff] }
 0xf57   :  { %2711 = vmatpush1.bf16.msra.mxu0 %v15145_v57  ;;  %2754 = vmatpush1.bf16.msra.mxu1 %v15147_v59  ;;  %v1846_v57 = vld [vmem:[#allocation15 + $0x2a8] sm:$0xff] }
 0xf58   :  { %2712 = vmatprep.subr.bf16.mxu0 %v15162_v60  ;;  %2755 = vmatprep.subr.bf16.mxu1 %v15164_v3  ;;  %v1854_v59 = vld [vmem:[#allocation15 + $0x2e8] sm:$0xff]  ;;  %v15133_v60 = vcombine.low %v1829_v40, %v1837_v41  ;;  %v15135_v3 = vcombine.low %v1830_v42, %v1838_v45  ;;  %v15106_v40 = vcombine.high %v1799_v35, %v1807_v36  ;;  %v1815_v42 = vld [vmem:[#allocation15 + $0x1b0] sm:$0xff] }
 0xf59   :  { %v15152_v6 = vcombine.high %v1846_v57, %v1854_v59  ;;  %v1823_v45 = vld [vmem:[#allocation15 + $0x1f0] sm:$0xff] }
 0xf5b   :  { %2713 = vmatpush1.bf16.msra.mxu0 %v15161_v12  ;;  %2756 = vmatpush1.bf16.msra.mxu1 %v15163_v13  ;;  %v1862_v12 = vld [vmem:[#allocation15 + $0x328] sm:$0xff] }
 0xf5c   :  { %2714 = vmatprep.subr.bf16.mxu0 %v15178_v14  ;;  %2757 = vmatprep.subr.bf16.mxu1 %v15180_v15  ;;  %v1870_v13 = vld [vmem:[#allocation15 + $0x368] sm:$0xff]  ;;  %v15149_v14 = vcombine.low %v1845_v53, %v1853_v54  ;;  %v15151_v15 = vcombine.low %v1846_v57, %v1854_v59  ;;  %v15122_v53 = vcombine.high %v1815_v42, %v1823_v45  ;;  %v1831_v57 = vld [vmem:[#allocation15 + $0x230] sm:$0xff] }
 0xf5d   :  { %v15168_v17 = vcombine.high %v1862_v12, %v1870_v13  ;;  %v1839_v59 = vld [vmem:[#allocation15 + $0x270] sm:$0xff] }
 0xf5f   :  { %2715 = vmatpush1.bf16.msra.mxu0 %v15177_v47  ;;  %2758 = vmatpush1.bf16.msra.mxu1 %v15179_v23  ;;  %v1878_v47 = vld [vmem:[#allocation15 + $0x3a8] sm:$0xff] }
 0xf60   :  { %2786 = vmatprep.subr.bf16.mxu0 %v15070_v24  ;;  %2829 = vmatprep.subr.bf16.mxu1 %v15072_v61  ;;  %v1886_v23 = vld [vmem:[#allocation15 + $0x3e8] sm:$0xff]  ;;  %v15165_v24 = vcombine.low %v1861_v7, %v1869_v9  ;;  %v15167_v61 = vcombine.low %v1862_v12, %v1870_v13  ;;  %v15138_v7 = vcombine.high %v1831_v57, %v1839_v59  ;;  %v1847_v12 = vld [vmem:[#allocation15 + $0x2b0] sm:$0xff] }
 0xf61   :  { %v15184_v48 = vcombine.high %v1878_v47, %v1886_v23  ;;  %v1855_v13 = vld [vmem:[#allocation15 + $0x2f0] sm:$0xff] }
 0xf62   :  { %2733 = vmatmul.mubr.bf16.vlgmr.msra.gmra.mrb[48].mxu0 %v19734_v22  ;;  %2776 = vmatmul.mubr.bf16.vlgmr.msra.gmra.mrb[40].mxu1 %v19734_v22 }
 0xf63   :  { %2787 = vmatpush1.bf16.msra.mxu0 %v15069_v27  ;;  %2830 = vmatpush1.bf16.msra.mxu1 %v15071_v28  ;;  %v1768_v27 = vld [vmem:[#allocation15 + $0x38] sm:$0xff] }
 0xf64   :  { %2788 = vmatprep.subr.bf16.mxu0 %v15086_v29  ;;  %2831 = vmatprep.subr.bf16.mxu1 %v15088_v62  ;;  %v1776_v28 = vld [vmem:[#allocation15 + $0x78] sm:$0xff]  ;;  %v15181_v29 = vcombine.low %v1877_v18, %v1885_v19  ;;  %v15183_v62 = vcombine.low %v1878_v47, %v1886_v23  ;;  %v15154_v18 = vcombine.high %v1847_v12, %v1855_v13  ;;  %v1863_v47 = vld [vmem:[#allocation15 + $0x330] sm:$0xff] }
 0xf65   :  { %2818 = vmatprep.mubr.bf16.mxu0 %v22031_v30  ;;  %2861 = vmatprep.mubr.bf16.mxu1 %v22031_v30  ;;  %v15076_v2 = vcombine.high %v1768_v27, %v1776_v28  ;;  %v1871_v23 = vld [vmem:[#allocation15 + $0x370] sm:$0xff] }
 0xf67   :  { %2789 = vmatpush1.bf16.msra.mxu0 %v15085_v63  ;;  %2832 = vmatpush1.bf16.msra.mxu1 %v15087_v1  ;;  %v1784_v63 = vld [vmem:[#allocation15 + $0xb8] sm:$0xff] }
 0xf68   :  { %2790 = vmatprep.subr.bf16.mxu0 %v15102_v11  ;;  %2833 = vmatprep.subr.bf16.mxu1 %v15104_v32  ;;  %v1792_v1 = vld [vmem:[#allocation15 + $0xf8] sm:$0xff]  ;;  %v15073_v11 = vcombine.low %v1767_v56, %v1775_v26  ;;  %v15075_v32 = vcombine.low %v1768_v27, %v1776_v28  ;;  %v15170_v56 = vcombine.high %v1863_v47, %v1871_v23  ;;  %v1879_v27 = vld [vmem:[#allocation15 + $0x3b0] sm:$0xff] }
 0xf69   :  { %v15092_v34 = vcombine.high %v1784_v63, %v1792_v1  ;;  %v1887_v28 = vld [vmem:[#allocation15 + $0x3f0] sm:$0xff] }
 0xf6b   :  { %2791 = vmatpush1.bf16.msra.mxu0 %v15101_v37  ;;  %2834 = vmatpush1.bf16.msra.mxu1 %v15103_v58  ;;  %v1800_v37 = vld [vmem:[#allocation15 + $0x138] sm:$0xff] }
 0xf6c   :  { %2792 = vmatprep.subr.bf16.mxu0 %v15118_v38  ;;  %2835 = vmatprep.subr.bf16.mxu1 %v15120_v39  ;;  %v1808_v58 = vld [vmem:[#allocation15 + $0x178] sm:$0xff]  ;;  %v15089_v38 = vcombine.low %v1783_v31, %v1791_v55  ;;  %v15091_v39 = vcombine.low %v1784_v63, %v1792_v1  ;;  %v15186_v31 = vcombine.high %v1879_v27, %v1887_v28 }
 0xf6d   :  { %v15108_v41 = vcombine.high %v1800_v37, %v1808_v58  ;;  %v15185_v63 = vcombine.low %v1879_v27, %v1887_v28 }
 0xf6f   :  { %2793 = vmatpush1.bf16.msra.mxu0 %v15117_v5  ;;  %2836 = vmatpush1.bf16.msra.mxu1 %v15119_v50  ;;  %v1816_v5 = vld [vmem:[#allocation15 + $0x1b8] sm:$0xff] }
 0xf70   :  { %2794 = vmatprep.subr.bf16.mxu0 %v15134_v51  ;;  %2837 = vmatprep.subr.bf16.mxu1 %v15136_v52  ;;  %v1824_v50 = vld [vmem:[#allocation15 + $0x1f8] sm:$0xff]  ;;  %v15105_v51 = vcombine.low %v1799_v35, %v1807_v36  ;;  %v15107_v52 = vcombine.low %v1800_v37, %v1808_v58  ;;  %v17189_v35 = vld [vmem:[#allocation18 + $0x48] sm:$0xff]  }
 0xf71   :  { %v15124_v54 = vcombine.high %v1816_v5, %v1824_v50  ;;  %v17190_v36 = vld [vmem:[#allocation18 + $0xc8] sm:$0xff]  }
 0xf72   :  { %v17191_v37 = vld [vmem:[#allocation18 + $0x8] sm:$0xff]  }
 0xf73   :  { %2795 = vmatpush1.bf16.msra.mxu0 %v15133_v60  ;;  %2838 = vmatpush1.bf16.msra.mxu1 %v15135_v3  ;;  %v1832_v60 = vld [vmem:[#allocation15 + $0x238] sm:$0xff]  ;;  %v17192_v58 = vld [vmem:[#allocation18 + $0x88] sm:$0xff]  }
 0xf74   :  { %2796 = vmatprep.subr.bf16.mxu0 %v15150_v4  ;;  %2839 = vmatprep.subr.bf16.mxu1 %v15152_v6  ;;  %v1840_v3 = vld [vmem:[#allocation15 + $0x278] sm:$0xff]  ;;  %v15121_v4 = vcombine.low %v1815_v42, %v1823_v45  ;;  %v15123_v6 = vcombine.low %v1816_v5, %v1824_v50  ;;  %v17201_v50 = vld [vmem:[#allocation18 + $0x60] sm:$0xff]  }
 0xf75   :  { %v15140_v9 = vcombine.high %v1832_v60, %v1840_v3  ;;  %v17197_v42 = vld [vmem:[#allocation18 + $0x58] sm:$0xff]  }
 0xf76   :  { %v17198_v45 = vld [vmem:[#allocation18 + $0xd8] sm:$0xff]  }
 0xf77   :  { %2797 = vmatpush1.bf16.msra.mxu0 %v15149_v14  ;;  %2840 = vmatpush1.bf16.msra.mxu1 %v15151_v15  ;;  %v1848_v14 = vld [vmem:[#allocation15 + $0x2b8] sm:$0xff] }
 0xf78   :  { %2798 = vmatprep.subr.bf16.mxu0 %v15166_v16  ;;  %2841 = vmatprep.subr.bf16.mxu1 %v15168_v17  ;;  %v1856_v15 = vld [vmem:[#allocation15 + $0x2f8] sm:$0xff]  ;;  %v15137_v16 = vcombine.low %v1831_v57, %v1839_v59  ;;  %v15139_v17 = vcombine.low %v1832_v60, %v1840_v3  ;;  %v17206_v57 = vld [vmem:[#allocation18 + $0xe8] sm:$0xff]   ;;  %v17209_v3 = vld [vmem:[#allocation18 + $0x70] sm:$0xff]  }
 0xf79   :  { %v15156_v19 = vcombine.high %v1848_v14, %v1856_v15  ;;  %v17199_v5 = vld [vmem:[#allocation18 + $0x18] sm:$0xff]   ;;  %v17207_v59 = vld [vmem:[#allocation18 + $0x28] sm:$0xff]  }
 0xf7a   :  { %v17208_v60 = vld [vmem:[#allocation18 + $0xa8] sm:$0xff]  }
 0xf7b   :  { %2799 = vmatpush1.bf16.msra.mxu0 %v15165_v24  ;;  %2842 = vmatpush1.bf16.msra.mxu1 %v15167_v61  ;;  %v1864_v24 = vld [vmem:[#allocation15 + $0x338] sm:$0xff] }
 0xf7c   :  { %2800 = vmatprep.subr.bf16.mxu0 %v15182_v25  ;;  %2843 = vmatprep.subr.bf16.mxu1 %v15184_v48  ;;  %v1872_v61 = vld [vmem:[#allocation15 + $0x378] sm:$0xff]  ;;  %v15153_v25 = vcombine.low %v1847_v12, %v1855_v13  ;;  %v15155_v48 = vcombine.low %v1848_v14, %v1856_v15  ;;  %v17217_v15 = vld [vmem:[#allocation18 + $0x140] sm:$0xff]  }
 0xf7d   :  { %v15172_v26 = vcombine.high %v1864_v24, %v1872_v61  ;;  %v17214_v12 = vld [vmem:[#allocation18 + $0xf8] sm:$0xff]  }
 0xf7e   :  { %v17215_v13 = vld [vmem:[#allocation18 + $0x38] sm:$0xff]  }
 0xf7f   :  { %2801 = vmatpush1.bf16.msra.mxu0 %v15181_v29  ;;  %2844 = vmatpush1.bf16.msra.mxu1 %v15183_v62  ;;  %v1880_v29 = vld [vmem:[#allocation15 + $0x3b8] sm:$0xff] }
 0xf80   :  { %2872 = vmatprep.subr.bf16.mxu0 %v15074_v10  ;;  %2915 = vmatprep.subr.bf16.mxu1 %v15076_v2  ;;  %v1888_v62 = vld [vmem:[#allocation15 + $0x3f8] sm:$0xff]  ;;  %v15169_v10 = vcombine.low %v1863_v47, %v1871_v23  ;;  %v15171_v2 = vcombine.low %v1864_v24, %v1872_v61 }
 0xf81   :  { %v15188_v55 = vcombine.high %v1880_v29, %v1888_v62  ;;  %v15187_v1 = vcombine.low %v1880_v29, %v1888_v62  ;;  %v17216_v14 = vld [vmem:[#allocation18 + $0xb8] sm:$0xff]  }
 0xf82   :  { %2819 = vmatmul.mubr.bf16.vlgmr.msra.gmra.mrb[52].mxu0 %v19734_v22  ;;  %2862 = vmatmul.mubr.bf16.vlgmr.msra.gmra.mrb[44].mxu1 %v19734_v22 }
 0xf83   :  { %2873 = vmatpush1.bf16.msra.mxu0 %v15073_v11  ;;  %2916 = vmatpush1.bf16.msra.mxu1 %v15075_v32  ;;  %v17185_v11 = vld [vmem:[#allocation18 + $0x40] sm:$0xff]  }
 0xf84   :  { %2874 = vmatprep.subr.bf16.mxu0 %v15090_v33  ;;  %2917 = vmatprep.subr.bf16.mxu1 %v15092_v34  ;;  %v17186_v32 = vld [vmem:[#allocation18 + $0xc0] sm:$0xff]  }
 0xf85   :  { %2904 = vmatprep.mubr.bf16.mxu0 %v22031_v30  ;;  %2947 = vmatprep.mubr.bf16.mxu1 %v22031_v30  ;;  %v17187_v33 = vld [vmem:[#allocation18] sm:$0xff]  }
 0xf86   :  { %v17188_v34 = vld [vmem:[#allocation18 + $0x80] sm:$0xff]  }
 0xf87   :  { %2875 = vmatpush1.bf16.msra.mxu0 %v15089_v38  ;;  %2918 = vmatpush1.bf16.msra.mxu1 %v15091_v39  ;;  %v17193_v38 = vld [vmem:[#allocation18 + $0x50] sm:$0xff]  }
 0xf88   :  { %2876 = vmatprep.subr.bf16.mxu0 %v15106_v40  ;;  %2919 = vmatprep.subr.bf16.mxu1 %v15108_v41  ;;  %v17194_v39 = vld [vmem:[#allocation18 + $0xd0] sm:$0xff]  }
 0xf89   :  { %v17195_v40 = vld [vmem:[#allocation18 + $0x10] sm:$0xff]  }
 0xf8a   :  { %v17196_v41 = vld [vmem:[#allocation18 + $0x90] sm:$0xff]  }
 0xf8b   :  { %2877 = vmatpush1.bf16.msra.mxu0 %v15105_v51  ;;  %2920 = vmatpush1.bf16.msra.mxu1 %v15107_v52  ;;  %v17202_v51 = vld [vmem:[#allocation18 + $0xe0] sm:$0xff]  }
 0xf8c   :  { %2878 = vmatprep.subr.bf16.mxu0 %v15122_v53  ;;  %2921 = vmatprep.subr.bf16.mxu1 %v15124_v54  ;;  %v17203_v52 = vld [vmem:[#allocation18 + $0x20] sm:$0xff]   ;;  %v17205_v54 = vld [vmem:[#allocation18 + $0x68] sm:$0xff]  }
 0xf8d   :  { %v17204_v53 = vld [vmem:[#allocation18 + $0xa0] sm:$0xff]  }
 0xf8f   :  { %2879 = vmatpush1.bf16.msra.mxu0 %v15121_v4  ;;  %2922 = vmatpush1.bf16.msra.mxu1 %v15123_v6  ;;  %v17210_v4 = vld [vmem:[#allocation18 + $0xf0] sm:$0xff]  }
 0xf90   :  { %2880 = vmatprep.subr.bf16.mxu0 %v15138_v7  ;;  %2923 = vmatprep.subr.bf16.mxu1 %v15140_v9  ;;  %v17211_v6 = vld [vmem:[#allocation18 + $0x30] sm:$0xff]   ;;  %v17213_v9 = vld [vmem:[#allocation18 + $0x78] sm:$0xff]  }
 0xf91   :  { %v17212_v7 = vld [vmem:[#allocation18 + $0xb0] sm:$0xff]  }
 0xf93   :  { %2881 = vmatpush1.bf16.msra.mxu0 %v15137_v16  ;;  %2924 = vmatpush1.bf16.msra.mxu1 %v15139_v17  ;;  %v17218_v16 = vld [vmem:[#allocation18 + $0x1c0] sm:$0xff]  }
 0xf94   :  { %2882 = vmatprep.subr.bf16.mxu0 %v15154_v18  ;;  %2925 = vmatprep.subr.bf16.mxu1 %v15156_v19  ;;  %v19750_v17 = vld [vmem:[#allocation17] sm:$0xff]  ;;  %v19753_v18 = vsub.s32 3, %v19519_v43 }
 0xf95   :  { %v1897_v19 = vrot.slane %v19750_v17, %v19530_v49  ;;  %v1905_v47 = vrot.slane %v19750_v17, %v19522_v44  ;;  %v1901_v23 = vrot.slane %v19750_v17, %v19525_v46 }
 0xf96   :  { %v1909_v24 = vrot.slane %v19750_v17, %v19753_v18 }
 0xf97   :  { %2883 = vmatpush1.bf16.msra.mxu0 %v15153_v25  ;;  %2926 = vmatpush1.bf16.msra.mxu1 %v15155_v48 }
 0xf98   :  { %2884 = vmatprep.subr.bf16.mxu0 %v15170_v56  ;;  %2927 = vmatprep.subr.bf16.mxu1 %v15172_v26 }
 0xf9b   :  { %2885 = vmatpush1.bf16.msra.mxu0 %v15169_v10  ;;  %2928 = vmatpush1.bf16.msra.mxu1 %v15171_v2 }
 0xf9c   :  { %2886 = vmatprep.subr.bf16.mxu0 %v15186_v31  ;;  %2929 = vmatprep.subr.bf16.mxu1 %v15188_v55 }
 0xf9f   :  { %2887 = vmatpush1.bf16.msra.mxu0 %v15185_v63  ;;  %2930 = vmatpush1.bf16.msra.mxu1 %v15187_v1 }
 0xfa0   :  { %16338 = vmatprep.subr.bf16.mxu0 %v17185_v11  ;;  %16360 = vmatprep.subr.bf16.mxu1 %v17186_v32 }
 0xfa2   :  { %2905 = vmatmul.mubr.bf16.vlgmr.msra.gmra.mrb[56].mxu0 %v19734_v22  ;;  %2948 = vmatmul.mubr.bf16.vlgmr.msra.gmra.mrb[48].mxu1 %v19734_v22  ;;  %v17200_v22 = vld [vmem:[#allocation18 + $0x98] sm:$0xff]  }
 0xfa3   :  { %16339 = vmatpush3.bf16.msra.mxu0 %v17187_v33  ;;  %16361 = vmatpush3.bf16.msra.mxu1 %v17188_v34 }
 0xfa4   :  { %16340 = vmatprep.subr.bf16.mxu0 %v17189_v35  ;;  %16362 = vmatprep.subr.bf16.mxu1 %v17190_v36 }
 0xfa7   :  { %16341 = vmatpush3.bf16.msra.mxu0 %v17191_v37  ;;  %16363 = vmatpush3.bf16.msra.mxu1 %v17192_v58 }
 0xfa8   :  { %16342 = vmatprep.subr.bf16.mxu0 %v17193_v38  ;;  %16364 = vmatprep.subr.bf16.mxu1 %v17194_v39 }
 0xfab   :  { %16343 = vmatpush3.bf16.msra.mxu0 %v17195_v40  ;;  %16365 = vmatpush3.bf16.msra.mxu1 %v17196_v41 }
 0xfac   :  { %16344 = vmatprep.subr.bf16.mxu0 %v17197_v42  ;;  %16366 = vmatprep.subr.bf16.mxu1 %v17198_v45  ;;  %v17219_v45 = vld [vmem:[#allocation18 + $0x100] sm:$0xff]  }
 0xfaf   :  { %16345 = vmatpush3.bf16.msra.mxu0 %v17199_v5  ;;  %16367 = vmatpush3.bf16.msra.mxu1 %v17200_v22  ;;  %v17220_v5 = vld [vmem:[#allocation18 + $0x180] sm:$0xff]   ;;  %v17221_v22 = vld [vmem:[#allocation18 + $0x148] sm:$0xff]  }
 0xfb0   :  { %16346 = vmatprep.subr.bf16.mxu0 %v17201_v50  ;;  %16368 = vmatprep.subr.bf16.mxu1 %v17202_v51  ;;  %v17222_v50 = vld [vmem:[#allocation18 + $0x1c8] sm:$0xff]  }
 0xfb1   :  { %v17223_v51 = vld [vmem:[#allocation18 + $0x108] sm:$0xff]  }
 0xfb3   :  { %16347 = vmatpush3.bf16.msra.mxu0 %v17203_v52  ;;  %16369 = vmatpush3.bf16.msra.mxu1 %v17204_v53  ;;  %v17224_v52 = vld [vmem:[#allocation18 + $0x188] sm:$0xff]   ;;  %v17225_v53 = vld [vmem:[#allocation18 + $0x150] sm:$0xff]  }
 0xfb4   :  { %16348 = vmatprep.subr.bf16.mxu0 %v17205_v54  ;;  %16370 = vmatprep.subr.bf16.mxu1 %v17206_v57  ;;  %v17226_v54 = vld [vmem:[#allocation18 + $0x1d0] sm:$0xff]  }
 0xfb5   :  { %v17227_v57 = vld [vmem:[#allocation18 + $0x110] sm:$0xff]  }
 0xfb7   :  { %16349 = vmatpush3.bf16.msra.mxu0 %v17207_v59  ;;  %16371 = vmatpush3.bf16.msra.mxu1 %v17208_v60  ;;  %v17228_v59 = vld [vmem:[#allocation18 + $0x190] sm:$0xff]   ;;  %v17229_v60 = vld [vmem:[#allocation18 + $0x158] sm:$0xff]  }
 0xfb8   :  { %16350 = vmatprep.subr.bf16.mxu0 %v17209_v3  ;;  %16372 = vmatprep.subr.bf16.mxu1 %v17210_v4  ;;  %v17230_v3 = vld [vmem:[#allocation18 + $0x1d8] sm:$0xff]  }
 0xfb9   :  { %v17231_v4 = vld [vmem:[#allocation18 + $0x118] sm:$0xff]  }
 0xfbb   :  { %16351 = vmatpush3.bf16.msra.mxu0 %v17211_v6  ;;  %16373 = vmatpush3.bf16.msra.mxu1 %v17212_v7  ;;  %v17232_v6 = vld [vmem:[#allocation18 + $0x198] sm:$0xff]   ;;  %v17233_v7 = vld [vmem:[#allocation18 + $0x160] sm:$0xff]  }
 0xfbc   :  { %16352 = vmatprep.subr.bf16.mxu0 %v17213_v9  ;;  %16374 = vmatprep.subr.bf16.mxu1 %v17214_v12  ;;  %v17234_v9 = vld [vmem:[#allocation18 + $0x1e0] sm:$0xff]  }
 0xfbd   :  { %v17235_v12 = vld [vmem:[#allocation18 + $0x120] sm:$0xff]  }
 0xfbf   :  { %16353 = vmatpush3.bf16.msra.mxu0 %v17215_v13  ;;  %16375 = vmatpush3.bf16.msra.mxu1 %v17216_v14  ;;  %v17236_v13 = vld [vmem:[#allocation18 + $0x1a0] sm:$0xff]   ;;  %v17237_v14 = vld [vmem:[#allocation18 + $0x168] sm:$0xff]  }
 0xfc0   :  { %16382 = vmatprep.subr.bf16.mxu0 %v17217_v15  ;;  %16404 = vmatprep.subr.bf16.mxu1 %v17218_v16  ;;  %v17238_v15 = vld [vmem:[#allocation18 + $0x1e8] sm:$0xff]   ;;  %v19764_v16 = vsub.s32 4, %v19519_v43 }
0x1015   :  { %v2648_v61 = vpop.f32.mrb[44].mxu0  ;;  %v2691_v25 = vpop.f32.mrb[36].mxu1 }
0x1016   :  { %v2649_v48 = vadd.f32 %v2648_v61, %v1897_v19  ;;  %v2692_v56 = vadd.f32 %v2691_v25, %v1905_v47  ;;  %v2650_v26 = vpop.f32.mrb[45].mxu0  ;;  %v2693_v27 = vpop.f32.mrb[37].mxu1  ;;  %v17240_v61 = vld [vmem:[#allocation18 + $0x1a8] sm:$0xff]   ;;  %v1913_v25 = vrot.slane %v19750_v17, %v19764_v16 }
0x1017   :  { %v2651_v28 = vadd.f32 %v2650_v26, %v1901_v23  ;;  %v2694_v29 = vadd.f32 %v2693_v27, %v1909_v24  ;;  %v2652_v62 = vpop.f32.mrb[46].mxu0  ;;  %v2695_v10 = vpop.f32.mrb[38].mxu1  ;;  %v17242_v26 = vld [vmem:[#allocation18 + $0x1f0] sm:$0xff]  }
0x1018   :  { %v2653_v2 = vadd.f32 %v2652_v62, %v1897_v19  ;;  %v2696_v31 = vadd.f32 %v2695_v10, %v1905_v47  ;;  %v2654_v55 = vpop.f32.mrb[47].mxu0  ;;  %v2697_v63 = vpop.f32.mrb[39].mxu1  ;;  %v2958_v32 = vmax.f32 %v2649_v48, 0.0  ;;  %v2960_v33 = vmax.f32 %v2692_v56, 0.0  ;;  %v17241_v56 = vld [vmem:[#allocation18 + $0x170] sm:$0xff]  }
0x1019   :  { %v2655_v1 = vadd.f32 %v2654_v55, %v1901_v23  ;;  %v2698_v11 = vadd.f32 %v2697_v63, %v1909_v24  ;;  %v2959_v36 = vmax.f32 %v2651_v28, 0.0  ;;  %v2961_v37 = vmax.f32 %v2694_v29, 0.0  ;;  %v17239_v24 = vld [vmem:[#allocation18 + $0x128] sm:$0xff]   ;;  %v17243_v62 = vld [vmem:[#allocation18 + $0x130] sm:$0xff]  }
0x101a   :  { %v2974_v34 = vmax.f32 %v2653_v2, 0.0  ;;  %v2976_v35 = vmax.f32 %v2696_v31, 0.0  ;;  %v19767_v19 = vsub.s32 6, %v19519_v43  ;;  %v19770_v47 = vsub.s32 5, %v19519_v43  ;;  %v17244_v10 = vld [vmem:[#allocation18 + $0x1b0] sm:$0xff]  }
0x101b   :  { %v2975_v58 = vmax.f32 %v2655_v1, 0.0  ;;  %v2977_v38 = vmax.f32 %v2698_v11, 0.0  ;;  %v19773_v23 = vsub.s32 7, %v19519_v43  ;;  %v17245_v1 = vld [vmem:[#allocation18 + $0x178] sm:$0xff]  }
0x101c   :  { %v3247_v39 = vpack.c.bf16 %v2974_v34, %v2958_v32  ;;  %v3249_v40 = vpack.c.bf16 %v2976_v35, %v2960_v33  ;;  %v1921_v48 = vrot.slane %v19750_v17, %v19767_v19  ;;  %v1917_v27 = vrot.slane %v19750_v17, %v19770_v47  ;;  %v17246_v11 = vld [vmem:[#allocation18 + $0x1f8] sm:$0xff]  }
0x101d   :  { %v3248_v41 = vpack.c.bf16 %v2975_v58, %v2959_v36  ;;  %v3250_v42 = vpack.c.bf16 %v2977_v38, %v2961_v37  ;;  %v1925_v43 = vrot.slane %v19750_v17, %v19773_v23 }
0x101f   :  { %4069 = vmatprep.mubr.bf16.mxu0 %v3248_v41  ;;  %4110 = vmatprep.mubr.bf16.mxu1 %v3250_v42  ;;  %v17248_v41 = vld [vmem:[#allocation18 + $0x1b8] sm:$0xff]  }
0x1020   :  { %4070 = vmatmul.mubr.bf16.vlgmr.msra.gmra.mrb[60].mxu0 %v3247_v39  ;;  %4111 = vmatmul.mubr.bf16.vlgmr.msra.gmra.mrb[52].mxu1 %v3249_v40  ;;  %v17247_v40 = vld [vmem:[#allocation18 + $0x138] sm:$0xff]  }
0x1021   :  { %16383 = vmatpush3.bf16.msra.mxu0 %v17219_v45  ;;  %16405 = vmatpush3.bf16.msra.mxu1 %v17220_v5 }
0x1022   :  { %16384 = vmatprep.subr.bf16.mxu0 %v17221_v22  ;;  %16406 = vmatprep.subr.bf16.mxu1 %v17222_v50  ;;  %v17249_v50 = vld [vmem:[#allocation18 + $0x240] sm:$0xff]  }
0x1025   :  { %16385 = vmatpush3.bf16.msra.mxu0 %v17223_v51  ;;  %16407 = vmatpush3.bf16.msra.mxu1 %v17224_v52  ;;  %v17250_v51 = vld [vmem:[#allocation18 + $0x2c0] sm:$0xff]  }
0x1026   :  { %16386 = vmatprep.subr.bf16.mxu0 %v17225_v53  ;;  %16408 = vmatprep.subr.bf16.mxu1 %v17226_v54 }
0x1029   :  { %16387 = vmatpush3.bf16.msra.mxu0 %v17227_v57  ;;  %16409 = vmatpush3.bf16.msra.mxu1 %v17228_v59 }
0x102a   :  { %16388 = vmatprep.subr.bf16.mxu0 %v17229_v60  ;;  %16410 = vmatprep.subr.bf16.mxu1 %v17230_v3 }
0x102d   :  { %16389 = vmatpush3.bf16.msra.mxu0 %v17231_v4  ;;  %16411 = vmatpush3.bf16.msra.mxu1 %v17232_v6  ;;  %v17251_v6 = vld [vmem:[#allocation18 + $0x200] sm:$0xff]  }
0x102e   :  { %16390 = vmatprep.subr.bf16.mxu0 %v17233_v7  ;;  %16412 = vmatprep.subr.bf16.mxu1 %v17234_v9  ;;  %v17252_v7 = vld [vmem:[#allocation18 + $0x280] sm:$0xff]   ;;  %v17253_v9 = vld [vmem:[#allocation18 + $0x248] sm:$0xff]  }
0x1031   :  { %16391 = vmatpush3.bf16.msra.mxu0 %v17235_v12  ;;  %16413 = vmatpush3.bf16.msra.mxu1 %v17236_v13  ;;  %v17254_v12 = vld [vmem:[#allocation18 + $0x2c8] sm:$0xff]  }
0x1032   :  { %16392 = vmatprep.subr.bf16.mxu0 %v17237_v14  ;;  %16414 = vmatprep.subr.bf16.mxu1 %v17238_v15  ;;  %v17255_v13 = vld [vmem:[#allocation18 + $0x208] sm:$0xff]   ;;  %v17257_v15 = vld [vmem:[#allocation18 + $0x250] sm:$0xff]  }
0x1033   :  { %v17256_v14 = vld [vmem:[#allocation18 + $0x288] sm:$0xff]  }
0x1035   :  { %v2734_v28 = vpop.f32.mrb[48].mxu0  ;;  %v2777_v29 = vpop.f32.mrb[40].mxu1  ;;  %16393 = vmatpush3.bf16.msra.mxu0 %v17239_v24  ;;  %16415 = vmatpush3.bf16.msra.mxu1 %v17240_v61  ;;  %v17258_v24 = vld [vmem:[#allocation18 + $0x2d0] sm:$0xff]  }
0x1036   :  { %v2735_v2 = vadd.f32 %v2734_v28, %v1913_v25  ;;  %v2778_v31 = vadd.f32 %v2777_v29, %v1921_v48  ;;  %v2736_v55 = vpop.f32.mrb[49].mxu0  ;;  %v2779_v63 = vpop.f32.mrb[41].mxu1  ;;  %16394 = vmatprep.subr.bf16.mxu0 %v17241_v56  ;;  %16416 = vmatprep.subr.bf16.mxu1 %v17242_v26  ;;  %v17259_v61 = vld [vmem:[#allocation18 + $0x210] sm:$0xff]   ;;  %v17262_v56 = vld [vmem:[#allocation18 + $0x2d8] sm:$0xff]   ;;  %v17266_v28 = vld [vmem:[#allocation18 + $0x2e0] sm:$0xff]  }
0x1037   :  { %v2737_v32 = vadd.f32 %v2736_v55, %v1917_v27  ;;  %v2780_v33 = vadd.f32 %v2779_v63, %v1925_v43  ;;  %v2738_v34 = vpop.f32.mrb[50].mxu0  ;;  %v2781_v35 = vpop.f32.mrb[42].mxu1  ;;  %v17263_v26 = vld [vmem:[#allocation18 + $0x218] sm:$0xff]   ;;  %v17267_v29 = vld [vmem:[#allocation18 + $0x220] sm:$0xff]   ;;  %v17271_v55 = vld [vmem:[#allocation18 + $0x228] sm:$0xff]  }
0x1038   :  { %v2739_v36 = vadd.f32 %v2738_v34, %v1913_v25  ;;  %v2782_v17 = vadd.f32 %v2781_v35, %v1921_v48  ;;  %v2740_v37 = vpop.f32.mrb[51].mxu0  ;;  %v2783_v58 = vpop.f32.mrb[43].mxu1  ;;  %v2962_v42 = vmax.f32 %v2735_v2, 0.0  ;;  %v2964_v45 = vmax.f32 %v2778_v31, 0.0  ;;  %v17260_v25 = vld [vmem:[#allocation18 + $0x290] sm:$0xff]   ;;  %v17261_v48 = vld [vmem:[#allocation18 + $0x258] sm:$0xff]  }
0x1039   :  { %v2741_v38 = vadd.f32 %v2740_v37, %v1917_v27  ;;  %v2784_v39 = vadd.f32 %v2783_v58, %v1925_v43  ;;  %16395 = vmatpush3.bf16.msra.mxu0 %v17243_v62  ;;  %16417 = vmatpush3.bf16.msra.mxu1 %v17244_v10  ;;  %v2963_v52 = vmax.f32 %v2737_v32, 0.0  ;;  %v2965_v53 = vmax.f32 %v2780_v33, 0.0  ;;  %v17264_v27 = vld [vmem:[#allocation18 + $0x298] sm:$0xff]   ;;  %v17265_v43 = vld [vmem:[#allocation18 + $0x260] sm:$0xff]   ;;  %v17269_v10 = vld [vmem:[#allocation18 + $0x268] sm:$0xff]  }
0x103a   :  { %v2978_v5 = vmax.f32 %v2739_v36, 0.0  ;;  %v2980_v22 = vmax.f32 %v2782_v17, 0.0  ;;  %16396 = vmatprep.subr.bf16.mxu0 %v17245_v1  ;;  %16418 = vmatprep.subr.bf16.mxu1 %v17246_v11  ;;  %v17268_v62 = vld [vmem:[#allocation18 + $0x2a0] sm:$0xff]   ;;  %v17270_v2 = vld [vmem:[#allocation18 + $0x2e8] sm:$0xff]   ;;  %v17273_v32 = vld [vmem:[#allocation18 + $0x270] sm:$0xff]  }
0x103b   :  { %v2979_v54 = vmax.f32 %v2741_v38, 0.0  ;;  %v2981_v57 = vmax.f32 %v2784_v39, 0.0  ;;  %v19783_v31 = vld [vmem:[#allocation17 + $0x8] sm:$0xff]  ;;  %v17274_v33 = vld [vmem:[#allocation18 + $0x2f0] sm:$0xff]  }
0x103c   :  { %v3251_v59 = vpack.c.bf16 %v2978_v5, %v2962_v42  ;;  %v3253_v60 = vpack.c.bf16 %v2980_v22, %v2964_v45  ;;  %v17272_v63 = vld [vmem:[#allocation18 + $0x2a8] sm:$0xff]   ;;  %v1929_v1 = vrot.slane %v19783_v31, %v19530_v49  ;;  %v1937_v11 = vrot.slane %v19783_v31, %v19522_v44  ;;  %v17275_v37 = vld [vmem:[#allocation18 + $0x230] sm:$0xff]   ;;  %v17277_v42 = vld [vmem:[#allocation18 + $0x278] sm:$0xff]  }
0x103d   :  { %v3252_v3 = vpack.c.bf16 %v2979_v54, %v2963_v52  ;;  %v3254_v4 = vpack.c.bf16 %v2981_v57, %v2965_v53  ;;  %16397 = vmatpush3.bf16.msra.mxu0 %v17247_v40  ;;  %16419 = vmatpush3.bf16.msra.mxu1 %v17248_v41  ;;  %v1933_v34 = vrot.slane %v19783_v31, %v19525_v46  ;;  %v17276_v58 = vld [vmem:[#allocation18 + $0x2b0] sm:$0xff]   ;;  %v17278_v45 = vld [vmem:[#allocation18 + $0x2f8] sm:$0xff]  }
0x103e   :  { %16426 = vmatprep.subr.bf16.mxu0 %v17249_v50  ;;  %16448 = vmatprep.subr.bf16.mxu1 %v17250_v51  ;;  %v1941_v35 = vrot.slane %v19783_v31, %v19753_v18 }
0x103f   :  { %4151 = vmatprep.mubr.bf16.mxu0 %v3252_v3  ;;  %4192 = vmatprep.mubr.bf16.mxu1 %v3254_v4  ;;  %v17279_v3 = vld [vmem:[#allocation18 + $0x238] sm:$0xff]  }
0x1040   :  { %4152 = vmatmul.mubr.bf16.vlgmr.msra.gmra.mrb[64].mxu0 %v3251_v59  ;;  %4193 = vmatmul.mubr.bf16.vlgmr.msra.gmra.mrb[56].mxu1 %v3253_v60  ;;  %v17280_v4 = vld [vmem:[#allocation18 + $0x2b8] sm:$0xff]  }
0x1041   :  { %16427 = vmatpush3.bf16.msra.mxu0 %v17251_v6  ;;  %16449 = vmatpush3.bf16.msra.mxu1 %v17252_v7 }
0x1042   :  { %16428 = vmatprep.subr.bf16.mxu0 %v17253_v9  ;;  %16450 = vmatprep.subr.bf16.mxu1 %v17254_v12 }
0x1045   :  { %16429 = vmatpush3.bf16.msra.mxu0 %v17255_v13  ;;  %16451 = vmatpush3.bf16.msra.mxu1 %v17256_v14  ;;  %v17281_v13 = vld [vmem:[#allocation18 + $0x340] sm:$0xff]  }
0x1046   :  { %16430 = vmatprep.subr.bf16.mxu0 %v17257_v15  ;;  %16452 = vmatprep.subr.bf16.mxu1 %v17258_v24  ;;  %v17282_v14 = vld [vmem:[#allocation18 + $0x3c0] sm:$0xff]  }
0x1049   :  { %16431 = vmatpush3.bf16.msra.mxu0 %v17259_v61  ;;  %16453 = vmatpush3.bf16.msra.mxu1 %v17260_v25 }
0x104a   :  { %16432 = vmatprep.subr.bf16.mxu0 %v17261_v48  ;;  %16454 = vmatprep.subr.bf16.mxu1 %v17262_v56 }
0x104d   :  { %16433 = vmatpush3.bf16.msra.mxu0 %v17263_v26  ;;  %16455 = vmatpush3.bf16.msra.mxu1 %v17264_v27 }
0x104e   :  { %16434 = vmatprep.subr.bf16.mxu0 %v17265_v43  ;;  %16456 = vmatprep.subr.bf16.mxu1 %v17266_v28  ;;  %v17283_v43 = vld [vmem:[#allocation18 + $0x300] sm:$0xff]  }
0x104f   :  { %v17284_v28 = vld [vmem:[#allocation18 + $0x380] sm:$0xff]  }
0x1051   :  { %16435 = vmatpush3.bf16.msra.mxu0 %v17267_v29  ;;  %16457 = vmatpush3.bf16.msra.mxu1 %v17268_v62  ;;  %v17285_v29 = vld [vmem:[#allocation18 + $0x348] sm:$0xff]  }
0x1052   :  { %16436 = vmatprep.subr.bf16.mxu0 %v17269_v10  ;;  %16458 = vmatprep.subr.bf16.mxu1 %v17270_v2  ;;  %v17286_v62 = vld [vmem:[#allocation18 + $0x3c8] sm:$0xff]  }
0x1053   :  { %v17287_v10 = vld [vmem:[#allocation18 + $0x308] sm:$0xff]  }
0x1054   :  { %v17288_v2 = vld [vmem:[#allocation18 + $0x388] sm:$0xff]  }
0x1055   :  { %v2820_v36 = vpop.f32.mrb[52].mxu0  ;;  %v2863_v17 = vpop.f32.mrb[44].mxu1  ;;  %16437 = vmatpush3.bf16.msra.mxu0 %v17271_v55  ;;  %16459 = vmatpush3.bf16.msra.mxu1 %v17272_v63  ;;  %v17289_v55 = vld [vmem:[#allocation18 + $0x350] sm:$0xff]  }
0x1056   :  { %v2821_v38 = vadd.f32 %v2820_v36, %v1929_v1  ;;  %v2864_v39 = vadd.f32 %v2863_v17, %v1937_v11  ;;  %v2822_v40 = vpop.f32.mrb[53].mxu0  ;;  %v2865_v41 = vpop.f32.mrb[45].mxu1  ;;  %16438 = vmatprep.subr.bf16.mxu0 %v17273_v32  ;;  %16460 = vmatprep.subr.bf16.mxu1 %v17274_v33  ;;  %v17290_v63 = vld [vmem:[#allocation18 + $0x3d0] sm:$0xff]   ;;  %v17293_v32 = vld [vmem:[#allocation18 + $0x358] sm:$0xff]   ;;  %v17297_v36 = vld [vmem:[#allocation18 + $0x360] sm:$0xff]  }
0x1057   :  { %v2823_v5 = vadd.f32 %v2822_v40, %v1933_v34  ;;  %v2866_v22 = vadd.f32 %v2865_v41, %v1941_v35  ;;  %v2824_v50 = vpop.f32.mrb[54].mxu0  ;;  %v2867_v51 = vpop.f32.mrb[46].mxu1  ;;  %v17294_v33 = vld [vmem:[#allocation18 + $0x3d8] sm:$0xff]   ;;  %v17298_v17 = vld [vmem:[#allocation18 + $0x3e0] sm:$0xff]   ;;  %v17303_v40 = vld [vmem:[#allocation18 + $0x328] sm:$0xff]  }
0x1058   :  { %v2825_v52 = vadd.f32 %v2824_v50, %v1929_v1  ;;  %v2868_v53 = vadd.f32 %v2867_v51, %v1937_v11  ;;  %v2826_v54 = vpop.f32.mrb[55].mxu0  ;;  %v2869_v57 = vpop.f32.mrb[47].mxu1  ;;  %v2966_v6 = vmax.f32 %v2821_v38, 0.0  ;;  %v2968_v7 = vmax.f32 %v2864_v39, 0.0  ;;  %v17291_v1 = vld [vmem:[#allocation18 + $0x310] sm:$0xff]   ;;  %v17301_v38 = vld [vmem:[#allocation18 + $0x368] sm:$0xff]  }
0x1059   :  { %v2827_v59 = vadd.f32 %v2826_v54, %v1933_v34  ;;  %v2870_v60 = vadd.f32 %v2869_v57, %v1941_v35  ;;  %16439 = vmatpush3.bf16.msra.mxu0 %v17275_v37  ;;  %16461 = vmatpush3.bf16.msra.mxu1 %v17276_v58  ;;  %v2967_v15 = vmax.f32 %v2823_v5, 0.0  ;;  %v2969_v24 = vmax.f32 %v2866_v22, 0.0  ;;  %v17292_v11 = vld [vmem:[#allocation18 + $0x390] sm:$0xff]   ;;  %v17295_v34 = vld [vmem:[#allocation18 + $0x318] sm:$0xff]   ;;  %v17299_v37 = vld [vmem:[#allocation18 + $0x320] sm:$0xff]  }
0x105a   :  { %v2982_v9 = vmax.f32 %v2825_v52, 0.0  ;;  %v2984_v12 = vmax.f32 %v2868_v53, 0.0  ;;  %16440 = vmatprep.subr.bf16.mxu0 %v17277_v42  ;;  %16462 = vmatprep.subr.bf16.mxu1 %v17278_v45  ;;  %v17296_v35 = vld [vmem:[#allocation18 + $0x398] sm:$0xff]   ;;  %v17300_v58 = vld [vmem:[#allocation18 + $0x3a0] sm:$0xff]   ;;  %v17302_v39 = vld [vmem:[#allocation18 + $0x3e8] sm:$0xff]   ;;  %v1945_v42 = vrot.slane %v19783_v31, %v19764_v16  ;;  %v1953_v45 = vrot.slane %v19783_v31, %v19767_v19 }
0x105b   :  { %v2983_v61 = vmax.f32 %v2827_v59, 0.0  ;;  %v2985_v25 = vmax.f32 %v2870_v60, 0.0  ;;  %v17304_v41 = vld [vmem:[#allocation18 + $0x3a8] sm:$0xff]   ;;  %v17305_v5 = vld [vmem:[#allocation18 + $0x370] sm:$0xff]   ;;  %v1949_v50 = vrot.slane %v19783_v31, %v19770_v47  ;;  %v1957_v51 = vrot.slane %v19783_v31, %v19773_v23 }
0x105c   :  { %v3255_v48 = vpack.c.bf16 %v2982_v9, %v2966_v6  ;;  %v3257_v56 = vpack.c.bf16 %v2984_v12, %v2968_v7  ;;  %v17306_v22 = vld [vmem:[#allocation18 + $0x3f0] sm:$0xff]   ;;  %v17309_v6 = vld [vmem:[#allocation18 + $0x378] sm:$0xff]  }
0x105d   :  { %v3256_v26 = vpack.c.bf16 %v2983_v61, %v2967_v15  ;;  %v3258_v27 = vpack.c.bf16 %v2985_v25, %v2969_v24  ;;  %16441 = vmatpush3.bf16.msra.mxu0 %v17279_v3  ;;  %16463 = vmatpush3.bf16.msra.mxu1 %v17280_v4  ;;  %v17307_v54 = vld [vmem:[#allocation18 + $0x330] sm:$0xff]   ;;  %v17310_v7 = vld [vmem:[#allocation18 + $0x3f8] sm:$0xff]  }
0x105e   :  { %16470 = vmatprep.subr.bf16.mxu0 %v17281_v13  ;;  %16492 = vmatprep.subr.bf16.mxu1 %v17282_v14  ;;  %v17308_v57 = vld [vmem:[#allocation18 + $0x3b0] sm:$0xff]  }
0x105f   :  { %4233 = vmatprep.mubr.bf16.mxu0 %v3256_v26  ;;  %4274 = vmatprep.mubr.bf16.mxu1 %v3258_v27  ;;  %v17312_v26 = vld [vmem:[#allocation18 + $0x3b8] sm:$0xff]  }
0x1060   :  { %4234 = vmatmul.mubr.bf16.vlgmr.msra.gmra.mrb[68].mxu0 %v3255_v48  ;;  %4275 = vmatmul.mubr.bf16.vlgmr.msra.gmra.mrb[60].mxu1 %v3257_v56  ;;  %v17311_v56 = vld [vmem:[#allocation18 + $0x338] sm:$0xff]  }
0x1061   :  { %16471 = vmatpush3.bf16.msra.mxu0 %v17283_v43  ;;  %16493 = vmatpush3.bf16.msra.mxu1 %v17284_v28 }
0x1062   :  { %16472 = vmatprep.subr.bf16.mxu0 %v17285_v29  ;;  %16494 = vmatprep.subr.bf16.mxu1 %v17286_v62 }
0x1065   :  { %16473 = vmatpush3.bf16.msra.mxu0 %v17287_v10  ;;  %16495 = vmatpush3.bf16.msra.mxu1 %v17288_v2 }
0x1066   :  { %16474 = vmatprep.subr.bf16.mxu0 %v17289_v55  ;;  %16496 = vmatprep.subr.bf16.mxu1 %v17290_v63 }
0x1069   :  { %16475 = vmatpush3.bf16.msra.mxu0 %v17291_v1  ;;  %16497 = vmatpush3.bf16.msra.mxu1 %v17292_v11 }
0x106a   :  { %16476 = vmatprep.subr.bf16.mxu0 %v17293_v32  ;;  %16498 = vmatprep.subr.bf16.mxu1 %v17294_v33 }
0x106d   :  { %16477 = vmatpush3.bf16.msra.mxu0 %v17295_v34  ;;  %16499 = vmatpush3.bf16.msra.mxu1 %v17296_v35  ;;  %v15189_v35 = vld [vmem:[#allocation20] ss:$0 sm:$0xff] }
0x106e   :  { %16478 = vmatprep.subr.bf16.mxu0 %v17297_v36  ;;  %16500 = vmatprep.subr.bf16.mxu1 %v17298_v17 }
0x1071   :  { %16479 = vmatpush3.bf16.msra.mxu0 %v17299_v37  ;;  %16501 = vmatpush3.bf16.msra.mxu1 %v17300_v58 }
0x1072   :  { %16480 = vmatprep.subr.bf16.mxu0 %v17301_v38  ;;  %16502 = vmatprep.subr.bf16.mxu1 %v17302_v39 }
0x1075   :  { %v2906_v52 = vpop.f32.mrb[56].mxu0  ;;  %v2949_v53 = vpop.f32.mrb[48].mxu1  ;;  %16481 = vmatpush3.bf16.msra.mxu0 %v17303_v40  ;;  %16503 = vmatpush3.bf16.msra.mxu1 %v17304_v41 }
0x1076   :  { %v2907_v59 = vadd.f32 %v2906_v52, %v1945_v42  ;;  %v2950_v60 = vadd.f32 %v2949_v53, %v1953_v45  ;;  %v2908_v3 = vpop.f32.mrb[57].mxu0  ;;  %v2951_v4 = vpop.f32.mrb[49].mxu1  ;;  %16482 = vmatprep.subr.bf16.mxu0 %v17305_v5  ;;  %16504 = vmatprep.subr.bf16.mxu1 %v17306_v22 }
0x1077   :  { %v2909_v9 = vadd.f32 %v2908_v3, %v1949_v50  ;;  %v2952_v12 = vadd.f32 %v2951_v4, %v1957_v51  ;;  %v2910_v13 = vpop.f32.mrb[58].mxu0  ;;  %v2953_v14 = vpop.f32.mrb[50].mxu1 }
0x1078   :  { %v2911_v15 = vadd.f32 %v2910_v13, %v1945_v42  ;;  %v2954_v31 = vadd.f32 %v2953_v14, %v1953_v45  ;;  %v2912_v24 = vpop.f32.mrb[59].mxu0  ;;  %v2955_v61 = vpop.f32.mrb[51].mxu1  ;;  %v2970_v27 = vmax.f32 %v2907_v59, 0.0  ;;  %v2972_v43 = vmax.f32 %v2950_v60, 0.0 }
0x1079   :  { %v2913_v25 = vadd.f32 %v2912_v24, %v1949_v50  ;;  %v2956_v48 = vadd.f32 %v2955_v61, %v1957_v51  ;;  %16483 = vmatpush3.bf16.msra.mxu0 %v17307_v54  ;;  %16505 = vmatpush3.bf16.msra.mxu1 %v17308_v57  ;;  %v2971_v62 = vmax.f32 %v2909_v9, 0.0  ;;  %v2973_v10 = vmax.f32 %v2952_v12, 0.0 }
0x107a   :  { %v2986_v28 = vmax.f32 %v2911_v15, 0.0  ;;  %v2988_v29 = vmax.f32 %v2954_v31, 0.0  ;;  %16484 = vmatprep.subr.bf16.mxu0 %v17309_v6  ;;  %16506 = vmatprep.subr.bf16.mxu1 %v17310_v7 }
0x107b   :  { %v2987_v2 = vmax.f32 %v2913_v25, 0.0  ;;  %v2989_v55 = vmax.f32 %v2956_v48, 0.0 }
0x107c   :  { %v3259_v63 = vpack.c.bf16 %v2986_v28, %v2970_v27  ;;  %v3261_v1 = vpack.c.bf16 %v2988_v29, %v2972_v43 }
0x107d   :  { %v3260_v11 = vpack.c.bf16 %v2987_v2, %v2971_v62  ;;  %v3262_v32 = vpack.c.bf16 %v2989_v55, %v2973_v10  ;;  %16485 = vmatpush3.bf16.msra.mxu0 %v17311_v56  ;;  %16507 = vmatpush3.bf16.msra.mxu1 %v17312_v26 }
0x107e   :  { %16915 = vmatprep.subr.bf16.mxu1 %v19048_v0 }
0x107f   :  { %4315 = vmatprep.mubr.bf16.mxu0 %v3260_v11  ;;  %4356 = vmatprep.mubr.bf16.mxu1 %v3262_v32 }
0x1080   :  { %4316 = vmatmul.mubr.bf16.vlgmr.msra.gmra.mrb[72].mxu0 %v3259_v63  ;;  %4357 = vmatmul.mubr.bf16.vlgmr.msra.gmra.mrb[64].mxu1 %v3261_v1 }
0x1081   :  { %4619 = vmatprep.mubr.bf16.mxu0 %v22031_v30  ;;  %16931 = vmatprep.mubr.msk.bf16.mxu1 %vm19049_vm0, %v19048_v0 }
0x10f3   :  { %v16354_v33 = vpop.f32.mrb[60].mxu0  ;;  %v16376_v34 = vpop.f32.mrb[52].mxu1 }
0x10f4   :  { %v16355_v36 = vpop.f32.mrb[61].mxu0  ;;  %v16377_v17 = vpop.f32.mrb[53].mxu1 }
0x10f5   :  { %v16356_v37 = vadd.f32 %v16355_v36, %v16354_v33  ;;  %v16378_v58 = vadd.f32 %v16377_v17, %v16376_v34  ;;  %v16357_v38 = vpop.f32.mrb[62].mxu0  ;;  %v16379_v39 = vpop.f32.mrb[54].mxu1 }
0x10f6   :  { %v16358_v40 = vpop.f32.mrb[63].mxu0  ;;  %v16380_v41 = vpop.f32.mrb[55].mxu1 }
0x10f7   :  { %v4072_v42 = vadd.f32 %v16356_v37, %v15189_v35  ;;  %v16359_v45 = vadd.f32 %v16358_v40, %v16357_v38  ;;  %v16381_v5 = vadd.f32 %v16380_v41, %v16379_v39 }
0x10f9   :  { %v4113_v22 = vadd.f32 %v16378_v58, %v4072_v42  ;;  %v4075_v50 = vadd.f32 %v16359_v45, %v15189_v35 }
0x10fb   :  { %v4116_v51 = vadd.f32 %v16381_v5, %v4075_v50 }
0x1113   :  { %v16398_v52 = vpop.f32.mrb[64].mxu0  ;;  %v16420_v53 = vpop.f32.mrb[56].mxu1 }
0x1114   :  { %v16399_v54 = vpop.f32.mrb[65].mxu0  ;;  %v16421_v57 = vpop.f32.mrb[57].mxu1 }
0x1115   :  { %v16400_v59 = vadd.f32 %v16399_v54, %v16398_v52  ;;  %v16422_v60 = vadd.f32 %v16421_v57, %v16420_v53  ;;  %v16401_v3 = vpop.f32.mrb[66].mxu0  ;;  %v16423_v4 = vpop.f32.mrb[58].mxu1  ;;  %v17315_v52 = vld [vmem:[#allocation8 + $0xc4] ss:$12 sps:$4 sm:$0xff]   ;;  %v17316_v53 = vld [vmem:[#allocation8 + $0xc8] ss:$12 sps:$4 sm:$0xff]  }
0x1116   :  { %v16402_v6 = vpop.f32.mrb[67].mxu0  ;;  %v16424_v7 = vpop.f32.mrb[59].mxu1  ;;  %v17319_v54 = vld [vmem:[#allocation8 + $0xdc] ss:$12 sps:$4 sm:$0xff]   ;;  %4587 = vmatprep.subr.bf16.mxu0 %v17315_v52  ;;  %16916 = vmatpush3.bf16.msra.mxu1 %v17316_v53  ;;  %v17320_v57 = vld [vmem:[#allocation8 + $0xe0] ss:$12 sps:$4 sm:$0xff]  }
0x1117   :  { %v4154_v9 = vadd.f32 %v16400_v59, %v4113_v22  ;;  %v16403_v12 = vadd.f32 %v16402_v6, %v16401_v3  ;;  %v16425_v13 = vadd.f32 %v16424_v7, %v16423_v4  ;;  %v17317_v59 = vld [vmem:[#allocation8 + $0xd8] ss:$12 sps:$4 sm:$0xff]   ;;  %16917 = vmatprep.subr.bf16.mxu1 %v19048_v0 }
0x1119   :  { %v4195_v14 = vadd.f32 %v16422_v60, %v4154_v9  ;;  %v4157_v15 = vadd.f32 %v16403_v12, %v4116_v51  ;;  %v17313_v51 = vld [vmem:[#allocation8 + $0xc0] ss:$12 sps:$4 sm:$0xff]  }
0x111a   :  { %4588 = vmatpush1.bf16.msra.mxu0 %v17313_v51  ;;  %16918 = vmatpush3.bf16.msra.mxu1 %v17320_v57  ;;  %v17323_v12 = vld [vmem:[#allocation8 + $0xf4] ss:$12 sps:$4 sm:$0xff]  }
0x111b   :  { %v4198_v31 = vadd.f32 %v16425_v13, %v4157_v15  ;;  %4589 = vmatprep.subr.bf16.mxu0 %v17319_v54  ;;  %16919 = vmatprep.subr.bf16.mxu1 %v19048_v0  ;;  %v17321_v13 = vld [vmem:[#allocation8 + $0xf0] ss:$12 sps:$4 sm:$0xff]   ;;  %v17327_v15 = vld [vmem:[#allocation8 + $0x10c] ss:$12 sps:$4 sm:$0xff]  }
0x111e   :  { %4590 = vmatpush1.bf16.msra.mxu0 %v17317_v59 }
0x111f   :  { %4591 = vmatprep.subr.bf16.mxu0 %v17323_v12 }
0x1122   :  { %4592 = vmatpush1.bf16.msra.mxu0 %v17321_v13 }
0x1123   :  { %4593 = vmatprep.subr.bf16.mxu0 %v17327_v15 }
0x1133   :  { %v16442_v24 = vpop.f32.mrb[68].mxu0  ;;  %v16464_v61 = vpop.f32.mrb[60].mxu1 }
0x1134   :  { %v16443_v25 = vpop.f32.mrb[69].mxu0  ;;  %v16465_v48 = vpop.f32.mrb[61].mxu1 }
0x1135   :  { %v16444_v56 = vadd.f32 %v16443_v25, %v16442_v24  ;;  %v16466_v26 = vadd.f32 %v16465_v48, %v16464_v61  ;;  %v16445_v27 = vpop.f32.mrb[70].mxu0  ;;  %v16467_v43 = vpop.f32.mrb[62].mxu1  ;;  %v17328_v24 = vld [vmem:[#allocation8 + $0x110] ss:$12 sps:$4 sm:$0xff]   ;;  %v17329_v25 = vld [vmem:[#allocation8 + $0x120] ss:$12 sps:$4 sm:$0xff]  }
0x1136   :  { %v16446_v28 = vpop.f32.mrb[71].mxu0  ;;  %v16468_v29 = vpop.f32.mrb[63].mxu1  ;;  %v17331_v61 = vld [vmem:[#allocation8 + $0x124] ss:$12 sps:$4 sm:$0xff]   ;;  %v17332_v48 = vld [vmem:[#allocation8 + $0x128] ss:$12 sps:$4 sm:$0xff]  }
0x1137   :  { %v4236_v62 = vadd.f32 %v16444_v56, %v4195_v14  ;;  %v16447_v10 = vadd.f32 %v16446_v28, %v16445_v27  ;;  %v16469_v2 = vadd.f32 %v16468_v29, %v16467_v43  ;;  %v17324_v14 = vld [vmem:[#allocation8 + $0xf8] ss:$12 sps:$4 sm:$0xff]   ;;  %v17335_v56 = vld [vmem:[#allocation8 + $0x13c] ss:$12 sps:$4 sm:$0xff]   ;;  %v17336_v27 = vld [vmem:[#allocation8 + $0x140] ss:$12 sps:$4 sm:$0xff]  }
0x1138   :  { %16920 = vmatpush3.bf16.msra.mxu1 %v17324_v14  ;;  %v17339_v43 = vld [vmem:[#allocation8 + $0x154] ss:$12 sps:$4 sm:$0xff]   ;;  %v17337_v28 = vld [vmem:[#allocation8 + $0x150] ss:$12 sps:$4 sm:$0xff]   ;;  %v17340_v29 = vld [vmem:[#allocation8 + $0x158] ss:$12 sps:$4 sm:$0xff]  }
0x1139   :  { %v4277_v55 = vadd.f32 %v16466_v26, %v4236_v62  ;;  %v4239_v63 = vadd.f32 %v16447_v10, %v4198_v31  ;;  %16921 = vmatprep.subr.bf16.mxu1 %v19048_v0  ;;  %v17325_v31 = vld [vmem:[#allocation8 + $0x108] ss:$12 sps:$4 sm:$0xff]   ;;  %v17333_v26 = vld [vmem:[#allocation8 + $0x138] ss:$12 sps:$4 sm:$0xff]  }
0x113a   :  { %4594 = vmatpush1.bf16.msra.mxu0 %v17325_v31  ;;  %v17343_v62 = vld [vmem:[#allocation8 + $0x16c] ss:$12 sps:$4 sm:$0xff]   ;;  %v17341_v10 = vld [vmem:[#allocation8 + $0x168] ss:$12 sps:$4 sm:$0xff]  }
0x113b   :  { %v4280_v1 = vadd.f32 %v16469_v2, %v4239_v63  ;;  %4595 = vmatprep.subr.bf16.mxu0 %v17331_v61  ;;  %v17344_v2 = vld [vmem:[#allocation8 + $0x170] ss:$12 sps:$4 sm:$0xff]  }
0x113c   :  { %16922 = vmatpush3.bf16.msra.mxu1 %v17328_v24 }
0x113d   :  { %16923 = vmatprep.subr.bf16.mxu1 %v19048_v0 }
0x113e   :  { %4596 = vmatpush1.bf16.msra.mxu0 %v17329_v25 }
0x113f   :  { %4597 = vmatprep.subr.bf16.mxu0 %v17335_v56 }
0x1140   :  { %16924 = vmatpush3.bf16.msra.mxu1 %v17332_v48 }
0x1141   :  { %16925 = vmatprep.subr.bf16.mxu1 %v19048_v0 }
0x1142   :  { %4598 = vmatpush1.bf16.msra.mxu0 %v17333_v26 }
0x1143   :  { %4599 = vmatprep.subr.bf16.mxu0 %v17339_v43 }
0x1144   :  { %16926 = vmatpush3.bf16.msra.mxu1 %v17336_v27 }
0x1145   :  { %16927 = vmatprep.subr.bf16.mxu1 %v19048_v0 }
0x1146   :  { %4600 = vmatpush1.bf16.msra.mxu0 %v17337_v28 }
0x1147   :  { %4601 = vmatprep.subr.bf16.mxu0 %v17343_v62 }
0x1148   :  { %16928 = vmatpush3.bf16.msra.mxu1 %v17340_v29 }
0x1149   :  { %16929 = vmatprep.subr.bf16.mxu1 %v19048_v0 }
0x114a   :  { %4602 = vmatpush1.bf16.msra.mxu0 %v17341_v10 }
0x114b   :  { %16935 = vmatprep.subr.bf16.mxu0 %v19048_v0 }
0x114c   :  { %16930 = vmatpush3.bf16.msra.mxu1 %v17344_v2 }
0x114d   :  { %16959 = vmatprep.subr.bf16.mxu1 %v19048_v0 }
0x1153   :  { %v16486_v11 = vpop.f32.mrb[72].mxu0  ;;  %v16508_v32 = vpop.f32.mrb[64].mxu1 }
0x1154   :  { %v16487_v33 = vpop.f32.mrb[73].mxu0  ;;  %v16509_v34 = vpop.f32.mrb[65].mxu1 }
0x1155   :  { %v16488_v35 = vadd.f32 %v16487_v33, %v16486_v11  ;;  %v16510_v36 = vadd.f32 %v16509_v34, %v16508_v32  ;;  %v16489_v17 = vpop.f32.mrb[74].mxu0  ;;  %v16511_v37 = vpop.f32.mrb[66].mxu1 }
0x1156   :  { %v16490_v58 = vpop.f32.mrb[75].mxu0  ;;  %v16512_v38 = vpop.f32.mrb[67].mxu1 }
0x1157   :  { %v4318_v39 = vadd.f32 %v16488_v35, %v4277_v55  ;;  %v16491_v40 = vadd.f32 %v16490_v58, %v16489_v17  ;;  %v16513_v41 = vadd.f32 %v16512_v38, %v16511_v37  ;;  %v15318_v35 = vld [vmem:[#allocation21] ss:$0 sm:$0xff]  ;;  %v15319_v38 = vld [vmem:[#allocation23] ss:$0 sm:$0xff] }
0x1159   :  { %v4359_v42 = vadd.f32 %v16510_v36, %v4318_v39  ;;  %v4321_v45 = vadd.f32 %v16491_v40, %v4280_v1 }
0x115b   :  { %v4362_v5 = vadd.f32 %v16513_v41, %v4321_v45  ;;  %v4365_v22 = vadd.f32 %v4359_v42, %v19728_v20  ;;  %v4441_v45 = vld [vmem:[#allocation9 + $0x3] sm:$0x7] }
0x115c   :  { %v4455_v51 = vrot.slane %v4441_v45, %v19522_v44 }
0x115d   :  { %4369 = vadd.xlane.f32.xlu1 %v4365_v22  ;;  %v4366_v50 = vadd.f32 %v4362_v5, %v19730_v21  ;;  %v4451_v5 = vrot.slane %v4441_v45, %v19525_v46 }
0x115f   :  { %4371 = vadd.xlane.f32.xlu0 %v4366_v50 }
0x11ea   :  { %v4370_v20 = vpop.xlane.xlu1 %4369 }
0x11eb   :  { %v4373_v60 = vmul.f32 0.0078125, %v4370_v20 }
0x11ec   :  { %v4372_v21 = vpop.xlane.xlu0 %4371 }
0x11ed   :  { %v4375_v3 = vsub.f32 %v4365_v22, %v4373_v60  ;;  %v4374_v4 = vmul.f32 0.0078125, %v4372_v21 }
0x11ef   :  { %v4376_v6 = vsub.f32 %v4366_v50, %v4374_v4  ;;  %v4377_v7 = vmul.f32 %v4375_v3, %v4375_v3 }
0x11f1   :  { %4379 = vadd.xlane.f32.xlu1 %v4377_v7  ;;  %v4378_v9 = vmul.f32 %v4376_v6, %v4376_v6 }
0x11f3   :  { %4381 = vadd.xlane.f32.xlu0 %v4378_v9 }
0x127e   :  { %v4380_v55 = vpop.xlane.xlu1 %4379 }
0x127f   :  { %v4383_v63 = vmul.f32 0.0078125, %v4380_v55 }
0x1280   :  { %v4382_v1 = vpop.xlane.xlu0 %4381 }
0x1281   :  { %v4385_v11 = vadd.f32 1e-05, %v4383_v63  ;;  %v4384_v32 = vmul.f32 0.0078125, %v4382_v1 }
0x1283   :  { %17970 = vrsqrt.f32 %v4385_v11  ;;  %v4386_v33 = vadd.f32 1e-05, %v4384_v32 }
0x1285   :  { %17972 = vrsqrt.f32 %v4386_v33 }
0x128d   :  { %v17971_v34 = vpop.eup %17970 }
0x128e   :  { %v4389_v36 = vmul.f32 %v17971_v34, %v4375_v3  ;;  %v4447_v3 = vrot.slane %v4441_v45, %v19530_v49 }
0x128f   :  { %v17973_v17 = vpop.eup %17972 }
0x1290   :  { %v4390_v37 = vmul.f32 %v17973_v17, %v4376_v6  ;;  %v4397_v58 = vmul.f32 %v15318_v35, %v4389_v36 }
0x1292   :  { %v4398_v39 = vmul.f32 %v15318_v35, %v4390_v37  ;;  %v19816_v40 = vadd.f32 %v15319_v38, %v4397_v58 }
0x1294   :  { %v19818_v41 = vadd.f32 %v15319_v38, %v4398_v39 }
0x1296   :  { %v4442_v42 = vpack.c.bf16 %v19818_v41, %v19816_v40 }
0x1298   :  { %4620 = vmatmul.mubr.bf16.vlgmr.msra.gmra.mrb[76].mxu0 %v4442_v42  ;;  %16932 = vmatmul.mubr.bf16.vlgmr.msra.gmra.mrb[68].mxu1 %v4442_v42 }
0x1299   :  { %16937 = vmatprep.mubr.msk.bf16.mxu0 %vm19049_vm0, %v19048_v0  ;;  %16961 = vmatprep.mubr.msk.bf16.mxu1 %vm19049_vm0, %v19048_v0 }
0x136b   :  { %v4621_v22 = vpop.f32.mrb[76].mxu0  ;;  %v4664_v50 = vpop.f32.mrb[68].mxu1 }
0x136c   :  { %v4623_v52 = vpop.f32.mrb[77].mxu0  ;;  %v16933_v53 = vpop.f32.mrb[69].mxu1  ;;  %v4622_v9 = vadd.f32 %v4621_v22, %v4447_v3  ;;  %v4665_v14 = vadd.f32 %v4664_v50, %v4455_v51 }
0x136d   :  { %v4624_v54 = vadd.f32 %v4623_v52, %v4451_v5  ;;  %v4625_v57 = vpop.f32.mrb[78].mxu0  ;;  %v4667_v59 = vpop.f32.mrb[70].mxu1 }
0x136e   :  { %v19828_v20 = vadd.f32 %v4667_v59, %v4455_v51  ;;  %v4627_v60 = vpop.f32.mrb[79].mxu0  ;;  %v16934_v21 = vpop.f32.mrb[71].mxu1  ;;  %v19838_v13 = vpack.c.bf16 %v4622_v9, %v4622_v9  ;;  %v4626_v31 = vadd.f32 %v4625_v57, %v4447_v3  ;;  %v19847_v24 = vpack.c.bf16 %v4665_v14, %v4665_v14 }
0x136f   :  { %v19831_v4 = vpack.c.bf16 %v4624_v54, %v4624_v54  ;;  %v4628_v6 = vadd.f32 %v4627_v60, %v4451_v5 }
0x1370   :  { %v19849_v61 = vpack.c.bf16 %v4626_v31, %v4626_v31  ;;  %v4799_v25 = vsel %vm811_vm2, %v19847_v24, 0  ;;  %v19874_v22 = vpack.c.bf16 %v19828_v20, %v19828_v20 }
0x1371   :  { %v4679_v7 = vsel %vm373_vm1, %v19831_v4, 0  ;;  %v19836_v12 = vpack.c.bf16 %v4628_v6, %v4628_v6 }
0x1372   :  { %16936 = vmatpush3.bf16.xpose.msra.mxu0 %v4679_v7  ;;  %v4845_v53 = vsel %vm811_vm2, %v19874_v22, 0 }
0x1373   :  { %16941 = vmatprep.subr.bf16.mxu0 %v19048_v0  ;;  %v4725_v15 = vsel %vm373_vm1, %v19836_v12, 0 }
0x1379   :  { %16938 = vmatmul.mubr.msk.bf16.vlgmr.msra.gmra.mrb[80].mxu0 %vm373_vm1, %v19838_v13 }
0x137a   :  { %16942 = vmatpush3.bf16.xpose.msra.mxu0 %v4725_v15  ;;  %16943 = vmatprep.mubr.msk.bf16.mxu0 %vm19049_vm0, %v19048_v0 }
0x137b   :  { %16947 = vmatprep.subr.bf16.mxu0 %v19048_v0 }
0x1381   :  { %16944 = vmatmul.mubr.msk.bf16.vlgmr.msra.gmra.mrb[84].mxu0 %vm373_vm1, %v19849_v61 }
0x1382   :  { %16948 = vmatpush3.bf16.msra.mxu0 %v4799_v25  ;;  %16949 = vmatprep.mubr.msk.bf16.mxu0 %vm19049_vm0, %v19048_v0 }
0x1383   :  { %16953 = vmatprep.subr.bf16.mxu0 %v19048_v0 }
0x144c   :  { %v4715_v48 = vpop.f32.mrb[80].mxu0 }
0x144d   :  { %v4767_v56 = vmul.f32 0.17677669, %v4715_v48  ;;  %v16939_v26 = vpop.f32.mrb[81].mxu0 }
0x144e   :  { %v4718_v27 = vpop.f32.mrb[82].mxu0 }
0x144f   :  { %v16940_v43 = vpop.f32.mrb[83].mxu0  ;;  %v4769_v28 = vsel %vm781_vm3, %v4767_v56, -inf }
0x1450   :  { %4770 = vmax.xlane.f32.xlu1 %v4769_v28 }
0x1454   :  { %v4761_v29 = vpop.f32.mrb[84].mxu0 }
0x1455   :  { %v4768_v62 = vmul.f32 0.17677669, %v4761_v29  ;;  %v16945_v10 = vpop.f32.mrb[85].mxu0 }
0x1456   :  { %v4764_v2 = vpop.f32.mrb[86].mxu0 }
0x1457   :  { %v16946_v55 = vpop.f32.mrb[87].mxu0  ;;  %v4772_v63 = vsel %vm781_vm3, %v4768_v62, -inf }
0x1458   :  { %4773 = vmax.xlane.f32.xlu0 %v4772_v63 }
0x14dd   :  { %v4771_v1 = vpop.xlane.xlu1 %4770 }
0x14de   :  { %v4775_v11 = vsub.f32 %v4767_v56, %v4771_v1 }
0x14e0   :  { %v4777_v32 = vmul.f32 1.442695, %v4775_v11 }
0x14e2   :  { %17974 = vpow2.f32 %v4777_v32 }
0x14e5   :  { %v4774_v33 = vpop.xlane.xlu0 %4773 }
0x14e6   :  { %v4776_v34 = vsub.f32 %v4768_v62, %v4774_v33 }
0x14e8   :  { %v4779_v35 = vmul.f32 1.442695, %v4776_v34 }
0x14ea   :  { %17976 = vpow2.f32 %v4779_v35 }
0x14ec   :  { %v17975_v36 = vpop.eup %17974 }
0x14ed   :  { %v4781_v17 = vsel %vm781_vm3, %v17975_v36, 0.0 }
0x14ee   :  { %4782 = vadd.xlane.f32.xlu1 %v4781_v17 }
0x14f4   :  { %v17977_v37 = vpop.eup %17976 }
0x14f5   :  { %v4784_v58 = vsel %vm781_vm3, %v17977_v37, 0.0 }
0x14f6   :  { %4785 = vadd.xlane.f32.xlu0 %v4784_v58 }
0x14ff   :  { %4891 = vrot.lane.b32.xlu1 %v19831_v4, %s19051_s0 }
0x1503   :  { %4888 = vrot.lane.b32.xlu1 %v19838_v13, %s19051_s0 }
0x1507   :  { %4940 = vrot.lane.b32.xlu1 %v19849_v61, %s19051_s0 }
0x150c   :  { %4943 = vrot.lane.b32.xlu0 %v19836_v12, %s19051_s0 }
0x157b   :  { %v4783_v38 = vpop.xlane.xlu1 %4782 }
0x157c   :  { %17978 = vrcp.f32 %v4783_v38 }
0x157f   :  { %v4892_v39 = vpop.permute.xlu1 %4891 }
0x1580   :  { %v4897_v42 = vsel %vm373_vm1, %v4892_v39, 0 }
0x1581   :  { %16960 = vmatpush3.bf16.xpose.msra.mxu1 %v4897_v42 }
0x1582   :  { %16971 = vmatprep.subr.bf16.mxu1 %v19048_v0 }
0x1583   :  { %v4786_v45 = vpop.xlane.xlu0 %4785  ;;  %v4889_v51 = vpop.permute.xlu1 %4888 }
0x1584   :  { %17980 = vrcp.f32 %v4786_v45 }
0x1586   :  { %v17979_v5 = vpop.eup %17978 }
0x1587   :  { %v4789_v50 = vmul.f32 %v17979_v5, %v17975_v36  ;;  %v4944_v59 = vpop.permute.xlu0 %4943  ;;  %v4941_v21 = vpop.permute.xlu1 %4940 }
0x1588   :  { %16962 = vmatmul.mubr.msk.bf16.vlgmr.msra.gmra.mrb[72].mxu1 %vm373_vm1, %v4889_v51  ;;  %v4949_v60 = vsel %vm373_vm1, %v4944_v59, 0 }
0x1589   :  { %v4791_v52 = vpack.c.bf16 %v4789_v50, %v4789_v50  ;;  %16973 = vmatprep.mubr.msk.bf16.mxu1 %vm19049_vm0, %v19048_v0 }
0x158b   :  { %16950 = vmatmul.mubr.msk.bf16.vlgmr.msra.gmra.mrb[88].mxu0 %vm781_vm3, %v4791_v52 }
0x158c   :  { %16954 = vmatpush3.bf16.msra.mxu0 %v4845_v53  ;;  %16955 = vmatprep.mubr.msk.bf16.mxu0 %vm19049_vm0, %v19048_v0 }
0x158d   :  { %16965 = vmatprep.subr.bf16.mxu0 %v19048_v0 }
0x158e   :  { %v17981_v54 = vpop.eup %17980 }
0x158f   :  { %v4790_v57 = vmul.f32 %v17981_v54, %v17977_v37 }
0x1591   :  { %v4792_v20 = vpack.c.bf16 %v4790_v57, %v4790_v57 }
0x1593   :  { %16956 = vmatmul.mubr.msk.bf16.vlgmr.msra.gmra.mrb[92].mxu0 %vm781_vm3, %v4792_v20 }
0x1594   :  { %16967 = vmatprep.mubr.msk.bf16.mxu0 %vm19049_vm0, %v19048_v0 }
0x1595   :  { %16966 = vmatpush3.bf16.xpose.msra.mxu0 %v4949_v60 }
0x1596   :  { %16977 = vmatprep.subr.bf16.mxu0 %v19048_v0 }
0x159c   :  { %16968 = vmatmul.mubr.msk.bf16.vlgmr.msra.gmra.mrb[96].mxu0 %vm373_vm1, %v4941_v21 }
0x159d   :  { %16979 = vmatprep.mubr.msk.bf16.mxu0 %vm19049_vm0, %v19048_v0 }
0x165b   :  { %v4933_v3 = vpop.f32.mrb[72].mxu1 }
0x165c   :  { %v4991_v6 = vmul.f32 0.17677669, %v4933_v3  ;;  %v16963_v7 = vpop.f32.mrb[73].mxu1 }
0x165d   :  { %v4936_v9 = vpop.f32.mrb[74].mxu1 }
0x165e   :  { %v19893_v14 = vpop.f32.mrb[88].mxu0  ;;  %v16964_v15 = vpop.f32.mrb[75].mxu1  ;;  %v4993_v31 = vsel %vm781_vm3, %v4991_v6, -inf }
0x165f   :  { %4994 = vmax.xlane.f32.xlu1 %v4993_v31  ;;  %v16951_v25 = vpop.f32.mrb[89].mxu0 }
0x1660   :  { %v4838_v48 = vpop.f32.mrb[90].mxu0 }
0x1661   :  { %v16952_v56 = vpop.f32.mrb[91].mxu0 }
0x1666   :  { %v19896_v26 = vpop.f32.mrb[92].mxu0 }
0x1667   :  { %v16957_v27 = vpop.f32.mrb[93].mxu0 }
0x1668   :  { %v4884_v43 = vpop.f32.mrb[94].mxu0 }
0x1669   :  { %v16958_v28 = vpop.f32.mrb[95].mxu0 }
0x166f   :  { %v4985_v29 = vpop.f32.mrb[96].mxu0 }
0x1670   :  { %v4992_v62 = vmul.f32 0.17677669, %v4985_v29  ;;  %v16969_v10 = vpop.f32.mrb[97].mxu0  ;;  %5018 = vrot.lane.b32.xlu1 %v19847_v24, %s19051_s0 }
0x1671   :  { %v4988_v2 = vpop.f32.mrb[98].mxu0 }
0x1672   :  { %v16970_v55 = vpop.f32.mrb[99].mxu0  ;;  %v4996_v63 = vsel %vm781_vm3, %v4992_v62, -inf }
0x1673   :  { %4997 = vmax.xlane.f32.xlu0 %v4996_v63 }
0x1674   :  { %5117 = vrot.lane.b32.xlu1 %v19831_v4, %s19027_s29 }
0x1678   :  { %5167 = vrot.lane.b32.xlu1 %v19836_v12, %s19027_s29 }
0x167c   :  { %5115 = vrot.lane.b32.xlu1 %v19838_v13, %s19027_s29 }
0x16ec   :  { %v4995_v1 = vpop.xlane.xlu1 %4994 }
0x16ed   :  { %v4999_v11 = vsub.f32 %v4991_v6, %v4995_v1 }
0x16ef   :  { %v5001_v32 = vmul.f32 1.442695, %v4999_v11 }
0x16f0   :  { %v5019_v33 = vpop.permute.xlu1 %5018 }
0x16f1   :  { %17982 = vpow2.f32 %v5001_v32  ;;  %v5024_v34 = vsel %vm811_vm2, %v5019_v33, 0 }
0x16f2   :  { %16972 = vmatpush3.bf16.msra.mxu1 %v5024_v34 }
0x16f3   :  { %16983 = vmatprep.subr.bf16.mxu1 %v19048_v0 }
0x16f4   :  { %v5118_v5 = vpop.permute.xlu1 %5117 }
0x16f5   :  { %v5123_v52 = vsel %vm373_vm1, %v5118_v5, 0 }
0x16f8   :  { %v5168_v53 = vpop.permute.xlu1 %5167 }
0x16f9   :  { %v5173_v6 = vsel %vm373_vm1, %v5168_v53, 0 }
0x16fb   :  { %v17983_v35 = vpop.eup %17982 }
0x16fc   :  { %v5005_v36 = vsel %vm781_vm3, %v17983_v35, 0.0  ;;  %v5116_v57 = vpop.permute.xlu1 %5115 }
0x16fd   :  { %5006 = vadd.xlane.f32.xlu0 %v5005_v36 }
0x1700   :  { %v4998_v17 = vpop.xlane.xlu0 %4997 }
0x1701   :  { %v5000_v37 = vsub.f32 %v4992_v62, %v4998_v17 }
0x1703   :  { %v5003_v58 = vmul.f32 1.442695, %v5000_v37 }
0x1705   :  { %17984 = vpow2.f32 %v5003_v58 }
0x170f   :  { %v17985_v38 = vpop.eup %17984 }
0x1710   :  { %v5008_v39 = vsel %vm781_vm3, %v17985_v38, 0.0 }
0x1711   :  { %5009 = vadd.xlane.f32.xlu0 %v5008_v39 }
0x1727   :  { %5067 = vrot.lane.b32.xlu0 %v19874_v22, %s19051_s0 }
0x172b   :  { %5165 = vrot.lane.b32.xlu0 %v19849_v61, %s19027_s29 }
0x178a   :  { %v5007_v42 = vpop.xlane.xlu0 %5006 }
0x178b   :  { %17986 = vrcp.f32 %v5007_v42 }
0x1795   :  { %v17987_v45 = vpop.eup %17986 }
0x1796   :  { %v5013_v50 = vmul.f32 %v17987_v45, %v17983_v35 }
0x1798   :  { %v5015_v51 = vpack.c.bf16 %v5013_v50, %v5013_v50 }
0x179a   :  { %16974 = vmatmul.mubr.msk.bf16.vlgmr.msra.gmra.mrb[76].mxu1 %vm781_vm3, %v5015_v51 }
0x179b   :  { %16984 = vmatpush3.bf16.xpose.msra.mxu1 %v5123_v52  ;;  %16985 = vmatprep.mubr.msk.bf16.mxu1 %vm19049_vm0, %v19048_v0 }
0x179c   :  { %16995 = vmatprep.subr.bf16.mxu1 %v19048_v0 }
0x179e   :  { %v5010_v54 = vpop.xlane.xlu0 %5009 }
0x179f   :  { %17988 = vrcp.f32 %v5010_v54 }
0x17a2   :  { %v5068_v59 = vpop.permute.xlu0 %5067  ;;  %16986 = vmatmul.mubr.msk.bf16.vlgmr.msra.gmra.mrb[80].mxu1 %vm373_vm1, %v5116_v57 }
0x17a3   :  { %v5073_v20 = vsel %vm811_vm2, %v5068_v59, 0  ;;  %16997 = vmatprep.mubr.msk.bf16.mxu1 %vm19049_vm0, %v19048_v0 }
0x17a4   :  { %16978 = vmatpush3.bf16.msra.mxu0 %v5073_v20 }
0x17a5   :  { %16989 = vmatprep.subr.bf16.mxu0 %v19048_v0 }
0x17a6   :  { %v5166_v7 = vpop.permute.xlu0 %5165 }
0x17a9   :  { %v17989_v60 = vpop.eup %17988 }
0x17aa   :  { %v5014_v21 = vmul.f32 %v17989_v60, %v17985_v38 }
0x17ac   :  { %v5016_v3 = vpack.c.bf16 %v5014_v21, %v5014_v21 }
0x17ae   :  { %16980 = vmatmul.mubr.msk.bf16.vlgmr.msra.gmra.mrb[100].mxu0 %vm781_vm3, %v5016_v3 }
0x17af   :  { %16990 = vmatpush3.bf16.xpose.msra.mxu0 %v5173_v6  ;;  %16991 = vmatprep.mubr.msk.bf16.mxu0 %vm19049_vm0, %v19048_v0 }
0x17b0   :  { %17001 = vmatprep.subr.bf16.mxu0 %v19048_v0 }
0x17b6   :  { %16992 = vmatmul.mubr.msk.bf16.vlgmr.msra.gmra.mrb[104].mxu0 %vm373_vm1, %v5166_v7 }
0x17b7   :  { %17003 = vmatprep.mubr.msk.bf16.mxu0 %vm19049_vm0, %v19048_v0 }
0x186d   :  { %v19933_v9 = vpop.f32.mrb[76].mxu1 }
0x186e   :  { %v16975_v15 = vpop.f32.mrb[77].mxu1 }
0x186f   :  { %v5063_v31 = vpop.f32.mrb[78].mxu1 }
0x1870   :  { %v16976_v25 = vpop.f32.mrb[79].mxu1 }
0x1875   :  { %v5159_v48 = vpop.f32.mrb[80].mxu1 }
0x1876   :  { %v5215_v56 = vmul.f32 0.17677669, %v5159_v48  ;;  %v16987_v27 = vpop.f32.mrb[81].mxu1 }
0x1877   :  { %v5162_v43 = vpop.f32.mrb[82].mxu1 }
0x1878   :  { %v16988_v28 = vpop.f32.mrb[83].mxu1  ;;  %v5217_v29 = vsel %vm781_vm3, %v5215_v56, -inf }
0x1879   :  { %5218 = vmax.xlane.f32.xlu1 %v5217_v29 }
0x1881   :  { %v19936_v62 = vpop.f32.mrb[100].mxu0 }
0x1882   :  { %v17125_v10 = vpack.i.bf16 %v19936_v62, %v19933_v9  ;;  %v16981_v2 = vpop.f32.mrb[101].mxu0 }
0x1883   :  { %v5112_v55 = vpop.f32.mrb[102].mxu0 }
0x1884   :  { %v16982_v63 = vpop.f32.mrb[103].mxu0 }
0x1889   :  { %v5209_v1 = vpop.f32.mrb[104].mxu0 }
0x188a   :  { %v5216_v11 = vmul.f32 0.17677669, %v5209_v1  ;;  %v16993_v32 = vpop.f32.mrb[105].mxu0  ;;  %5241 = vrot.lane.b32.xlu1 %v19847_v24, %s19027_s29 }
0x188b   :  { %v5212_v33 = vpop.f32.mrb[106].mxu0 }
0x188c   :  { %v16994_v34 = vpop.f32.mrb[107].mxu0  ;;  %v5220_v35 = vsel %vm781_vm3, %v5216_v11, -inf }
0x188d   :  { %5221 = vmax.xlane.f32.xlu0 %v5220_v35 }
0x188e   :  { %5339 = vrot.lane.b32.xlu1 %v19831_v4, %s19052_s8 }
0x1892   :  { %5389 = vrot.lane.b32.xlu1 %v19836_v12, %s19052_s8 }
0x1896   :  { %5337 = vrot.lane.b32.xlu1 %v19838_v13, %s19052_s8 }
0x1906   :  { %v5219_v36 = vpop.xlane.xlu1 %5218 }
0x1907   :  { %v5223_v17 = vsub.f32 %v5215_v56, %v5219_v36 }
0x1909   :  { %v5225_v37 = vmul.f32 1.442695, %v5223_v17 }
0x190a   :  { %v5242_v58 = vpop.permute.xlu1 %5241 }
0x190b   :  { %17990 = vpow2.f32 %v5225_v37  ;;  %v5247_v38 = vsel %vm811_vm2, %v5242_v58, 0 }
0x190c   :  { %16996 = vmatpush3.bf16.msra.mxu1 %v5247_v38 }
0x190d   :  { %17007 = vmatprep.subr.bf16.mxu1 %v19048_v0 }
0x190e   :  { %v5340_v52 = vpop.permute.xlu1 %5339 }
0x190f   :  { %v5345_v57 = vsel %vm373_vm1, %v5340_v52, 0 }
0x1912   :  { %v5390_v59 = vpop.permute.xlu1 %5389 }
0x1913   :  { %v5395_v15 = vsel %vm373_vm1, %v5390_v59, 0 }
0x1915   :  { %v17991_v39 = vpop.eup %17990 }
0x1916   :  { %v5229_v42 = vsel %vm781_vm3, %v17991_v39, 0.0 }
0x1917   :  { %5230 = vadd.xlane.f32.xlu0 %v5229_v42 }
0x191a   :  { %v5222_v4 = vpop.xlane.xlu0 %5221 }
0x191b   :  { %v5224_v45 = vsub.f32 %v5216_v11, %v5222_v4 }
0x191d   :  { %v5227_v12 = vmul.f32 1.442695, %v5224_v45 }
0x191f   :  { %17992 = vpow2.f32 %v5227_v12 }
0x1929   :  { %v17993_v5 = vpop.eup %17992 }
0x192a   :  { %v5232_v13 = vsel %vm781_vm3, %v17993_v5, 0.0 }
0x192b   :  { %5233 = vadd.xlane.f32.xlu0 %v5232_v13 }
0x1941   :  { %5289 = vrot.lane.b32.xlu0 %v19874_v22, %s19027_s29 }
0x1945   :  { %5387 = vrot.lane.b32.xlu0 %v19849_v61, %s19052_s8  ;;  %v5338_v61 = vpop.permute.xlu1 %5337 }
0x19a4   :  { %v5231_v50 = vpop.xlane.xlu0 %5230 }
0x19a5   :  { %17994 = vrcp.f32 %v5231_v50 }
0x19af   :  { %v17995_v51 = vpop.eup %17994 }
0x19b0   :  { %v5237_v53 = vmul.f32 %v17995_v51, %v17991_v39 }
0x19b2   :  { %v5239_v54 = vpack.c.bf16 %v5237_v53, %v5237_v53 }
0x19b4   :  { %16998 = vmatmul.mubr.msk.bf16.vlgmr.msra.gmra.mrb[84].mxu1 %vm781_vm3, %v5239_v54 }
0x19b5   :  { %17008 = vmatpush3.bf16.xpose.msra.mxu1 %v5345_v57  ;;  %17009 = vmatprep.mubr.msk.bf16.mxu1 %vm19049_vm0, %v19048_v0 }
0x19b6   :  { %17019 = vmatprep.subr.bf16.mxu1 %v19048_v0 }
0x19b8   :  { %v5234_v20 = vpop.xlane.xlu0 %5233 }
0x19b9   :  { %17996 = vrcp.f32 %v5234_v20 }
0x19bc   :  { %v5290_v60 = vpop.permute.xlu0 %5289  ;;  %17010 = vmatmul.mubr.msk.bf16.vlgmr.msra.gmra.mrb[88].mxu1 %vm373_vm1, %v5338_v61 }
0x19bd   :  { %v5295_v21 = vsel %vm811_vm2, %v5290_v60, 0  ;;  %17021 = vmatprep.mubr.msk.bf16.mxu1 %vm19049_vm0, %v19048_v0 }
0x19be   :  { %17002 = vmatpush3.bf16.msra.mxu0 %v5295_v21 }
0x19bf   :  { %17013 = vmatprep.subr.bf16.mxu0 %v19048_v0 }
0x19c0   :  { %v5388_v31 = vpop.permute.xlu0 %5387 }
0x19c3   :  { %v17997_v3 = vpop.eup %17996 }
0x19c4   :  { %v5238_v6 = vmul.f32 %v17997_v3, %v17993_v5  ;;  %v17346_v3 = vld [vmem:[#allocation11 + $0x48] sm:$0xff]  }
0x19c6   :  { %v5240_v7 = vpack.c.bf16 %v5238_v6, %v5238_v6  ;;  %v17347_v6 = vld [vmem:[#allocation11 + $0x50] sm:$0xff]  }
0x19c8   :  { %17004 = vmatmul.mubr.msk.bf16.vlgmr.msra.gmra.mrb[108].mxu0 %vm781_vm3, %v5240_v7  ;;  %v17348_v7 = vld [vmem:[#allocation11 + $0x58] sm:$0xff]  }
0x19c9   :  { %17014 = vmatpush3.bf16.xpose.msra.mxu0 %v5395_v15  ;;  %17015 = vmatprep.mubr.msk.bf16.mxu0 %vm19049_vm0, %v19048_v0  ;;  %v17349_v15 = vld [vmem:[#allocation11 + $0x60] sm:$0xff]  }
0x19ca   :  { %17025 = vmatprep.subr.bf16.mxu0 %v19048_v0 }
0x19d0   :  { %17016 = vmatmul.mubr.msk.bf16.vlgmr.msra.gmra.mrb[112].mxu0 %vm373_vm1, %v5388_v31  ;;  %v17350_v31 = vld [vmem:[#allocation11 + $0x68] sm:$0xff]  }
0x19d1   :  { %17027 = vmatprep.mubr.msk.bf16.mxu0 %vm19049_vm0, %v19048_v0 }
0x1a87   :  { %v5283_v25 = vpop.f32.mrb[84].mxu1 }
0x1a88   :  { %v16999_v48 = vpop.f32.mrb[85].mxu1 }
0x1a89   :  { %v5286_v56 = vpop.f32.mrb[86].mxu1 }
0x1a8a   :  { %v17000_v27 = vpop.f32.mrb[87].mxu1 }
0x1a8f   :  { %v5381_v43 = vpop.f32.mrb[88].mxu1 }
0x1a90   :  { %v5437_v28 = vmul.f32 0.17677669, %v5381_v43  ;;  %v17011_v29 = vpop.f32.mrb[89].mxu1 }
0x1a91   :  { %v5384_v2 = vpop.f32.mrb[90].mxu1 }
0x1a92   :  { %v17012_v55 = vpop.f32.mrb[91].mxu1  ;;  %v5439_v63 = vsel %vm781_vm3, %v5437_v28, -inf }
0x1a93   :  { %5440 = vmax.xlane.f32.xlu1 %v5439_v63 }
0x1a9b   :  { %v5331_v1 = vpop.f32.mrb[108].mxu0 }
0x1a9c   :  { %v17130_v11 = vpack.i.bf16 %v5331_v1, %v5283_v25  ;;  %v17005_v32 = vpop.f32.mrb[109].mxu0  ;;  %v17351_v25 = vld [vmem:[#allocation11 + $0x70] sm:$0xff]  }
0x1a9d   :  { %v5334_v33 = vpop.f32.mrb[110].mxu0 }
0x1a9e   :  { %v17006_v34 = vpop.f32.mrb[111].mxu0 }
0x1aa3   :  { %v5431_v35 = vpop.f32.mrb[112].mxu0 }
0x1aa4   :  { %v5438_v36 = vmul.f32 0.17677669, %v5431_v35  ;;  %v17017_v17 = vpop.f32.mrb[113].mxu0  ;;  %5463 = vrot.lane.b32.xlu1 %v19847_v24, %s19052_s8 }
0x1aa5   :  { %v5434_v37 = vpop.f32.mrb[114].mxu0 }
0x1aa6   :  { %v17018_v58 = vpop.f32.mrb[115].mxu0  ;;  %v5442_v38 = vsel %vm781_vm3, %v5438_v36, -inf }
0x1aa7   :  { %5443 = vmax.xlane.f32.xlu0 %v5442_v38 }
0x1aa8   :  { %17126 = vrot.lane.b32.xlu1 %v17125_v10, %s19052_s8 }
0x1aac   :  { %17131 = vrot.lane.b32.xlu1 %v17130_v11, %s19027_s29 }
0x1b20   :  { %v5441_v39 = vpop.xlane.xlu1 %5440 }
0x1b21   :  { %v5445_v42 = vsub.f32 %v5437_v28, %v5441_v39  ;;  %v17352_v28 = vld [vmem:[#allocation11 + $0x78] sm:$0xff]  }
0x1b23   :  { %v5447_v4 = vmul.f32 1.442695, %v5445_v42 }
0x1b24   :  { %v5464_v45 = vpop.permute.xlu1 %5463 }
0x1b25   :  { %17998 = vpow2.f32 %v5447_v4  ;;  %v5469_v12 = vsel %vm811_vm2, %v5464_v45, 0 }
0x1b26   :  { %17020 = vmatpush3.bf16.msra.mxu1 %v5469_v12 }
0x1b27   :  { %17031 = vmatprep.subr.bf16.mxu1 %v19048_v0 }
0x1b28   :  { %v17127_v11 = vpop.permute.xlu1 %17126 }
0x1b29   :  { %v17129_v33 = vunpack.i.h.bf16 %v17127_v11  ;;  %v17128_v34 = vunpack.i.l.bf16 %v17127_v11  ;;  %v5790_v11 = vld [vmem:[#allocation15 + $0x548] sm:$0xff] }
0x1b2b   :  { %v5584_v37 = vsel %vm373_vm1, %v19896_v26, %v17129_v33  ;;  %v5583_v58 = vsel %vm373_vm1, %v19893_v14, %v17128_v34  ;;  %v15361_v26 = vld [vmem:[%s22144_s22 + $0x1] ss:$0 sm:$0xff] }
0x1b2c   :  { %v17132_v32 = vpop.permute.xlu1 %17131 }
0x1b2d   :  { %v17134_v35 = vunpack.i.h.bf16 %v17132_v32 }
0x1b2f   :  { %v17999_v24 = vpop.eup %17998  ;;  %v5586_v42 = vsel %vm1599_vm4, %v5584_v37, %v17134_v35  ;;  %v5797_v35 = vld [vmem:[#allocation15 + $0x580] sm:$0xff] }
0x1b30   :  { %v5451_v5 = vsel %vm781_vm3, %v17999_v24, 0.0 }
0x1b31   :  { %5452 = vadd.xlane.f32.xlu0 %v5451_v5 }
0x1b34   :  { %v5444_v13 = vpop.xlane.xlu0 %5443 }
0x1b35   :  { %v5446_v50 = vsub.f32 %v5438_v36, %v5444_v13  ;;  %v17133_v36 = vunpack.i.l.bf16 %v17132_v32 }
0x1b37   :  { %v5449_v9 = vmul.f32 1.442695, %v5446_v50  ;;  %v5585_v4 = vsel %vm1599_vm4, %v5583_v58, %v17133_v36  ;;  %v5805_v36 = vld [vmem:[#allocation15 + $0x5c0] sm:$0xff]  ;;  %v5806_v58 = vld [vmem:[#allocation15 + $0x5c8] sm:$0xff] }
0x1b38   :  { %v15421_v37 = vcombine.high %v5797_v35, %v5805_v36 }
0x1b39   :  { %18000 = vpow2.f32 %v5449_v9 }
0x1b43   :  { %v18001_v62 = vpop.eup %18000 }
0x1b44   :  { %v5454_v10 = vsel %vm781_vm3, %v18001_v62, 0.0 }
0x1b45   :  { %5455 = vadd.xlane.f32.xlu0 %v5454_v10 }
0x1b5b   :  { %5511 = vrot.lane.b32.xlu0 %v19874_v22, %s19052_s8  ;;  %v17345_v22 = vld [vmem:[#allocation11 + $0x40] sm:$0xff]  }
0x1bbe   :  { %v5453_v51 = vpop.xlane.xlu0 %5452 }
0x1bbf   :  { %18002 = vrcp.f32 %v5453_v51 }
0x1bc9   :  { %v18003_v52 = vpop.eup %18002 }
0x1bca   :  { %v5459_v53 = vmul.f32 %v18003_v52, %v17999_v24  ;;  %v5749_v52 = vld [vmem:[#allocation15 + $0x400] sm:$0xff] }
0x1bcc   :  { %v5461_v54 = vpack.c.bf16 %v5459_v53, %v5459_v53  ;;  %v5757_v53 = vld [vmem:[#allocation15 + $0x440] sm:$0xff] }
0x1bce   :  { %17022 = vmatmul.mubr.msk.bf16.vlgmr.msra.gmra.mrb[92].mxu1 %vm781_vm3, %v5461_v54  ;;  %v5750_v54 = vld [vmem:[#allocation15 + $0x408] sm:$0xff] }
0x1bcf   :  { %17047 = vmatprep.mubr.msk.bf16.mxu1 %vm19049_vm0, %v19048_v0  ;;  %17032 = vmatpush3.bf16.msra.mxu1 %v17345_v22 }
0x1bd0   :  { %17033 = vmatprep.subr.bf16.mxu1 %v19048_v0 }
0x1bd2   :  { %v5456_v57 = vpop.xlane.xlu0 %5455 }
0x1bd3   :  { %18004 = vrcp.f32 %v5456_v57  ;;  %17034 = vmatpush3.bf16.msra.mxu1 %v17346_v3  ;;  %v15372_v57 = vcombine.low %v5749_v52, %v5757_v53 }
0x1bd4   :  { %17035 = vmatprep.subr.bf16.mxu1 %v19048_v0 }
0x1bd6   :  { %v5512_v59 = vpop.permute.xlu0 %5511 }
0x1bd7   :  { %v5517_v20 = vsel %vm811_vm2, %v5512_v59, 0  ;;  %17036 = vmatpush3.bf16.msra.mxu1 %v17347_v6  ;;  %v15373_v59 = vcombine.high %v5749_v52, %v5757_v53  ;;  %v5766_v6 = vld [vmem:[#allocation15 + $0x488] sm:$0xff] }
0x1bd8   :  { %17026 = vmatpush3.bf16.msra.mxu0 %v5517_v20  ;;  %17037 = vmatprep.subr.bf16.mxu1 %v19048_v0  ;;  %v5758_v20 = vld [vmem:[#allocation15 + $0x448] sm:$0xff] }
0x1bd9   :  { %v15375_v22 = vcombine.high %v5750_v54, %v5758_v20  ;;  %6603 = vmatprep.subr.bf16.mxu0 %v15373_v59  ;;  %v5853_v59 = vld [vmem:[#allocation15 + $0x740] sm:$0xff] }
0x1bdb   :  { %17038 = vmatpush3.bf16.msra.mxu1 %v17348_v7  ;;  %v5774_v7 = vld [vmem:[#allocation15 + $0x4c8] sm:$0xff] }
0x1bdc   :  { %17039 = vmatprep.subr.bf16.mxu1 %v19048_v0 }
0x1bdd   :  { %v18005_v61 = vpop.eup %18004 }
0x1bde   :  { %v5460_v60 = vmul.f32 %v18005_v61, %v18001_v62  ;;  %v5765_v61 = vld [vmem:[#allocation15 + $0x480] sm:$0xff] }
0x1bdf   :  { %17040 = vmatpush3.bf16.msra.mxu1 %v17349_v15  ;;  %v15391_v15 = vcombine.high %v5766_v6, %v5774_v7 }
0x1be0   :  { %v5462_v21 = vpack.c.bf16 %v5460_v60, %v5460_v60  ;;  %17041 = vmatprep.subr.bf16.mxu1 %v19048_v0  ;;  %v5773_v60 = vld [vmem:[#allocation15 + $0x4c0] sm:$0xff] }
0x1be1   :  { %v15389_v3 = vcombine.high %v5765_v61, %v5773_v60 }
0x1be2   :  { %17028 = vmatmul.mubr.msk.bf16.vlgmr.msra.gmra.mrb[116].mxu0 %vm781_vm3, %v5462_v21  ;;  %v15374_v21 = vcombine.low %v5750_v54, %v5758_v20  ;;  %v5846_v20 = vld [vmem:[#allocation15 + $0x708] sm:$0xff] }
0x1be3   :  { %6635 = vmatprep.mubr.bf16.mxu0 %v22031_v30  ;;  %17042 = vmatpush3.bf16.msra.mxu1 %v17350_v31 }
0x1be4   :  { %17043 = vmatprep.subr.bf16.mxu1 %v19048_v0  ;;  %6604 = vmatpush1.bf16.msra.mxu0 %v15372_v57  ;;  %v5845_v57 = vld [vmem:[#allocation15 + $0x700] sm:$0xff] }
0x1be5   :  { %6605 = vmatprep.subr.bf16.mxu0 %v15389_v3 }
0x1be7   :  { %17044 = vmatpush3.bf16.msra.mxu1 %v17351_v25 }
0x1be8   :  { %17045 = vmatprep.subr.bf16.mxu1 %v19048_v0 }
0x1beb   :  { %17046 = vmatpush3.bf16.msra.mxu1 %v17352_v28 }
0x1bec   :  { %6646 = vmatprep.subr.bf16.mxu1 %v15375_v22 }
0x1ca1   :  { %v5505_v48 = vpop.f32.mrb[92].mxu1 }
0x1ca2   :  { %v17023_v56 = vpop.f32.mrb[93].mxu1 }
0x1ca3   :  { %v5508_v27 = vpop.f32.mrb[94].mxu1 }
0x1ca4   :  { %v17024_v43 = vpop.f32.mrb[95].mxu1 }
0x1cb5   :  { %v5553_v29 = vpop.f32.mrb[116].mxu0 }
0x1cb6   :  { %v17135_v2 = vpack.i.bf16 %v5553_v29, %v5505_v48  ;;  %v17029_v55 = vpop.f32.mrb[117].mxu0 }
0x1cb7   :  { %v5556_v63 = vpop.f32.mrb[118].mxu0  ;;  %v5789_v55 = vld [vmem:[#allocation15 + $0x540] sm:$0xff] }
0x1cb8   :  { %17136 = vrot.lane.b32.xlu1 %v17135_v2, %s19051_s0  ;;  %v17030_v1 = vpop.f32.mrb[119].mxu0  ;;  %v5781_v2 = vld [vmem:[#allocation15 + $0x500] sm:$0xff]  ;;  %v5782_v63 = vld [vmem:[#allocation15 + $0x508] sm:$0xff] }
0x1cb9   :  { %v15405_v1 = vcombine.high %v5781_v2, %v5789_v55  ;;  %v15404_v32 = vcombine.low %v5781_v2, %v5789_v55  ;;  %v15406_v33 = vcombine.low %v5782_v63, %v5790_v11  ;;  %v15407_v34 = vcombine.high %v5782_v63, %v5790_v11  ;;  %v5760_v63 = vld [vmem:[#allocation15 + $0x458] sm:$0xff] }
0x1d2a   :  { %v17137_v17 = vpop.permute.xlu1 %17136 }
0x1d2b   :  { %v17139_v38 = vunpack.i.h.bf16 %v17137_v17  ;;  %v17138_v39 = vunpack.i.l.bf16 %v17137_v17  ;;  %v5798_v17 = vld [vmem:[#allocation15 + $0x588] sm:$0xff] }
0x1d2d   :  { %v5588_v45 = vsel %vm1602_vm5, %v5586_v42, %v17139_v38  ;;  %v5587_v12 = vsel %vm1602_vm5, %v5585_v4, %v17138_v39  ;;  %v15420_v38 = vcombine.low %v5797_v35, %v5805_v36  ;;  %v15422_v39 = vcombine.low %v5798_v17, %v5806_v58  ;;  %v5813_v4 = vld [vmem:[#allocation15 + $0x600] sm:$0xff] }
0x1d2e   :  { %v5608_v24 = vpack.c.bf16 %v5588_v45, %v5587_v12  ;;  %v15423_v42 = vcombine.high %v5798_v17, %v5806_v58  ;;  %v5821_v45 = vld [vmem:[#allocation15 + $0x640] sm:$0xff]  ;;  %v5814_v12 = vld [vmem:[#allocation15 + $0x608] sm:$0xff] }
0x1d30   :  { %17048 = vmatmul.mubr.bf16.vlgmr.msra.gmra.mrb[96].mxu1 %v5608_v24  ;;  %v15437_v24 = vcombine.high %v5813_v4, %v5821_v45 }
0x1d31   :  { %6678 = vmatprep.mubr.bf16.mxu1 %v22031_v30  ;;  %6647 = vmatpush1.bf16.msra.mxu1 %v15374_v21  ;;  %v15468_v21 = vcombine.low %v5845_v57, %v5853_v59 }
0x1d32   :  { %6648 = vmatprep.subr.bf16.mxu1 %v15391_v15  ;;  %v5862_v15 = vld [vmem:[#allocation15 + $0x788] sm:$0xff] }
0x1e03   :  { %v5697_v5 = vpop.f32.mrb[96].mxu1 }
0x1e04   :  { %v5698_v14 = vadd.f32 %v15361_v26, %v5697_v5  ;;  %v17049_v13 = vpop.f32.mrb[97].mxu1  ;;  %v15436_v5 = vcombine.low %v5813_v4, %v5821_v45  ;;  %v15371_v45 = vld [vmem:[#allocation14 + $0x1] ss:$0 sm:$0xff] }
0x1e05   :  { %v5700_v50 = vpop.f32.mrb[98].mxu1 }
0x1e06   :  { %v5701_v9 = vadd.f32 %v15361_v26, %v5700_v50  ;;  %v17050_v62 = vpop.f32.mrb[99].mxu1  ;;  %v5704_v10 = vadd.f32 %v5698_v14, %v19816_v40  ;;  %v15388_v40 = vcombine.low %v5765_v61, %v5773_v60  ;;  %v5822_v26 = vld [vmem:[#allocation15 + $0x648] sm:$0xff]  ;;  %v5829_v50 = vld [vmem:[#allocation15 + $0x680] sm:$0xff]  ;;  %v15469_v61 = vcombine.high %v5845_v57, %v5853_v59 }
0x1e07   :  { %v15438_v14 = vcombine.low %v5814_v12, %v5822_v26  ;;  %v15439_v13 = vcombine.high %v5814_v12, %v5822_v26  ;;  %v5830_v62 = vld [vmem:[#allocation15 + $0x688] sm:$0xff]  ;;  %v5775_v26 = vld [vmem:[#allocation15 + $0x4d0] sm:$0xff] }
0x1e08   :  { %5710 = vadd.xlane.f32.xlu0 %v5704_v10  ;;  %v5705_v51 = vadd.f32 %v5701_v9, %v19818_v41  ;;  %v15390_v41 = vcombine.low %v5766_v6, %v5774_v7  ;;  %6606 = vmatpush1.bf16.msra.mxu0 %v15388_v40  ;;  %v5837_v9 = vld [vmem:[#allocation15 + $0x6c0] sm:$0xff]  ;;  %v5854_v60 = vld [vmem:[#allocation15 + $0x748] sm:$0xff] }
0x1e09   :  { %6607 = vmatprep.subr.bf16.mxu0 %v15405_v1  ;;  %v15452_v52 = vcombine.low %v5829_v50, %v5837_v9  ;;  %v15470_v22 = vcombine.low %v5846_v20, %v5854_v60  ;;  %v15471_v3 = vcombine.high %v5846_v20, %v5854_v60  ;;  %v5861_v6 = vld [vmem:[#allocation15 + $0x780] sm:$0xff]  ;;  %v5799_v20 = vld [vmem:[#allocation15 + $0x590] sm:$0xff]  ;;  %v5800_v60 = vld [vmem:[#allocation15 + $0x598] sm:$0xff] }
0x1e0a   :  { %5712 = vadd.xlane.f32.xlu1 %v5705_v51  ;;  %6649 = vmatpush1.bf16.msra.mxu1 %v15390_v41  ;;  %v5869_v7 = vld [vmem:[#allocation15 + $0x7c0] sm:$0xff]  ;;  %v5870_v41 = vld [vmem:[#allocation15 + $0x7c8] sm:$0xff] }
0x1e0b   :  { %6650 = vmatprep.subr.bf16.mxu1 %v15407_v34  ;;  %v15485_v40 = vcombine.high %v5861_v6, %v5869_v7 }
0x1e0c   :  { %6608 = vmatpush1.bf16.msra.mxu0 %v15404_v32 }
0x1e0d   :  { %6609 = vmatprep.subr.bf16.mxu0 %v15421_v37 }
0x1e0e   :  { %6651 = vmatpush1.bf16.msra.mxu1 %v15406_v33 }
0x1e0f   :  { %6652 = vmatprep.subr.bf16.mxu1 %v15423_v42 }
0x1e10   :  { %6610 = vmatpush1.bf16.msra.mxu0 %v15420_v38  ;;  %v15370_v38 = vld [vmem:[#allocation12 + $0x1] ss:$0 sm:$0xff] }
0x1e11   :  { %6611 = vmatprep.subr.bf16.mxu0 %v15437_v24  ;;  %v5767_v24 = vld [vmem:[#allocation15 + $0x490] sm:$0xff] }
0x1e12   :  { %6653 = vmatpush1.bf16.msra.mxu1 %v15422_v39 }
0x1e13   :  { %6654 = vmatprep.subr.bf16.mxu1 %v15439_v13 }
0x1e14   :  { %6612 = vmatpush1.bf16.msra.mxu0 %v15436_v5  ;;  %v5768_v5 = vld [vmem:[#allocation15 + $0x498] sm:$0xff] }
0x1e16   :  { %6655 = vmatpush1.bf16.msra.mxu1 %v15438_v14  ;;  %v5776_v14 = vld [vmem:[#allocation15 + $0x4d8] sm:$0xff] }
0x1e95   :  { %v5711_v31 = vpop.xlane.xlu0 %5710 }
0x1e96   :  { %v5714_v25 = vmul.f32 0.0078125, %v5711_v31  ;;  %v15484_v31 = vcombine.low %v5861_v6, %v5869_v7 }
0x1e97   :  { %v5713_v48 = vpop.xlane.xlu1 %5712 }
0x1e98   :  { %v20018_v56 = vsub.f32 %v5704_v10, %v5714_v25  ;;  %v5715_v27 = vmul.f32 0.0078125, %v5713_v48  ;;  %v15453_v10 = vcombine.high %v5829_v50, %v5837_v9  ;;  %v15486_v25 = vcombine.low %v5862_v15, %v5870_v41 }
0x1e99   :  { %v15487_v48 = vcombine.high %v5862_v15, %v5870_v41  ;;  %v5815_v15 = vld [vmem:[#allocation15 + $0x610] sm:$0xff]  ;;  %v5816_v41 = vld [vmem:[#allocation15 + $0x618] sm:$0xff] }
0x1e9a   :  { %v20020_v43 = vsub.f32 %v5705_v51, %v5715_v27  ;;  %v5718_v28 = vmul.f32 %v20018_v56, %v20018_v56  ;;  %v5838_v51 = vld [vmem:[#allocation15 + $0x6c8] sm:$0xff]  ;;  %6613 = vmatprep.subr.bf16.mxu0 %v15453_v10  ;;  %v5751_v27 = vld [vmem:[#allocation15 + $0x410] sm:$0xff] }
0x1e9b   :  { %v15454_v53 = vcombine.low %v5830_v62, %v5838_v51  ;;  %v15455_v54 = vcombine.high %v5830_v62, %v5838_v51  ;;  %6614 = vmatpush1.bf16.msra.mxu0 %v15452_v52  ;;  %v15395_v62 = vcombine.high %v5768_v5, %v5776_v14  ;;  %v5783_v10 = vld [vmem:[#allocation15 + $0x510] sm:$0xff]  ;;  %v5784_v52 = vld [vmem:[#allocation15 + $0x518] sm:$0xff] }
0x1e9c   :  { %5720 = vadd.xlane.f32.xlu0 %v5718_v28  ;;  %v5719_v29 = vmul.f32 %v20020_v43, %v20020_v43  ;;  %6615 = vmatprep.subr.bf16.mxu0 %v15469_v61  ;;  %v5759_v28 = vld [vmem:[#allocation15 + $0x450] sm:$0xff] }
0x1e9d   :  { %6656 = vmatprep.subr.bf16.mxu1 %v15455_v54  ;;  %v15376_v2 = vcombine.low %v5751_v27, %v5759_v28  ;;  %v15377_v55 = vcombine.high %v5751_v27, %v5759_v28  ;;  %v5791_v51 = vld [vmem:[#allocation15 + $0x550] sm:$0xff]  ;;  %v15394_v54 = vcombine.low %v5768_v5, %v5776_v14 }
0x1e9e   :  { %6657 = vmatpush1.bf16.msra.mxu1 %v15454_v53  ;;  %v15392_v53 = vcombine.low %v5767_v24, %v5775_v26  ;;  %v15409_v57 = vcombine.high %v5783_v10, %v5791_v51  ;;  %v5807_v61 = vld [vmem:[#allocation15 + $0x5d0] sm:$0xff] }
0x1e9f   :  { %6658 = vmatprep.subr.bf16.mxu1 %v15471_v3  ;;  %6616 = vmatpush1.bf16.msra.mxu0 %v15468_v21  ;;  %v5808_v21 = vld [vmem:[#allocation15 + $0x5d8] sm:$0xff]  ;;  %v15425_v6 = vcombine.high %v5799_v20, %v5807_v61 }
0x1ea0   :  { %5722 = vadd.xlane.f32.xlu0 %v5719_v29  ;;  %6617 = vmatprep.subr.bf16.mxu0 %v15485_v40  ;;  %v5752_v29 = vld [vmem:[#allocation15 + $0x418] sm:$0xff]  ;;  %v15427_v7 = vcombine.high %v5800_v60, %v5808_v21  ;;  %v5823_v40 = vld [vmem:[#allocation15 + $0x650] sm:$0xff] }
0x1ea1   :  { %v15378_v1 = vcombine.low %v5752_v29, %v5760_v63  ;;  %v15379_v11 = vcombine.high %v5752_v29, %v5760_v63  ;;  %v15441_v27 = vcombine.high %v5815_v15, %v5823_v40  ;;  %v5831_v29 = vld [vmem:[#allocation15 + $0x690] sm:$0xff]  ;;  %v5840_v63 = vld [vmem:[#allocation15 + $0x6d8] sm:$0xff] }
0x1ea2   :  { %6659 = vmatpush1.bf16.msra.mxu1 %v15470_v22  ;;  %v15408_v22 = vcombine.low %v5783_v10, %v5791_v51  ;;  %v5754_v10 = vld [vmem:[#allocation15 + $0x428] sm:$0xff] }
0x1ea3   :  { %6660 = vmatprep.subr.bf16.mxu1 %v15487_v48  ;;  %6618 = vmatpush1.bf16.msra.mxu0 %v15484_v31  ;;  %v5824_v31 = vld [vmem:[#allocation15 + $0x658] sm:$0xff]  ;;  %v15426_v48 = vcombine.low %v5800_v60, %v5808_v21  ;;  %v5762_v51 = vld [vmem:[#allocation15 + $0x468] sm:$0xff] }
0x1ea4   :  { %6689 = vmatprep.subr.bf16.mxu0 %v15377_v55  ;;  %v15443_v28 = vcombine.high %v5816_v41, %v5824_v31  ;;  %v5832_v55 = vld [vmem:[#allocation15 + $0x698] sm:$0xff]  ;;  %v15382_v21 = vcombine.low %v5754_v10, %v5762_v51 }
0x1ea6   :  { %6661 = vmatpush1.bf16.msra.mxu1 %v15486_v25  ;;  %v15424_v25 = vcombine.low %v5799_v20, %v5807_v61  ;;  %v5770_v20 = vld [vmem:[#allocation15 + $0x4a8] sm:$0xff] }
0x1ea7   :  { %6732 = vmatprep.subr.bf16.mxu1 %v15379_v11  ;;  %v15442_v11 = vcombine.low %v5816_v41, %v5824_v31  ;;  %v5778_v61 = vld [vmem:[#allocation15 + $0x4e8] sm:$0xff] }
0x1ea8   :  { %v15398_v31 = vcombine.low %v5770_v20, %v5778_v61 }
0x1f29   :  { %v5721_v32 = vpop.xlane.xlu0 %5720 }
0x1f2a   :  { %v5724_v33 = vmul.f32 0.0078125, %v5721_v32 }
0x1f2c   :  { %v5726_v34 = vadd.f32 1e-05, %v5724_v33  ;;  %v15459_v33 = vcombine.high %v5832_v55, %v5840_v63 }
0x1f2d   :  { %v5723_v35 = vpop.xlane.xlu0 %5722 }
0x1f2e   :  { %18006 = vrsqrt.f32 %v5726_v34  ;;  %v5725_v36 = vmul.f32 0.0078125, %v5723_v35  ;;  %v5847_v34 = vld [vmem:[#allocation15 + $0x710] sm:$0xff] }
0x1f2f   :  { %v5855_v35 = vld [vmem:[#allocation15 + $0x750] sm:$0xff] }
0x1f30   :  { %v5727_v17 = vadd.f32 1e-05, %v5725_v36  ;;  %v5848_v36 = vld [vmem:[#allocation15 + $0x718] sm:$0xff] }
0x1f32   :  { %18008 = vrsqrt.f32 %v5727_v17  ;;  %v5856_v17 = vld [vmem:[#allocation15 + $0x758] sm:$0xff] }
0x1f38   :  { %v18007_v37 = vpop.eup %18006 }
0x1f39   :  { %v5730_v58 = vmul.f32 %v18007_v37, %v20018_v56  ;;  %v15393_v56 = vcombine.high %v5767_v24, %v5775_v26  ;;  %v15472_v24 = vcombine.low %v5847_v34, %v5855_v35  ;;  %v15474_v26 = vcombine.low %v5848_v36, %v5856_v17 }
0x1f3b   :  { %v5738_v42 = vmul.f32 %v15370_v38, %v5730_v58  ;;  %v15458_v58 = vcombine.low %v5832_v55, %v5840_v63 }
0x1f3c   :  { %v18009_v39 = vpop.eup %18008 }
0x1f3d   :  { %v5731_v4 = vmul.f32 %v18009_v39, %v20020_v43  ;;  %v20028_v13 = vadd.f32 %v15371_v45, %v5738_v42  ;;  %v5792_v43 = vld [vmem:[#allocation15 + $0x558] sm:$0xff]  ;;  %v15475_v39 = vcombine.high %v5848_v36, %v5856_v17  ;;  %v5863_v42 = vld [vmem:[#allocation15 + $0x790] sm:$0xff] }
0x1f3e   :  { %v15411_v59 = vcombine.high %v5784_v52, %v5792_v43  ;;  %v15410_v3 = vcombine.low %v5784_v52, %v5792_v43 }
0x1f3f   :  { %v5739_v12 = vmul.f32 %v15370_v38, %v5731_v4  ;;  %v15473_v38 = vcombine.high %v5847_v34, %v5855_v35  ;;  %v5871_v4 = vld [vmem:[#allocation15 + $0x7d0] sm:$0xff]  ;;  %v5818_v34 = vld [vmem:[#allocation15 + $0x628] sm:$0xff] }
0x1f40   :  { %v15489_v5 = vcombine.high %v5863_v42, %v5871_v4  ;;  %v15488_v52 = vcombine.low %v5863_v42, %v5871_v4  ;;  %v5826_v35 = vld [vmem:[#allocation15 + $0x668] sm:$0xff] }
0x1f41   :  { %v20030_v50 = vadd.f32 %v15371_v45, %v5739_v12  ;;  %v5864_v45 = vld [vmem:[#allocation15 + $0x798] sm:$0xff]  ;;  %v5834_v42 = vld [vmem:[#allocation15 + $0x6a8] sm:$0xff] }
0x1f42   :  { %v5872_v12 = vld [vmem:[#allocation15 + $0x7d8] sm:$0xff]  ;;  %v5842_v4 = vld [vmem:[#allocation15 + $0x6e8] sm:$0xff] }
0x1f43   :  { %v20034_v9 = vpack.c.bf16 %v20030_v50, %v20028_v13  ;;  %v15491_v14 = vcombine.high %v5864_v45, %v5872_v12  ;;  %v15490_v43 = vcombine.low %v5864_v45, %v5872_v12  ;;  %v15446_v12 = vcombine.low %v5818_v34, %v5826_v35 }
0x1f45   :  { %6636 = vmatmul.mubr.bf16.vlgmr.msra.gmra.mrb[120].mxu0 %v20034_v9  ;;  %6679 = vmatmul.mubr.bf16.vlgmr.msra.gmra.mrb[100].mxu1 %v20034_v9 }
0x1f46   :  { %6690 = vmatpush1.bf16.msra.mxu0 %v15376_v2  ;;  %6733 = vmatpush1.bf16.msra.mxu1 %v15378_v1  ;;  %v5839_v2 = vld [vmem:[#allocation15 + $0x6d0] sm:$0xff]  ;;  %v15440_v1 = vcombine.low %v5815_v15, %v5823_v40  ;;  %v5786_v15 = vld [vmem:[#allocation15 + $0x528] sm:$0xff] }
0x1f47   :  { %6691 = vmatprep.subr.bf16.mxu0 %v15393_v56  ;;  %6734 = vmatprep.subr.bf16.mxu1 %v15395_v62  ;;  %v15457_v32 = vcombine.high %v5831_v29, %v5839_v2  ;;  %v15456_v37 = vcombine.low %v5831_v29, %v5839_v2  ;;  %v5753_v56 = vld [vmem:[#allocation15 + $0x420] sm:$0xff]  ;;  %v5794_v40 = vld [vmem:[#allocation15 + $0x568] sm:$0xff] }
0x1f48   :  { %6721 = vmatprep.mubr.bf16.mxu0 %v22031_v30  ;;  %6764 = vmatprep.mubr.bf16.mxu1 %v22031_v30  ;;  %v5761_v62 = vld [vmem:[#allocation15 + $0x460] sm:$0xff]  ;;  %v5802_v29 = vld [vmem:[#allocation15 + $0x5a8] sm:$0xff]  ;;  %v15414_v63 = vcombine.low %v5786_v15, %v5794_v40 }
0x1f49   :  { %v15380_v60 = vcombine.low %v5753_v56, %v5761_v62  ;;  %v5810_v2 = vld [vmem:[#allocation15 + $0x5e8] sm:$0xff] }
0x1f4a   :  { %6692 = vmatpush1.bf16.msra.mxu0 %v15392_v53  ;;  %6735 = vmatpush1.bf16.msra.mxu1 %v15394_v54  ;;  %v15381_v53 = vcombine.high %v5753_v56, %v5761_v62  ;;  %v15383_v54 = vcombine.high %v5754_v10, %v5762_v51  ;;  %v15430_v17 = vcombine.low %v5802_v29, %v5810_v2  ;;  %v5850_v56 = vld [vmem:[#allocation15 + $0x728] sm:$0xff] }
0x1f4b   :  { %6693 = vmatprep.subr.bf16.mxu0 %v15409_v57  ;;  %6736 = vmatprep.subr.bf16.mxu1 %v15411_v59  ;;  %v5769_v57 = vld [vmem:[#allocation15 + $0x4a0] sm:$0xff]  ;;  %v5858_v62 = vld [vmem:[#allocation15 + $0x768] sm:$0xff]  ;;  %v15462_v51 = vcombine.low %v5834_v42, %v5842_v4 }
0x1f4c   :  { %v5777_v59 = vld [vmem:[#allocation15 + $0x4e0] sm:$0xff] }
0x1f4d   :  { %v15396_v41 = vcombine.low %v5769_v57, %v5777_v59 }
0x1f4e   :  { %6694 = vmatpush1.bf16.msra.mxu0 %v15408_v22  ;;  %6737 = vmatpush1.bf16.msra.mxu1 %v15410_v3  ;;  %v15397_v22 = vcombine.high %v5769_v57, %v5777_v59  ;;  %v15399_v3 = vcombine.high %v5770_v20, %v5778_v61  ;;  %v5866_v57 = vld [vmem:[#allocation15 + $0x7a8] sm:$0xff]  ;;  %v15478_v61 = vcombine.low %v5850_v56, %v5858_v62 }
0x1f4f   :  { %6695 = vmatprep.subr.bf16.mxu0 %v15425_v6  ;;  %6738 = vmatprep.subr.bf16.mxu1 %v15427_v7  ;;  %v5785_v6 = vld [vmem:[#allocation15 + $0x520] sm:$0xff]  ;;  %v5874_v59 = vld [vmem:[#allocation15 + $0x7e8] sm:$0xff] }
0x1f50   :  { %v5793_v7 = vld [vmem:[#allocation15 + $0x560] sm:$0xff] }
0x1f51   :  { %v15412_v55 = vcombine.low %v5785_v6, %v5793_v7 }
0x1f52   :  { %6696 = vmatpush1.bf16.msra.mxu0 %v15424_v25  ;;  %6739 = vmatpush1.bf16.msra.mxu1 %v15426_v48  ;;  %v15413_v25 = vcombine.high %v5785_v6, %v5793_v7  ;;  %v15415_v48 = vcombine.high %v5786_v15, %v5794_v40  ;;  %v5756_v6 = vld [vmem:[#allocation15 + $0x438] sm:$0xff]  ;;  %v15494_v40 = vcombine.low %v5866_v57, %v5874_v59 }
0x1f53   :  { %6697 = vmatprep.subr.bf16.mxu0 %v15441_v27  ;;  %6740 = vmatprep.subr.bf16.mxu1 %v15443_v28  ;;  %v5801_v27 = vld [vmem:[#allocation15 + $0x5a0] sm:$0xff]  ;;  %v5764_v7 = vld [vmem:[#allocation15 + $0x478] sm:$0xff] }
0x1f54   :  { %v5809_v28 = vld [vmem:[#allocation15 + $0x5e0] sm:$0xff] }
0x1f55   :  { %v15428_v36 = vcombine.low %v5801_v27, %v5809_v28 }
0x1f56   :  { %6698 = vmatpush1.bf16.msra.mxu0 %v15440_v1  ;;  %6741 = vmatpush1.bf16.msra.mxu1 %v15442_v11  ;;  %v15429_v1 = vcombine.high %v5801_v27, %v5809_v28  ;;  %v15431_v11 = vcombine.high %v5802_v29, %v5810_v2  ;;  %v5772_v27 = vld [vmem:[#allocation15 + $0x4b8] sm:$0xff]  ;;  %v15386_v2 = vcombine.low %v5756_v6, %v5764_v7 }
0x1f57   :  { %6699 = vmatprep.subr.bf16.mxu0 %v15457_v32  ;;  %6742 = vmatprep.subr.bf16.mxu1 %v15459_v33  ;;  %v5817_v32 = vld [vmem:[#allocation15 + $0x620] sm:$0xff]  ;;  %v5780_v28 = vld [vmem:[#allocation15 + $0x4f8] sm:$0xff] }
0x1f58   :  { %v5825_v33 = vld [vmem:[#allocation15 + $0x660] sm:$0xff] }
0x1f59   :  { %v15444_v45 = vcombine.low %v5817_v32, %v5825_v33 }
0x1f5a   :  { %6700 = vmatpush1.bf16.msra.mxu0 %v15456_v37  ;;  %6743 = vmatpush1.bf16.msra.mxu1 %v15458_v58  ;;  %v15445_v37 = vcombine.high %v5817_v32, %v5825_v33  ;;  %v15447_v58 = vcombine.high %v5818_v34, %v5826_v35  ;;  %v5788_v32 = vld [vmem:[#allocation15 + $0x538] sm:$0xff]  ;;  %v15402_v35 = vcombine.low %v5772_v27, %v5780_v28 }
0x1f5b   :  { %6701 = vmatprep.subr.bf16.mxu0 %v15473_v38  ;;  %6744 = vmatprep.subr.bf16.mxu1 %v15475_v39  ;;  %v5833_v38 = vld [vmem:[#allocation15 + $0x6a0] sm:$0xff]  ;;  %v5796_v33 = vld [vmem:[#allocation15 + $0x578] sm:$0xff] }
0x1f5c   :  { %v5841_v39 = vld [vmem:[#allocation15 + $0x6e0] sm:$0xff] }
0x1f5d   :  { %v15460_v10 = vcombine.low %v5833_v38, %v5841_v39 }
0x1f5e   :  { %6702 = vmatpush1.bf16.msra.mxu0 %v15472_v24  ;;  %6745 = vmatpush1.bf16.msra.mxu1 %v15474_v26  ;;  %v15461_v24 = vcombine.high %v5833_v38, %v5841_v39  ;;  %v15463_v26 = vcombine.high %v5834_v42, %v5842_v4  ;;  %v5804_v38 = vld [vmem:[#allocation15 + $0x5b8] sm:$0xff]  ;;  %v15418_v4 = vcombine.low %v5788_v32, %v5796_v33 }
0x1f5f   :  { %6703 = vmatprep.subr.bf16.mxu0 %v15489_v5  ;;  %6746 = vmatprep.subr.bf16.mxu1 %v15491_v14  ;;  %v5849_v5 = vld [vmem:[#allocation15 + $0x720] sm:$0xff]  ;;  %v5812_v39 = vld [vmem:[#allocation15 + $0x5f8] sm:$0xff] }
0x1f60   :  { %v5857_v14 = vld [vmem:[#allocation15 + $0x760] sm:$0xff] }
0x1f61   :  { %v15476_v20 = vcombine.low %v5849_v5, %v5857_v14 }
0x1f62   :  { %6704 = vmatpush1.bf16.msra.mxu0 %v15488_v52  ;;  %6747 = vmatpush1.bf16.msra.mxu1 %v15490_v43  ;;  %v15477_v52 = vcombine.high %v5849_v5, %v5857_v14  ;;  %v15479_v43 = vcombine.high %v5850_v56, %v5858_v62  ;;  %v5820_v5 = vld [vmem:[#allocation15 + $0x638] sm:$0xff]  ;;  %v15434_v62 = vcombine.low %v5804_v38, %v5812_v39 }
0x1f63   :  { %6775 = vmatprep.subr.bf16.mxu0 %v15381_v53  ;;  %6818 = vmatprep.subr.bf16.mxu1 %v15383_v54  ;;  %v5865_v53 = vld [vmem:[#allocation15 + $0x7a0] sm:$0xff]  ;;  %v5828_v14 = vld [vmem:[#allocation15 + $0x678] sm:$0xff] }
0x1f64   :  { %v5873_v54 = vld [vmem:[#allocation15 + $0x7e0] sm:$0xff] }
0x1f65   :  { %6722 = vmatmul.mubr.bf16.vlgmr.msra.gmra.mrb[124].mxu0 %v20034_v9  ;;  %6765 = vmatmul.mubr.bf16.vlgmr.msra.gmra.mrb[104].mxu1 %v20034_v9  ;;  %v15492_v15 = vcombine.low %v5865_v53, %v5873_v54 }
0x1f66   :  { %6776 = vmatpush1.bf16.msra.mxu0 %v15380_v60  ;;  %6819 = vmatpush1.bf16.msra.mxu1 %v15382_v21  ;;  %v15493_v60 = vcombine.high %v5865_v53, %v5873_v54  ;;  %v15495_v21 = vcombine.high %v5866_v57, %v5874_v59  ;;  %v5836_v53 = vld [vmem:[#allocation15 + $0x6b8] sm:$0xff]  ;;  %v15450_v59 = vcombine.low %v5820_v5, %v5828_v14 }
0x1f67   :  { %6777 = vmatprep.subr.bf16.mxu0 %v15397_v22  ;;  %6820 = vmatprep.subr.bf16.mxu1 %v15399_v3  ;;  %v5755_v22 = vld [vmem:[#allocation15 + $0x430] sm:$0xff]  ;;  %v5844_v54 = vld [vmem:[#allocation15 + $0x6f8] sm:$0xff] }
0x1f68   :  { %6807 = vmatprep.mubr.bf16.mxu0 %v22031_v30  ;;  %6850 = vmatprep.mubr.bf16.mxu1 %v22031_v30  ;;  %v5763_v3 = vld [vmem:[#allocation15 + $0x470] sm:$0xff] }
0x1f69   :  { %v15384_v29 = vcombine.low %v5755_v22, %v5763_v3 }
0x1f6a   :  { %6778 = vmatpush1.bf16.msra.mxu0 %v15396_v41  ;;  %6821 = vmatpush1.bf16.msra.mxu1 %v15398_v31  ;;  %v15385_v41 = vcombine.high %v5755_v22, %v5763_v3  ;;  %v15387_v31 = vcombine.high %v5756_v6, %v5764_v7  ;;  %v5852_v22 = vld [vmem:[#allocation15 + $0x738] sm:$0xff]  ;;  %v15466_v7 = vcombine.low %v5836_v53, %v5844_v54 }
0x1f6b   :  { %6779 = vmatprep.subr.bf16.mxu0 %v15413_v25  ;;  %6822 = vmatprep.subr.bf16.mxu1 %v15415_v48  ;;  %v5771_v25 = vld [vmem:[#allocation15 + $0x4b0] sm:$0xff]  ;;  %v5860_v3 = vld [vmem:[#allocation15 + $0x778] sm:$0xff] }
0x1f6c   :  { %v5779_v48 = vld [vmem:[#allocation15 + $0x4f0] sm:$0xff] }
0x1f6d   :  { %v15400_v34 = vcombine.low %v5771_v25, %v5779_v48 }
0x1f6e   :  { %6780 = vmatpush1.bf16.msra.mxu0 %v15412_v55  ;;  %6823 = vmatpush1.bf16.msra.mxu1 %v15414_v63  ;;  %v15401_v55 = vcombine.high %v5771_v25, %v5779_v48  ;;  %v15403_v63 = vcombine.high %v5772_v27, %v5780_v28  ;;  %v5868_v25 = vld [vmem:[#allocation15 + $0x7b8] sm:$0xff]  ;;  %v15482_v28 = vcombine.low %v5852_v22, %v5860_v3 }
0x1f6f   :  { %6781 = vmatprep.subr.bf16.mxu0 %v15429_v1  ;;  %6824 = vmatprep.subr.bf16.mxu1 %v15431_v11  ;;  %v5787_v1 = vld [vmem:[#allocation15 + $0x530] sm:$0xff]  ;;  %v5876_v48 = vld [vmem:[#allocation15 + $0x7f8] sm:$0xff] }
0x1f70   :  { %v5795_v11 = vld [vmem:[#allocation15 + $0x570] sm:$0xff] }
0x1f71   :  { %v15416_v42 = vcombine.low %v5787_v1, %v5795_v11 }
0x1f72   :  { %6782 = vmatpush1.bf16.msra.mxu0 %v15428_v36  ;;  %6825 = vmatpush1.bf16.msra.mxu1 %v15430_v17  ;;  %v15417_v36 = vcombine.high %v5787_v1, %v5795_v11  ;;  %v15419_v17 = vcombine.high %v5788_v32, %v5796_v33  ;;  %v17353_v1 = vld [vmem:[#allocation18 + $0x440] sm:$0xff]  }
0x1f73   :  { %6783 = vmatprep.subr.bf16.mxu0 %v15445_v37  ;;  %6826 = vmatprep.subr.bf16.mxu1 %v15447_v58  ;;  %v5803_v37 = vld [vmem:[#allocation15 + $0x5b0] sm:$0xff]  ;;  %v17354_v11 = vld [vmem:[#allocation18 + $0x4c0] sm:$0xff]  }
0x1f74   :  { %v5811_v58 = vld [vmem:[#allocation15 + $0x5f0] sm:$0xff]  ;;  %v17355_v32 = vld [vmem:[#allocation18 + $0x400] sm:$0xff]  }
0x1f75   :  { %v15432_v56 = vcombine.low %v5803_v37, %v5811_v58  ;;  %v17356_v33 = vld [vmem:[#allocation18 + $0x480] sm:$0xff]  }
0x1f76   :  { %6784 = vmatpush1.bf16.msra.mxu0 %v15444_v45  ;;  %6827 = vmatpush1.bf16.msra.mxu1 %v15446_v12  ;;  %v15433_v45 = vcombine.high %v5803_v37, %v5811_v58  ;;  %v15435_v12 = vcombine.high %v5804_v38, %v5812_v39  ;;  %v17361_v37 = vld [vmem:[#allocation18 + $0x450] sm:$0xff]  }
0x1f77   :  { %6785 = vmatprep.subr.bf16.mxu0 %v15461_v24  ;;  %6828 = vmatprep.subr.bf16.mxu1 %v15463_v26  ;;  %v5819_v24 = vld [vmem:[#allocation15 + $0x630] sm:$0xff] }
0x1f78   :  { %v5827_v26 = vld [vmem:[#allocation15 + $0x670] sm:$0xff] }
0x1f79   :  { %v15448_v57 = vcombine.low %v5819_v24, %v5827_v26  ;;  %v17362_v58 = vld [vmem:[#allocation18 + $0x4d0] sm:$0xff]  }
0x1f7a   :  { %6786 = vmatpush1.bf16.msra.mxu0 %v15460_v10  ;;  %6829 = vmatpush1.bf16.msra.mxu1 %v15462_v51  ;;  %v15449_v10 = vcombine.high %v5819_v24, %v5827_v26  ;;  %v15451_v51 = vcombine.high %v5820_v5, %v5828_v14  ;;  %v17363_v38 = vld [vmem:[#allocation18 + $0x410] sm:$0xff]   ;;  %v17370_v24 = vld [vmem:[#allocation18 + $0x4e0] sm:$0xff]   ;;  %v17373_v14 = vld [vmem:[#allocation18 + $0x468] sm:$0xff]  }
0x1f7b   :  { %6787 = vmatprep.subr.bf16.mxu0 %v15477_v52  ;;  %6830 = vmatprep.subr.bf16.mxu1 %v15479_v43  ;;  %v5835_v52 = vld [vmem:[#allocation15 + $0x6b0] sm:$0xff]  ;;  %v17371_v26 = vld [vmem:[#allocation18 + $0x420] sm:$0xff]  }
0x1f7c   :  { %v5843_v43 = vld [vmem:[#allocation15 + $0x6f0] sm:$0xff]  ;;  %v17372_v5 = vld [vmem:[#allocation18 + $0x4a0] sm:$0xff]  }
0x1f7d   :  { %v15464_v6 = vcombine.low %v5835_v52, %v5843_v43  ;;  %v17364_v39 = vld [vmem:[#allocation18 + $0x490] sm:$0xff]  }
0x1f7e   :  { %6788 = vmatpush1.bf16.msra.mxu0 %v15476_v20  ;;  %6831 = vmatpush1.bf16.msra.mxu1 %v15478_v61  ;;  %v15465_v20 = vcombine.high %v5835_v52, %v5843_v43  ;;  %v15467_v61 = vcombine.high %v5836_v53, %v5844_v54  ;;  %v17378_v52 = vld [vmem:[#allocation18 + $0x4f0] sm:$0xff]   ;;  %v17381_v54 = vld [vmem:[#allocation18 + $0x478] sm:$0xff]  }
0x1f7f   :  { %6789 = vmatprep.subr.bf16.mxu0 %v15493_v60  ;;  %6832 = vmatprep.subr.bf16.mxu1 %v15495_v21  ;;  %v5851_v60 = vld [vmem:[#allocation15 + $0x730] sm:$0xff] }
0x1f80   :  { %v5859_v21 = vld [vmem:[#allocation15 + $0x770] sm:$0xff] }
0x1f81   :  { %v15480_v27 = vcombine.low %v5851_v60, %v5859_v21  ;;  %v17379_v43 = vld [vmem:[#allocation18 + $0x430] sm:$0xff]  }
0x1f82   :  { %6790 = vmatpush1.bf16.msra.mxu0 %v15492_v15  ;;  %6833 = vmatpush1.bf16.msra.mxu1 %v15494_v40  ;;  %v15481_v15 = vcombine.high %v5851_v60, %v5859_v21  ;;  %v15483_v40 = vcombine.high %v5852_v22, %v5860_v3  ;;  %v17380_v53 = vld [vmem:[#allocation18 + $0x4b0] sm:$0xff]   ;;  %v17386_v60 = vld [vmem:[#allocation18 + $0x5c0] sm:$0xff]  }
0x1f83   :  { %6861 = vmatprep.subr.bf16.mxu0 %v15385_v41  ;;  %6904 = vmatprep.subr.bf16.mxu1 %v15387_v31  ;;  %v5867_v41 = vld [vmem:[#allocation15 + $0x7b0] sm:$0xff] }
0x1f84   :  { %v5875_v31 = vld [vmem:[#allocation15 + $0x7f0] sm:$0xff] }
0x1f85   :  { %6808 = vmatmul.mubr.bf16.vlgmr.msra.gmra.mrb[128].mxu0 %v20034_v9  ;;  %6851 = vmatmul.mubr.bf16.vlgmr.msra.gmra.mrb[108].mxu1 %v20034_v9  ;;  %v20050_v21 = vld [vmem:[#allocation17 + $0x10] sm:$0xff] }
0x1f86   :  { %6862 = vmatpush1.bf16.msra.mxu0 %v15384_v29  ;;  %6905 = vmatpush1.bf16.msra.mxu1 %v15386_v2  ;;  %v15497_v29 = vcombine.high %v5867_v41, %v5875_v31  ;;  %v15499_v2 = vcombine.high %v5868_v25, %v5876_v48  ;;  %v5886_v22 = vrot.slane %v20050_v21, %v19530_v49 }
0x1f87   :  { %6863 = vmatprep.subr.bf16.mxu0 %v15401_v55  ;;  %6906 = vmatprep.subr.bf16.mxu1 %v15403_v63  ;;  %v15496_v55 = vcombine.low %v5867_v41, %v5875_v31  ;;  %v15498_v63 = vcombine.low %v5868_v25, %v5876_v48  ;;  %v5894_v3 = vrot.slane %v20050_v21, %v19522_v44 }
0x1f88   :  { %6893 = vmatprep.mubr.bf16.mxu0 %v22031_v30  ;;  %6936 = vmatprep.mubr.bf16.mxu1 %v22031_v30 }
0x1f8a   :  { %6864 = vmatpush1.bf16.msra.mxu0 %v15400_v34  ;;  %6907 = vmatpush1.bf16.msra.mxu1 %v15402_v35  ;;  %v17357_v34 = vld [vmem:[#allocation18 + $0x448] sm:$0xff]  }
0x1f8b   :  { %6865 = vmatprep.subr.bf16.mxu0 %v15417_v36  ;;  %6908 = vmatprep.subr.bf16.mxu1 %v15419_v17  ;;  %v17358_v35 = vld [vmem:[#allocation18 + $0x4c8] sm:$0xff]  }
0x1f8c   :  { %v17359_v36 = vld [vmem:[#allocation18 + $0x408] sm:$0xff]  }
0x1f8d   :  { %v17360_v17 = vld [vmem:[#allocation18 + $0x488] sm:$0xff]  }
0x1f8e   :  { %6866 = vmatpush1.bf16.msra.mxu0 %v15416_v42  ;;  %6909 = vmatpush1.bf16.msra.mxu1 %v15418_v4  ;;  %v17365_v42 = vld [vmem:[#allocation18 + $0x458] sm:$0xff]  }
0x1f8f   :  { %6867 = vmatprep.subr.bf16.mxu0 %v15433_v45  ;;  %6910 = vmatprep.subr.bf16.mxu1 %v15435_v12  ;;  %v17366_v4 = vld [vmem:[#allocation18 + $0x4d8] sm:$0xff]   ;;  %v17369_v12 = vld [vmem:[#allocation18 + $0x460] sm:$0xff]  }
0x1f90   :  { %v17367_v45 = vld [vmem:[#allocation18 + $0x418] sm:$0xff]  }
0x1f92   :  { %6868 = vmatpush1.bf16.msra.mxu0 %v15432_v56  ;;  %6911 = vmatpush1.bf16.msra.mxu1 %v15434_v62  ;;  %v17374_v56 = vld [vmem:[#allocation18 + $0x4e8] sm:$0xff]  }
0x1f93   :  { %6869 = vmatprep.subr.bf16.mxu0 %v15449_v10  ;;  %6912 = vmatprep.subr.bf16.mxu1 %v15451_v51  ;;  %v17375_v62 = vld [vmem:[#allocation18 + $0x428] sm:$0xff]   ;;  %v17377_v51 = vld [vmem:[#allocation18 + $0x470] sm:$0xff]  }
0x1f94   :  { %v17376_v10 = vld [vmem:[#allocation18 + $0x4a8] sm:$0xff]  }
0x1f96   :  { %6870 = vmatpush1.bf16.msra.mxu0 %v15448_v57  ;;  %6913 = vmatpush1.bf16.msra.mxu1 %v15450_v59  ;;  %v17382_v57 = vld [vmem:[#allocation18 + $0x4f8] sm:$0xff]  }
0x1f97   :  { %6871 = vmatprep.subr.bf16.mxu0 %v15465_v20  ;;  %6914 = vmatprep.subr.bf16.mxu1 %v15467_v61  ;;  %v17383_v59 = vld [vmem:[#allocation18 + $0x438] sm:$0xff]   ;;  %v17385_v61 = vld [vmem:[#allocation18 + $0x540] sm:$0xff]  }
0x1f98   :  { %v17384_v20 = vld [vmem:[#allocation18 + $0x4b8] sm:$0xff]  }
0x1f9a   :  { %6872 = vmatpush1.bf16.msra.mxu0 %v15464_v6  ;;  %6915 = vmatpush1.bf16.msra.mxu1 %v15466_v7  ;;  %v5890_v6 = vrot.slane %v20050_v21, %v19525_v46  ;;  %v5898_v7 = vrot.slane %v20050_v21, %v19753_v18 }
0x1f9b   :  { %6873 = vmatprep.subr.bf16.mxu0 %v15481_v15  ;;  %6916 = vmatprep.subr.bf16.mxu1 %v15483_v40 }
0x1f9e   :  { %6874 = vmatpush1.bf16.msra.mxu0 %v15480_v27  ;;  %6917 = vmatpush1.bf16.msra.mxu1 %v15482_v28 }
0x1f9f   :  { %6875 = vmatprep.subr.bf16.mxu0 %v15497_v29  ;;  %6918 = vmatprep.subr.bf16.mxu1 %v15499_v2 }
0x1fa2   :  { %6876 = vmatpush1.bf16.msra.mxu0 %v15496_v55  ;;  %6919 = vmatpush1.bf16.msra.mxu1 %v15498_v63 }
0x1fa3   :  { %16564 = vmatprep.subr.bf16.mxu0 %v17353_v1  ;;  %16586 = vmatprep.subr.bf16.mxu1 %v17354_v11 }
0x1fa5   :  { %6894 = vmatmul.mubr.bf16.vlgmr.msra.gmra.mrb[132].mxu0 %v20034_v9  ;;  %6937 = vmatmul.mubr.bf16.vlgmr.msra.gmra.mrb[112].mxu1 %v20034_v9  ;;  %v17368_v9 = vld [vmem:[#allocation18 + $0x498] sm:$0xff]  }
0x1fa6   :  { %16565 = vmatpush3.bf16.msra.mxu0 %v17355_v32  ;;  %16587 = vmatpush3.bf16.msra.mxu1 %v17356_v33 }
0x1fa7   :  { %16566 = vmatprep.subr.bf16.mxu0 %v17357_v34  ;;  %16588 = vmatprep.subr.bf16.mxu1 %v17358_v35 }
0x1faa   :  { %16567 = vmatpush3.bf16.msra.mxu0 %v17359_v36  ;;  %16589 = vmatpush3.bf16.msra.mxu1 %v17360_v17 }
0x1fab   :  { %16568 = vmatprep.subr.bf16.mxu0 %v17361_v37  ;;  %16590 = vmatprep.subr.bf16.mxu1 %v17362_v58 }
0x1fae   :  { %16569 = vmatpush3.bf16.msra.mxu0 %v17363_v38  ;;  %16591 = vmatpush3.bf16.msra.mxu1 %v17364_v39 }
0x1faf   :  { %16570 = vmatprep.subr.bf16.mxu0 %v17365_v42  ;;  %16592 = vmatprep.subr.bf16.mxu1 %v17366_v4 }
0x1fb2   :  { %16571 = vmatpush3.bf16.msra.mxu0 %v17367_v45  ;;  %16593 = vmatpush3.bf16.msra.mxu1 %v17368_v9 }
0x1fb3   :  { %16572 = vmatprep.subr.bf16.mxu0 %v17369_v12  ;;  %16594 = vmatprep.subr.bf16.mxu1 %v17370_v24  ;;  %v17387_v12 = vld [vmem:[#allocation18 + $0x500] sm:$0xff]  }
0x1fb4   :  { %v17388_v24 = vld [vmem:[#allocation18 + $0x580] sm:$0xff]  }
0x1fb6   :  { %16573 = vmatpush3.bf16.msra.mxu0 %v17371_v26  ;;  %16595 = vmatpush3.bf16.msra.mxu1 %v17372_v5  ;;  %v17389_v26 = vld [vmem:[#allocation18 + $0x548] sm:$0xff]  }
0x1fb7   :  { %16574 = vmatprep.subr.bf16.mxu0 %v17373_v14  ;;  %16596 = vmatprep.subr.bf16.mxu1 %v17374_v56  ;;  %v17390_v5 = vld [vmem:[#allocation18 + $0x5c8] sm:$0xff]  }
0x1fb8   :  { %v17391_v14 = vld [vmem:[#allocation18 + $0x508] sm:$0xff]  }
0x1fb9   :  { %v17392_v56 = vld [vmem:[#allocation18 + $0x588] sm:$0xff]  }
0x1fba   :  { %16575 = vmatpush3.bf16.msra.mxu0 %v17375_v62  ;;  %16597 = vmatpush3.bf16.msra.mxu1 %v17376_v10  ;;  %v17393_v62 = vld [vmem:[#allocation18 + $0x550] sm:$0xff]  }
0x1fbb   :  { %16576 = vmatprep.subr.bf16.mxu0 %v17377_v51  ;;  %16598 = vmatprep.subr.bf16.mxu1 %v17378_v52  ;;  %v17394_v10 = vld [vmem:[#allocation18 + $0x5d0] sm:$0xff]  }
0x1fbc   :  { %v17395_v51 = vld [vmem:[#allocation18 + $0x510] sm:$0xff]  }
0x1fbd   :  { %v17396_v52 = vld [vmem:[#allocation18 + $0x590] sm:$0xff]  }
0x1fbe   :  { %16577 = vmatpush3.bf16.msra.mxu0 %v17379_v43  ;;  %16599 = vmatpush3.bf16.msra.mxu1 %v17380_v53  ;;  %v17397_v43 = vld [vmem:[#allocation18 + $0x558] sm:$0xff]  }
0x1fbf   :  { %16578 = vmatprep.subr.bf16.mxu0 %v17381_v54  ;;  %16600 = vmatprep.subr.bf16.mxu1 %v17382_v57  ;;  %v17398_v53 = vld [vmem:[#allocation18 + $0x5d8] sm:$0xff]  }
0x1fc0   :  { %v17399_v54 = vld [vmem:[#allocation18 + $0x518] sm:$0xff]  }
0x1fc1   :  { %v17400_v57 = vld [vmem:[#allocation18 + $0x598] sm:$0xff]  }
0x1fc2   :  { %16579 = vmatpush3.bf16.msra.mxu0 %v17383_v59  ;;  %16601 = vmatpush3.bf16.msra.mxu1 %v17384_v20  ;;  %v17401_v59 = vld [vmem:[#allocation18 + $0x560] sm:$0xff]  }
0x1fc3   :  { %16608 = vmatprep.subr.bf16.mxu0 %v17385_v61  ;;  %16630 = vmatprep.subr.bf16.mxu1 %v17386_v60  ;;  %v17402_v20 = vld [vmem:[#allocation18 + $0x5e0] sm:$0xff]  }
0x1fc4   :  { %v17403_v61 = vld [vmem:[#allocation18 + $0x520] sm:$0xff]  }
0x1fc5   :  { %v17404_v60 = vld [vmem:[#allocation18 + $0x5a0] sm:$0xff]  }
0x2018   :  { %v6637_v15 = vpop.f32.mrb[120].mxu0  ;;  %v6680_v40 = vpop.f32.mrb[100].mxu1 }
0x2019   :  { %v6638_v41 = vadd.f32 %v6637_v15, %v5886_v22  ;;  %v6681_v31 = vadd.f32 %v6680_v40, %v5894_v3  ;;  %v6639_v25 = vpop.f32.mrb[121].mxu0  ;;  %v6682_v48 = vpop.f32.mrb[101].mxu1  ;;  %v5902_v15 = vrot.slane %v20050_v21, %v19764_v16  ;;  %v5910_v40 = vrot.slane %v20050_v21, %v19767_v19 }
0x201a   :  { %v6640_v27 = vadd.f32 %v6639_v25, %v5890_v6  ;;  %v6683_v28 = vadd.f32 %v6682_v48, %v5898_v7  ;;  %v6641_v29 = vpop.f32.mrb[122].mxu0  ;;  %v6684_v2 = vpop.f32.mrb[102].mxu1  ;;  %v5906_v25 = vrot.slane %v20050_v21, %v19770_v47  ;;  %v5914_v48 = vrot.slane %v20050_v21, %v19773_v23 }
0x201b   :  { %v6642_v55 = vadd.f32 %v6641_v29, %v5886_v22  ;;  %v6685_v63 = vadd.f32 %v6684_v2, %v5894_v3  ;;  %v6643_v1 = vpop.f32.mrb[123].mxu0  ;;  %v6686_v11 = vpop.f32.mrb[103].mxu1  ;;  %v6947_v34 = vmax.f32 %v6638_v41, 0.0  ;;  %v6949_v35 = vmax.f32 %v6681_v31, 0.0  ;;  %v17405_v22 = vld [vmem:[#allocation18 + $0x568] sm:$0xff]   ;;  %v17409_v41 = vld [vmem:[#allocation18 + $0x570] sm:$0xff]  }
0x201c   :  { %v6644_v32 = vadd.f32 %v6643_v1, %v5890_v6  ;;  %v6687_v33 = vadd.f32 %v6686_v11, %v5898_v7  ;;  %v6948_v37 = vmax.f32 %v6640_v27, 0.0  ;;  %v6950_v58 = vmax.f32 %v6683_v28, 0.0  ;;  %v17406_v3 = vld [vmem:[#allocation18 + $0x5e8] sm:$0xff]   ;;  %v17410_v31 = vld [vmem:[#allocation18 + $0x5f0] sm:$0xff]  }
0x201d   :  { %v6963_v36 = vmax.f32 %v6642_v55, 0.0  ;;  %v6965_v17 = vmax.f32 %v6685_v63, 0.0  ;;  %v17407_v6 = vld [vmem:[#allocation18 + $0x528] sm:$0xff]   ;;  %v17411_v29 = vld [vmem:[#allocation18 + $0x530] sm:$0xff]  }
0x201e   :  { %v6964_v38 = vmax.f32 %v6644_v32, 0.0  ;;  %v6966_v39 = vmax.f32 %v6687_v33, 0.0  ;;  %v17408_v7 = vld [vmem:[#allocation18 + $0x5a8] sm:$0xff]   ;;  %v17412_v2 = vld [vmem:[#allocation18 + $0x5b0] sm:$0xff]   ;;  %v17413_v32 = vld [vmem:[#allocation18 + $0x578] sm:$0xff]  }
0x201f   :  { %v7238_v42 = vpack.c.bf16 %v6963_v36, %v6947_v34  ;;  %v7240_v4 = vpack.c.bf16 %v6965_v17, %v6949_v35  ;;  %v17414_v33 = vld [vmem:[#allocation18 + $0x5f8] sm:$0xff]  }
0x2020   :  { %v7239_v45 = vpack.c.bf16 %v6964_v38, %v6948_v37  ;;  %v7241_v9 = vpack.c.bf16 %v6966_v39, %v6950_v58 }
0x2022   :  { %8060 = vmatprep.mubr.bf16.mxu0 %v7239_v45  ;;  %8101 = vmatprep.mubr.bf16.mxu1 %v7241_v9  ;;  %v17416_v45 = vld [vmem:[#allocation18 + $0x5b8] sm:$0xff]  }
0x2023   :  { %8061 = vmatmul.mubr.bf16.vlgmr.msra.gmra.mrb[136].mxu0 %v7238_v42  ;;  %8102 = vmatmul.mubr.bf16.vlgmr.msra.gmra.mrb[116].mxu1 %v7240_v4  ;;  %v17415_v4 = vld [vmem:[#allocation18 + $0x538] sm:$0xff]  }
0x2024   :  { %16609 = vmatpush3.bf16.msra.mxu0 %v17387_v12  ;;  %16631 = vmatpush3.bf16.msra.mxu1 %v17388_v24 }
0x2025   :  { %16610 = vmatprep.subr.bf16.mxu0 %v17389_v26  ;;  %16632 = vmatprep.subr.bf16.mxu1 %v17390_v5  ;;  %v17417_v5 = vld [vmem:[#allocation18 + $0x640] sm:$0xff]  }
0x2028   :  { %16611 = vmatpush3.bf16.msra.mxu0 %v17391_v14  ;;  %16633 = vmatpush3.bf16.msra.mxu1 %v17392_v56  ;;  %v17418_v14 = vld [vmem:[#allocation18 + $0x6c0] sm:$0xff]  }
0x2029   :  { %16612 = vmatprep.subr.bf16.mxu0 %v17393_v62  ;;  %16634 = vmatprep.subr.bf16.mxu1 %v17394_v10 }
0x202c   :  { %16613 = vmatpush3.bf16.msra.mxu0 %v17395_v51  ;;  %16635 = vmatpush3.bf16.msra.mxu1 %v17396_v52 }
0x202d   :  { %16614 = vmatprep.subr.bf16.mxu0 %v17397_v43  ;;  %16636 = vmatprep.subr.bf16.mxu1 %v17398_v53 }
0x2030   :  { %16615 = vmatpush3.bf16.msra.mxu0 %v17399_v54  ;;  %16637 = vmatpush3.bf16.msra.mxu1 %v17400_v57  ;;  %v17419_v57 = vld [vmem:[#allocation18 + $0x600] sm:$0xff]  }
0x2031   :  { %16616 = vmatprep.subr.bf16.mxu0 %v17401_v59  ;;  %16638 = vmatprep.subr.bf16.mxu1 %v17402_v20  ;;  %v17420_v59 = vld [vmem:[#allocation18 + $0x680] sm:$0xff]   ;;  %v17421_v20 = vld [vmem:[#allocation18 + $0x648] sm:$0xff]  }
0x2034   :  { %16617 = vmatpush3.bf16.msra.mxu0 %v17403_v61  ;;  %16639 = vmatpush3.bf16.msra.mxu1 %v17404_v60  ;;  %v17422_v61 = vld [vmem:[#allocation18 + $0x6c8] sm:$0xff]  }
0x2035   :  { %16618 = vmatprep.subr.bf16.mxu0 %v17405_v22  ;;  %16640 = vmatprep.subr.bf16.mxu1 %v17406_v3  ;;  %v17423_v60 = vld [vmem:[#allocation18 + $0x608] sm:$0xff]   ;;  %v17425_v3 = vld [vmem:[#allocation18 + $0x650] sm:$0xff]  }
0x2036   :  { %v17424_v22 = vld [vmem:[#allocation18 + $0x688] sm:$0xff]  }
0x2038   :  { %v6723_v27 = vpop.f32.mrb[124].mxu0  ;;  %v6766_v28 = vpop.f32.mrb[104].mxu1  ;;  %16619 = vmatpush3.bf16.msra.mxu0 %v17407_v6  ;;  %16641 = vmatpush3.bf16.msra.mxu1 %v17408_v7  ;;  %v17426_v6 = vld [vmem:[#allocation18 + $0x6d0] sm:$0xff]  }
0x2039   :  { %v6724_v55 = vadd.f32 %v6723_v27, %v5902_v15  ;;  %v6767_v63 = vadd.f32 %v6766_v28, %v5910_v40  ;;  %v6725_v1 = vpop.f32.mrb[125].mxu0  ;;  %v6768_v11 = vpop.f32.mrb[105].mxu1  ;;  %16620 = vmatprep.subr.bf16.mxu0 %v17409_v41  ;;  %16642 = vmatprep.subr.bf16.mxu1 %v17410_v31  ;;  %v17427_v7 = vld [vmem:[#allocation18 + $0x610] sm:$0xff]   ;;  %v17430_v41 = vld [vmem:[#allocation18 + $0x6d8] sm:$0xff]   ;;  %v17434_v27 = vld [vmem:[#allocation18 + $0x6e0] sm:$0xff]  }
0x203a   :  { %v6726_v34 = vadd.f32 %v6725_v1, %v5906_v25  ;;  %v6769_v35 = vadd.f32 %v6768_v11, %v5914_v48  ;;  %v6727_v36 = vpop.f32.mrb[126].mxu0  ;;  %v6770_v17 = vpop.f32.mrb[106].mxu1  ;;  %v17431_v31 = vld [vmem:[#allocation18 + $0x618] sm:$0xff]   ;;  %v17435_v28 = vld [vmem:[#allocation18 + $0x620] sm:$0xff]   ;;  %v17439_v1 = vld [vmem:[#allocation18 + $0x628] sm:$0xff]  }
0x203b   :  { %v6728_v37 = vadd.f32 %v6727_v36, %v5902_v15  ;;  %v6771_v21 = vadd.f32 %v6770_v17, %v5910_v40  ;;  %v6729_v58 = vpop.f32.mrb[127].mxu0  ;;  %v6772_v38 = vpop.f32.mrb[107].mxu1  ;;  %v6951_v9 = vmax.f32 %v6724_v55, 0.0  ;;  %v6953_v12 = vmax.f32 %v6767_v63, 0.0  ;;  %v17428_v15 = vld [vmem:[#allocation18 + $0x690] sm:$0xff]   ;;  %v17429_v40 = vld [vmem:[#allocation18 + $0x658] sm:$0xff]  }
0x203c   :  { %v6730_v39 = vadd.f32 %v6729_v58, %v5906_v25  ;;  %v6773_v42 = vadd.f32 %v6772_v38, %v5914_v48  ;;  %16621 = vmatpush3.bf16.msra.mxu0 %v17411_v29  ;;  %16643 = vmatpush3.bf16.msra.mxu1 %v17412_v2  ;;  %v6952_v56 = vmax.f32 %v6726_v34, 0.0  ;;  %v6954_v62 = vmax.f32 %v6769_v35, 0.0  ;;  %v17432_v25 = vld [vmem:[#allocation18 + $0x698] sm:$0xff]   ;;  %v17433_v48 = vld [vmem:[#allocation18 + $0x660] sm:$0xff]   ;;  %v17437_v2 = vld [vmem:[#allocation18 + $0x668] sm:$0xff]  }
0x203d   :  { %v6967_v24 = vmax.f32 %v6728_v37, 0.0  ;;  %v6969_v26 = vmax.f32 %v6771_v21, 0.0  ;;  %16622 = vmatprep.subr.bf16.mxu0 %v17413_v32  ;;  %16644 = vmatprep.subr.bf16.mxu1 %v17414_v33  ;;  %v17436_v29 = vld [vmem:[#allocation18 + $0x6a0] sm:$0xff]   ;;  %v17438_v55 = vld [vmem:[#allocation18 + $0x6e8] sm:$0xff]   ;;  %v20068_v63 = vld [vmem:[#allocation17 + $0x18] sm:$0xff] }
0x203e   :  { %v6968_v10 = vmax.f32 %v6730_v39, 0.0  ;;  %v6970_v51 = vmax.f32 %v6773_v42, 0.0  ;;  %v17440_v11 = vld [vmem:[#allocation18 + $0x6a8] sm:$0xff]   ;;  %v5918_v32 = vrot.slane %v20068_v63, %v19530_v49  ;;  %v5926_v33 = vrot.slane %v20068_v63, %v19522_v44  ;;  %v17441_v34 = vld [vmem:[#allocation18 + $0x670] sm:$0xff]  }
0x203f   :  { %v7242_v52 = vpack.c.bf16 %v6967_v24, %v6951_v9  ;;  %v7244_v43 = vpack.c.bf16 %v6969_v26, %v6953_v12  ;;  %v17442_v35 = vld [vmem:[#allocation18 + $0x6f0] sm:$0xff]   ;;  %v5922_v36 = vrot.slane %v20068_v63, %v19525_v46  ;;  %v5930_v17 = vrot.slane %v20068_v63, %v19753_v18  ;;  %v17445_v9 = vld [vmem:[#allocation18 + $0x678] sm:$0xff]  }
0x2040   :  { %v7243_v53 = vpack.c.bf16 %v6968_v10, %v6952_v56  ;;  %v7245_v54 = vpack.c.bf16 %v6970_v51, %v6954_v62  ;;  %16623 = vmatpush3.bf16.msra.mxu0 %v17415_v4  ;;  %16645 = vmatpush3.bf16.msra.mxu1 %v17416_v45  ;;  %v17443_v58 = vld [vmem:[#allocation18 + $0x630] sm:$0xff]   ;;  %v17446_v12 = vld [vmem:[#allocation18 + $0x6f8] sm:$0xff]  }
0x2041   :  { %16652 = vmatprep.subr.bf16.mxu0 %v17417_v5  ;;  %16674 = vmatprep.subr.bf16.mxu1 %v17418_v14  ;;  %v17444_v38 = vld [vmem:[#allocation18 + $0x6b0] sm:$0xff]  }
0x2042   :  { %8142 = vmatprep.mubr.bf16.mxu0 %v7243_v53  ;;  %8183 = vmatprep.mubr.bf16.mxu1 %v7245_v54  ;;  %v17447_v53 = vld [vmem:[#allocation18 + $0x638] sm:$0xff]  }
0x2043   :  { %8143 = vmatmul.mubr.bf16.vlgmr.msra.gmra.mrb[140].mxu0 %v7242_v52  ;;  %8184 = vmatmul.mubr.bf16.vlgmr.msra.gmra.mrb[120].mxu1 %v7244_v43  ;;  %v17448_v54 = vld [vmem:[#allocation18 + $0x6b8] sm:$0xff]  }
0x2044   :  { %16653 = vmatpush3.bf16.msra.mxu0 %v17419_v57  ;;  %16675 = vmatpush3.bf16.msra.mxu1 %v17420_v59 }
0x2045   :  { %16654 = vmatprep.subr.bf16.mxu0 %v17421_v20  ;;  %16676 = vmatprep.subr.bf16.mxu1 %v17422_v61 }
0x2048   :  { %16655 = vmatpush3.bf16.msra.mxu0 %v17423_v60  ;;  %16677 = vmatpush3.bf16.msra.mxu1 %v17424_v22  ;;  %v17449_v60 = vld [vmem:[#allocation18 + $0x740] sm:$0xff]  }
0x2049   :  { %16656 = vmatprep.subr.bf16.mxu0 %v17425_v3  ;;  %16678 = vmatprep.subr.bf16.mxu1 %v17426_v6  ;;  %v17450_v22 = vld [vmem:[#allocation18 + $0x7c0] sm:$0xff]  }
0x204c   :  { %16657 = vmatpush3.bf16.msra.mxu0 %v17427_v7  ;;  %16679 = vmatpush3.bf16.msra.mxu1 %v17428_v15 }
0x204d   :  { %16658 = vmatprep.subr.bf16.mxu0 %v17429_v40  ;;  %16680 = vmatprep.subr.bf16.mxu1 %v17430_v41 }
0x2050   :  { %16659 = vmatpush3.bf16.msra.mxu0 %v17431_v31  ;;  %16681 = vmatpush3.bf16.msra.mxu1 %v17432_v25 }
0x2051   :  { %16660 = vmatprep.subr.bf16.mxu0 %v17433_v48  ;;  %16682 = vmatprep.subr.bf16.mxu1 %v17434_v27  ;;  %v17451_v48 = vld [vmem:[#allocation18 + $0x700] sm:$0xff]  }
0x2052   :  { %v17452_v27 = vld [vmem:[#allocation18 + $0x780] sm:$0xff]  }
0x2054   :  { %16661 = vmatpush3.bf16.msra.mxu0 %v17435_v28  ;;  %16683 = vmatpush3.bf16.msra.mxu1 %v17436_v29  ;;  %v17453_v28 = vld [vmem:[#allocation18 + $0x748] sm:$0xff]  }
0x2055   :  { %16662 = vmatprep.subr.bf16.mxu0 %v17437_v2  ;;  %16684 = vmatprep.subr.bf16.mxu1 %v17438_v55  ;;  %v17454_v29 = vld [vmem:[#allocation18 + $0x7c8] sm:$0xff]  }
0x2056   :  { %v17455_v2 = vld [vmem:[#allocation18 + $0x708] sm:$0xff]  }
0x2057   :  { %v17456_v55 = vld [vmem:[#allocation18 + $0x788] sm:$0xff]  }
0x2058   :  { %v6809_v37 = vpop.f32.mrb[128].mxu0  ;;  %v6852_v21 = vpop.f32.mrb[108].mxu1  ;;  %16663 = vmatpush3.bf16.msra.mxu0 %v17439_v1  ;;  %16685 = vmatpush3.bf16.msra.mxu1 %v17440_v11  ;;  %v17457_v1 = vld [vmem:[#allocation18 + $0x750] sm:$0xff]  }
0x2059   :  { %v6810_v39 = vadd.f32 %v6809_v37, %v5918_v32  ;;  %v6853_v42 = vadd.f32 %v6852_v21, %v5926_v33  ;;  %v6811_v4 = vpop.f32.mrb[129].mxu0  ;;  %v6854_v45 = vpop.f32.mrb[109].mxu1  ;;  %16664 = vmatprep.subr.bf16.mxu0 %v17441_v34  ;;  %16686 = vmatprep.subr.bf16.mxu1 %v17442_v35  ;;  %v17458_v11 = vld [vmem:[#allocation18 + $0x7d0] sm:$0xff]   ;;  %v17461_v34 = vld [vmem:[#allocation18 + $0x758] sm:$0xff]   ;;  %v17465_v37 = vld [vmem:[#allocation18 + $0x760] sm:$0xff]  }
0x205a   :  { %v6812_v24 = vadd.f32 %v6811_v4, %v5922_v36  ;;  %v6855_v26 = vadd.f32 %v6854_v45, %v5930_v17  ;;  %v6813_v5 = vpop.f32.mrb[130].mxu0  ;;  %v6856_v14 = vpop.f32.mrb[110].mxu1  ;;  %v17462_v35 = vld [vmem:[#allocation18 + $0x7d8] sm:$0xff]   ;;  %v17466_v21 = vld [vmem:[#allocation18 + $0x7e0] sm:$0xff]   ;;  %v17471_v4 = vld [vmem:[#allocation18 + $0x728] sm:$0xff]  }
0x205b   :  { %v6814_v56 = vadd.f32 %v6813_v5, %v5918_v32  ;;  %v6857_v62 = vadd.f32 %v6856_v14, %v5926_v33  ;;  %v6815_v10 = vpop.f32.mrb[131].mxu0  ;;  %v6858_v51 = vpop.f32.mrb[111].mxu1  ;;  %v6955_v57 = vmax.f32 %v6810_v39, 0.0  ;;  %v6957_v59 = vmax.f32 %v6853_v42, 0.0  ;;  %v17459_v32 = vld [vmem:[#allocation18 + $0x710] sm:$0xff]   ;;  %v17469_v39 = vld [vmem:[#allocation18 + $0x768] sm:$0xff]  }
0x205c   :  { %v6816_v52 = vadd.f32 %v6815_v10, %v5922_v36  ;;  %v6859_v43 = vadd.f32 %v6858_v51, %v5930_v17  ;;  %16665 = vmatpush3.bf16.msra.mxu0 %v17443_v58  ;;  %16687 = vmatpush3.bf16.msra.mxu1 %v17444_v38  ;;  %v6956_v3 = vmax.f32 %v6812_v24, 0.0  ;;  %v6958_v6 = vmax.f32 %v6855_v26, 0.0  ;;  %v17460_v33 = vld [vmem:[#allocation18 + $0x790] sm:$0xff]   ;;  %v17463_v36 = vld [vmem:[#allocation18 + $0x718] sm:$0xff]   ;;  %v17467_v58 = vld [vmem:[#allocation18 + $0x720] sm:$0xff]  }
0x205d   :  { %v6971_v20 = vmax.f32 %v6814_v56, 0.0  ;;  %v6973_v61 = vmax.f32 %v6857_v62, 0.0  ;;  %16666 = vmatprep.subr.bf16.mxu0 %v17445_v9  ;;  %16688 = vmatprep.subr.bf16.mxu1 %v17446_v12  ;;  %v17464_v17 = vld [vmem:[#allocation18 + $0x798] sm:$0xff]   ;;  %v17468_v38 = vld [vmem:[#allocation18 + $0x7a0] sm:$0xff]   ;;  %v17470_v42 = vld [vmem:[#allocation18 + $0x7e8] sm:$0xff]   ;;  %v5934_v9 = vrot.slane %v20068_v63, %v19764_v16  ;;  %v5942_v12 = vrot.slane %v20068_v63, %v19767_v19 }
0x205e   :  { %v6972_v7 = vmax.f32 %v6816_v52, 0.0  ;;  %v6974_v15 = vmax.f32 %v6859_v43, 0.0  ;;  %v17472_v45 = vld [vmem:[#allocation18 + $0x7a8] sm:$0xff]   ;;  %v17473_v24 = vld [vmem:[#allocation18 + $0x770] sm:$0xff]   ;;  %v5938_v5 = vrot.slane %v20068_v63, %v19770_v47  ;;  %v5946_v14 = vrot.slane %v20068_v63, %v19773_v23  ;;  %v17477_v19 = vld [vmem:[#allocation18 + $0x778] sm:$0xff]  }
0x205f   :  { %v7246_v40 = vpack.c.bf16 %v6971_v20, %v6955_v57  ;;  %v7248_v41 = vpack.c.bf16 %v6973_v61, %v6957_v59  ;;  %v17474_v26 = vld [vmem:[#allocation18 + $0x7f0] sm:$0xff]  }
0x2060   :  { %v7247_v31 = vpack.c.bf16 %v6972_v7, %v6956_v3  ;;  %v7249_v25 = vpack.c.bf16 %v6974_v15, %v6958_v6  ;;  %16667 = vmatpush3.bf16.msra.mxu0 %v17447_v53  ;;  %16689 = vmatpush3.bf16.msra.mxu1 %v17448_v54  ;;  %v17475_v10 = vld [vmem:[#allocation18 + $0x730] sm:$0xff]   ;;  %v17478_v54 = vld [vmem:[#allocation18 + $0x7f8] sm:$0xff]  }
0x2061   :  { %16696 = vmatprep.subr.bf16.mxu0 %v17449_v60  ;;  %16718 = vmatprep.subr.bf16.mxu1 %v17450_v22  ;;  %v17476_v51 = vld [vmem:[#allocation18 + $0x7b0] sm:$0xff]   ;;  %v17479_v6 = vld [vmem:[#allocation18 + $0x738] sm:$0xff]  }
0x2062   :  { %8224 = vmatprep.mubr.bf16.mxu0 %v7247_v31  ;;  %8265 = vmatprep.mubr.bf16.mxu1 %v7249_v25  ;;  %v17480_v7 = vld [vmem:[#allocation18 + $0x7b8] sm:$0xff]  }
0x2063   :  { %8225 = vmatmul.mubr.bf16.vlgmr.msra.gmra.mrb[144].mxu0 %v7246_v40  ;;  %8266 = vmatmul.mubr.bf16.vlgmr.msra.gmra.mrb[124].mxu1 %v7248_v41 }
0x2064   :  { %16697 = vmatpush3.bf16.msra.mxu0 %v17451_v48  ;;  %16719 = vmatpush3.bf16.msra.mxu1 %v17452_v27 }
0x2065   :  { %16698 = vmatprep.subr.bf16.mxu0 %v17453_v28  ;;  %16720 = vmatprep.subr.bf16.mxu1 %v17454_v29 }
0x2068   :  { %16699 = vmatpush3.bf16.msra.mxu0 %v17455_v2  ;;  %16721 = vmatpush3.bf16.msra.mxu1 %v17456_v55 }
0x2069   :  { %16700 = vmatprep.subr.bf16.mxu0 %v17457_v1  ;;  %16722 = vmatprep.subr.bf16.mxu1 %v17458_v11 }
0x206c   :  { %16701 = vmatpush3.bf16.msra.mxu0 %v17459_v32  ;;  %16723 = vmatpush3.bf16.msra.mxu1 %v17460_v33  ;;  %v15500_v33 = vld [vmem:[#allocation20 + $0x1] ss:$0 sm:$0xff] }
0x206d   :  { %16702 = vmatprep.subr.bf16.mxu0 %v17461_v34  ;;  %16724 = vmatprep.subr.bf16.mxu1 %v17462_v35 }
0x2070   :  { %16703 = vmatpush3.bf16.msra.mxu0 %v17463_v36  ;;  %16725 = vmatpush3.bf16.msra.mxu1 %v17464_v17 }
0x2071   :  { %16704 = vmatprep.subr.bf16.mxu0 %v17465_v37  ;;  %16726 = vmatprep.subr.bf16.mxu1 %v17466_v21 }
0x2074   :  { %16705 = vmatpush3.bf16.msra.mxu0 %v17467_v58  ;;  %16727 = vmatpush3.bf16.msra.mxu1 %v17468_v38 }
0x2075   :  { %16706 = vmatprep.subr.bf16.mxu0 %v17469_v39  ;;  %16728 = vmatprep.subr.bf16.mxu1 %v17470_v42 }
0x2078   :  { %v6895_v56 = vpop.f32.mrb[132].mxu0  ;;  %v6938_v62 = vpop.f32.mrb[112].mxu1  ;;  %16707 = vmatpush3.bf16.msra.mxu0 %v17471_v4  ;;  %16729 = vmatpush3.bf16.msra.mxu1 %v17472_v45 }
0x2079   :  { %v6896_v52 = vadd.f32 %v6895_v56, %v5934_v9  ;;  %v6939_v43 = vadd.f32 %v6938_v62, %v5942_v12  ;;  %v6897_v16 = vpop.f32.mrb[133].mxu0  ;;  %v6940_v53 = vpop.f32.mrb[113].mxu1  ;;  %16708 = vmatprep.subr.bf16.mxu0 %v17473_v24  ;;  %16730 = vmatprep.subr.bf16.mxu1 %v17474_v26 }
0x207a   :  { %v6898_v57 = vadd.f32 %v6897_v16, %v5938_v5  ;;  %v6941_v59 = vadd.f32 %v6940_v53, %v5946_v14  ;;  %v6899_v47 = vpop.f32.mrb[134].mxu0  ;;  %v6942_v20 = vpop.f32.mrb[114].mxu1 }
0x207b   :  { %v6900_v61 = vadd.f32 %v6899_v47, %v5934_v9  ;;  %v6943_v23 = vadd.f32 %v6942_v20, %v5942_v12  ;;  %v6901_v63 = vpop.f32.mrb[135].mxu0  ;;  %v6944_v60 = vpop.f32.mrb[115].mxu1  ;;  %v6959_v15 = vmax.f32 %v6896_v52, 0.0  ;;  %v6961_v40 = vmax.f32 %v6939_v43, 0.0 }
0x207c   :  { %v6902_v22 = vadd.f32 %v6901_v63, %v5938_v5  ;;  %v6945_v3 = vadd.f32 %v6944_v60, %v5946_v14  ;;  %16709 = vmatpush3.bf16.msra.mxu0 %v17475_v10  ;;  %16731 = vmatpush3.bf16.msra.mxu1 %v17476_v51  ;;  %v6960_v25 = vmax.f32 %v6898_v57, 0.0  ;;  %v6962_v48 = vmax.f32 %v6941_v59, 0.0 }
0x207d   :  { %v6975_v41 = vmax.f32 %v6900_v61, 0.0  ;;  %v6977_v31 = vmax.f32 %v6943_v23, 0.0  ;;  %16710 = vmatprep.subr.bf16.mxu0 %v17477_v19  ;;  %16732 = vmatprep.subr.bf16.mxu1 %v17478_v54 }
0x207e   :  { %v6976_v27 = vmax.f32 %v6902_v22, 0.0  ;;  %v6978_v28 = vmax.f32 %v6945_v3, 0.0 }
0x207f   :  { %v7250_v29 = vpack.c.bf16 %v6975_v41, %v6959_v15  ;;  %v7252_v2 = vpack.c.bf16 %v6977_v31, %v6961_v40 }
0x2080   :  { %v7251_v55 = vpack.c.bf16 %v6976_v27, %v6960_v25  ;;  %v7253_v1 = vpack.c.bf16 %v6978_v28, %v6962_v48  ;;  %16711 = vmatpush3.bf16.msra.mxu0 %v17479_v6  ;;  %16733 = vmatpush3.bf16.msra.mxu1 %v17480_v7 }
0x2081   :  { %17051 = vmatprep.subr.bf16.mxu0 %v19048_v0 }
0x2082   :  { %8306 = vmatprep.mubr.bf16.mxu0 %v7251_v55  ;;  %8347 = vmatprep.mubr.bf16.mxu1 %v7253_v1 }
0x2083   :  { %8307 = vmatmul.mubr.bf16.vlgmr.msra.gmra.mrb[148].mxu0 %v7250_v29  ;;  %8348 = vmatmul.mubr.bf16.vlgmr.msra.gmra.mrb[128].mxu1 %v7252_v2 }
0x2084   :  { %8615 = vmatprep.mubr.bf16.mxu1 %v22031_v30  ;;  %17067 = vmatprep.mubr.msk.bf16.mxu0 %vm19049_vm0, %v19048_v0 }
0x20f6   :  { %v16580_v11 = vpop.f32.mrb[136].mxu0  ;;  %v16602_v32 = vpop.f32.mrb[116].mxu1 }
0x20f7   :  { %v16581_v34 = vpop.f32.mrb[137].mxu0  ;;  %v16603_v35 = vpop.f32.mrb[117].mxu1 }
0x20f8   :  { %v16582_v36 = vadd.f32 %v16581_v34, %v16580_v11  ;;  %v16604_v17 = vadd.f32 %v16603_v35, %v16602_v32  ;;  %v16583_v37 = vpop.f32.mrb[138].mxu0  ;;  %v16605_v21 = vpop.f32.mrb[118].mxu1 }
0x20f9   :  { %v16584_v58 = vpop.f32.mrb[139].mxu0  ;;  %v16606_v38 = vpop.f32.mrb[119].mxu1 }
0x20fa   :  { %v8063_v39 = vadd.f32 %v16582_v36, %v15500_v33  ;;  %v16585_v42 = vadd.f32 %v16584_v58, %v16583_v37  ;;  %v16607_v4 = vadd.f32 %v16606_v38, %v16605_v21 }
0x20fc   :  { %v8104_v45 = vadd.f32 %v16604_v17, %v8063_v39  ;;  %v8066_v9 = vadd.f32 %v16585_v42, %v15500_v33  ;;  %v17481_v42 = vld [vmem:[%s22003_s18] ss:$16 sps:$4 sm:$0xff]  }
0x20fe   :  { %v8107_v12 = vadd.f32 %v16607_v4, %v8066_v9  ;;  %v17483_v4 = vld [vmem:[%s22003_s18 + $0x4] ss:$16 sps:$4 sm:$0xff]   ;;  %v17487_v9 = vld [vmem:[#allocation27] ss:$16 sps:$4 sm:$0xff]  }
0x20ff   :  { %8583 = vmatprep.subr.bf16.mxu1 %v17483_v4  ;;  %v17551_v4 = vld [vmem:[%s22003_s18 + $0xc] ss:$16 sps:$4 sm:$0xff]  }
0x2100   :  { %8584 = vmatpush1.bf16.msra.mxu1 %v17481_v42  ;;  %v17546_v42 = vld [vmem:[#allocation30 + $0xe0] ss:$16 sps:$4 sm:$0xff]  }
0x2116   :  { %v16624_v24 = vpop.f32.mrb[140].mxu0  ;;  %v16646_v26 = vpop.f32.mrb[120].mxu1 }
0x2117   :  { %v16625_v5 = vpop.f32.mrb[141].mxu0  ;;  %v16647_v14 = vpop.f32.mrb[121].mxu1 }
0x2118   :  { %v16626_v56 = vadd.f32 %v16625_v5, %v16624_v24  ;;  %v16648_v62 = vadd.f32 %v16647_v14, %v16646_v26  ;;  %v16627_v10 = vpop.f32.mrb[142].mxu0  ;;  %v16649_v51 = vpop.f32.mrb[122].mxu1  ;;  %v17517_v24 = vld [vmem:[%s22001_s16] sm:$0xff]   ;;  %v17521_v26 = vld [vmem:[%s22001_s16 + $0x8] sm:$0xff]  }
0x2119   :  { %v16628_v52 = vpop.f32.mrb[143].mxu0  ;;  %v16650_v43 = vpop.f32.mrb[123].mxu1  ;;  %17052 = vmatpush3.bf16.msra.mxu0 %v17517_v24  ;;  %v17490_v5 = vld [vmem:[#allocation27 + $0x20] ss:$16 sps:$4 sm:$0xff]   ;;  %v20122_v14 = vld [vmem:[%s22005_s20 + $0x4] ss:$16 sps:$4 sm:$0xff]  }
0x211a   :  { %v8145_v16 = vadd.f32 %v16626_v56, %v8104_v45  ;;  %v16629_v53 = vadd.f32 %v16628_v52, %v16627_v10  ;;  %v16651_v19 = vadd.f32 %v16650_v43, %v16649_v51  ;;  %v17489_v45 = vld [vmem:[#allocation27 + $0x4] ss:$16 sps:$4 sm:$0xff]   ;;  %17053 = vmatprep.subr.bf16.mxu0 %v19048_v0  ;;  %v20128_v56 = vld [vmem:[%s22005_s20] ss:$16 sps:$4 sm:$0xff]   ;;  %v20150_v51 = vld [vmem:[%s22005_s20 + $0x44] ss:$16 sps:$4 sm:$0xff]  }
0x211b   :  { %v20143_v10 = vld [vmem:[%s22005_s20 + $0x20] ss:$16 sps:$4 sm:$0xff]   ;;  %v20162_v43 = vld [vmem:[%s22005_s20 + $0x64] ss:$16 sps:$4 sm:$0xff]  }
0x211c   :  { %v8186_v54 = vadd.f32 %v16648_v62, %v8145_v16  ;;  %v8148_v57 = vadd.f32 %v16629_v53, %v8107_v12  ;;  %v17492_v12 = vld [vmem:[#allocation27 + $0x24] ss:$16 sps:$4 sm:$0xff]   ;;  %v20135_v62 = vld [vmem:[%s22005_s20 + $0x24] ss:$16 sps:$4 sm:$0xff]   ;;  %v20156_v52 = vld [vmem:[%s22005_s20 + $0x40] ss:$16 sps:$4 sm:$0xff]  }
0x211d   :  { %17054 = vmatpush3.bf16.msra.mxu0 %v17521_v26  ;;  %v20168_v16 = vld [vmem:[%s22005_s20 + $0x60] ss:$16 sps:$4 sm:$0xff]   ;;  %v20174_v53 = vld [vmem:[%s22005_s20 + $0x84] ss:$16 sps:$4 sm:$0xff]  }
0x211e   :  { %v8189_v59 = vadd.f32 %v16651_v19, %v8148_v57  ;;  %17055 = vmatprep.subr.bf16.mxu0 %v19048_v0  ;;  %v20180_v19 = vld [vmem:[%s22005_s20 + $0x80] ss:$16 sps:$4 sm:$0xff]  }
0x211f   :  { %v20192_v57 = vld [vmem:[%s22005_s20 + $0xa0] ss:$16 sps:$4 sm:$0xff]  }
0x2136   :  { %v16668_v47 = vpop.f32.mrb[144].mxu0  ;;  %v16690_v20 = vpop.f32.mrb[124].mxu1 }
0x2137   :  { %v16669_v61 = vpop.f32.mrb[145].mxu0  ;;  %v16691_v23 = vpop.f32.mrb[125].mxu1 }
0x2138   :  { %v16670_v63 = vadd.f32 %v16669_v61, %v16668_v47  ;;  %v16692_v60 = vadd.f32 %v16691_v23, %v16690_v20  ;;  %v16671_v22 = vpop.f32.mrb[146].mxu0  ;;  %v16693_v3 = vpop.f32.mrb[126].mxu1  ;;  %v20204_v47 = vld [vmem:[%s22005_s20 + $0xc0] ss:$16 sps:$4 sm:$0xff]   ;;  %v20210_v20 = vld [vmem:[%s22005_s20 + $0xe4] ss:$16 sps:$4 sm:$0xff]  }
0x2139   :  { %v16672_v6 = vpop.f32.mrb[147].mxu0  ;;  %v16694_v7 = vpop.f32.mrb[127].mxu1  ;;  %v20216_v61 = vld [vmem:[%s22005_s20 + $0xe0] ss:$16 sps:$4 sm:$0xff]  }
0x213a   :  { %v8227_v15 = vadd.f32 %v16670_v63, %v8186_v54  ;;  %v16673_v40 = vadd.f32 %v16672_v6, %v16671_v22  ;;  %v16695_v41 = vadd.f32 %v16694_v7, %v16693_v3  ;;  %v20186_v54 = vld [vmem:[%s22005_s20 + $0xa4] ss:$16 sps:$4 sm:$0xff]   ;;  %v17520_v23 = vld [vmem:[#allocation30 + $0x4] ss:$16 sps:$4 sm:$0xff]   ;;  %v17518_v63 = vld [vmem:[#allocation30] ss:$16 sps:$4 sm:$0xff]  }
0x213b   :  { %v17522_v22 = vld [vmem:[#allocation30 + $0x20] ss:$16 sps:$4 sm:$0xff]  }
0x213c   :  { %v8268_v31 = vadd.f32 %v16692_v60, %v8227_v15  ;;  %v8230_v25 = vadd.f32 %v16673_v40, %v8189_v59  ;;  %v20198_v59 = vld [vmem:[%s22005_s20 + $0xc4] ss:$16 sps:$4 sm:$0xff]   ;;  %v17524_v60 = vld [vmem:[#allocation30 + $0x24] ss:$16 sps:$4 sm:$0xff]  }
0x213e   :  { %v8271_v48 = vadd.f32 %v16695_v41, %v8230_v25  ;;  %v20230_v25 = vld [vmem:[#allocation33] sm:$0x1] }
0x2156   :  { %v16712_v27 = vpop.f32.mrb[148].mxu0  ;;  %v16734_v28 = vpop.f32.mrb[128].mxu1 }
0x2157   :  { %v16713_v29 = vpop.f32.mrb[149].mxu0  ;;  %v16735_v2 = vpop.f32.mrb[129].mxu1 }
0x2158   :  { %v16714_v55 = vadd.f32 %v16713_v29, %v16712_v27  ;;  %v16736_v1 = vadd.f32 %v16735_v2, %v16734_v28  ;;  %v16715_v11 = vpop.f32.mrb[150].mxu0  ;;  %v16737_v32 = vpop.f32.mrb[130].mxu1  ;;  %v14945_v27 = vsel %vm14944_vm6, %v20230_v25, -inf  ;;  %v17525_v28 = vld [vmem:[%s22001_s16 + $0x10] sm:$0xff]   ;;  %v17526_v2 = vld [vmem:[#allocation30 + $0x40] ss:$16 sps:$4 sm:$0xff]  }
0x2159   :  { %v16716_v33 = vpop.f32.mrb[151].mxu0  ;;  %v16738_v34 = vpop.f32.mrb[131].mxu1  ;;  %v17528_v29 = vld [vmem:[#allocation30 + $0x44] ss:$16 sps:$4 sm:$0xff]   ;;  %17056 = vmatpush3.bf16.msra.mxu0 %v17525_v28 }
0x215a   :  { %v8309_v35 = vadd.f32 %v16714_v55, %v8268_v31  ;;  %v16717_v36 = vadd.f32 %v16716_v33, %v16715_v11  ;;  %v16739_v17 = vadd.f32 %v16738_v34, %v16737_v32  ;;  %17057 = vmatprep.subr.bf16.mxu0 %v19048_v0  ;;  %v17529_v55 = vld [vmem:[%s22001_s16 + $0x18] sm:$0xff]   ;;  %v17533_v32 = vld [vmem:[%s22001_s16 + $0x20] sm:$0xff]  }
0x215b   :  { %v20245_v11 = vld [vmem:[#allocation30 + $0x60] ss:$16 sps:$4 sm:$0xff]   ;;  %v17536_v33 = vld [vmem:[#allocation30 + $0x84] ss:$16 sps:$4 sm:$0xff]  }
0x215c   :  { %v8350_v37 = vadd.f32 %v16736_v1, %v8309_v35  ;;  %v8312_v21 = vadd.f32 %v16717_v36, %v8271_v48  ;;  %v20243_v1 = vld [vmem:[#allocation30 + $0x64] ss:$16 sps:$4 sm:$0xff]   ;;  %v17534_v34 = vld [vmem:[#allocation30 + $0x80] ss:$16 sps:$4 sm:$0xff]  }
0x215d   :  { %17058 = vmatpush3.bf16.msra.mxu0 %v17529_v55  ;;  %v17537_v35 = vld [vmem:[%s22001_s16 + $0x28] sm:$0xff]   ;;  %v17540_v36 = vld [vmem:[#allocation30 + $0xa4] ss:$16 sps:$4 sm:$0xff]  }
0x215e   :  { %v8353_v58 = vadd.f32 %v16739_v17, %v8312_v21  ;;  %v20091_v38 = vadd.f32 %v8350_v37, %v20028_v13  ;;  %v17486_v13 = vld [vmem:[%s22003_s18 + $0x24] ss:$16 sps:$4 sm:$0xff]   ;;  %17059 = vmatprep.subr.bf16.mxu0 %v19048_v0  ;;  %v17538_v17 = vld [vmem:[#allocation30 + $0xa0] ss:$16 sps:$4 sm:$0xff]   ;;  %v17544_v21 = vld [vmem:[#allocation30 + $0xc4] ss:$16 sps:$4 sm:$0xff]  }
0x215f   :  { %8585 = vmatprep.subr.bf16.mxu1 %v17486_v13  ;;  %v17541_v37 = vld [vmem:[%s22001_s16 + $0x30] sm:$0xff]   ;;  %v20375_v55 = vld [vmem:[%s22005_s20 + $0x88] ss:$16 sps:$4 sm:$0xff]  }
0x2160   :  { %8362 = vadd.xlane.f32.xlu0 %v20091_v38  ;;  %v20095_v39 = vadd.f32 %v8353_v58, %v20030_v50  ;;  %v17484_v50 = vld [vmem:[%s22003_s18 + $0x20] ss:$16 sps:$4 sm:$0xff]   ;;  %v17542_v58 = vld [vmem:[#allocation30 + $0xc0] ss:$16 sps:$4 sm:$0xff]  }
0x2161   :  { %8586 = vmatpush1.bf16.msra.mxu1 %v17484_v50  ;;  %17060 = vmatpush3.bf16.msra.mxu0 %v17533_v32 }
0x2162   :  { %8364 = vadd.xlane.f32.xlu1 %v20095_v39  ;;  %8739 = vmatprep.subr.bf16.mxu1 %v17489_v45 }
0x2163   :  { %17061 = vmatprep.subr.bf16.mxu0 %v19048_v0 }
0x2164   :  { %15648 = vmatmul.mubr.msk.bf16.vlgmr.msra.gmra.mrb[132].mxu1 %vm373_vm1, %v19488_v8 }
0x2165   :  { %8740 = vmatpush1.bf16.msra.mxu1 %v17487_v9  ;;  %8771 = vmatprep.mubr.bf16.mxu1 %v22031_v30 }
0x2166   :  { %8741 = vmatprep.subr.bf16.mxu1 %v17492_v12  ;;  %17062 = vmatpush3.bf16.msra.mxu0 %v17537_v35 }
0x2167   :  { %17063 = vmatprep.subr.bf16.mxu0 %v19048_v0 }
0x2169   :  { %8742 = vmatpush1.bf16.msra.mxu1 %v17490_v5 }
0x216a   :  { %9017 = vmatprep.subr.bf16.mxu1 %v20122_v14  ;;  %17064 = vmatpush3.bf16.msra.mxu0 %v17541_v37 }
0x216b   :  { %17065 = vmatprep.subr.bf16.mxu0 %v19048_v0 }
0x216c   :  { %15658 = vmatmul.mubr.msk.bf16.vlgmr.msra.gmra.mrb[136].mxu1 %vm373_vm1, %v19488_v8 }
0x216d   :  { %9018 = vmatpush1.bf16.msra.mxu1 %v20128_v56  ;;  %9049 = vmatprep.mubr.bf16.mxu1 %v22031_v30 }
0x216e   :  { %9019 = vmatprep.subr.bf16.mxu1 %v20135_v62 }
0x2171   :  { %9020 = vmatpush1.bf16.msra.mxu1 %v20143_v10 }
0x2172   :  { %9021 = vmatprep.subr.bf16.mxu1 %v20150_v51 }
0x2175   :  { %9022 = vmatpush1.bf16.msra.mxu1 %v20156_v52 }
0x2176   :  { %9023 = vmatprep.subr.bf16.mxu1 %v20162_v43 }
0x2179   :  { %9024 = vmatpush1.bf16.msra.mxu1 %v20168_v16 }
0x217a   :  { %9025 = vmatprep.subr.bf16.mxu1 %v20174_v53 }
0x217d   :  { %9026 = vmatpush1.bf16.msra.mxu1 %v20180_v19 }
0x217e   :  { %9027 = vmatprep.subr.bf16.mxu1 %v20186_v54 }
0x2181   :  { %9028 = vmatpush1.bf16.msra.mxu1 %v20192_v57 }
0x2182   :  { %9029 = vmatprep.subr.bf16.mxu1 %v20198_v59 }
0x2185   :  { %9030 = vmatpush1.bf16.msra.mxu1 %v20204_v47 }
0x2186   :  { %9031 = vmatprep.subr.bf16.mxu1 %v20210_v20 }
0x2189   :  { %9032 = vmatpush1.bf16.msra.mxu1 %v20216_v61 }
0x218a   :  { %9315 = vmatprep.subr.bf16.mxu1 %v17520_v23  ;;  %v17557_v23 = vld [vmem:[#allocation27 + $0xc] ss:$16 sps:$4 sm:$0xff]  }
0x218c   :  { %9050 = vmatmul.mubr.bf16.vlgmr.msra.gmra.mrb[140].mxu1 %v22031_v30 }
0x218d   :  { %9316 = vmatpush1.bf16.msra.mxu1 %v17518_v63  ;;  %9347 = vmatprep.mubr.bf16.mxu1 %v22031_v30  ;;  %v17555_v63 = vld [vmem:[#allocation27 + $0x8] ss:$16 sps:$4 sm:$0xff]  }
0x218e   :  { %9317 = vmatprep.subr.bf16.mxu1 %v17524_v60  ;;  %v17560_v60 = vld [vmem:[#allocation27 + $0x2c] ss:$16 sps:$4 sm:$0xff]  }
0x2191   :  { %9318 = vmatpush1.bf16.msra.mxu1 %v17522_v22  ;;  %v17558_v22 = vld [vmem:[#allocation27 + $0x28] ss:$16 sps:$4 sm:$0xff]  }
0x2192   :  { %9319 = vmatprep.subr.bf16.mxu1 %v17528_v29 }
0x2195   :  { %9320 = vmatpush1.bf16.msra.mxu1 %v17526_v2 }
0x2196   :  { %9321 = vmatprep.subr.bf16.mxu1 %v20243_v1 }
0x2199   :  { %9322 = vmatpush1.bf16.msra.mxu1 %v20245_v11 }
0x219a   :  { %9323 = vmatprep.subr.bf16.mxu1 %v17536_v33  ;;  %v20383_v33 = vld [vmem:[%s22005_s20 + $0xac] ss:$16 sps:$4 sm:$0xff]  }
0x219d   :  { %9324 = vmatpush1.bf16.msra.mxu1 %v17534_v34 }
0x219e   :  { %9325 = vmatprep.subr.bf16.mxu1 %v17540_v36 }
0x21a1   :  { %9326 = vmatpush1.bf16.msra.mxu1 %v17538_v17  ;;  %v20395_v17 = vld [vmem:[%s22005_s20 + $0xa8] ss:$16 sps:$4 sm:$0xff]  }
0x21a2   :  { %9327 = vmatprep.subr.bf16.mxu1 %v17544_v21  ;;  %v17581_v21 = vld [vmem:[%s22005_s20 + $0xcc] ss:$16 sps:$4 sm:$0xff]  }
0x21a5   :  { %9328 = vmatpush1.bf16.msra.mxu1 %v17542_v58 }
0x21ed   :  { %v8363_v3 = vpop.xlane.xlu0 %8362 }
0x21ee   :  { %v8366_v6 = vmul.f32 0.0078125, %v8363_v3  ;;  %v20309_v3 = vld [vmem:[%s22005_s20 + $0xc] ss:$16 sps:$4 sm:$0xff]  }
0x21ef   :  { %v8365_v7 = vpop.xlane.xlu1 %8364 }
0x21f0   :  { %v20223_v15 = vsub.f32 %v20091_v38, %v8366_v6  ;;  %v8367_v40 = vmul.f32 0.0078125, %v8365_v7  ;;  %v17545_v38 = vld [vmem:[%s22001_s16 + $0x38] sm:$0xff]  }
0x21f1   :  { %17066 = vmatpush3.bf16.msra.mxu0 %v17545_v38  ;;  %v20314_v6 = vld [vmem:[%s22005_s20 + $0x8] ss:$16 sps:$4 sm:$0xff]   ;;  %v20320_v7 = vld [vmem:[%s22005_s20 + $0x2c] ss:$16 sps:$4 sm:$0xff]  }
0x21f2   :  { %v20226_v41 = vsub.f32 %v20095_v39, %v8367_v40  ;;  %v8370_v31 = vmul.f32 %v20223_v15, %v20223_v15  ;;  %v17548_v39 = vld [vmem:[#allocation30 + $0xe4] ss:$16 sps:$4 sm:$0xff]   ;;  %8626 = vmatprep.subr.bf16.mxu0 %v17551_v4  ;;  %v20335_v40 = vld [vmem:[%s22005_s20 + $0x4c] ss:$16 sps:$4 sm:$0xff]   ;;  %v17582_v4 = vld [vmem:[%s22005_s20 + $0xe8] ss:$16 sps:$4 sm:$0xff]  }
0x21f3   :  { %9329 = vmatprep.subr.bf16.mxu1 %v17548_v39  ;;  %v17579_v39 = vld [vmem:[%s22005_s20 + $0xc8] ss:$16 sps:$4 sm:$0xff]  }
0x21f4   :  { %8372 = vadd.xlane.f32.xlu0 %v8370_v31  ;;  %v8371_v48 = vmul.f32 %v20226_v41, %v20226_v41  ;;  %9330 = vmatpush1.bf16.msra.mxu1 %v17546_v42  ;;  %v17584_v42 = vld [vmem:[%s22005_s20 + $0xec] ss:$16 sps:$4 sm:$0xff]  }
0x21f5   :  { %9734 = vmatprep.subr.bf16.mxu1 %v20122_v14 }
0x21f6   :  { %8374 = vadd.xlane.f32.xlu1 %v8371_v48 }
0x21f7   :  { %9348 = vmatmul.mubr.bf16.vlgmr.msra.gmra.mrb[144].mxu1 %v22031_v30 }
0x21f8   :  { %14946 = vmax.xlane.f32.xlu0 %v14945_v27  ;;  %9735 = vmatpush1.bf16.msra.mxu1 %v20128_v56  ;;  %v15629_v56 = vld [vmem:[#allocation21 + $0x1] ss:$0 sm:$0xff] }
0x21f9   :  { %9766 = vmatprep.mubr.bf16.mxu1 %v22031_v30  ;;  %9736 = vmatprep.subr.bf16.mxu1 %v20135_v62  ;;  %v20363_v27 = vld [vmem:[%s22005_s20 + $0x8c] ss:$16 sps:$4 sm:$0xff]  }
0x21fc   :  { %9737 = vmatpush1.bf16.msra.mxu1 %v20143_v10 }
0x21fd   :  { %9738 = vmatprep.subr.bf16.mxu1 %v20150_v51 }
0x2200   :  { %9739 = vmatpush1.bf16.msra.mxu1 %v20156_v52 }
0x2201   :  { %9740 = vmatprep.subr.bf16.mxu1 %v20162_v43 }
0x2204   :  { %9741 = vmatpush1.bf16.msra.mxu1 %v20168_v16  ;;  %v15630_v16 = vld [vmem:[#allocation23 + $0x1] ss:$0 sm:$0xff] }
0x2205   :  { %9742 = vmatprep.subr.bf16.mxu1 %v20174_v53 }
0x2208   :  { %9743 = vmatpush1.bf16.msra.mxu1 %v20180_v19 }
0x2209   :  { %9744 = vmatprep.subr.bf16.mxu1 %v20186_v54 }
0x220c   :  { %9745 = vmatpush1.bf16.msra.mxu1 %v20192_v57 }
0x220d   :  { %9746 = vmatprep.subr.bf16.mxu1 %v20198_v59  ;;  %v17549_v59 = vld [vmem:[%s22003_s18 + $0x8] ss:$16 sps:$4 sm:$0xff]  }
0x2210   :  { %9747 = vmatpush1.bf16.msra.mxu1 %v20204_v47 }
0x2211   :  { %9748 = vmatprep.subr.bf16.mxu1 %v20210_v20  ;;  %v17554_v20 = vld [vmem:[%s22003_s18 + $0x2c] ss:$16 sps:$4 sm:$0xff]  }
0x2214   :  { %9749 = vmatpush1.bf16.msra.mxu1 %v20216_v61  ;;  %v17552_v61 = vld [vmem:[%s22003_s18 + $0x28] ss:$16 sps:$4 sm:$0xff]  }
0x2237   :  { %v20349_v31 = vpop.f32.mrb[132].mxu1 }
0x2238   :  { %v20357_v48 = vpop.f32.mrb[133].mxu1 }
0x2239   :  { %v20365_v28 = vpop.f32.mrb[134].mxu1 }
0x223a   :  { %v20367_v29 = vpop.f32.mrb[135].mxu1 }
0x223f   :  { %v20369_v2 = vpop.f32.mrb[136].mxu1 }
0x2240   :  { %v20377_v32 = vpop.f32.mrb[137].mxu1 }
0x2241   :  { %v20385_v34 = vpop.f32.mrb[138].mxu1 }
0x2242   :  { %v20387_v35 = vpop.f32.mrb[139].mxu1 }
0x225f   :  { %v20389_v36 = vpop.f32.mrb[140].mxu1 }
0x2260   :  { %v20397_v37 = vpop.f32.mrb[141].mxu1 }
0x2261   :  { %v9055_v58 = vpop.f32.mrb[142].mxu1 }
0x2262   :  { %v9056_v38 = vpop.f32.mrb[143].mxu1  ;;  %v9104_v58 = vrot.slane %v20397_v37, 1 }
0x2281   :  { %v8373_v0 = vpop.xlane.xlu0 %8372 }
0x2282   :  { %v8376_v13 = vmul.f32 0.0078125, %v8373_v0  ;;  %v17587_v0 = vld [vmem:[#allocation30 + $0xc] ss:$16 sps:$4 sm:$0xff]  }
0x2283   :  { %v8375_v50 = vpop.xlane.xlu1 %8374 }
0x2284   :  { %v8378_v45 = vadd.f32 1e-05, %v8376_v13  ;;  %v8377_v9 = vmul.f32 0.0078125, %v8375_v50  ;;  %v20413_v13 = vld [vmem:[#allocation30 + $0x8] ss:$16 sps:$4 sm:$0xff]  }
0x2285   :  { %v14947_v12 = vpop.xlane.xlu0 %14946  ;;  %v20415_v50 = vld [vmem:[#allocation30 + $0x2c] ss:$16 sps:$4 sm:$0xff]  }
0x2286   :  { %18010 = vrsqrt.f32 %v8378_v45  ;;  %v8379_v24 = vadd.f32 1e-05, %v8377_v9  ;;  %v14948_v26 = vsub.f32 %v20230_v25, %v14947_v12  ;;  %v20355_v25 = vld [vmem:[%s22005_s20 + $0x68] ss:$16 sps:$4 sm:$0xff]   ;;  %v20419_v45 = vld [vmem:[#allocation30 + $0x28] ss:$16 sps:$4 sm:$0xff]  }
0x2287   :  { %v20423_v9 = vld [vmem:[#allocation30 + $0x4c] ss:$16 sps:$4 sm:$0xff]   ;;  %v20426_v12 = vld [vmem:[#allocation30 + $0x48] ss:$16 sps:$4 sm:$0xff]  }
0x2288   :  { %18012 = vrsqrt.f32 %v8379_v24  ;;  %v14949_v5 = vmul.f32 1.442695, %v14948_v26  ;;  %v20429_v24 = vld [vmem:[#allocation30 + $0x6c] ss:$16 sps:$4 sm:$0xff]   ;;  %v20432_v26 = vld [vmem:[#allocation30 + $0x68] ss:$16 sps:$4 sm:$0xff]  }
0x228a   :  { %18014 = vpow2.f32 %v14949_v5  ;;  %v20435_v5 = vld [vmem:[#allocation30 + $0x8c] ss:$16 sps:$4 sm:$0xff]  }
0x2290   :  { %v18011_v14 = vpop.eup %18010 }
0x2291   :  { %v8382_v62 = vmul.f32 %v18011_v14, %v20223_v15  ;;  %v20328_v15 = vld [vmem:[%s22005_s20 + $0x28] ss:$16 sps:$4 sm:$0xff]   ;;  %v20438_v14 = vld [vmem:[#allocation30 + $0x88] ss:$16 sps:$4 sm:$0xff]  }
0x2292   :  { %v18013_v10 = vpop.eup %18012 }
0x2293   :  { %v8383_v51 = vmul.f32 %v18013_v10, %v20226_v41  ;;  %v8390_v52 = vmul.f32 %v15629_v56, %v8382_v62  ;;  %v20347_v41 = vld [vmem:[%s22005_s20 + $0x6c] ss:$16 sps:$4 sm:$0xff]   ;;  %v20444_v62 = vld [vmem:[#allocation30 + $0xa8] ss:$16 sps:$4 sm:$0xff]   ;;  %v20447_v10 = vld [vmem:[#allocation30 + $0xcc] ss:$16 sps:$4 sm:$0xff]  }
0x2294   :  { %v20289_v43 = vpop.eup %18014 }
0x2295   :  { %v14951_v53 = vsel %vm14944_vm6, %v20289_v43, 0.0  ;;  %v8391_v19 = vmul.f32 %v15629_v56, %v8383_v51  ;;  %v8398_v54 = vadd.f32 %v15630_v16, %v8390_v52  ;;  %v20441_v56 = vld [vmem:[#allocation30 + $0xac] ss:$16 sps:$4 sm:$0xff]   ;;  %v20450_v51 = vld [vmem:[#allocation30 + $0xc8] ss:$16 sps:$4 sm:$0xff]  }
0x2296   :  { %14952 = vadd.xlane.f32.xlu1 %v14951_v53  ;;  %v20453_v52 = vld [vmem:[#allocation30 + $0xec] ss:$16 sps:$4 sm:$0xff]  }
0x2297   :  { %v8399_v57 = vadd.f32 %v15630_v16, %v8391_v19  ;;  %v20456_v16 = vld [vmem:[#allocation30 + $0xe8] ss:$16 sps:$4 sm:$0xff]  }
0x2299   :  { %v8417_v47 = vpack.c.bf16 %v8399_v57, %v8398_v54 }
0x229b   :  { %17068 = vmatmul.mubr.bf16.vlgmr.msra.gmra.mrb[152].mxu0 %v8417_v47 }
0x229c   :  { %8627 = vmatpush1.bf16.msra.mxu0 %v17549_v59  ;;  %8658 = vmatprep.mubr.bf16.mxu0 %v22031_v30 }
0x229d   :  { %8628 = vmatprep.subr.bf16.mxu0 %v17554_v20 }
0x22a0   :  { %8629 = vmatpush1.bf16.msra.mxu0 %v17552_v61 }
0x22a1   :  { %8782 = vmatprep.subr.bf16.mxu0 %v17557_v23  ;;  %v20483_v23 = vld [vmem:[#allocation30 + $0x4] ss:$16 sps:$4 sm:$0xff]  }
0x22a2   :  { %10043 = vmatprep.subr.bf16.mxu1 %v20483_v23 }
0x22a3   :  { %15649 = vmatmul.mubr.msk.bf16.vlgmr.msra.gmra.mrb[156].mxu0 %vm373_vm1, %v19488_v8 }
0x22a4   :  { %8783 = vmatpush1.bf16.msra.mxu0 %v17555_v63  ;;  %8814 = vmatprep.mubr.bf16.mxu0 %v22031_v30 }
0x22a5   :  { %8784 = vmatprep.subr.bf16.mxu0 %v17560_v60 }
0x22a8   :  { %8785 = vmatpush1.bf16.msra.mxu0 %v17558_v22 }
0x22a9   :  { %9058 = vmatprep.subr.bf16.mxu0 %v20309_v3 }
0x22ab   :  { %15659 = vmatmul.mubr.msk.bf16.vlgmr.msra.gmra.mrb[160].mxu0 %vm373_vm1, %v19488_v8  ;;  %v20341_v8 = vld [vmem:[%s22005_s20 + $0x48] ss:$16 sps:$4 sm:$0xff]  }
0x22ac   :  { %9059 = vmatpush1.bf16.msra.mxu0 %v20314_v6  ;;  %9090 = vmatprep.mubr.bf16.mxu0 %v22031_v30 }
0x22ad   :  { %9060 = vmatprep.subr.bf16.mxu0 %v20320_v7 }
0x22b0   :  { %9061 = vmatpush1.bf16.msra.mxu0 %v20328_v15 }
0x22b1   :  { %9062 = vmatprep.subr.bf16.mxu0 %v20335_v40 }
0x22b4   :  { %9063 = vmatpush1.bf16.msra.mxu0 %v20341_v8 }
0x22b5   :  { %9064 = vmatprep.subr.bf16.mxu0 %v20347_v41 }
0x22b8   :  { %9065 = vmatpush1.bf16.msra.mxu0 %v20355_v25 }
0x22b9   :  { %9066 = vmatprep.subr.bf16.mxu0 %v20363_v27 }
0x22bc   :  { %9067 = vmatpush1.bf16.msra.mxu0 %v20375_v55 }
0x22bd   :  { %9068 = vmatprep.subr.bf16.mxu0 %v20383_v33 }
0x22c0   :  { %9069 = vmatpush1.bf16.msra.mxu0 %v20395_v17 }
0x22c1   :  { %9070 = vmatprep.subr.bf16.mxu0 %v17581_v21 }
0x22c4   :  { %9071 = vmatpush1.bf16.msra.mxu0 %v17579_v39 }
0x22c5   :  { %9072 = vmatprep.subr.bf16.mxu0 %v17584_v42 }
0x22c8   :  { %9073 = vmatpush1.bf16.msra.mxu0 %v17582_v4 }
0x22c9   :  { %9356 = vmatprep.subr.bf16.mxu0 %v17587_v0 }
0x22ca   :  { %v20465_v53 = vpop.f32.mrb[144].mxu1 }
0x22cb   :  { %9091 = vmatmul.mubr.bf16.vlgmr.msra.gmra.mrb[164].mxu0 %v22031_v30  ;;  %v20467_v19 = vpop.f32.mrb[145].mxu1 }
0x22cc   :  { %9357 = vmatpush1.bf16.msra.mxu0 %v20413_v13  ;;  %9388 = vmatprep.mubr.bf16.mxu0 %v22031_v30  ;;  %v9353_v54 = vpop.f32.mrb[146].mxu1 }
0x22cd   :  { %9358 = vmatprep.subr.bf16.mxu0 %v20415_v50  ;;  %v9354_v57 = vpop.f32.mrb[147].mxu1 }
0x22d0   :  { %9359 = vmatpush1.bf16.msra.mxu0 %v20419_v45 }
0x22d1   :  { %9360 = vmatprep.subr.bf16.mxu0 %v20423_v9 }
0x22d4   :  { %9361 = vmatpush1.bf16.msra.mxu0 %v20426_v12 }
0x22d5   :  { %9362 = vmatprep.subr.bf16.mxu0 %v20429_v24 }
0x22d8   :  { %9363 = vmatpush1.bf16.msra.mxu0 %v20432_v26 }
0x22d9   :  { %9364 = vmatprep.subr.bf16.mxu0 %v20435_v5 }
0x22dc   :  { %9365 = vmatpush1.bf16.msra.mxu0 %v20438_v14 }
0x22dd   :  { %9366 = vmatprep.subr.bf16.mxu0 %v20441_v56 }
0x22e0   :  { %9367 = vmatpush1.bf16.msra.mxu0 %v20444_v62 }
0x22e1   :  { %9368 = vmatprep.subr.bf16.mxu0 %v20447_v10 }
0x22e4   :  { %9369 = vmatpush1.bf16.msra.mxu0 %v20450_v51 }
0x22e5   :  { %9370 = vmatprep.subr.bf16.mxu0 %v20453_v52 }
0x22e8   :  { %9371 = vmatpush1.bf16.msra.mxu0 %v20456_v16 }
0x22e9   :  { %9775 = vmatprep.subr.bf16.mxu0 %v20309_v3 }
0x22eb   :  { %9389 = vmatmul.mubr.bf16.vlgmr.msra.gmra.mrb[168].mxu0 %v22031_v30 }
0x22ec   :  { %9776 = vmatpush1.bf16.msra.mxu0 %v20314_v6  ;;  %9807 = vmatprep.mubr.bf16.mxu0 %v22031_v30 }
0x22ed   :  { %9777 = vmatprep.subr.bf16.mxu0 %v20320_v7 }
0x22f0   :  { %9778 = vmatpush1.bf16.msra.mxu0 %v20328_v15  ;;  %v8521_v15 = vld [vmem:[#allocation26] sm:$0xf] }
0x22f1   :  { %9779 = vmatprep.subr.bf16.mxu0 %v20335_v40 }
0x22f4   :  { %9780 = vmatpush1.bf16.msra.mxu0 %v20341_v8  ;;  %v8526_v8 = vrot.slane %v8521_v15, %v19530_v49 }
0x22f5   :  { %9781 = vmatprep.subr.bf16.mxu0 %v20347_v41  ;;  %v8530_v41 = vrot.slane %v8521_v15, %v19525_v46 }
0x22f8   :  { %9782 = vmatpush1.bf16.msra.mxu0 %v20355_v25 }
0x22f9   :  { %9783 = vmatprep.subr.bf16.mxu0 %v20363_v27  ;;  %v20495_v27 = vadd.f32 %v20349_v31, %v8526_v8 }
0x22fc   :  { %9784 = vmatpush1.bf16.msra.mxu0 %v20375_v55 }
0x22fd   :  { %9785 = vmatprep.subr.bf16.mxu0 %v20383_v33  ;;  %v20500_v33 = vadd.f32 %v20357_v48, %v8530_v41  ;;  %v9103_v48 = vrot.slane %v20389_v36, 1 }
0x22ff   :  { %v9116_v31 = vadd.f32 %v20397_v37, %v20500_v33  ;;  %v20520_v37 = vld [vmem:[#allocation29] sm:$0xf] }
0x2300   :  { %9786 = vmatpush1.bf16.msra.mxu0 %v20395_v17 }
0x2301   :  { %9787 = vmatprep.subr.bf16.mxu0 %v17581_v21  ;;  %v20505_v21 = vadd.f32 %v20367_v29, %v8530_v41  ;;  %v15726_v29 = vmul.f32 -1.442695, %v9116_v31 }
0x2304   :  { %9788 = vmatpush1.bf16.msra.mxu0 %v17579_v39  ;;  %v9115_v39 = vadd.f32 %v20389_v36, %v20495_v27  ;;  %v8682_v36 = vrot.slane %v20520_v37, %v19530_v49 }
0x2305   :  { %9789 = vmatprep.subr.bf16.mxu0 %v17584_v42  ;;  %v20515_v42 = vadd.f32 %v20365_v28, %v8526_v8  ;;  %v8534_v8 = vrot.slane %v8521_v15, %v19522_v44 }
0x2306   :  { %v20527_v31 = vadd.f32 %v20369_v2, %v8682_v36 }
0x2307   :  { %v9119_v54 = vadd.f32 %v9103_v48, %v20515_v42  ;;  %v8686_v48 = vrot.slane %v20520_v37, %v19525_v46  ;;  %v9405_v46 = vrot.slane %v20465_v53, 2 }
0x2308   :  { %9790 = vmatpush1.bf16.msra.mxu0 %v17582_v4  ;;  %v9120_v4 = vadd.f32 %v9104_v58, %v20505_v21  ;;  %v8538_v58 = vrot.slane %v8521_v15, %v19753_v18  ;;  %v9401_v15 = vrot.slane %v20465_v53, 1 }
0x2309   :  { %10084 = vmatprep.subr.bf16.mxu0 %v17587_v0  ;;  %v15724_v0 = vmul.f32 -1.442695, %v9115_v39  ;;  %v20553_v53 = vadd.f32 %v20387_v35, %v8686_v48 }
0x230a   :  { %v15727_v57 = vmul.f32 -1.442695, %v9120_v4 }
0x230b   :  { %22149 = vst [vmem:[#allocation52_spill] sm:$0xff] %v20553_v53 }
0x2323   :  { %v14953_v59 = vpop.xlane.xlu1 %14952 }
0x2324   :  { %18016 = vrcp.f32 %v14953_v59  ;;  %v15725_v59 = vmul.f32 -1.442695, %v9119_v54 }
0x2325   :  { %18018 = vpow2.f32 %v15724_v0  ;;  %v20534_v0 = vadd.f32 %v20385_v34, %v8682_v36  ;;  %v9402_v36 = vrot.slane %v20467_v19, 1 }
0x2326   :  { %18020 = vpow2.f32 %v15726_v29 }
0x2327   :  { %18022 = vpow2.f32 %v15727_v57 }
0x2328   :  { %18024 = vpow2.f32 %v15725_v59 }
0x232e   :  { %v18017_v47 = vpop.eup %18016 }
0x232f   :  { %v14955_v20 = vmul.f32 %v18017_v47, %v20289_v43  ;;  %v18019_v47 = vpop.eup %18018 }
0x2331   :  { %v20480_v61 = vrot.slane %v14955_v20, %v19530_v49  ;;  %v18021_v20 = vpop.eup %18020 }
0x2332   :  { %v18023_v28 = vpop.eup %18022 }
0x2333   :  { %22145 = vst [vmem:[#allocation48_spill] sm:$0xff] %v20480_v61  ;;  %14962 = vperm.xlu0 %17140, %v20480_v61   ;;  %v9444_v41 = vadd.f32 1.0, %v18023_v28  ;;  %v18025_v39 = vpop.eup %18024  ;;  %v20830_v61 = vld [vmem:[%s22005_s20 + $0xec] ss:$16 sps:$4 sm:$0xff]  }
0x2334   :  { %v9432_v49 = vadd.f32 1.0, %v18025_v39  ;;  %22170 = vst [vmem:[#allocation73_spill] sm:$0xff] %v20830_v61 }
0x236e   :  { %v20486_v63 = vpop.f32.mrb[152].mxu0 }
0x236f   :  { %22146 = vst [vmem:[#allocation49_spill] sm:$0xff] %v20486_v63  ;;  %v17069_v60 = vpop.f32.mrb[153].mxu0  ;;  %v20825_v63 = vld [vmem:[%s22005_s20 + $0xe4] ss:$16 sps:$4 sm:$0xff]  }
0x2370   :  { %v20488_v22 = vpop.f32.mrb[154].mxu0  ;;  %v9431_v60 = vadd.f32 1.0, %v18019_v47  ;;  %22169 = vst [vmem:[#allocation72_spill] sm:$0xff] %v20825_v63 }
0x2371   :  { %22147 = vst [vmem:[#allocation50_spill] sm:$0xff] %v20488_v22  ;;  %v17070_v3 = vpop.f32.mrb[155].mxu0  ;;  %v20816_v22 = vld [vmem:[%s22005_s20 + $0xc8] ss:$16 sps:$4 sm:$0xff]  }
0x2372   :  { %v9443_v3 = vadd.f32 1.0, %v18021_v20  ;;  %18026 = vrcp.f32 %v9431_v60  ;;  %22168 = vst [vmem:[#allocation71_spill] sm:$0xff] %v20816_v22 }
0x2374   :  { %18028 = vrcp.f32 %v9443_v3 }
0x2375   :  { %18030 = vrcp.f32 %v9444_v41  ;;  %v9406_v41 = vrot.slane %v20467_v19, 2 }
0x2376   :  { %v8660_v6 = vpop.f32.mrb[156].mxu0 }
0x2377   :  { %v8662_v7 = vpop.f32.mrb[157].mxu0  ;;  %v20531_v4 = vadd.f32 %v8660_v6, %v8534_v8 }
0x2378   :  { %v8664_v40 = vpop.f32.mrb[158].mxu0  ;;  %v20536_v29 = vadd.f32 %v8662_v7, %v8538_v58  ;;  %v20547_v7 = vadd.f32 %v20377_v32, %v8686_v48  ;;  %v9421_v32 = vadd.f32 %v9405_v46, %v20534_v0 }
0x2379   :  { %v8666_v43 = vpop.f32.mrb[159].mxu0  ;;  %v20539_v57 = vadd.f32 %v8664_v40, %v8534_v8 }
0x237a   :  { %v20543_v6 = vadd.f32 %v8666_v43, %v8538_v58  ;;  %v9417_v43 = vadd.f32 %v9401_v15, %v20527_v31  ;;  %v15731_v35 = vmul.f32 -1.442695, %v9421_v32 }
0x237b   :  { %22148 = vst [vmem:[#allocation51_spill] sm:$0xff] %v20539_v57 }
0x237c   :  { %v18027_v39 = vpop.eup %18026 }
0x237e   :  { %v20492_v25 = vpop.f32.mrb[160].mxu0 }
0x237f   :  { %v20497_v55 = vpop.f32.mrb[161].mxu0 }
0x2380   :  { %v20502_v17 = vpop.f32.mrb[162].mxu0 }
0x2381   :  { %v20508_v38 = vpop.f32.mrb[163].mxu0 }
0x239e   :  { %v9092_v54 = vpop.f32.mrb[164].mxu0 }
0x239f   :  { %v9105_v2 = vrot.slane %v9092_v54, 1  ;;  %v9117_v59 = vadd.f32 %v9092_v54, %v20531_v4  ;;  %v9094_v47 = vpop.f32.mrb[165].mxu0  ;;  %v18029_v54 = vpop.eup %18028 }
0x23a0   :  { %v9106_v20 = vrot.slane %v9094_v47, 1  ;;  %v9118_v34 = vadd.f32 %v9094_v47, %v20536_v29  ;;  %v9096_v28 = vpop.f32.mrb[166].mxu0  ;;  %v18031_v47 = vpop.eup %18030 }
0x23a1   :  { %v9121_v60 = vadd.f32 %v9105_v2, %v20539_v57  ;;  %18032 = vtanh.f32 %v9117_v59  ;;  %v9097_v40 = vpop.f32.mrb[167].mxu0  ;;  %v15730_v2 = vmul.f32 -1.442695, %v9417_v43  ;;  %v9422_v59 = vadd.f32 %v9406_v41, %v20553_v53 }
0x23a2   :  { %18034 = vrcp.f32 %v9432_v49  ;;  %v9122_v3 = vadd.f32 %v9106_v20, %v20543_v6  ;;  %v15728_v8 = vmul.f32 -1.442695, %v9118_v34  ;;  %v9418_v49 = vadd.f32 %v9402_v36, %v20547_v7 }
0x23a3   :  { %18036 = vtanh.f32 %v9121_v60  ;;  %v15733_v15 = vmul.f32 -1.442695, %v9422_v59  ;;  %v9463_v34 = vmul.f32 0.0, %v18029_v54  ;;  %v9464_v40 = vmul.f32 0.0, %v18031_v47 }
0x23a4   :  { %18038 = vpow2.f32 %v15728_v8  ;;  %v15729_v58 = vmul.f32 -1.442695, %v9122_v3  ;;  %v15732_v48 = vmul.f32 -1.442695, %v9418_v49 }
0x23a6   :  { %18040 = vpow2.f32 %v15729_v58 }
0x23a7   :  { %18042 = vpow2.f32 %v15730_v2 }
0x23a8   :  { %18044 = vpow2.f32 %v15731_v35  ;;  %v8690_v35 = vrot.slane %v20520_v37, %v19522_v44 }
0x23a9   :  { %18046 = vpow2.f32 %v15732_v48  ;;  %v8694_v48 = vrot.slane %v20520_v37, %v19753_v18 }
0x23aa   :  { %18048 = vpow2.f32 %v15733_v15  ;;  %v20577_v44 = vadd.f32 %v20502_v17, %v8690_v35 }
0x23ab   :  { %v18033_v20 = vpop.eup %18032 }
0x23ac   :  { %v18035_v19 = vpop.eup %18034  ;;  %v9465_v46 = vmul.f32 %v18033_v20, %v18027_v39 }
0x23ad   :  { %v18037_v28 = vpop.eup %18036 }
0x23ae   :  { %v18039_v60 = vpop.eup %18038  ;;  %v9466_v36 = vmul.f32 %v18037_v28, %v18035_v19  ;;  %v20560_v3 = vadd.f32 %v9465_v46, %v9463_v34 }
0x23af   :  { %v9457_v8 = vadd.f32 1.0, %v18039_v60  ;;  %v20571_v60 = vadd.f32 %v20492_v25, %v8690_v35 }
0x23b0   :  { %v18041_v43 = vpop.eup %18040  ;;  %v20562_v41 = vadd.f32 %v9466_v36, %v9464_v40  ;;  %18050 = vtanh.f32 %v20560_v3  ;;  %v20574_v40 = vadd.f32 %v20497_v55, %v8694_v48 }
0x23b1   :  { %v9458_v32 = vadd.f32 1.0, %v18041_v43  ;;  %18052 = vrcp.f32 %v9457_v8  ;;  %v18043_v58 = vpop.eup %18042  ;;  %22150 = vst [vmem:[#allocation53_spill] sm:$0xff] %v20571_v60 }
0x23b2   :  { %18054 = vtanh.f32 %v20562_v41  ;;  %v18045_v39 = vpop.eup %18044  ;;  %v9479_v54 = vadd.f32 1.0, %v18043_v58  ;;  %22151 = vst [vmem:[#allocation54_spill] sm:$0xff] %v20574_v40  ;;  %v20580_v58 = vadd.f32 %v20508_v38, %v8694_v48 }
0x23b3   :  { %18056 = vrcp.f32 %v9458_v32  ;;  %v18047_v49 = vpop.eup %18046  ;;  %v9480_v59 = vadd.f32 1.0, %v18045_v39 }
0x23b4   :  { %v18049_v2 = vpop.eup %18048  ;;  %18058 = vrcp.f32 %v9479_v54  ;;  %v9491_v46 = vadd.f32 1.0, %v18047_v49  ;;  %22152 = vst [vmem:[#allocation55_spill] sm:$0xff] %v20580_v58 }
0x23b5   :  { %18060 = vrcp.f32 %v9480_v59  ;;  %v9492_v28 = vadd.f32 1.0, %v18049_v2 }
0x23b6   :  { %18062 = vrcp.f32 %v9491_v46  ;;  %v20587_v46 = vld [vmem:[#allocation30] ss:$16 sps:$4 sm:$0xff]  }
0x23b7   :  { %18064 = vrcp.f32 %v9492_v28 }
0x23ba   :  { %v18051_v47 = vpop.eup %18050 }
0x23bb   :  { %v18053_v20 = vpop.eup %18052 }
0x23bc   :  { %v18055_v15 = vpop.eup %18054  ;;  %v9471_v19 = vmul.f32 %v18053_v20, %v18051_v47 }
0x23bd   :  { %v18057_v34 = vpop.eup %18056 }
0x23be   :  { %v9390_v36 = vpop.f32.mrb[168].mxu0  ;;  %v9472_v8 = vmul.f32 %v18057_v34, %v18055_v15  ;;  %9521 = vst [vmem:[#allocation2] sm:$0x1] %v9471_v19  ;;  %v9563_v32 = vpack.c.bf16 %v9471_v19, %v9471_v19  ;;  %v18059_v19 = vpop.eup %18058 }
0x23bf   :  { %v9403_v18 = vrot.slane %v9390_v36, 1  ;;  %v9407_v37 = vrot.slane %v9390_v36, 2  ;;  %v9392_v43 = vpop.f32.mrb[169].mxu0  ;;  %v18061_v36 = vpop.eup %18060 }
0x23c0   :  { %v9404_v39 = vrot.slane %v9392_v43, 1  ;;  %v9408_v49 = vrot.slane %v9392_v43, 2  ;;  %v9394_v25 = vpop.f32.mrb[170].mxu0  ;;  %9522 = vst [vmem:[#allocation2 + $0x10] sm:$0x1] %v9472_v8  ;;  %v9564_v54 = vpack.c.bf16 %v9472_v8, %v9472_v8  ;;  %v9567_v38 = vunpack.c.l.b16 %v9563_v32 }
0x23c1   :  { %v9419_v55 = vadd.f32 %v9403_v18, %v20571_v60  ;;  %v9423_v2 = vadd.f32 %v9407_v37, %v20577_v44  ;;  %v9395_v59 = vpop.f32.mrb[171].mxu0  ;;  %v20589_v8 = vld [vmem:[#allocation30 + $0x24] ss:$16 sps:$4 sm:$0xff]   ;;  %v20593_v18 = vld [vmem:[#allocation30 + $0x20] ss:$16 sps:$4 sm:$0xff]   ;;  %v18063_v37 = vpop.eup %18062 }
0x23c2   :  { %v9420_v17 = vadd.f32 %v9404_v39, %v20574_v40  ;;  %v9424_v47 = vadd.f32 %v9408_v49, %v20580_v58  ;;  %v9568_v35 = vunpack.c.l.b16 %v9564_v54  ;;  %v20597_v43 = vld [vmem:[#allocation30 + $0x44] ss:$16 sps:$4 sm:$0xff]   ;;  %v18065_v32 = vpop.eup %18064  ;;  %v9511_v25 = vmul.f32 0.0, %v18063_v37 }
0x23c3   :  { %18066 = vtanh.f32 %v9419_v55  ;;  %v9512_v55 = vmul.f32 0.0, %v18065_v32 }
0x23c4   :  { %18068 = vtanh.f32 %v9423_v2  ;;  %v15734_v48 = vmul.f32 -1.442695, %v9420_v17  ;;  %v15735_v20 = vmul.f32 -1.442695, %v9424_v47  ;;  %v9569_v15 = vrot.slane %v9568_v35, 7 }
0x23c6   :  { %18070 = vpow2.f32 %v15734_v48  ;;  %v9571_v34 = vsel %vm9570_vm7, %v9569_v15, %v9567_v38 }
0x23c7   :  { %18072 = vpow2.f32 %v15735_v20  ;;  %v9572_v28 = vpack.c.b16 %v9571_v34, %v9571_v34 }
0x23c9   :  { %9767 = vmatmul.mubr.bf16.vlgmr.msra.gmra.mrb[148].mxu1 %v9572_v28  ;;  %9808 = vmatmul.mubr.bf16.vlgmr.msra.gmra.mrb[172].mxu0 %v9572_v28 }
0x23ca   :  { %10044 = vmatpush1.bf16.msra.mxu1 %v20587_v46  ;;  %10085 = vmatpush1.bf16.msra.mxu0 %v20413_v13  ;;  %v20603_v13 = vld [vmem:[#allocation30 + $0x40] ss:$16 sps:$4 sm:$0xff]  }
0x23cb   :  { %10045 = vmatprep.subr.bf16.mxu1 %v20589_v8  ;;  %10086 = vmatprep.subr.bf16.mxu0 %v20415_v50 }
0x23cc   :  { %10075 = vmatprep.mubr.bf16.mxu1 %v22031_v30  ;;  %10116 = vmatprep.mubr.bf16.mxu0 %v22031_v30 }
0x23cd   :  { %v18067_v39 = vpop.eup %18066 }
0x23ce   :  { %v18069_v49 = vpop.eup %18068  ;;  %v9513_v54 = vmul.f32 %v18067_v39, %v18059_v19  ;;  %10046 = vmatpush1.bf16.msra.mxu1 %v20593_v18  ;;  %10087 = vmatpush1.bf16.msra.mxu0 %v20419_v45  ;;  %v20617_v45 = vld [vmem:[#allocation30 + $0x84] ss:$16 sps:$4 sm:$0xff]  }
0x23cf   :  { %v9514_v2 = vmul.f32 %v18069_v49, %v18061_v36  ;;  %10047 = vmatprep.subr.bf16.mxu1 %v20597_v43  ;;  %10088 = vmatprep.subr.bf16.mxu0 %v20423_v9  ;;  %v20621_v9 = vld [vmem:[#allocation30 + $0x80] ss:$16 sps:$4 sm:$0xff]  }
0x23d0   :  { %v18071_v50 = vpop.eup %18070  ;;  %v20607_v59 = vadd.f32 %v9513_v54, %v9511_v25  ;;  %v20645_v36 = vld [vmem:[#allocation30 + $0xe0] ss:$16 sps:$4 sm:$0xff]   ;;  %v20672_v54 = vld [vmem:[%s22005_s20 + $0x8] ss:$16 sps:$4 sm:$0xff]  }
0x23d1   :  { %v18073_v17 = vpop.eup %18072  ;;  %v20609_v47 = vadd.f32 %v9514_v2, %v9512_v55  ;;  %v9505_v35 = vadd.f32 1.0, %v18071_v50  ;;  %v20662_v25 = vld [vmem:[%s22005_s20 + $0xc] ss:$16 sps:$4 sm:$0xff]   ;;  %v20681_v55 = vld [vmem:[%s22005_s20 + $0x24] ss:$16 sps:$4 sm:$0xff]  }
0x23d2   :  { %18074 = vtanh.f32 %v20607_v59  ;;  %v9506_v38 = vadd.f32 1.0, %v18073_v17  ;;  %10048 = vmatpush1.bf16.msra.mxu1 %v20603_v13  ;;  %10089 = vmatpush1.bf16.msra.mxu0 %v20426_v12  ;;  %v20625_v12 = vld [vmem:[#allocation30 + $0xa4] ss:$16 sps:$4 sm:$0xff]   ;;  %v20686_v2 = vld [vmem:[%s22005_s20 + $0x2c] ss:$16 sps:$4 sm:$0xff]  }
0x23d3   :  { %18076 = vtanh.f32 %v20609_v47  ;;  %10049 = vmatprep.subr.bf16.mxu1 %v20243_v1  ;;  %10090 = vmatprep.subr.bf16.mxu0 %v20429_v24  ;;  %v20629_v1 = vld [vmem:[#allocation30 + $0xa0] ss:$16 sps:$4 sm:$0xff]   ;;  %v20691_v50 = vld [vmem:[%s22005_s20 + $0x20] ss:$16 sps:$4 sm:$0xff]   ;;  %v20696_v17 = vld [vmem:[%s22005_s20 + $0x28] ss:$16 sps:$4 sm:$0xff]  }
0x23d4   :  { %18078 = vrcp.f32 %v9505_v35  ;;  %v20705_v35 = vld [vmem:[%s22005_s20 + $0x44] ss:$16 sps:$4 sm:$0xff]  }
0x23d5   :  { %18080 = vrcp.f32 %v9506_v38  ;;  %v20710_v38 = vld [vmem:[%s22005_s20 + $0x4c] ss:$16 sps:$4 sm:$0xff]  }
0x23d6   :  { %10050 = vmatpush1.bf16.msra.mxu1 %v20245_v11  ;;  %10091 = vmatpush1.bf16.msra.mxu0 %v20432_v26  ;;  %v20633_v11 = vld [vmem:[#allocation30 + $0xc4] ss:$16 sps:$4 sm:$0xff]  }
0x23d7   :  { %10051 = vmatprep.subr.bf16.mxu1 %v20617_v45  ;;  %10092 = vmatprep.subr.bf16.mxu0 %v20435_v5  ;;  %v20637_v5 = vld [vmem:[#allocation30 + $0xc0] ss:$16 sps:$4 sm:$0xff]  }
0x23da   :  { %10052 = vmatpush1.bf16.msra.mxu1 %v20621_v9  ;;  %10093 = vmatpush1.bf16.msra.mxu0 %v20438_v14  ;;  %v20641_v14 = vld [vmem:[#allocation30 + $0xe4] ss:$16 sps:$4 sm:$0xff]  }
0x23db   :  { %10053 = vmatprep.subr.bf16.mxu1 %v20625_v12  ;;  %10094 = vmatprep.subr.bf16.mxu0 %v20441_v56 }
0x23dc   :  { %v18075_v24 = vpop.eup %18074 }
0x23dd   :  { %v18077_v26 = vpop.eup %18076 }
0x23de   :  { %v18079_v48 = vpop.eup %18078  ;;  %10054 = vmatpush1.bf16.msra.mxu1 %v20629_v1  ;;  %10095 = vmatpush1.bf16.msra.mxu0 %v20444_v62 }
0x23df   :  { %v18081_v20 = vpop.eup %18080  ;;  %10055 = vmatprep.subr.bf16.mxu1 %v20633_v11  ;;  %10096 = vmatprep.subr.bf16.mxu0 %v20447_v10  ;;  %v9519_v15 = vmul.f32 %v18079_v48, %v18075_v24  ;;  %v20715_v24 = vld [vmem:[%s22005_s20 + $0x40] ss:$16 sps:$4 sm:$0xff]   ;;  %v20729_v48 = vld [vmem:[%s22005_s20 + $0x64] ss:$16 sps:$4 sm:$0xff]  }
0x23e0   :  { %v9520_v56 = vmul.f32 %v18081_v20, %v18077_v26  ;;  %v20720_v26 = vld [vmem:[%s22005_s20 + $0x48] ss:$16 sps:$4 sm:$0xff]   ;;  %22153 = vst [vmem:[#allocation56_spill] sm:$0xff] %v20729_v48  ;;  %v20734_v20 = vld [vmem:[%s22005_s20 + $0x6c] ss:$16 sps:$4 sm:$0xff]  }
0x23e1   :  { %v9525_v19 = vrot.slane %v9519_v15, 7  ;;  %v9872_v34 = vpack.c.bf16 %v9519_v15, %v9519_v15  ;;  %22154 = vst [vmem:[#allocation57_spill] sm:$0xff] %v20734_v20  ;;  %v20739_v15 = vld [vmem:[%s22005_s20 + $0x60] ss:$16 sps:$4 sm:$0xff]  }
0x23e2   :  { %10056 = vmatpush1.bf16.msra.mxu1 %v20637_v5  ;;  %10097 = vmatpush1.bf16.msra.mxu0 %v20450_v51  ;;  %v9526_v62 = vrot.slane %v9520_v56, 7  ;;  %v9873_v28 = vpack.c.bf16 %v9520_v56, %v9520_v56  ;;  %22155 = vst [vmem:[#allocation58_spill] sm:$0xff] %v20739_v15  ;;  %v20744_v56 = vld [vmem:[%s22005_s20 + $0x68] ss:$16 sps:$4 sm:$0xff]  }
0x23e3   :  { %10057 = vmatprep.subr.bf16.mxu1 %v20641_v14  ;;  %10098 = vmatprep.subr.bf16.mxu0 %v20453_v52  ;;  %9529 = vst [vmem:[#allocation2 + $0xf] sm:$0x1] %v9525_v19  ;;  %v9876_v10 = vunpack.c.l.b16 %v9872_v34  ;;  %v20657_v52 = vld [vmem:[%s22005_s20 + $0x4] ss:$16 sps:$4 sm:$0xff]   ;;  %22156 = vst [vmem:[#allocation59_spill] sm:$0xff] %v20744_v56 }
0x23e4   :  { %9530 = vst [vmem:[#allocation2 + $0x1f] sm:$0x1] %v9526_v62  ;;  %v9877_v37 = vunpack.c.l.b16 %v9873_v28  ;;  %v20753_v19 = vld [vmem:[%s22005_s20 + $0x84] ss:$16 sps:$4 sm:$0xff]   ;;  %v20758_v34 = vld [vmem:[%s22005_s20 + $0x8c] ss:$16 sps:$4 sm:$0xff]  }
0x23e5   :  { %v9878_v32 = vrot.slane %v9876_v10, 7  ;;  %22157 = vst [vmem:[#allocation60_spill] sm:$0xff] %v20753_v19  ;;  %22158 = vst [vmem:[#allocation61_spill] sm:$0xff] %v20758_v34  ;;  %v20763_v62 = vld [vmem:[%s22005_s20 + $0x80] ss:$16 sps:$4 sm:$0xff]  }
0x23e6   :  { %10058 = vmatpush1.bf16.msra.mxu1 %v20645_v36  ;;  %10099 = vmatpush1.bf16.msra.mxu0 %v20456_v16  ;;  %v9879_v39 = vrot.slane %v9877_v37, 6  ;;  %v20667_v16 = vld [vmem:[%s22005_s20] ss:$16 sps:$4 sm:$0xff]   ;;  %22159 = vst [vmem:[#allocation62_spill] sm:$0xff] %v20763_v62  ;;  %v20768_v28 = vld [vmem:[%s22005_s20 + $0x88] ss:$16 sps:$4 sm:$0xff]  }
0x23e7   :  { %10479 = vmatprep.subr.bf16.mxu1 %v20657_v52  ;;  %10520 = vmatprep.subr.bf16.mxu0 %v20662_v25  ;;  %22160 = vst [vmem:[#allocation63_spill] sm:$0xff] %v20768_v28  ;;  %v20777_v10 = vld [vmem:[%s22005_s20 + $0xa4] ss:$16 sps:$4 sm:$0xff]   ;;  %v20782_v37 = vld [vmem:[%s22005_s20 + $0xac] ss:$16 sps:$4 sm:$0xff]  }
0x23e8   :  { %v9880_v51 = vsel %vm9570_vm7, %v9879_v39, %v9878_v32  ;;  %22161 = vst [vmem:[#allocation64_spill] sm:$0xff] %v20777_v10  ;;  %22162 = vst [vmem:[#allocation65_spill] sm:$0xff] %v20782_v37  ;;  %v20787_v32 = vld [vmem:[%s22005_s20 + $0xa0] ss:$16 sps:$4 sm:$0xff]   ;;  %v20792_v39 = vld [vmem:[%s22005_s20 + $0xa8] ss:$16 sps:$4 sm:$0xff]  }
0x23e9   :  { %v9881_v49 = vpack.c.b16 %v9880_v51, %v9880_v51  ;;  %22163 = vst [vmem:[#allocation66_spill] sm:$0xff] %v20787_v32  ;;  %22164 = vst [vmem:[#allocation67_spill] sm:$0xff] %v20792_v39  ;;  %v20801_v51 = vld [vmem:[%s22005_s20 + $0xc4] ss:$16 sps:$4 sm:$0xff]  }
0x23ea   :  { %22165 = vst [vmem:[#allocation68_spill] sm:$0xff] %v20801_v51 }
0x23eb   :  { %10076 = vmatmul.mubr.bf16.vlgmr.msra.gmra.mrb[152].mxu1 %v9881_v49  ;;  %10117 = vmatmul.mubr.bf16.vlgmr.msra.gmra.mrb[176].mxu0 %v9881_v49  ;;  %v20806_v49 = vld [vmem:[%s22005_s20 + $0xcc] ss:$16 sps:$4 sm:$0xff]  }
0x23ec   :  { %10511 = vmatprep.mubr.bf16.mxu1 %v22031_v30  ;;  %10552 = vmatprep.mubr.bf16.mxu0 %v22031_v30  ;;  %22166 = vst [vmem:[#allocation69_spill] sm:$0xff] %v20806_v49  ;;  %v20811_v30 = vld [vmem:[%s22005_s20 + $0xc0] ss:$16 sps:$4 sm:$0xff]  }
0x23ed   :  { %10480 = vmatpush1.bf16.msra.mxu1 %v20667_v16  ;;  %10521 = vmatpush1.bf16.msra.mxu0 %v20672_v54  ;;  %22167 = vst [vmem:[#allocation70_spill] sm:$0xff] %v20811_v30 }
0x23ee   :  { %10481 = vmatprep.subr.bf16.mxu1 %v20681_v55  ;;  %10522 = vmatprep.subr.bf16.mxu0 %v20686_v2 }
0x23f1   :  { %10482 = vmatpush1.bf16.msra.mxu1 %v20691_v50  ;;  %10523 = vmatpush1.bf16.msra.mxu0 %v20696_v17 }
0x23f2   :  { %10483 = vmatprep.subr.bf16.mxu1 %v20705_v35  ;;  %10524 = vmatprep.subr.bf16.mxu0 %v20710_v38 }
0x23f5   :  { %10484 = vmatpush1.bf16.msra.mxu1 %v20715_v24  ;;  %10525 = vmatpush1.bf16.msra.mxu0 %v20720_v26 }
0x23f6   :  { %10485 = vmatprep.subr.bf16.mxu1 %v20729_v48  ;;  %10526 = vmatprep.subr.bf16.mxu0 %v20734_v20 }
0x23f9   :  { %10486 = vmatpush1.bf16.msra.mxu1 %v20739_v15  ;;  %10527 = vmatpush1.bf16.msra.mxu0 %v20744_v56 }
0x23fa   :  { %10487 = vmatprep.subr.bf16.mxu1 %v20753_v19  ;;  %10528 = vmatprep.subr.bf16.mxu0 %v20758_v34 }
0x23fd   :  { %10488 = vmatpush1.bf16.msra.mxu1 %v20763_v62  ;;  %10529 = vmatpush1.bf16.msra.mxu0 %v20768_v28 }
0x23fe   :  { %10489 = vmatprep.subr.bf16.mxu1 %v20777_v10  ;;  %10530 = vmatprep.subr.bf16.mxu0 %v20782_v37 }
0x2401   :  { %10490 = vmatpush1.bf16.msra.mxu1 %v20787_v32  ;;  %10531 = vmatpush1.bf16.msra.mxu0 %v20792_v39 }
0x2402   :  { %10491 = vmatprep.subr.bf16.mxu1 %v20801_v51  ;;  %10532 = vmatprep.subr.bf16.mxu0 %v20806_v49  ;;  %v20835_v51 = vld [vmem:[%s22005_s20 + $0xe0] ss:$16 sps:$4 sm:$0xff]  }
0x2403   :  { %22171 = vst [vmem:[#allocation74_spill] sm:$0xff] %v20835_v51 }
0x2405   :  { %10492 = vmatpush1.bf16.msra.mxu1 %v20811_v30  ;;  %10533 = vmatpush1.bf16.msra.mxu0 %v20816_v22  ;;  %v20840_v30 = vld [vmem:[%s22005_s20 + $0xe8] ss:$16 sps:$4 sm:$0xff]  }
0x2406   :  { %22172 = vst [vmem:[#allocation75_spill] sm:$0xff] %v20840_v30  ;;  %10493 = vmatprep.subr.bf16.mxu1 %v20825_v63  ;;  %10534 = vmatprep.subr.bf16.mxu0 %v20830_v61  ;;  %v20847_v22 = vld [vmem:[#allocation30 + $0xc] ss:$16 sps:$4 sm:$0xff]  }
0x2407   :  { %22173 = vst [vmem:[#allocation76_spill] sm:$0xff] %v20847_v22 }
0x2409   :  { %10494 = vmatpush1.bf16.msra.mxu1 %v20835_v51  ;;  %10535 = vmatpush1.bf16.msra.mxu0 %v20840_v30 }
0x240a   :  { %10792 = vmatprep.subr.bf16.mxu1 %v20483_v23  ;;  %10833 = vmatprep.subr.bf16.mxu0 %v20847_v22 }
0x249c   :  { %v9768_v49 = vpop.f32.mrb[148].mxu1  ;;  %v9809_v39 = vpop.f32.mrb[172].mxu0 }
0x249d   :  { %v9820_v32 = vrot.slane %v9768_v49, 7  ;;  %v9836_v37 = vadd.f32 %v9768_v49, %v20515_v42  ;;  %v9770_v10 = vpop.f32.mrb[149].mxu1  ;;  %v9811_v28 = vpop.f32.mrb[173].mxu0 }
0x249e   :  { %v9821_v63 = vrot.slane %v9770_v10, 7  ;;  %v9837_v61 = vadd.f32 %v9770_v10, %v20505_v21  ;;  %v9772_v62 = vpop.f32.mrb[150].mxu1  ;;  %v9813_v51 = vpop.f32.mrb[174].mxu0  ;;  %v9823_v22 = vrot.slane %v9811_v28, 7  ;;  %v9822_v10 = vrot.slane %v9809_v39, 7 }
0x249f   :  { %v9832_v30 = vadd.f32 %v9820_v32, %v20495_v27  ;;  %v15801_v34 = vmul.f32 -1.442695, %v9836_v37  ;;  %v9773_v23 = vpop.f32.mrb[151].mxu1  ;;  %v9814_v19 = vpop.f32.mrb[175].mxu0  ;;  %v9839_v62 = vadd.f32 %v9811_v28, %v20543_v6  ;;  %v9838_v32 = vadd.f32 %v9809_v39, %v20539_v57 }
0x24a0   :  { %v9833_v56 = vadd.f32 %v9821_v63, %v20500_v33  ;;  %v15803_v20 = vmul.f32 -1.442695, %v9837_v61  ;;  %v9835_v49 = vadd.f32 %v9823_v22, %v20536_v29  ;;  %v9834_v63 = vadd.f32 %v9822_v10, %v20531_v4 }
0x24a1   :  { %v15800_v15 = vmul.f32 -1.442695, %v9832_v30  ;;  %18082 = vpow2.f32 %v15801_v34  ;;  %v15805_v51 = vmul.f32 -1.442695, %v9839_v62 }
0x24a2   :  { %v15802_v48 = vmul.f32 -1.442695, %v9833_v56  ;;  %v15804_v37 = vmul.f32 -1.442695, %v9835_v49 }
0x24a3   :  { %18084 = vpow2.f32 %v15800_v15 }
0x24a4   :  { %18086 = vpow2.f32 %v15802_v48 }
0x24a5   :  { %18088 = vpow2.f32 %v15803_v20 }
0x24a6   :  { %18090 = vtanh.f32 %v9838_v32  ;;  %v10193_v32 = vrot.slane %v20560_v3, 7 }
0x24a7   :  { %18092 = vpow2.f32 %v15804_v37 }
0x24a8   :  { %18094 = vpow2.f32 %v15805_v51 }
0x24ab   :  { %v18083_v19 = vpop.eup %18082 }
0x24ac   :  { %v10160_v30 = vadd.f32 1.0, %v18083_v19 }
0x24ad   :  { %v18085_v61 = vpop.eup %18084 }
0x24ae   :  { %v18087_v15 = vpop.eup %18086  ;;  %v10159_v48 = vadd.f32 1.0, %v18085_v61  ;;  %18096 = vrcp.f32 %v10160_v30  ;;  %v10194_v30 = vrot.slane %v20562_v41, 7 }
0x24af   :  { %v18089_v22 = vpop.eup %18088  ;;  %18098 = vtanh.f32 %v9834_v63  ;;  %v10171_v20 = vadd.f32 1.0, %v18087_v15 }
0x24b0   :  { %18100 = vrcp.f32 %v10159_v48  ;;  %v10172_v56 = vadd.f32 1.0, %v18089_v22  ;;  %v18091_v34 = vpop.eup %18090 }
0x24b1   :  { %18102 = vrcp.f32 %v10171_v20  ;;  %v18093_v28 = vpop.eup %18092 }
0x24b2   :  { %18104 = vrcp.f32 %v10172_v56  ;;  %v18095_v39 = vpop.eup %18094  ;;  %v10185_v37 = vadd.f32 1.0, %v18093_v28 }
0x24b3   :  { %v10186_v63 = vadd.f32 1.0, %v18095_v39 }
0x24b4   :  { %18106 = vrcp.f32 %v10185_v37 }
0x24b5   :  { %18108 = vrcp.f32 %v10186_v63 }
0x24b8   :  { %v18097_v23 = vpop.eup %18096 }
0x24b9   :  { %v18099_v49 = vpop.eup %18098  ;;  %v10200_v62 = vmul.f32 %v18097_v23, %v18091_v34 }
0x24ba   :  { %v18101_v10 = vpop.eup %18100 }
0x24bb   :  { %v18103_v51 = vpop.eup %18102  ;;  %v10199_v19 = vmul.f32 %v18101_v10, %v18099_v49 }
0x24bc   :  { %v18105_v61 = vpop.eup %18104  ;;  %v10197_v15 = vmul.f32 %v18103_v51, %v10193_v32 }
0x24bd   :  { %v10198_v48 = vmul.f32 %v18105_v61, %v10194_v30 }
0x24be   :  { %v20860_v22 = vadd.f32 %v10199_v19, %v10197_v15  ;;  %v10077_v20 = vpop.f32.mrb[152].mxu1  ;;  %v10118_v56 = vpop.f32.mrb[176].mxu0 }
0x24bf   :  { %v20862_v57 = vadd.f32 %v10200_v62, %v10198_v48  ;;  %v10129_v34 = vrot.slane %v10077_v20, 2  ;;  %v10133_v23 = vrot.slane %v10077_v20, 3  ;;  %v10079_v3 = vpop.f32.mrb[153].mxu1  ;;  %v10120_v28 = vpop.f32.mrb[177].mxu0 }
0x24c0   :  { %18110 = vtanh.f32 %v20860_v22  ;;  %v10130_v49 = vrot.slane %v10079_v3, 2  ;;  %v10134_v41 = vrot.slane %v10079_v3, 3  ;;  %v10081_v39 = vpop.f32.mrb[154].mxu1  ;;  %v10122_v10 = vpop.f32.mrb[178].mxu0  ;;  %v10132_v20 = vrot.slane %v10120_v28, 2 }
0x24c1   :  { %18112 = vtanh.f32 %v20862_v57  ;;  %v10145_v32 = vadd.f32 %v10129_v34, %v20527_v31  ;;  %v10149_v37 = vadd.f32 %v10133_v23, %v20534_v0  ;;  %v10082_v51 = vpop.f32.mrb[155].mxu1  ;;  %v10123_v62 = vpop.f32.mrb[179].mxu0  ;;  %v10136_v3 = vrot.slane %v10120_v28, 3 }
0x24c2   :  { %v10146_v19 = vadd.f32 %v10130_v49, %v20547_v7  ;;  %v10150_v30 = vadd.f32 %v10134_v41, %v20553_v53  ;;  %v10131_v39 = vrot.slane %v10118_v56, 2  ;;  %v10135_v10 = vrot.slane %v10118_v56, 3  ;;  %v18107_v34 = vpop.eup %18106 }
0x24c3   :  { %v15806_v63 = vmul.f32 -1.442695, %v10145_v32  ;;  %v15807_v61 = vmul.f32 -1.442695, %v10149_v37  ;;  %v10148_v23 = vadd.f32 %v10132_v20, %v20574_v40  ;;  %v18109_v51 = vpop.eup %18108  ;;  %v10152_v49 = vadd.f32 %v10136_v3, %v20580_v58 }
0x24c4   :  { %v15808_v15 = vmul.f32 -1.442695, %v10146_v19  ;;  %v15809_v48 = vmul.f32 -1.442695, %v10150_v30  ;;  %v10147_v41 = vadd.f32 %v10131_v39, %v20571_v60  ;;  %v10151_v37 = vadd.f32 %v10135_v10, %v20577_v44 }
0x24c5   :  { %18114 = vpow2.f32 %v15806_v63  ;;  %v15810_v30 = vmul.f32 -1.442695, %v10148_v23  ;;  %v15811_v63 = vmul.f32 -1.442695, %v10152_v49 }
0x24c6   :  { %18116 = vpow2.f32 %v15807_v61 }
0x24c7   :  { %18118 = vpow2.f32 %v15808_v15 }
0x24c8   :  { %18120 = vpow2.f32 %v15809_v48 }
0x24c9   :  { %18122 = vtanh.f32 %v10147_v41  ;;  %v20875_v41 = vld [vmem:[#allocation30 + $0x8] ss:$16 sps:$4 sm:$0xff]  }
0x24ca   :  { %v18111_v62 = vpop.eup %18110  ;;  %18124 = vtanh.f32 %v10151_v37  ;;  %v20877_v37 = vld [vmem:[#allocation30 + $0x2c] ss:$16 sps:$4 sm:$0xff]  }
0x24cb   :  { %v18113_v32 = vpop.eup %18112  ;;  %v10205_v19 = vmul.f32 %v18111_v62, %v18107_v34  ;;  %18126 = vpow2.f32 %v15810_v30  ;;  %v22174_v30 = vmov 0  }
0x24cc   :  { %v10206_v28 = vmul.f32 %v18113_v32, %v18109_v51  ;;  %18128 = vpow2.f32 %v15811_v63 }
0x24cd   :  { %v10263_v61 = vrot.slane %v10205_v19, 1  ;;  %v10309_v56 = vpack.c.bf16 %v10205_v19, %v10205_v19 }
0x24ce   :  { %v10264_v15 = vrot.slane %v10206_v28, 1  ;;  %v10310_v48 = vpack.c.bf16 %v10206_v28, %v10206_v28 }
0x24cf   :  { %v18115_v53 = vpop.eup %18114  ;;  %10267 = vst [vmem:[#allocation2 + $0x1] sm:$0x1] %v10263_v61  ;;  %v10313_v20 = vunpack.c.l.b16 %v10309_v56  ;;  %v20897_v56 = vld [vmem:[#allocation30 + $0x6c] ss:$16 sps:$4 sm:$0xff]  }
0x24d0   :  { %v18117_v3 = vpop.eup %18116  ;;  %v10213_v58 = vadd.f32 1.0, %v18115_v53  ;;  %10268 = vst [vmem:[#allocation2 + $0x11] sm:$0x1] %v10264_v15  ;;  %v10314_v10 = vunpack.c.l.b16 %v10310_v48  ;;  %v20881_v53 = vld [vmem:[#allocation30 + $0x28] ss:$16 sps:$4 sm:$0xff]   ;;  %v10247_v48 = vrot.slane %v20607_v59, 1 }
0x24d1   :  { %v18119_v39 = vpop.eup %18118  ;;  %v10214_v60 = vadd.f32 1.0, %v18117_v3  ;;  %v10315_v34 = vrot.slane %v10313_v20, 1  ;;  %v20909_v59 = vld [vmem:[#allocation30 + $0x8c] ss:$16 sps:$4 sm:$0xff]  }
0x24d2   :  { %v18121_v23 = vpop.eup %18120  ;;  %18130 = vrcp.f32 %v10213_v58  ;;  %v10225_v51 = vadd.f32 1.0, %v18119_v39 }
0x24d3   :  { %18132 = vrcp.f32 %v10214_v60  ;;  %v10226_v49 = vadd.f32 1.0, %v18121_v23  ;;  %v10316_v62 = vsel %vm9570_vm7, %v10314_v10, %v10315_v34  ;;  %v18123_v58 = vpop.eup %18122  ;;  %v20885_v60 = vld [vmem:[#allocation30 + $0x4c] ss:$16 sps:$4 sm:$0xff]  }
0x24d4   :  { %18134 = vrcp.f32 %v10225_v51  ;;  %v10317_v32 = vpack.c.b16 %v10316_v62, %v10316_v62  ;;  %v18125_v19 = vpop.eup %18124 }
0x24d5   :  { %18136 = vrcp.f32 %v10226_v49  ;;  %v18127_v28 = vpop.eup %18126  ;;  %v20905_v49 = vld [vmem:[#allocation30 + $0x68] ss:$16 sps:$4 sm:$0xff]  }
0x24d6   :  { %10512 = vmatmul.mubr.bf16.vlgmr.msra.gmra.mrb[156].mxu1 %v10317_v32  ;;  %10553 = vmatmul.mubr.bf16.vlgmr.msra.gmra.mrb[180].mxu0 %v10317_v32  ;;  %v18129_v63 = vpop.eup %18128  ;;  %v10239_v3 = vadd.f32 1.0, %v18127_v28  ;;  %v20931_v28 = vld [vmem:[#allocation30 + $0xcc] ss:$16 sps:$4 sm:$0xff]  }
0x24d7   :  { %10793 = vmatpush1.bf16.msra.mxu1 %v20587_v46  ;;  %10834 = vmatpush1.bf16.msra.mxu0 %v20875_v41  ;;  %v20891_v46 = vld [vmem:[#allocation30 + $0x48] ss:$16 sps:$4 sm:$0xff]   ;;  %v10240_v34 = vadd.f32 1.0, %v18129_v63 }
0x24d8   :  { %10794 = vmatprep.subr.bf16.mxu1 %v20589_v8  ;;  %10835 = vmatprep.subr.bf16.mxu0 %v20877_v37  ;;  %v20895_v8 = vld [vmem:[#allocation30 + $0x64] ss:$16 sps:$4 sm:$0xff]   ;;  %18138 = vrcp.f32 %v10239_v3 }
0x24d9   :  { %10824 = vmatprep.mubr.bf16.mxu1 %v22174_v30  ;;  %10865 = vmatprep.mubr.bf16.mxu0 %v22174_v30  ;;  %18140 = vrcp.f32 %v10240_v34 }
0x24db   :  { %10795 = vmatpush1.bf16.msra.mxu1 %v20593_v18  ;;  %10836 = vmatpush1.bf16.msra.mxu0 %v20881_v53  ;;  %v10248_v18 = vrot.slane %v20609_v47, 1 }
0x24dc   :  { %v18131_v61 = vpop.eup %18130  ;;  %10796 = vmatprep.subr.bf16.mxu1 %v20597_v43  ;;  %10837 = vmatprep.subr.bf16.mxu0 %v20885_v60  ;;  %v20903_v43 = vld [vmem:[#allocation30 + $0x60] ss:$16 sps:$4 sm:$0xff]  }
0x24dd   :  { %v18133_v15 = vpop.eup %18132  ;;  %v10253_v20 = vmul.f32 %v18131_v61, %v18123_v58  ;;  %v20923_v58 = vld [vmem:[#allocation30 + $0xac] ss:$16 sps:$4 sm:$0xff]  }
0x24de   :  { %v18135_v39 = vpop.eup %18134  ;;  %v10254_v10 = vmul.f32 %v18133_v15, %v18125_v19  ;;  %v20927_v19 = vld [vmem:[#allocation30 + $0xa8] ss:$16 sps:$4 sm:$0xff]  }
0x24df   :  { %v18137_v23 = vpop.eup %18136  ;;  %v10251_v51 = vmul.f32 %v18135_v39, %v10247_v48  ;;  %10797 = vmatpush1.bf16.msra.mxu1 %v20603_v13  ;;  %10838 = vmatpush1.bf16.msra.mxu0 %v20891_v46  ;;  %v20918_v13 = vld [vmem:[#allocation30 + $0x88] ss:$16 sps:$4 sm:$0xff]  }
0x24e0   :  { %v10252_v62 = vmul.f32 %v18137_v23, %v10248_v18  ;;  %10798 = vmatprep.subr.bf16.mxu1 %v20895_v8  ;;  %10839 = vmatprep.subr.bf16.mxu0 %v20897_v56 }
0x24e1   :  { %v20911_v47 = vadd.f32 %v10253_v20, %v10251_v51  ;;  %v20943_v20 = vld [vmem:[#allocation30 + $0xe8] ss:$16 sps:$4 sm:$0xff]  }
0x24e2   :  { %v20913_v32 = vadd.f32 %v10254_v10, %v10252_v62  ;;  %v18139_v63 = vpop.eup %18138  ;;  %v22188_v62 = vld [vmem:[#allocation69_spill] sm:$0xff] }
0x24e3   :  { %18142 = vtanh.f32 %v20911_v47  ;;  %10799 = vmatpush1.bf16.msra.mxu1 %v20903_v43  ;;  %10840 = vmatpush1.bf16.msra.mxu0 %v20905_v49  ;;  %v18141_v61 = vpop.eup %18140 }
0x24e4   :  { %18144 = vtanh.f32 %v20913_v32  ;;  %10800 = vmatprep.subr.bf16.mxu1 %v20617_v45  ;;  %10841 = vmatprep.subr.bf16.mxu0 %v20909_v59  ;;  %v20935_v45 = vld [vmem:[#allocation30 + $0xc8] ss:$16 sps:$4 sm:$0xff]  }
0x24e7   :  { %10801 = vmatpush1.bf16.msra.mxu1 %v20621_v9  ;;  %10842 = vmatpush1.bf16.msra.mxu0 %v20918_v13  ;;  %v20939_v9 = vld [vmem:[#allocation30 + $0xec] ss:$16 sps:$4 sm:$0xff]  }
0x24e8   :  { %10802 = vmatprep.subr.bf16.mxu1 %v20625_v12  ;;  %10843 = vmatprep.subr.bf16.mxu0 %v20923_v58 }
0x24eb   :  { %10803 = vmatpush1.bf16.msra.mxu1 %v20629_v1  ;;  %10844 = vmatpush1.bf16.msra.mxu0 %v20927_v19 }
0x24ec   :  { %10804 = vmatprep.subr.bf16.mxu1 %v20633_v11  ;;  %10845 = vmatprep.subr.bf16.mxu0 %v20931_v28 }
0x24ed   :  { %v18143_v15 = vpop.eup %18142 }
0x24ee   :  { %v18145_v12 = vpop.eup %18144  ;;  %v10259_v48 = vmul.f32 %v18143_v15, %v18139_v63  ;;  %v22189_v63 = vld [vmem:[#allocation70_spill] sm:$0xff]  ;;  %v22191_v15 = vld [vmem:[#allocation72_spill] sm:$0xff] }
0x24ef   :  { %10805 = vmatpush1.bf16.msra.mxu1 %v20637_v5  ;;  %10846 = vmatpush1.bf16.msra.mxu0 %v20935_v45  ;;  %v10260_v1 = vmul.f32 %v18145_v12, %v18141_v61  ;;  %v22190_v61 = vld [vmem:[#allocation71_spill] sm:$0xff]  ;;  %v22192_v12 = vld [vmem:[#allocation73_spill] sm:$0xff] }
0x24f0   :  { %10806 = vmatprep.subr.bf16.mxu1 %v20641_v14  ;;  %10847 = vmatprep.subr.bf16.mxu0 %v20939_v9  ;;  %v10271_v3 = vrot.slane %v10259_v48, 6  ;;  %v10621_v11 = vpack.c.bf16 %v10259_v48, %v10259_v48  ;;  %v22193_v48 = vld [vmem:[#allocation74_spill] sm:$0xff] }
0x24f1   :  { %v10272_v39 = vrot.slane %v10260_v1, 6  ;;  %v10622_v18 = vpack.c.bf16 %v10260_v1, %v10260_v1  ;;  %v22194_v1 = vld [vmem:[#allocation75_spill] sm:$0xff] }
0x24f2   :  { %10275 = vst [vmem:[#allocation2 + $0xe] sm:$0x1] %v10271_v3  ;;  %v10625_v10 = vunpack.c.l.b16 %v10621_v11  ;;  %v22195_v3 = vld [vmem:[#allocation76_spill] sm:$0xff] }
0x24f3   :  { %10807 = vmatpush1.bf16.msra.mxu1 %v20645_v36  ;;  %10848 = vmatpush1.bf16.msra.mxu0 %v20943_v20  ;;  %10276 = vst [vmem:[#allocation2 + $0x1e] sm:$0x1] %v10272_v39  ;;  %v10626_v5 = vunpack.c.l.b16 %v10622_v18  ;;  %v22175_v36 = vld [vmem:[#allocation56_spill] sm:$0xff] }
0x24f4   :  { %v10627_v34 = vrot.slane %v10625_v10, 6  ;;  %11229 = vmatprep.subr.bf16.mxu1 %v20657_v52  ;;  %11270 = vmatprep.subr.bf16.mxu0 %v20662_v25  ;;  %v22176_v52 = vld [vmem:[#allocation57_spill] sm:$0xff]  ;;  %v22177_v25 = vld [vmem:[#allocation58_spill] sm:$0xff] }
0x24f5   :  { %v10628_v14 = vrot.slane %v10626_v5, 5  ;;  %v20985_v11 = vld [vmem:[#allocation30 + $0x4] ss:$16 sps:$4 sm:$0xff]  }
0x24f7   :  { %v10629_v23 = vsel %vm9570_vm7, %v10628_v14, %v10627_v34 }
0x24f8   :  { %v10630_v51 = vpack.c.b16 %v10629_v23, %v10629_v23 }
0x24fa   :  { %10825 = vmatmul.mubr.bf16.vlgmr.msra.gmra.mrb[160].mxu1 %v10630_v51  ;;  %10866 = vmatmul.mubr.bf16.vlgmr.msra.gmra.mrb[184].mxu0 %v10630_v51 }
0x24fb   :  { %11230 = vmatpush1.bf16.msra.mxu1 %v20667_v16  ;;  %11271 = vmatpush1.bf16.msra.mxu0 %v20672_v54  ;;  %v22178_v16 = vld [vmem:[#allocation59_spill] sm:$0xff]  ;;  %v22179_v54 = vld [vmem:[#allocation60_spill] sm:$0xff] }
0x24fc   :  { %11231 = vmatprep.subr.bf16.mxu1 %v20681_v55  ;;  %11272 = vmatprep.subr.bf16.mxu0 %v20686_v2  ;;  %v22180_v55 = vld [vmem:[#allocation61_spill] sm:$0xff]  ;;  %v22181_v2 = vld [vmem:[#allocation62_spill] sm:$0xff] }
0x24fd   :  { %11261 = vmatprep.mubr.bf16.mxu1 %v22174_v30  ;;  %11302 = vmatprep.mubr.bf16.mxu0 %v22174_v30 }
0x24ff   :  { %11232 = vmatpush1.bf16.msra.mxu1 %v20691_v50  ;;  %11273 = vmatpush1.bf16.msra.mxu0 %v20696_v17  ;;  %v22182_v50 = vld [vmem:[#allocation63_spill] sm:$0xff]  ;;  %v22183_v17 = vld [vmem:[#allocation64_spill] sm:$0xff] }
0x2500   :  { %11233 = vmatprep.subr.bf16.mxu1 %v20705_v35  ;;  %11274 = vmatprep.subr.bf16.mxu0 %v20710_v38  ;;  %v22184_v35 = vld [vmem:[#allocation65_spill] sm:$0xff]  ;;  %v22185_v38 = vld [vmem:[#allocation66_spill] sm:$0xff] }
0x2503   :  { %11234 = vmatpush1.bf16.msra.mxu1 %v20715_v24  ;;  %11275 = vmatpush1.bf16.msra.mxu0 %v20720_v26  ;;  %v22186_v24 = vld [vmem:[#allocation67_spill] sm:$0xff]  ;;  %v22187_v26 = vld [vmem:[#allocation68_spill] sm:$0xff] }
0x2504   :  { %11235 = vmatprep.subr.bf16.mxu1 %v22175_v36  ;;  %11276 = vmatprep.subr.bf16.mxu0 %v22176_v52 }
0x2507   :  { %11236 = vmatpush1.bf16.msra.mxu1 %v22177_v25  ;;  %11277 = vmatpush1.bf16.msra.mxu0 %v22178_v16 }
0x2508   :  { %11237 = vmatprep.subr.bf16.mxu1 %v22179_v54  ;;  %11278 = vmatprep.subr.bf16.mxu0 %v22180_v55 }
0x250b   :  { %11238 = vmatpush1.bf16.msra.mxu1 %v22181_v2  ;;  %11279 = vmatpush1.bf16.msra.mxu0 %v22182_v50 }
0x250c   :  { %11239 = vmatprep.subr.bf16.mxu1 %v22183_v17  ;;  %11280 = vmatprep.subr.bf16.mxu0 %v22184_v35 }
0x250f   :  { %11240 = vmatpush1.bf16.msra.mxu1 %v22185_v38  ;;  %11281 = vmatpush1.bf16.msra.mxu0 %v22186_v24 }
0x2510   :  { %11241 = vmatprep.subr.bf16.mxu1 %v22187_v26  ;;  %11282 = vmatprep.subr.bf16.mxu0 %v22188_v62 }
0x2513   :  { %11242 = vmatpush1.bf16.msra.mxu1 %v22189_v63  ;;  %11283 = vmatpush1.bf16.msra.mxu0 %v22190_v61 }
0x2514   :  { %11243 = vmatprep.subr.bf16.mxu1 %v22191_v15  ;;  %11284 = vmatprep.subr.bf16.mxu0 %v22192_v12 }
0x2517   :  { %11244 = vmatpush1.bf16.msra.mxu1 %v22193_v48  ;;  %11285 = vmatpush1.bf16.msra.mxu0 %v22194_v1  ;;  %v22196_v1 = vld [vmem:[#allocation51_spill] sm:$0xff] }
0x2518   :  { %11583 = vmatprep.subr.bf16.mxu0 %v22195_v3  ;;  %11542 = vmatprep.subr.bf16.mxu1 %v20985_v11 }
0x25a9   :  { %v10513_v39 = vpop.f32.mrb[156].mxu1  ;;  %v10554_v18 = vpop.f32.mrb[180].mxu0 }
0x25aa   :  { %v10565_v10 = vrot.slane %v10513_v39, 6  ;;  %v10569_v5 = vrot.slane %v10513_v39, 7  ;;  %v10515_v34 = vpop.f32.mrb[157].mxu1  ;;  %v10556_v14 = vpop.f32.mrb[181].mxu0  ;;  %v10567_v63 = vrot.slane %v10554_v18, 6  ;;  %v10571_v61 = vrot.slane %v10554_v18, 7 }
0x25ab   :  { %v10566_v23 = vrot.slane %v10515_v34, 6  ;;  %v10570_v51 = vrot.slane %v10515_v34, 7  ;;  %v10517_v36 = vpop.f32.mrb[158].mxu1  ;;  %v10558_v52 = vpop.f32.mrb[182].mxu0  ;;  %v10568_v26 = vrot.slane %v10556_v14, 6  ;;  %v10572_v62 = vrot.slane %v10556_v14, 7 }
0x25ac   :  { %v10581_v25 = vadd.f32 %v10565_v10, %v20495_v27  ;;  %v10585_v16 = vadd.f32 %v10569_v5, %v20515_v42  ;;  %v10518_v54 = vpop.f32.mrb[159].mxu1  ;;  %v10559_v55 = vpop.f32.mrb[183].mxu0  ;;  %v10583_v48 = vadd.f32 %v10567_v63, %v20531_v4  ;;  %v10587_v3 = vadd.f32 %v10571_v61, %v22196_v1 }
0x25ad   :  { %v10582_v2 = vadd.f32 %v10566_v23, %v20500_v33  ;;  %v10586_v50 = vadd.f32 %v10570_v51, %v20505_v21  ;;  %v10584_v15 = vadd.f32 %v10568_v26, %v20536_v29  ;;  %v10588_v12 = vadd.f32 %v10572_v62, %v20543_v6 }
0x25ae   :  { %v15876_v17 = vmul.f32 -1.442695, %v10581_v25  ;;  %v15877_v35 = vmul.f32 -1.442695, %v10585_v16  ;;  %v10943_v62 = vrot.slane %v20862_v57, 7 }
0x25af   :  { %v15878_v38 = vmul.f32 -1.442695, %v10582_v2  ;;  %v15879_v24 = vmul.f32 -1.442695, %v10586_v50  ;;  %v15880_v39 = vmul.f32 -1.442695, %v10584_v15 }
0x25b0   :  { %18146 = vpow2.f32 %v15876_v17  ;;  %v15881_v10 = vmul.f32 -1.442695, %v10588_v12 }
0x25b1   :  { %18148 = vpow2.f32 %v15877_v35  ;;  %v10942_v35 = vrot.slane %v20860_v22, 7 }
0x25b2   :  { %18150 = vpow2.f32 %v15878_v38 }
0x25b3   :  { %18152 = vpow2.f32 %v15879_v24 }
0x25b4   :  { %18154 = vtanh.f32 %v10583_v48 }
0x25b5   :  { %18156 = vtanh.f32 %v10587_v3 }
0x25b6   :  { %18158 = vpow2.f32 %v15880_v39 }
0x25b7   :  { %18160 = vpow2.f32 %v15881_v10 }
0x25ba   :  { %v18147_v5 = vpop.eup %18146 }
0x25bb   :  { %v18149_v34 = vpop.eup %18148  ;;  %v10908_v14 = vadd.f32 1.0, %v18147_v5 }
0x25bc   :  { %v18151_v23 = vpop.eup %18150  ;;  %v10909_v18 = vadd.f32 1.0, %v18149_v34 }
0x25bd   :  { %v18153_v51 = vpop.eup %18152  ;;  %18162 = vrcp.f32 %v10908_v14  ;;  %v10920_v36 = vadd.f32 1.0, %v18151_v23 }
0x25be   :  { %18164 = vrcp.f32 %v10909_v18  ;;  %v10921_v52 = vadd.f32 1.0, %v18153_v51  ;;  %v18155_v25 = vpop.eup %18154 }
0x25bf   :  { %18166 = vrcp.f32 %v10920_v36  ;;  %v18157_v16 = vpop.eup %18156 }
0x25c0   :  { %18168 = vrcp.f32 %v10921_v52  ;;  %v18159_v54 = vpop.eup %18158 }
0x25c1   :  { %v18161_v55 = vpop.eup %18160  ;;  %v10934_v38 = vadd.f32 1.0, %v18159_v54 }
0x25c2   :  { %v10935_v63 = vadd.f32 1.0, %v18161_v55  ;;  %v22197_v55 = vld [vmem:[#allocation52_spill] sm:$0xff] }
0x25c3   :  { %18170 = vrcp.f32 %v10934_v38 }
0x25c4   :  { %18172 = vrcp.f32 %v10935_v63 }
0x25c7   :  { %v18163_v2 = vpop.eup %18162 }
0x25c8   :  { %v18165_v50 = vpop.eup %18164  ;;  %v10948_v17 = vmul.f32 %v18163_v2, %v18155_v25 }
0x25c9   :  { %v18167_v24 = vpop.eup %18166  ;;  %v10949_v26 = vmul.f32 %v18165_v50, %v18157_v16 }
0x25ca   :  { %v18169_v61 = vpop.eup %18168  ;;  %v10946_v15 = vmul.f32 %v18167_v24, %v10942_v35 }
0x25cb   :  { %v10947_v12 = vmul.f32 %v18169_v61, %v10943_v62 }
0x25cc   :  { %v20998_v48 = vadd.f32 %v10948_v17, %v10946_v15 }
0x25cd   :  { %v21000_v3 = vadd.f32 %v10949_v26, %v10947_v12  ;;  %v10826_v39 = vpop.f32.mrb[160].mxu1  ;;  %v10867_v10 = vpop.f32.mrb[184].mxu0 }
0x25ce   :  { %18174 = vtanh.f32 %v20998_v48  ;;  %v10878_v22 = vrot.slane %v10826_v39, 3  ;;  %v10882_v5 = vrot.slane %v10826_v39, 4  ;;  %v10828_v34 = vpop.f32.mrb[161].mxu1  ;;  %v10869_v14 = vpop.f32.mrb[185].mxu0  ;;  %v10880_v62 = vrot.slane %v10867_v10, 3 }
0x25cf   :  { %18176 = vtanh.f32 %v21000_v3  ;;  %v10879_v57 = vrot.slane %v10828_v34, 3  ;;  %v10883_v23 = vrot.slane %v10828_v34, 4  ;;  %v10830_v18 = vpop.f32.mrb[162].mxu1  ;;  %v10871_v51 = vpop.f32.mrb[186].mxu0  ;;  %v10881_v24 = vrot.slane %v10869_v14, 3 }
0x25d0   :  { %v10894_v36 = vadd.f32 %v10878_v22, %v20527_v31  ;;  %v10898_v52 = vadd.f32 %v10882_v5, %v20534_v0  ;;  %v10831_v25 = vpop.f32.mrb[163].mxu1  ;;  %v10872_v16 = vpop.f32.mrb[187].mxu0  ;;  %v10885_v26 = vrot.slane %v10869_v14, 4  ;;  %v10884_v61 = vrot.slane %v10867_v10, 4  ;;  %v22198_v22 = vld [vmem:[#allocation55_spill] sm:$0xff] }
0x25d1   :  { %v10895_v54 = vadd.f32 %v10879_v57, %v20547_v7  ;;  %v10899_v2 = vadd.f32 %v10883_v23, %v22197_v55  ;;  %v18171_v63 = vpop.eup %18170  ;;  %v10897_v12 = vadd.f32 %v10881_v24, %v20574_v40  ;;  %v22199_v57 = vld [vmem:[#allocation53_spill] sm:$0xff] }
0x25d2   :  { %v15882_v50 = vmul.f32 -1.442695, %v10894_v36  ;;  %v15883_v17 = vmul.f32 -1.442695, %v10898_v52  ;;  %v18173_v15 = vpop.eup %18172  ;;  %v10901_v5 = vadd.f32 %v10885_v26, %v22198_v22  ;;  %v10896_v23 = vadd.f32 %v10880_v62, %v22199_v57 }
0x25d3   :  { %v15884_v35 = vmul.f32 -1.442695, %v10895_v54  ;;  %v15885_v38 = vmul.f32 -1.442695, %v10899_v2  ;;  %v10900_v51 = vadd.f32 %v10884_v61, %v20577_v44  ;;  %v15886_v14 = vmul.f32 -1.442695, %v10897_v12 }
0x25d4   :  { %18178 = vpow2.f32 %v15882_v50  ;;  %v15887_v16 = vmul.f32 -1.442695, %v10901_v5  ;;  %v21013_v5 = vld [vmem:[#allocation30] ss:$16 sps:$4 sm:$0xff]  }
0x25d5   :  { %18180 = vpow2.f32 %v15883_v17 }
0x25d6   :  { %18182 = vpow2.f32 %v15884_v35 }
0x25d7   :  { %18184 = vpow2.f32 %v15885_v38 }
0x25d8   :  { %v18175_v39 = vpop.eup %18174  ;;  %18186 = vtanh.f32 %v10896_v23  ;;  %v21015_v23 = vld [vmem:[#allocation30 + $0x24] ss:$16 sps:$4 sm:$0xff]  }
0x25d9   :  { %v18177_v34 = vpop.eup %18176  ;;  %v10954_v18 = vmul.f32 %v18175_v39, %v18171_v63  ;;  %18188 = vtanh.f32 %v10900_v51 }
0x25da   :  { %v10955_v36 = vmul.f32 %v18177_v34, %v18173_v15  ;;  %18190 = vpow2.f32 %v15886_v14 }
0x25db   :  { %v11012_v52 = vrot.slane %v10954_v18, 2  ;;  %v11058_v25 = vpack.c.bf16 %v10954_v18, %v10954_v18  ;;  %18192 = vpow2.f32 %v15887_v16  ;;  %v21019_v18 = vld [vmem:[#allocation30 + $0x20] ss:$16 sps:$4 sm:$0xff]  }
0x25dc   :  { %v11013_v10 = vrot.slane %v10955_v36, 2  ;;  %v11059_v54 = vpack.c.bf16 %v10955_v36, %v10955_v36  ;;  %v21023_v36 = vld [vmem:[#allocation30 + $0x44] ss:$16 sps:$4 sm:$0xff]  }
0x25dd   :  { %11016 = vst [vmem:[#allocation2 + $0x2] sm:$0x1] %v11012_v52  ;;  %v11062_v2 = vunpack.c.l.b16 %v11058_v25 }
0x25de   :  { %v18179_v50 = vpop.eup %18178  ;;  %11017 = vst [vmem:[#allocation2 + $0x12] sm:$0x1] %v11013_v10  ;;  %v11063_v17 = vunpack.c.l.b16 %v11059_v54  ;;  %v10996_v54 = vrot.slane %v20911_v47, 1 }
0x25df   :  { %v18181_v35 = vpop.eup %18180  ;;  %v10962_v38 = vadd.f32 1.0, %v18179_v50  ;;  %v11064_v24 = vrot.slane %v11062_v2, 2 }
0x25e0   :  { %v18183_v26 = vpop.eup %18182  ;;  %v10963_v62 = vadd.f32 1.0, %v18181_v35  ;;  %v11065_v63 = vrot.slane %v11063_v17, 1  ;;  %v10997_v35 = vrot.slane %v20913_v32, 1 }
0x25e1   :  { %v18185_v61 = vpop.eup %18184  ;;  %18194 = vrcp.f32 %v10962_v38  ;;  %v10974_v15 = vadd.f32 1.0, %v18183_v26 }
0x25e2   :  { %18196 = vrcp.f32 %v10963_v62  ;;  %v10975_v12 = vadd.f32 1.0, %v18185_v61  ;;  %v11066_v39 = vsel %vm9570_vm7, %v11065_v63, %v11064_v24  ;;  %v18187_v51 = vpop.eup %18186 }
0x25e3   :  { %18198 = vrcp.f32 %v10974_v15  ;;  %v11067_v34 = vpack.c.b16 %v11066_v39, %v11066_v39  ;;  %v18189_v14 = vpop.eup %18188 }
0x25e4   :  { %18200 = vrcp.f32 %v10975_v12  ;;  %v18191_v52 = vpop.eup %18190 }
0x25e5   :  { %11262 = vmatmul.mubr.bf16.vlgmr.msra.gmra.mrb[164].mxu1 %v11067_v34  ;;  %11303 = vmatmul.mubr.bf16.vlgmr.msra.gmra.mrb[188].mxu0 %v11067_v34  ;;  %v18193_v25 = vpop.eup %18192  ;;  %v10988_v2 = vadd.f32 1.0, %v18191_v52 }
0x25e6   :  { %11543 = vmatpush1.bf16.msra.mxu1 %v21013_v5  ;;  %11584 = vmatpush1.bf16.msra.mxu0 %v20875_v41  ;;  %v21029_v41 = vld [vmem:[#allocation30 + $0x40] ss:$16 sps:$4 sm:$0xff]   ;;  %v10989_v38 = vadd.f32 1.0, %v18193_v25 }
0x25e7   :  { %11544 = vmatprep.subr.bf16.mxu1 %v21015_v23  ;;  %11585 = vmatprep.subr.bf16.mxu0 %v20877_v37  ;;  %18202 = vrcp.f32 %v10988_v2  ;;  %v21114_v2 = vld [vmem:[%s22005_s20 + $0x2c] ss:$16 sps:$4 sm:$0xff]  }
0x25e8   :  { %11574 = vmatprep.mubr.bf16.mxu1 %v22174_v30  ;;  %11615 = vmatprep.mubr.bf16.mxu0 %v22174_v30  ;;  %18204 = vrcp.f32 %v10989_v38  ;;  %v21138_v38 = vld [vmem:[%s22005_s20 + $0x4c] ss:$16 sps:$4 sm:$0xff]  }
0x25e9   :  { %22200 = vst [vmem:[#allocation56_spill] sm:$0xff] %v21138_v38 }
0x25ea   :  { %11545 = vmatpush1.bf16.msra.mxu1 %v21019_v18  ;;  %11586 = vmatpush1.bf16.msra.mxu0 %v20881_v53 }
0x25eb   :  { %v18195_v16 = vpop.eup %18194  ;;  %11546 = vmatprep.subr.bf16.mxu1 %v21023_v36  ;;  %11587 = vmatprep.subr.bf16.mxu0 %v20885_v60  ;;  %v21039_v60 = vld [vmem:[#allocation30 + $0x84] ss:$16 sps:$4 sm:$0xff]  }
0x25ec   :  { %v18197_v37 = vpop.eup %18196  ;;  %v11002_v10 = vmul.f32 %v18195_v16, %v18187_v51 }
0x25ed   :  { %v18199_v50 = vpop.eup %18198  ;;  %v11003_v17 = vmul.f32 %v18197_v37, %v18189_v14  ;;  %v21095_v37 = vld [vmem:[%s22005_s20] ss:$16 sps:$4 sm:$0xff]  }
0x25ee   :  { %v18201_v24 = vpop.eup %18200  ;;  %v11000_v26 = vmul.f32 %v18199_v50, %v10996_v54  ;;  %11547 = vmatpush1.bf16.msra.mxu1 %v21029_v41  ;;  %11588 = vmatpush1.bf16.msra.mxu0 %v20891_v46  ;;  %v21048_v46 = vld [vmem:[#allocation30 + $0x80] ss:$16 sps:$4 sm:$0xff]   ;;  %v21109_v54 = vld [vmem:[%s22005_s20 + $0x24] ss:$16 sps:$4 sm:$0xff]   ;;  %v21119_v50 = vld [vmem:[%s22005_s20 + $0x20] ss:$16 sps:$4 sm:$0xff]  }
0x25ef   :  { %v11001_v53 = vmul.f32 %v18201_v24, %v10997_v35  ;;  %11548 = vmatprep.subr.bf16.mxu1 %v20895_v8  ;;  %11589 = vmatprep.subr.bf16.mxu0 %v20897_v56  ;;  %v21053_v8 = vld [vmem:[#allocation30 + $0xa4] ss:$16 sps:$4 sm:$0xff]   ;;  %v21057_v56 = vld [vmem:[#allocation30 + $0xa0] ss:$16 sps:$4 sm:$0xff]   ;;  %v21133_v35 = vld [vmem:[%s22005_s20 + $0x44] ss:$16 sps:$4 sm:$0xff]  }
0x25f0   :  { %v21041_v47 = vadd.f32 %v11002_v10, %v11000_v26  ;;  %v21100_v10 = vld [vmem:[%s22005_s20 + $0x8] ss:$16 sps:$4 sm:$0xff]   ;;  %v21143_v24 = vld [vmem:[%s22005_s20 + $0x40] ss:$16 sps:$4 sm:$0xff]  }
0x25f1   :  { %v21043_v62 = vadd.f32 %v11003_v17, %v11001_v53  ;;  %v21124_v17 = vld [vmem:[%s22005_s20 + $0x28] ss:$16 sps:$4 sm:$0xff]   ;;  %22201 = vst [vmem:[#allocation57_spill] sm:$0xff] %v21143_v24  ;;  %v21157_v53 = vld [vmem:[%s22005_s20 + $0x64] ss:$16 sps:$4 sm:$0xff]  }
0x25f2   :  { %18206 = vtanh.f32 %v21041_v47  ;;  %11549 = vmatpush1.bf16.msra.mxu1 %v20903_v43  ;;  %11590 = vmatpush1.bf16.msra.mxu0 %v20905_v49  ;;  %v21061_v43 = vld [vmem:[#allocation30 + $0xc4] ss:$16 sps:$4 sm:$0xff]   ;;  %v18203_v49 = vpop.eup %18202  ;;  %v21148_v26 = vld [vmem:[%s22005_s20 + $0x48] ss:$16 sps:$4 sm:$0xff]   ;;  %22203 = vst [vmem:[#allocation59_spill] sm:$0xff] %v21157_v53 }
0x25f3   :  { %18208 = vtanh.f32 %v21043_v62  ;;  %11550 = vmatprep.subr.bf16.mxu1 %v21039_v60  ;;  %11591 = vmatprep.subr.bf16.mxu0 %v20909_v59  ;;  %v21065_v59 = vld [vmem:[#allocation30 + $0xc0] ss:$16 sps:$4 sm:$0xff]   ;;  %v18205_v32 = vpop.eup %18204  ;;  %22202 = vst [vmem:[#allocation58_spill] sm:$0xff] %v21148_v26 }
0x25f6   :  { %11551 = vmatpush1.bf16.msra.mxu1 %v21048_v46  ;;  %11592 = vmatpush1.bf16.msra.mxu0 %v20918_v13  ;;  %v21069_v13 = vld [vmem:[#allocation30 + $0xe4] ss:$16 sps:$4 sm:$0xff]  }
0x25f7   :  { %11552 = vmatprep.subr.bf16.mxu1 %v21053_v8  ;;  %11593 = vmatprep.subr.bf16.mxu0 %v20923_v58  ;;  %v21073_v58 = vld [vmem:[#allocation30 + $0xe0] ss:$16 sps:$4 sm:$0xff]  }
0x25fa   :  { %11553 = vmatpush1.bf16.msra.mxu1 %v21057_v56  ;;  %11594 = vmatpush1.bf16.msra.mxu0 %v20927_v19 }
0x25fb   :  { %11554 = vmatprep.subr.bf16.mxu1 %v21061_v43  ;;  %11595 = vmatprep.subr.bf16.mxu0 %v20931_v28 }
0x25fc   :  { %v18207_v63 = vpop.eup %18206 }
0x25fd   :  { %v18209_v61 = vpop.eup %18208  ;;  %v11008_v15 = vmul.f32 %v18207_v63, %v18203_v49  ;;  %v21162_v49 = vld [vmem:[%s22005_s20 + $0x6c] ss:$16 sps:$4 sm:$0xff]   ;;  %v21172_v63 = vld [vmem:[%s22005_s20 + $0x68] ss:$16 sps:$4 sm:$0xff]  }
0x25fe   :  { %11555 = vmatpush1.bf16.msra.mxu1 %v21065_v59  ;;  %11596 = vmatpush1.bf16.msra.mxu0 %v20935_v45  ;;  %v11009_v12 = vmul.f32 %v18209_v61, %v18205_v32  ;;  %22204 = vst [vmem:[#allocation60_spill] sm:$0xff] %v21162_v49  ;;  %v21167_v32 = vld [vmem:[%s22005_s20 + $0x60] ss:$16 sps:$4 sm:$0xff]   ;;  %22206 = vst [vmem:[#allocation62_spill] sm:$0xff] %v21172_v63  ;;  %v21181_v61 = vld [vmem:[%s22005_s20 + $0x84] ss:$16 sps:$4 sm:$0xff]  }
0x25ff   :  { %11556 = vmatprep.subr.bf16.mxu1 %v21069_v13  ;;  %11597 = vmatprep.subr.bf16.mxu0 %v20939_v9  ;;  %v11020_v19 = vrot.slane %v11008_v15, 5  ;;  %v11371_v39 = vpack.c.bf16 %v11008_v15, %v11008_v15  ;;  %v21085_v9 = vld [vmem:[%s22005_s20 + $0x4] ss:$16 sps:$4 sm:$0xff]   ;;  %22205 = vst [vmem:[#allocation61_spill] sm:$0xff] %v21167_v32  ;;  %22207 = vst [vmem:[#allocation63_spill] sm:$0xff] %v21181_v61 }
0x2600   :  { %v11021_v34 = vrot.slane %v11009_v12, 5  ;;  %v11372_v28 = vpack.c.bf16 %v11009_v12, %v11009_v12  ;;  %v21186_v15 = vld [vmem:[%s22005_s20 + $0x8c] ss:$16 sps:$4 sm:$0xff]   ;;  %v21191_v12 = vld [vmem:[%s22005_s20 + $0x80] ss:$16 sps:$4 sm:$0xff]  }
0x2601   :  { %11024 = vst [vmem:[#allocation2 + $0xd] sm:$0x1] %v11020_v19  ;;  %v11375_v51 = vunpack.c.l.b16 %v11371_v39  ;;  %22208 = vst [vmem:[#allocation64_spill] sm:$0xff] %v21186_v15  ;;  %v21196_v19 = vld [vmem:[%s22005_s20 + $0x88] ss:$16 sps:$4 sm:$0xff]  }
0x2602   :  { %11557 = vmatpush1.bf16.msra.mxu1 %v21073_v58  ;;  %11598 = vmatpush1.bf16.msra.mxu0 %v20943_v20  ;;  %11025 = vst [vmem:[#allocation2 + $0x1d] sm:$0x1] %v11021_v34  ;;  %v11376_v14 = vunpack.c.l.b16 %v11372_v28  ;;  %v21090_v20 = vld [vmem:[%s22005_s20 + $0xc] ss:$16 sps:$4 sm:$0xff]   ;;  %22209 = vst [vmem:[#allocation65_spill] sm:$0xff] %v21191_v12 }
0x2603   :  { %v11377_v45 = vrot.slane %v11375_v51, 5  ;;  %11979 = vmatprep.subr.bf16.mxu1 %v21085_v9  ;;  %12020 = vmatprep.subr.bf16.mxu0 %v21090_v20  ;;  %22210 = vst [vmem:[#allocation66_spill] sm:$0xff] %v21196_v19  ;;  %v21205_v39 = vld [vmem:[%s22005_s20 + $0xa4] ss:$16 sps:$4 sm:$0xff]   ;;  %v21210_v34 = vld [vmem:[%s22005_s20 + $0xac] ss:$16 sps:$4 sm:$0xff]  }
0x2604   :  { %v11378_v52 = vrot.slane %v11376_v14, 4  ;;  %22211 = vst [vmem:[#allocation67_spill] sm:$0xff] %v21205_v39  ;;  %22212 = vst [vmem:[#allocation68_spill] sm:$0xff] %v21210_v34  ;;  %v21215_v28 = vld [vmem:[%s22005_s20 + $0xa0] ss:$16 sps:$4 sm:$0xff]  }
0x2605   :  { %22213 = vst [vmem:[#allocation69_spill] sm:$0xff] %v21215_v28  ;;  %v21220_v51 = vld [vmem:[%s22005_s20 + $0xa8] ss:$16 sps:$4 sm:$0xff]   ;;  %v21229_v14 = vld [vmem:[%s22005_s20 + $0xc4] ss:$16 sps:$4 sm:$0xff]  }
0x2606   :  { %v11379_v25 = vsel %vm9570_vm7, %v11378_v52, %v11377_v45  ;;  %22214 = vst [vmem:[#allocation70_spill] sm:$0xff] %v21220_v51  ;;  %22215 = vst [vmem:[#allocation71_spill] sm:$0xff] %v21229_v14  ;;  %v21234_v45 = vld [vmem:[%s22005_s20 + $0xcc] ss:$16 sps:$4 sm:$0xff]   ;;  %v21239_v52 = vld [vmem:[%s22005_s20 + $0xc0] ss:$16 sps:$4 sm:$0xff]  }
0x2607   :  { %v11380_v16 = vpack.c.b16 %v11379_v25, %v11379_v25  ;;  %22216 = vst [vmem:[#allocation72_spill] sm:$0xff] %v21234_v45  ;;  %22217 = vst [vmem:[#allocation73_spill] sm:$0xff] %v21239_v52  ;;  %v21244_v25 = vld [vmem:[%s22005_s20 + $0xc8] ss:$16 sps:$4 sm:$0xff]  }
0x2608   :  { %22218 = vst [vmem:[#allocation74_spill] sm:$0xff] %v21244_v25 }
0x2609   :  { %11575 = vmatmul.mubr.bf16.vlgmr.msra.gmra.mrb[168].mxu1 %v11380_v16  ;;  %11616 = vmatmul.mubr.bf16.vlgmr.msra.gmra.mrb[192].mxu0 %v11380_v16  ;;  %v21253_v16 = vld [vmem:[%s22005_s20 + $0xe4] ss:$16 sps:$4 sm:$0xff]  }
0x260a   :  { %12011 = vmatprep.mubr.bf16.mxu1 %v22174_v30  ;;  %12052 = vmatprep.mubr.bf16.mxu0 %v22174_v30  ;;  %22219 = vst [vmem:[#allocation75_spill] sm:$0xff] %v21253_v16 }
0x260b   :  { %11980 = vmatpush1.bf16.msra.mxu1 %v21095_v37  ;;  %12021 = vmatpush1.bf16.msra.mxu0 %v21100_v10 }
0x260c   :  { %11981 = vmatprep.subr.bf16.mxu1 %v21109_v54  ;;  %12022 = vmatprep.subr.bf16.mxu0 %v21114_v2 }
0x260f   :  { %11982 = vmatpush1.bf16.msra.mxu1 %v21119_v50  ;;  %12023 = vmatpush1.bf16.msra.mxu0 %v21124_v17 }
0x2610   :  { %11983 = vmatprep.subr.bf16.mxu1 %v21133_v35  ;;  %12024 = vmatprep.subr.bf16.mxu0 %v21138_v38 }
0x2613   :  { %11984 = vmatpush1.bf16.msra.mxu1 %v21143_v24  ;;  %12025 = vmatpush1.bf16.msra.mxu0 %v21148_v26 }
0x2614   :  { %11985 = vmatprep.subr.bf16.mxu1 %v21157_v53  ;;  %12026 = vmatprep.subr.bf16.mxu0 %v21162_v49 }
0x2617   :  { %11986 = vmatpush1.bf16.msra.mxu1 %v21167_v32  ;;  %12027 = vmatpush1.bf16.msra.mxu0 %v21172_v63 }
0x2618   :  { %11987 = vmatprep.subr.bf16.mxu1 %v21181_v61  ;;  %12028 = vmatprep.subr.bf16.mxu0 %v21186_v15 }
0x261b   :  { %11988 = vmatpush1.bf16.msra.mxu1 %v21191_v12  ;;  %12029 = vmatpush1.bf16.msra.mxu0 %v21196_v19 }
0x261c   :  { %11989 = vmatprep.subr.bf16.mxu1 %v21205_v39  ;;  %12030 = vmatprep.subr.bf16.mxu0 %v21210_v34 }
0x261f   :  { %11990 = vmatpush1.bf16.msra.mxu1 %v21215_v28  ;;  %12031 = vmatpush1.bf16.msra.mxu0 %v21220_v51  ;;  %v21258_v51 = vld [vmem:[%s22005_s20 + $0xec] ss:$16 sps:$4 sm:$0xff]  }
0x2620   :  { %11991 = vmatprep.subr.bf16.mxu1 %v21229_v14  ;;  %12032 = vmatprep.subr.bf16.mxu0 %v21234_v45  ;;  %22220 = vst [vmem:[#allocation76_spill] sm:$0xff] %v21258_v51  ;;  %v21263_v14 = vld [vmem:[%s22005_s20 + $0xe0] ss:$16 sps:$4 sm:$0xff]  }
0x2621   :  { %22221 = vst [vmem:[#allocation51_spill] sm:$0xff] %v21263_v14 }
0x2623   :  { %11992 = vmatpush1.bf16.msra.mxu1 %v21239_v52  ;;  %12033 = vmatpush1.bf16.msra.mxu0 %v21244_v25  ;;  %v21268_v52 = vld [vmem:[%s22005_s20 + $0xe8] ss:$16 sps:$4 sm:$0xff]  }
0x2624   :  { %22222 = vst [vmem:[#allocation52_spill] sm:$0xff] %v21268_v52  ;;  %11993 = vmatprep.subr.bf16.mxu1 %v21253_v16  ;;  %12034 = vmatprep.subr.bf16.mxu0 %v21258_v51  ;;  %v21275_v25 = vld [vmem:[#allocation30 + $0xc] ss:$16 sps:$4 sm:$0xff]  }
0x2625   :  { %22223 = vst [vmem:[#allocation53_spill] sm:$0xff] %v21275_v25 }
0x2627   :  { %11994 = vmatpush1.bf16.msra.mxu1 %v21263_v14  ;;  %12035 = vmatpush1.bf16.msra.mxu0 %v21268_v52 }
0x2628   :  { %12292 = vmatprep.subr.bf16.mxu1 %v20985_v11  ;;  %12333 = vmatprep.subr.bf16.mxu0 %v21275_v25 }
0x26b8   :  { %v11263_v45 = vpop.f32.mrb[164].mxu1  ;;  %v11304_v28 = vpop.f32.mrb[188].mxu0 }
0x26b9   :  { %v11315_v34 = vrot.slane %v11263_v45, 5  ;;  %v11319_v39 = vrot.slane %v11263_v45, 6  ;;  %v11265_v19 = vpop.f32.mrb[165].mxu1  ;;  %v11306_v12 = vpop.f32.mrb[189].mxu0 }
0x26ba   :  { %v11316_v15 = vrot.slane %v11265_v19, 5  ;;  %v11320_v16 = vrot.slane %v11265_v19, 6  ;;  %v11267_v61 = vpop.f32.mrb[166].mxu1  ;;  %v11308_v51 = vpop.f32.mrb[190].mxu0  ;;  %v11318_v24 = vrot.slane %v11306_v12, 5  ;;  %v11322_v38 = vrot.slane %v11306_v12, 6 }
0x26bb   :  { %v11331_v14 = vadd.f32 %v11315_v34, %v20495_v27  ;;  %v11335_v52 = vadd.f32 %v11319_v39, %v20515_v42  ;;  %v11268_v63 = vpop.f32.mrb[167].mxu1  ;;  %v11309_v11 = vpop.f32.mrb[191].mxu0  ;;  %v11317_v61 = vrot.slane %v11304_v28, 5  ;;  %v11321_v19 = vrot.slane %v11304_v28, 6 }
0x26bc   :  { %v11332_v32 = vadd.f32 %v11316_v15, %v20500_v33  ;;  %v11336_v25 = vadd.f32 %v11320_v16, %v20505_v21  ;;  %v11334_v39 = vadd.f32 %v11318_v24, %v20536_v29  ;;  %v11338_v63 = vadd.f32 %v11322_v38, %v20543_v6 }
0x26bd   :  { %v15952_v49 = vmul.f32 -1.442695, %v11331_v14  ;;  %v15953_v53 = vmul.f32 -1.442695, %v11335_v52  ;;  %v11333_v15 = vadd.f32 %v11317_v61, %v20531_v4  ;;  %v11337_v34 = vadd.f32 %v11321_v19, %v22196_v1 }
0x26be   :  { %v15954_v26 = vmul.f32 -1.442695, %v11332_v32  ;;  %v15955_v45 = vmul.f32 -1.442695, %v11336_v25  ;;  %v15956_v51 = vmul.f32 -1.442695, %v11334_v39 }
0x26bf   :  { %18210 = vpow2.f32 %v15952_v49  ;;  %v15957_v14 = vmul.f32 -1.442695, %v11338_v63  ;;  %v11692_v39 = vrot.slane %v20998_v48, 7 }
0x26c0   :  { %18212 = vpow2.f32 %v15953_v53 }
0x26c1   :  { %18214 = vpow2.f32 %v15954_v26 }
0x26c2   :  { %18216 = vpow2.f32 %v15955_v45 }
0x26c3   :  { %18218 = vtanh.f32 %v11333_v15 }
0x26c4   :  { %18220 = vtanh.f32 %v11337_v34 }
0x26c5   :  { %18222 = vpow2.f32 %v15956_v51  ;;  %v11693_v51 = vrot.slane %v21000_v3, 7 }
0x26c6   :  { %18224 = vpow2.f32 %v15957_v14 }
0x26c9   :  { %v18211_v32 = vpop.eup %18210 }
0x26ca   :  { %v18213_v49 = vpop.eup %18212  ;;  %v11658_v12 = vadd.f32 1.0, %v18211_v32 }
0x26cb   :  { %v18215_v53 = vpop.eup %18214  ;;  %v11659_v28 = vadd.f32 1.0, %v18213_v49 }
0x26cc   :  { %v18217_v26 = vpop.eup %18216  ;;  %18226 = vrcp.f32 %v11658_v12  ;;  %v11670_v24 = vadd.f32 1.0, %v18215_v53 }
0x26cd   :  { %18228 = vrcp.f32 %v11659_v28  ;;  %v11671_v38 = vadd.f32 1.0, %v18217_v26  ;;  %v18219_v52 = vpop.eup %18218 }
0x26ce   :  { %18230 = vrcp.f32 %v11670_v24  ;;  %v18221_v25 = vpop.eup %18220 }
0x26cf   :  { %18232 = vrcp.f32 %v11671_v38  ;;  %v18223_v16 = vpop.eup %18222 }
0x26d0   :  { %v18225_v11 = vpop.eup %18224  ;;  %v11684_v63 = vadd.f32 1.0, %v18223_v16 }
0x26d1   :  { %v11685_v14 = vadd.f32 1.0, %v18225_v11 }
0x26d2   :  { %18234 = vrcp.f32 %v11684_v63 }
0x26d3   :  { %18236 = vrcp.f32 %v11685_v14 }
0x26d6   :  { %v18227_v45 = vpop.eup %18226 }
0x26d7   :  { %v18229_v61 = vpop.eup %18228  ;;  %v11698_v19 = vmul.f32 %v18227_v45, %v18219_v52 }
0x26d8   :  { %v18231_v15 = vpop.eup %18230  ;;  %v11699_v34 = vmul.f32 %v18229_v61, %v18221_v25 }
0x26d9   :  { %v18233_v32 = vpop.eup %18232  ;;  %v11696_v49 = vmul.f32 %v18231_v15, %v11692_v39 }
0x26da   :  { %v11697_v12 = vmul.f32 %v18233_v32, %v11693_v51 }
0x26db   :  { %v21288_v53 = vadd.f32 %v11698_v19, %v11696_v49 }
0x26dc   :  { %v21290_v28 = vadd.f32 %v11699_v34, %v11697_v12  ;;  %v11576_v26 = vpop.f32.mrb[168].mxu1  ;;  %v11617_v24 = vpop.f32.mrb[192].mxu0 }
0x26dd   :  { %18238 = vtanh.f32 %v21288_v53  ;;  %v11628_v48 = vrot.slane %v11576_v26, 4  ;;  %v11632_v38 = vrot.slane %v11576_v26, 5  ;;  %v11578_v52 = vpop.f32.mrb[169].mxu1  ;;  %v11619_v25 = vpop.f32.mrb[193].mxu0 }
0x26de   :  { %18240 = vtanh.f32 %v21290_v28  ;;  %v11629_v3 = vrot.slane %v11578_v52, 4  ;;  %v11633_v16 = vrot.slane %v11578_v52, 5  ;;  %v11580_v11 = vpop.f32.mrb[170].mxu1  ;;  %v11621_v45 = vpop.f32.mrb[194].mxu0  ;;  %v11631_v12 = vrot.slane %v11619_v25, 4 }
0x26df   :  { %v11644_v61 = vadd.f32 %v11628_v48, %v20527_v31  ;;  %v11648_v19 = vadd.f32 %v11632_v38, %v20534_v0  ;;  %v11581_v39 = vpop.f32.mrb[171].mxu1  ;;  %v11622_v63 = vpop.f32.mrb[195].mxu0  ;;  %v11635_v26 = vrot.slane %v11619_v25, 5  ;;  %v11630_v52 = vrot.slane %v11617_v24, 4 }
0x26e0   :  { %v11645_v15 = vadd.f32 %v11629_v3, %v20547_v7  ;;  %v11649_v34 = vadd.f32 %v11633_v16, %v22197_v55  ;;  %v18235_v11 = vpop.eup %18234  ;;  %v11634_v45 = vrot.slane %v11617_v24, 5  ;;  %v11647_v38 = vadd.f32 %v11631_v12, %v20574_v40 }
0x26e1   :  { %v15958_v51 = vmul.f32 -1.442695, %v11644_v61  ;;  %v15959_v14 = vmul.f32 -1.442695, %v11648_v19  ;;  %v18237_v48 = vpop.eup %18236  ;;  %v11651_v3 = vadd.f32 %v11635_v26, %v22198_v22  ;;  %v11646_v61 = vadd.f32 %v11630_v52, %v22199_v57 }
0x26e2   :  { %v15960_v32 = vmul.f32 -1.442695, %v11645_v15  ;;  %v15961_v49 = vmul.f32 -1.442695, %v11649_v34  ;;  %v11650_v63 = vadd.f32 %v11634_v45, %v20577_v44  ;;  %v15962_v25 = vmul.f32 -1.442695, %v11647_v38 }
0x26e3   :  { %18242 = vpow2.f32 %v15958_v51 }
0x26e4   :  { %18244 = vpow2.f32 %v15959_v14  ;;  %v15963_v14 = vmul.f32 -1.442695, %v11651_v3 }
0x26e5   :  { %18246 = vpow2.f32 %v15960_v32 }
0x26e6   :  { %18248 = vpow2.f32 %v15961_v49 }
0x26e7   :  { %v18239_v39 = vpop.eup %18238  ;;  %18250 = vtanh.f32 %v11646_v61  ;;  %v21303_v61 = vld [vmem:[#allocation30 + $0x8] ss:$16 sps:$4 sm:$0xff]  }
0x26e8   :  { %v18241_v16 = vpop.eup %18240  ;;  %v11704_v19 = vmul.f32 %v18239_v39, %v18235_v11  ;;  %18252 = vtanh.f32 %v11650_v63  ;;  %v21305_v63 = vld [vmem:[#allocation30 + $0x2c] ss:$16 sps:$4 sm:$0xff]  }
0x26e9   :  { %v11705_v15 = vmul.f32 %v18241_v16, %v18237_v48  ;;  %18254 = vpow2.f32 %v15962_v25 }
0x26ea   :  { %v11762_v34 = vrot.slane %v11704_v19, 3  ;;  %v11808_v51 = vpack.c.bf16 %v11704_v19, %v11704_v19  ;;  %18256 = vpow2.f32 %v15963_v14 }
0x26eb   :  { %v11763_v24 = vrot.slane %v11705_v15, 3  ;;  %v11809_v32 = vpack.c.bf16 %v11705_v15, %v11705_v15  ;;  %v21313_v15 = vld [vmem:[#allocation30 + $0x4c] ss:$16 sps:$4 sm:$0xff]  }
0x26ec   :  { %11766 = vst [vmem:[#allocation2 + $0x3] sm:$0x1] %v11762_v34  ;;  %v11812_v49 = vunpack.c.l.b16 %v11808_v51 }
0x26ed   :  { %v18243_v12 = vpop.eup %18242  ;;  %11767 = vst [vmem:[#allocation2 + $0x13] sm:$0x1] %v11763_v24  ;;  %v11813_v26 = vunpack.c.l.b16 %v11809_v32  ;;  %v21325_v24 = vld [vmem:[#allocation30 + $0x6c] ss:$16 sps:$4 sm:$0xff]  }
0x26ee   :  { %v18245_v22 = vpop.eup %18244  ;;  %v11712_v40 = vadd.f32 1.0, %v18243_v12  ;;  %v11814_v52 = vrot.slane %v11812_v49, 3  ;;  %v11746_v12 = vrot.slane %v21041_v47, 1  ;;  %v21337_v47 = vld [vmem:[#allocation30 + $0x8c] ss:$16 sps:$4 sm:$0xff]  }
0x26ef   :  { %v18247_v11 = vpop.eup %18246  ;;  %v11713_v45 = vadd.f32 1.0, %v18245_v22  ;;  %v11815_v48 = vrot.slane %v11813_v26, 2  ;;  %v21309_v22 = vld [vmem:[#allocation30 + $0x28] ss:$16 sps:$4 sm:$0xff]  }
0x26f0   :  { %v18249_v38 = vpop.eup %18248  ;;  %18258 = vrcp.f32 %v11712_v40  ;;  %v11724_v39 = vadd.f32 1.0, %v18247_v11  ;;  %v11747_v11 = vrot.slane %v21043_v62, 1 }
0x26f1   :  { %18260 = vrcp.f32 %v11713_v45  ;;  %v11725_v3 = vadd.f32 1.0, %v18249_v38  ;;  %v11816_v16 = vsel %vm9570_vm7, %v11815_v48, %v11814_v52  ;;  %v18251_v40 = vpop.eup %18250 }
0x26f2   :  { %18262 = vrcp.f32 %v11724_v39  ;;  %v11817_v19 = vpack.c.b16 %v11816_v16, %v11816_v16  ;;  %v18253_v25 = vpop.eup %18252  ;;  %v21333_v39 = vld [vmem:[#allocation30 + $0x68] ss:$16 sps:$4 sm:$0xff]  }
0x26f3   :  { %18264 = vrcp.f32 %v11725_v3  ;;  %v18255_v34 = vpop.eup %18254 }
0x26f4   :  { %12012 = vmatmul.mubr.bf16.vlgmr.msra.gmra.mrb[172].mxu1 %v11817_v19  ;;  %12053 = vmatmul.mubr.bf16.vlgmr.msra.gmra.mrb[196].mxu0 %v11817_v19  ;;  %v18257_v51 = vpop.eup %18256  ;;  %v11738_v26 = vadd.f32 1.0, %v18255_v34  ;;  %v21351_v19 = vld [vmem:[#allocation30 + $0xac] ss:$16 sps:$4 sm:$0xff]  }
0x26f5   :  { %12293 = vmatpush1.bf16.msra.mxu1 %v21013_v5  ;;  %12334 = vmatpush1.bf16.msra.mxu0 %v21303_v61  ;;  %v21319_v5 = vld [vmem:[#allocation30 + $0x48] ss:$16 sps:$4 sm:$0xff]   ;;  %v11739_v45 = vadd.f32 1.0, %v18257_v51 }
0x26f6   :  { %12294 = vmatprep.subr.bf16.mxu1 %v21015_v23  ;;  %12335 = vmatprep.subr.bf16.mxu0 %v21305_v63  ;;  %v21323_v23 = vld [vmem:[#allocation30 + $0x64] ss:$16 sps:$4 sm:$0xff]   ;;  %18266 = vrcp.f32 %v11738_v26 }
0x26f7   :  { %12324 = vmatprep.mubr.bf16.mxu1 %v22174_v30  ;;  %12365 = vmatprep.mubr.bf16.mxu0 %v22174_v30  ;;  %18268 = vrcp.f32 %v11739_v45 }
0x26f9   :  { %12295 = vmatpush1.bf16.msra.mxu1 %v21019_v18  ;;  %12336 = vmatpush1.bf16.msra.mxu0 %v21309_v22 }
0x26fa   :  { %v18259_v14 = vpop.eup %18258  ;;  %12296 = vmatprep.subr.bf16.mxu1 %v21023_v36  ;;  %12337 = vmatprep.subr.bf16.mxu0 %v21313_v15  ;;  %v21331_v36 = vld [vmem:[#allocation30 + $0x60] ss:$16 sps:$4 sm:$0xff]  }
0x26fb   :  { %v18261_v32 = vpop.eup %18260  ;;  %v11752_v49 = vmul.f32 %v18259_v14, %v18251_v40  ;;  %v21355_v40 = vld [vmem:[#allocation30 + $0xa8] ss:$16 sps:$4 sm:$0xff]  }
0x26fc   :  { %v18263_v52 = vpop.eup %18262  ;;  %v11753_v18 = vmul.f32 %v18261_v32, %v18253_v25  ;;  %v21359_v25 = vld [vmem:[#allocation30 + $0xcc] ss:$16 sps:$4 sm:$0xff]  }
0x26fd   :  { %v18265_v48 = vpop.eup %18264  ;;  %v11750_v38 = vmul.f32 %v18263_v52, %v11746_v12  ;;  %12297 = vmatpush1.bf16.msra.mxu1 %v21029_v41  ;;  %12338 = vmatpush1.bf16.msra.mxu0 %v21319_v5  ;;  %v21346_v41 = vld [vmem:[#allocation30 + $0x88] ss:$16 sps:$4 sm:$0xff]  }
0x26fe   :  { %v11751_v3 = vmul.f32 %v18265_v48, %v11747_v11  ;;  %12298 = vmatprep.subr.bf16.mxu1 %v21323_v23  ;;  %12339 = vmatprep.subr.bf16.mxu0 %v21325_v24 }
0x26ff   :  { %v21339_v16 = vadd.f32 %v11752_v49, %v11750_v38  ;;  %v21371_v49 = vld [vmem:[#allocation30 + $0xe8] ss:$16 sps:$4 sm:$0xff]   ;;  %v22231_v38 = vld [vmem:[#allocation63_spill] sm:$0xff] }
0x2700   :  { %v21341_v62 = vadd.f32 %v11753_v18, %v11751_v3  ;;  %v18267_v34 = vpop.eup %18266  ;;  %v22235_v3 = vld [vmem:[#allocation67_spill] sm:$0xff] }
0x2701   :  { %18270 = vtanh.f32 %v21339_v16  ;;  %12299 = vmatpush1.bf16.msra.mxu1 %v21331_v36  ;;  %12340 = vmatpush1.bf16.msra.mxu0 %v21333_v39  ;;  %v18269_v51 = vpop.eup %18268 }
0x2702   :  { %18272 = vtanh.f32 %v21341_v62  ;;  %12300 = vmatprep.subr.bf16.mxu1 %v21039_v60  ;;  %12341 = vmatprep.subr.bf16.mxu0 %v21337_v47  ;;  %v21363_v60 = vld [vmem:[#allocation30 + $0xc8] ss:$16 sps:$4 sm:$0xff]  }
0x2705   :  { %12301 = vmatpush1.bf16.msra.mxu1 %v21048_v46  ;;  %12342 = vmatpush1.bf16.msra.mxu0 %v21346_v41  ;;  %v21367_v46 = vld [vmem:[#allocation30 + $0xec] ss:$16 sps:$4 sm:$0xff]  }
0x2706   :  { %12302 = vmatprep.subr.bf16.mxu1 %v21053_v8  ;;  %12343 = vmatprep.subr.bf16.mxu0 %v21351_v19 }
0x2709   :  { %12303 = vmatpush1.bf16.msra.mxu1 %v21057_v56  ;;  %12344 = vmatpush1.bf16.msra.mxu0 %v21355_v40 }
0x270a   :  { %12304 = vmatprep.subr.bf16.mxu1 %v21061_v43  ;;  %12345 = vmatprep.subr.bf16.mxu0 %v21359_v25 }
0x270b   :  { %v18271_v14 = vpop.eup %18270 }
0x270c   :  { %v18273_v8 = vpop.eup %18272  ;;  %v11758_v32 = vmul.f32 %v18271_v14, %v18267_v34  ;;  %v22236_v34 = vld [vmem:[#allocation68_spill] sm:$0xff]  ;;  %v22238_v14 = vld [vmem:[#allocation70_spill] sm:$0xff] }
0x270d   :  { %12305 = vmatpush1.bf16.msra.mxu1 %v21065_v59  ;;  %12346 = vmatpush1.bf16.msra.mxu0 %v21363_v60  ;;  %v11759_v56 = vmul.f32 %v18273_v8, %v18269_v51  ;;  %v22237_v51 = vld [vmem:[#allocation69_spill] sm:$0xff]  ;;  %v22239_v8 = vld [vmem:[#allocation71_spill] sm:$0xff] }
0x270e   :  { %12306 = vmatprep.subr.bf16.mxu1 %v21069_v13  ;;  %12347 = vmatprep.subr.bf16.mxu0 %v21367_v46  ;;  %v11770_v12 = vrot.slane %v11758_v32, 4  ;;  %v12121_v43 = vpack.c.bf16 %v11758_v32, %v11758_v32  ;;  %v22240_v32 = vld [vmem:[#allocation72_spill] sm:$0xff] }
0x270f   :  { %v11771_v26 = vrot.slane %v11759_v56, 4  ;;  %v12122_v52 = vpack.c.bf16 %v11759_v56, %v11759_v56  ;;  %v22241_v56 = vld [vmem:[#allocation73_spill] sm:$0xff] }
0x2710   :  { %11774 = vst [vmem:[#allocation2 + $0xc] sm:$0x1] %v11770_v12  ;;  %v12125_v18 = vunpack.c.l.b16 %v12121_v43  ;;  %v22242_v12 = vld [vmem:[#allocation74_spill] sm:$0xff]  ;;  %v22243_v43 = vld [vmem:[#allocation75_spill] sm:$0xff] }
0x2711   :  { %12307 = vmatpush1.bf16.msra.mxu1 %v21073_v58  ;;  %12348 = vmatpush1.bf16.msra.mxu0 %v21371_v49  ;;  %11775 = vst [vmem:[#allocation2 + $0x1c] sm:$0x1] %v11771_v26  ;;  %v12126_v59 = vunpack.c.l.b16 %v12122_v52  ;;  %v22224_v58 = vld [vmem:[#allocation56_spill] sm:$0xff]  ;;  %v22245_v52 = vld [vmem:[#allocation51_spill] sm:$0xff] }
0x2712   :  { %v12127_v11 = vrot.slane %v12125_v18, 4  ;;  %12729 = vmatprep.subr.bf16.mxu1 %v21085_v9  ;;  %12770 = vmatprep.subr.bf16.mxu0 %v21090_v20  ;;  %v22225_v9 = vld [vmem:[#allocation57_spill] sm:$0xff]  ;;  %v22226_v20 = vld [vmem:[#allocation58_spill] sm:$0xff]  ;;  %v22244_v26 = vld [vmem:[#allocation76_spill] sm:$0xff] }
0x2713   :  { %v12128_v13 = vrot.slane %v12126_v59, 3  ;;  %v22246_v18 = vld [vmem:[#allocation52_spill] sm:$0xff]  ;;  %v22247_v59 = vld [vmem:[#allocation53_spill] sm:$0xff] }
0x2715   :  { %v12129_v45 = vsel %vm9570_vm7, %v12128_v13, %v12127_v11  ;;  %v21413_v11 = vld [vmem:[#allocation30 + $0x4] ss:$16 sps:$4 sm:$0xff]  }
0x2716   :  { %v12130_v48 = vpack.c.b16 %v12129_v45, %v12129_v45 }
0x2718   :  { %12325 = vmatmul.mubr.bf16.vlgmr.msra.gmra.mrb[176].mxu1 %v12130_v48  ;;  %12366 = vmatmul.mubr.bf16.vlgmr.msra.gmra.mrb[200].mxu0 %v12130_v48 }
0x2719   :  { %12730 = vmatpush1.bf16.msra.mxu1 %v21095_v37  ;;  %12771 = vmatpush1.bf16.msra.mxu0 %v21100_v10  ;;  %v22227_v37 = vld [vmem:[#allocation59_spill] sm:$0xff]  ;;  %v22228_v10 = vld [vmem:[#allocation60_spill] sm:$0xff] }
0x271a   :  { %12731 = vmatprep.subr.bf16.mxu1 %v21109_v54  ;;  %12772 = vmatprep.subr.bf16.mxu0 %v21114_v2  ;;  %v22229_v54 = vld [vmem:[#allocation61_spill] sm:$0xff]  ;;  %v22230_v2 = vld [vmem:[#allocation62_spill] sm:$0xff] }
0x271b   :  { %12761 = vmatprep.mubr.bf16.mxu1 %v22174_v30  ;;  %12802 = vmatprep.mubr.bf16.mxu0 %v22174_v30 }
0x271d   :  { %12732 = vmatpush1.bf16.msra.mxu1 %v21119_v50  ;;  %12773 = vmatpush1.bf16.msra.mxu0 %v21124_v17  ;;  %v22232_v50 = vld [vmem:[#allocation64_spill] sm:$0xff]  ;;  %v22233_v17 = vld [vmem:[#allocation65_spill] sm:$0xff] }
0x271e   :  { %12733 = vmatprep.subr.bf16.mxu1 %v21133_v35  ;;  %12774 = vmatprep.subr.bf16.mxu0 %v22224_v58  ;;  %v22234_v35 = vld [vmem:[#allocation66_spill] sm:$0xff] }
0x2721   :  { %12734 = vmatpush1.bf16.msra.mxu1 %v22225_v9  ;;  %12775 = vmatpush1.bf16.msra.mxu0 %v22226_v20 }
0x2722   :  { %12735 = vmatprep.subr.bf16.mxu1 %v22227_v37  ;;  %12776 = vmatprep.subr.bf16.mxu0 %v22228_v10 }
0x2725   :  { %12736 = vmatpush1.bf16.msra.mxu1 %v22229_v54  ;;  %12777 = vmatpush1.bf16.msra.mxu0 %v22230_v2 }
0x2726   :  { %12737 = vmatprep.subr.bf16.mxu1 %v22231_v38  ;;  %12778 = vmatprep.subr.bf16.mxu0 %v22232_v50 }
0x2729   :  { %12738 = vmatpush1.bf16.msra.mxu1 %v22233_v17  ;;  %12779 = vmatpush1.bf16.msra.mxu0 %v22234_v35 }
0x272a   :  { %12739 = vmatprep.subr.bf16.mxu1 %v22235_v3  ;;  %12780 = vmatprep.subr.bf16.mxu0 %v22236_v34 }
0x272d   :  { %12740 = vmatpush1.bf16.msra.mxu1 %v22237_v51  ;;  %12781 = vmatpush1.bf16.msra.mxu0 %v22238_v14 }
0x272e   :  { %12741 = vmatprep.subr.bf16.mxu1 %v22239_v8  ;;  %12782 = vmatprep.subr.bf16.mxu0 %v22240_v32 }
0x2731   :  { %12742 = vmatpush1.bf16.msra.mxu1 %v22241_v56  ;;  %12783 = vmatpush1.bf16.msra.mxu0 %v22242_v12 }
0x2732   :  { %12743 = vmatprep.subr.bf16.mxu1 %v22243_v43  ;;  %12784 = vmatprep.subr.bf16.mxu0 %v22244_v26 }
0x2735   :  { %12744 = vmatpush1.bf16.msra.mxu1 %v22245_v52  ;;  %12785 = vmatpush1.bf16.msra.mxu0 %v22246_v18 }
0x2736   :  { %13083 = vmatprep.subr.bf16.mxu0 %v22247_v59  ;;  %13042 = vmatprep.subr.bf16.mxu1 %v21413_v11 }
0x27c7   :  { %v12013_v13 = vpop.f32.mrb[172].mxu1  ;;  %v12054_v45 = vpop.f32.mrb[196].mxu0 }
0x27c8   :  { %v12065_v48 = vrot.slane %v12013_v13, 4  ;;  %v12069_v58 = vrot.slane %v12013_v13, 5  ;;  %v12015_v9 = vpop.f32.mrb[173].mxu1  ;;  %v12056_v20 = vpop.f32.mrb[197].mxu0  ;;  %v12067_v43 = vrot.slane %v12054_v45, 4  ;;  %v12071_v26 = vrot.slane %v12054_v45, 5 }
0x27c9   :  { %v12066_v37 = vrot.slane %v12015_v9, 4  ;;  %v12070_v10 = vrot.slane %v12015_v9, 5  ;;  %v12017_v54 = vpop.f32.mrb[174].mxu1  ;;  %v12058_v2 = vpop.f32.mrb[198].mxu0  ;;  %v12068_v56 = vrot.slane %v12056_v20, 4  ;;  %v12072_v12 = vrot.slane %v12056_v20, 5 }
0x27ca   :  { %v12081_v38 = vadd.f32 %v12065_v48, %v20495_v27  ;;  %v12085_v50 = vadd.f32 %v12069_v58, %v20515_v42  ;;  %v12018_v17 = vpop.f32.mrb[175].mxu1  ;;  %v12059_v35 = vpop.f32.mrb[199].mxu0  ;;  %v12083_v59 = vadd.f32 %v12067_v43, %v20531_v4  ;;  %v12087_v13 = vadd.f32 %v12071_v26, %v22196_v1 }
0x27cb   :  { %v12082_v3 = vadd.f32 %v12066_v37, %v20500_v33  ;;  %v12086_v34 = vadd.f32 %v12070_v10, %v20505_v21  ;;  %v12084_v52 = vadd.f32 %v12068_v56, %v20536_v29  ;;  %v12088_v18 = vadd.f32 %v12072_v12, %v20543_v6 }
0x27cc   :  { %v16028_v51 = vmul.f32 -1.442695, %v12081_v38  ;;  %v16029_v14 = vmul.f32 -1.442695, %v12085_v50  ;;  %v12443_v43 = vrot.slane %v21290_v28, 7 }
0x27cd   :  { %v16030_v8 = vmul.f32 -1.442695, %v12082_v3  ;;  %v16031_v32 = vmul.f32 -1.442695, %v12086_v34  ;;  %v16032_v48 = vmul.f32 -1.442695, %v12084_v52 }
0x27ce   :  { %18274 = vpow2.f32 %v16028_v51  ;;  %v16033_v58 = vmul.f32 -1.442695, %v12088_v18 }
0x27cf   :  { %18276 = vpow2.f32 %v16029_v14 }
0x27d0   :  { %18278 = vpow2.f32 %v16030_v8  ;;  %v12442_v8 = vrot.slane %v21288_v53, 7 }
0x27d1   :  { %18280 = vpow2.f32 %v16031_v32 }
0x27d2   :  { %18282 = vtanh.f32 %v12083_v59 }
0x27d3   :  { %18284 = vtanh.f32 %v12087_v13 }
0x27d4   :  { %18286 = vpow2.f32 %v16032_v48 }
0x27d5   :  { %18288 = vpow2.f32 %v16033_v58 }
0x27d8   :  { %v18275_v9 = vpop.eup %18274 }
0x27d9   :  { %v18277_v37 = vpop.eup %18276  ;;  %v12408_v20 = vadd.f32 1.0, %v18275_v9 }
0x27da   :  { %v18279_v10 = vpop.eup %18278  ;;  %v12409_v45 = vadd.f32 1.0, %v18277_v37 }
0x27db   :  { %v18281_v54 = vpop.eup %18280  ;;  %18290 = vrcp.f32 %v12408_v20  ;;  %v12420_v2 = vadd.f32 1.0, %v18279_v10 }
0x27dc   :  { %18292 = vrcp.f32 %v12409_v45  ;;  %v12421_v38 = vadd.f32 1.0, %v18281_v54  ;;  %v18283_v50 = vpop.eup %18282 }
0x27dd   :  { %18294 = vrcp.f32 %v12420_v2  ;;  %v18285_v17 = vpop.eup %18284 }
0x27de   :  { %18296 = vrcp.f32 %v12421_v38  ;;  %v18287_v35 = vpop.eup %18286 }
0x27df   :  { %v18289_v3 = vpop.eup %18288  ;;  %v12434_v32 = vadd.f32 1.0, %v18287_v35 }
0x27e0   :  { %v12435_v26 = vadd.f32 1.0, %v18289_v3 }
0x27e1   :  { %18298 = vrcp.f32 %v12434_v32 }
0x27e2   :  { %18300 = vrcp.f32 %v12435_v26 }
0x27e5   :  { %v18291_v34 = vpop.eup %18290 }
0x27e6   :  { %v18293_v51 = vpop.eup %18292  ;;  %v12448_v14 = vmul.f32 %v18291_v34, %v18283_v50 }
0x27e7   :  { %v18295_v56 = vpop.eup %18294  ;;  %v12449_v12 = vmul.f32 %v18293_v51, %v18285_v17 }
0x27e8   :  { %v18297_v52 = vpop.eup %18296  ;;  %v12446_v18 = vmul.f32 %v18295_v56, %v12442_v8 }
0x27e9   :  { %v12447_v59 = vmul.f32 %v18297_v52, %v12443_v43 }
0x27ea   :  { %v21426_v13 = vadd.f32 %v12448_v14, %v12446_v18 }
0x27eb   :  { %v21428_v48 = vadd.f32 %v12449_v12, %v12447_v59  ;;  %v12326_v58 = vpop.f32.mrb[176].mxu1  ;;  %v12367_v9 = vpop.f32.mrb[200].mxu0  ;;  %v22248_v59 = vld [vmem:[#allocation54_spill] sm:$0xff] }
0x27ec   :  { %18302 = vtanh.f32 %v21426_v13  ;;  %v12378_v53 = vrot.slane %v12326_v58, 5  ;;  %v12382_v37 = vrot.slane %v12326_v58, 6  ;;  %v12328_v20 = vpop.f32.mrb[177].mxu1  ;;  %v12369_v10 = vpop.f32.mrb[201].mxu0  ;;  %v12380_v43 = vrot.slane %v12367_v9, 5 }
0x27ed   :  { %18304 = vtanh.f32 %v21428_v48  ;;  %v12379_v28 = vrot.slane %v12328_v20, 5  ;;  %v12383_v45 = vrot.slane %v12328_v20, 6  ;;  %v12330_v54 = vpop.f32.mrb[178].mxu1  ;;  %v12371_v2 = vpop.f32.mrb[202].mxu0  ;;  %v12381_v56 = vrot.slane %v12369_v10, 5 }
0x27ee   :  { %v12394_v38 = vadd.f32 %v12378_v53, %v20527_v31  ;;  %v12398_v50 = vadd.f32 %v12382_v37, %v20534_v0  ;;  %v12331_v17 = vpop.f32.mrb[179].mxu1  ;;  %v12372_v35 = vpop.f32.mrb[203].mxu0  ;;  %v12385_v12 = vrot.slane %v12369_v10, 6  ;;  %v12384_v52 = vrot.slane %v12367_v9, 6  ;;  %v22249_v37 = vld [vmem:[#allocation55_spill] sm:$0xff] }
0x27ef   :  { %v12395_v3 = vadd.f32 %v12379_v28, %v20547_v7  ;;  %v12399_v34 = vadd.f32 %v12383_v45, %v22197_v55  ;;  %v18299_v26 = vpop.eup %18298  ;;  %v12397_v58 = vadd.f32 %v12381_v56, %v22248_v59  ;;  %v12396_v45 = vadd.f32 %v12380_v43, %v22199_v57 }
0x27f0   :  { %v16034_v51 = vmul.f32 -1.442695, %v12394_v38  ;;  %v16035_v14 = vmul.f32 -1.442695, %v12398_v50  ;;  %v18301_v18 = vpop.eup %18300  ;;  %v12401_v20 = vadd.f32 %v12385_v12, %v22249_v37  ;;  %v12400_v2 = vadd.f32 %v12384_v52, %v20577_v44 }
0x27f1   :  { %v16036_v8 = vmul.f32 -1.442695, %v12395_v3  ;;  %v16037_v32 = vmul.f32 -1.442695, %v12399_v34  ;;  %v16038_v10 = vmul.f32 -1.442695, %v12397_v58 }
0x27f2   :  { %18306 = vpow2.f32 %v16034_v51  ;;  %v16039_v35 = vmul.f32 -1.442695, %v12401_v20  ;;  %v21441_v20 = vld [vmem:[#allocation30] ss:$16 sps:$4 sm:$0xff]  }
0x27f3   :  { %18308 = vpow2.f32 %v16035_v14 }
0x27f4   :  { %18310 = vpow2.f32 %v16036_v8 }
0x27f5   :  { %18312 = vpow2.f32 %v16037_v32 }
0x27f6   :  { %v18303_v53 = vpop.eup %18302  ;;  %18314 = vtanh.f32 %v12396_v45  ;;  %v21443_v45 = vld [vmem:[#allocation30 + $0x24] ss:$16 sps:$4 sm:$0xff]  }
0x27f7   :  { %v18305_v28 = vpop.eup %18304  ;;  %v12454_v54 = vmul.f32 %v18303_v53, %v18299_v26  ;;  %18316 = vtanh.f32 %v12400_v2 }
0x27f8   :  { %v12455_v38 = vmul.f32 %v18305_v28, %v18301_v18  ;;  %18318 = vpow2.f32 %v16038_v10 }
0x27f9   :  { %v12512_v50 = vrot.slane %v12454_v54, 4  ;;  %v12558_v17 = vpack.c.bf16 %v12454_v54, %v12454_v54  ;;  %18320 = vpow2.f32 %v16039_v35  ;;  %v21447_v54 = vld [vmem:[#allocation30 + $0x20] ss:$16 sps:$4 sm:$0xff]  }
0x27fa   :  { %v12513_v9 = vrot.slane %v12455_v38, 4  ;;  %v12559_v3 = vpack.c.bf16 %v12455_v38, %v12455_v38  ;;  %v21451_v38 = vld [vmem:[#allocation30 + $0x44] ss:$16 sps:$4 sm:$0xff]  }
0x27fb   :  { %12516 = vst [vmem:[#allocation2 + $0x4] sm:$0x1] %v12512_v50  ;;  %v12562_v34 = vunpack.c.l.b16 %v12558_v17 }
0x27fc   :  { %v18307_v51 = vpop.eup %18306  ;;  %12517 = vst [vmem:[#allocation2 + $0x14] sm:$0x1] %v12513_v9  ;;  %v12563_v14 = vunpack.c.l.b16 %v12559_v3  ;;  %v12496_v3 = vrot.slane %v21339_v16, 1 }
0x27fd   :  { %v18309_v8 = vpop.eup %18308  ;;  %v12462_v32 = vadd.f32 1.0, %v18307_v51  ;;  %v12564_v56 = vrot.slane %v12562_v34, 4 }
0x27fe   :  { %v18311_v12 = vpop.eup %18310  ;;  %v12463_v43 = vadd.f32 1.0, %v18309_v8  ;;  %v12565_v26 = vrot.slane %v12563_v14, 3  ;;  %v12497_v8 = vrot.slane %v21341_v62, 1 }
0x27ff   :  { %v18313_v52 = vpop.eup %18312  ;;  %18322 = vrcp.f32 %v12462_v32  ;;  %v12474_v18 = vadd.f32 1.0, %v18311_v12 }
0x2800   :  { %18324 = vrcp.f32 %v12463_v43  ;;  %v12475_v58 = vadd.f32 1.0, %v18313_v52  ;;  %v12566_v53 = vsel %vm9570_vm7, %v12565_v26, %v12564_v56  ;;  %v18315_v2 = vpop.eup %18314 }
0x2801   :  { %18326 = vrcp.f32 %v12474_v18  ;;  %v12567_v28 = vpack.c.b16 %v12566_v53, %v12566_v53  ;;  %v18317_v10 = vpop.eup %18316 }
0x2802   :  { %18328 = vrcp.f32 %v12475_v58  ;;  %v18319_v50 = vpop.eup %18318 }
0x2803   :  { %12762 = vmatmul.mubr.bf16.vlgmr.msra.gmra.mrb[180].mxu1 %v12567_v28  ;;  %12803 = vmatmul.mubr.bf16.vlgmr.msra.gmra.mrb[204].mxu0 %v12567_v28  ;;  %v18321_v17 = vpop.eup %18320  ;;  %v12488_v34 = vadd.f32 1.0, %v18319_v50 }
0x2804   :  { %13043 = vmatpush1.bf16.msra.mxu1 %v21441_v20  ;;  %13084 = vmatpush1.bf16.msra.mxu0 %v21303_v61  ;;  %v21457_v61 = vld [vmem:[#allocation30 + $0x40] ss:$16 sps:$4 sm:$0xff]   ;;  %v12489_v32 = vadd.f32 1.0, %v18321_v17 }
0x2805   :  { %13044 = vmatprep.subr.bf16.mxu1 %v21443_v45  ;;  %13085 = vmatprep.subr.bf16.mxu0 %v21305_v63  ;;  %18330 = vrcp.f32 %v12488_v34  ;;  %v21542_v34 = vld [vmem:[%s22005_s20 + $0x2c] ss:$16 sps:$4 sm:$0xff]  }
0x2806   :  { %13074 = vmatprep.mubr.bf16.mxu1 %v22174_v30  ;;  %13115 = vmatprep.mubr.bf16.mxu0 %v22174_v30  ;;  %18332 = vrcp.f32 %v12489_v32  ;;  %v21566_v32 = vld [vmem:[%s22005_s20 + $0x4c] ss:$16 sps:$4 sm:$0xff]  }
0x2807   :  { %22250 = vst [vmem:[#allocation56_spill] sm:$0xff] %v21566_v32 }
0x2808   :  { %13045 = vmatpush1.bf16.msra.mxu1 %v21447_v54  ;;  %13086 = vmatpush1.bf16.msra.mxu0 %v21309_v22 }
0x2809   :  { %v18323_v35 = vpop.eup %18322  ;;  %13046 = vmatprep.subr.bf16.mxu1 %v21451_v38  ;;  %13087 = vmatprep.subr.bf16.mxu0 %v21313_v15  ;;  %v21467_v15 = vld [vmem:[#allocation30 + $0x84] ss:$16 sps:$4 sm:$0xff]  }
0x280a   :  { %v18325_v63 = vpop.eup %18324  ;;  %v12502_v9 = vmul.f32 %v18323_v35, %v18315_v2 }
0x280b   :  { %v18327_v51 = vpop.eup %18326  ;;  %v12503_v14 = vmul.f32 %v18325_v63, %v18317_v10  ;;  %v21523_v63 = vld [vmem:[%s22005_s20] ss:$16 sps:$4 sm:$0xff]  }
0x280c   :  { %v18329_v56 = vpop.eup %18328  ;;  %v12500_v12 = vmul.f32 %v18327_v51, %v12496_v3  ;;  %13047 = vmatpush1.bf16.msra.mxu1 %v21457_v61  ;;  %13088 = vmatpush1.bf16.msra.mxu0 %v21319_v5  ;;  %v21476_v5 = vld [vmem:[#allocation30 + $0x80] ss:$16 sps:$4 sm:$0xff]   ;;  %v21537_v3 = vld [vmem:[%s22005_s20 + $0x24] ss:$16 sps:$4 sm:$0xff]   ;;  %v21547_v51 = vld [vmem:[%s22005_s20 + $0x20] ss:$16 sps:$4 sm:$0xff]  }
0x280d   :  { %v12501_v22 = vmul.f32 %v18329_v56, %v12497_v8  ;;  %13048 = vmatprep.subr.bf16.mxu1 %v21323_v23  ;;  %13089 = vmatprep.subr.bf16.mxu0 %v21325_v24  ;;  %v21481_v23 = vld [vmem:[#allocation30 + $0xa4] ss:$16 sps:$4 sm:$0xff]   ;;  %v21485_v24 = vld [vmem:[#allocation30 + $0xa0] ss:$16 sps:$4 sm:$0xff]   ;;  %v21561_v8 = vld [vmem:[%s22005_s20 + $0x44] ss:$16 sps:$4 sm:$0xff]  }
0x280e   :  { %v21469_v16 = vadd.f32 %v12502_v9, %v12500_v12  ;;  %v21528_v9 = vld [vmem:[%s22005_s20 + $0x8] ss:$16 sps:$4 sm:$0xff]   ;;  %v21571_v56 = vld [vmem:[%s22005_s20 + $0x40] ss:$16 sps:$4 sm:$0xff]  }
0x280f   :  { %v21471_v43 = vadd.f32 %v12503_v14, %v12501_v22  ;;  %v21552_v14 = vld [vmem:[%s22005_s20 + $0x28] ss:$16 sps:$4 sm:$0xff]   ;;  %22251 = vst [vmem:[#allocation57_spill] sm:$0xff] %v21571_v56  ;;  %v21585_v22 = vld [vmem:[%s22005_s20 + $0x64] ss:$16 sps:$4 sm:$0xff]  }
0x2810   :  { %18334 = vtanh.f32 %v21469_v16  ;;  %13049 = vmatpush1.bf16.msra.mxu1 %v21331_v36  ;;  %13090 = vmatpush1.bf16.msra.mxu0 %v21333_v39  ;;  %v21489_v36 = vld [vmem:[#allocation30 + $0xc4] ss:$16 sps:$4 sm:$0xff]   ;;  %v18331_v39 = vpop.eup %18330  ;;  %v21576_v12 = vld [vmem:[%s22005_s20 + $0x48] ss:$16 sps:$4 sm:$0xff]   ;;  %22253 = vst [vmem:[#allocation59_spill] sm:$0xff] %v21585_v22 }
0x2811   :  { %18336 = vtanh.f32 %v21471_v43  ;;  %13050 = vmatprep.subr.bf16.mxu1 %v21467_v15  ;;  %13091 = vmatprep.subr.bf16.mxu0 %v21337_v47  ;;  %v21493_v47 = vld [vmem:[#allocation30 + $0xc0] ss:$16 sps:$4 sm:$0xff]   ;;  %v18333_v62 = vpop.eup %18332  ;;  %22252 = vst [vmem:[#allocation58_spill] sm:$0xff] %v21576_v12 }
0x2814   :  { %13051 = vmatpush1.bf16.msra.mxu1 %v21476_v5  ;;  %13092 = vmatpush1.bf16.msra.mxu0 %v21346_v41  ;;  %v21497_v41 = vld [vmem:[#allocation30 + $0xe4] ss:$16 sps:$4 sm:$0xff]  }
0x2815   :  { %13052 = vmatprep.subr.bf16.mxu1 %v21481_v23  ;;  %13093 = vmatprep.subr.bf16.mxu0 %v21351_v19  ;;  %v21501_v19 = vld [vmem:[#allocation30 + $0xe0] ss:$16 sps:$4 sm:$0xff]  }
0x2818   :  { %13053 = vmatpush1.bf16.msra.mxu1 %v21485_v24  ;;  %13094 = vmatpush1.bf16.msra.mxu0 %v21355_v40 }
0x2819   :  { %13054 = vmatprep.subr.bf16.mxu1 %v21489_v36  ;;  %13095 = vmatprep.subr.bf16.mxu0 %v21359_v25 }
0x281a   :  { %v18335_v26 = vpop.eup %18334 }
0x281b   :  { %v18337_v52 = vpop.eup %18336  ;;  %v12508_v18 = vmul.f32 %v18335_v26, %v18331_v39  ;;  %v21590_v39 = vld [vmem:[%s22005_s20 + $0x6c] ss:$16 sps:$4 sm:$0xff]   ;;  %v21600_v26 = vld [vmem:[%s22005_s20 + $0x68] ss:$16 sps:$4 sm:$0xff]  }
0x281c   :  { %13055 = vmatpush1.bf16.msra.mxu1 %v21493_v47  ;;  %13096 = vmatpush1.bf16.msra.mxu0 %v21363_v60  ;;  %v12509_v58 = vmul.f32 %v18337_v52, %v18333_v62  ;;  %22254 = vst [vmem:[#allocation60_spill] sm:$0xff] %v21590_v39  ;;  %v21595_v62 = vld [vmem:[%s22005_s20 + $0x60] ss:$16 sps:$4 sm:$0xff]   ;;  %22256 = vst [vmem:[#allocation62_spill] sm:$0xff] %v21600_v26  ;;  %v21609_v52 = vld [vmem:[%s22005_s20 + $0x84] ss:$16 sps:$4 sm:$0xff]  }
0x281d   :  { %13056 = vmatprep.subr.bf16.mxu1 %v21497_v41  ;;  %13097 = vmatprep.subr.bf16.mxu0 %v21367_v46  ;;  %v12520_v40 = vrot.slane %v12508_v18, 3  ;;  %v12871_v53 = vpack.c.bf16 %v12508_v18, %v12508_v18  ;;  %v21513_v46 = vld [vmem:[%s22005_s20 + $0x4] ss:$16 sps:$4 sm:$0xff]   ;;  %22255 = vst [vmem:[#allocation61_spill] sm:$0xff] %v21595_v62  ;;  %22257 = vst [vmem:[#allocation63_spill] sm:$0xff] %v21609_v52 }
0x281e   :  { %v12521_v28 = vrot.slane %v12509_v58, 3  ;;  %v12872_v25 = vpack.c.bf16 %v12509_v58, %v12509_v58  ;;  %v21614_v18 = vld [vmem:[%s22005_s20 + $0x8c] ss:$16 sps:$4 sm:$0xff]   ;;  %v21619_v58 = vld [vmem:[%s22005_s20 + $0x80] ss:$16 sps:$4 sm:$0xff]  }
0x281f   :  { %12524 = vst [vmem:[#allocation2 + $0xb] sm:$0x1] %v12520_v40  ;;  %v12875_v2 = vunpack.c.l.b16 %v12871_v53  ;;  %22258 = vst [vmem:[#allocation64_spill] sm:$0xff] %v21614_v18  ;;  %v21624_v40 = vld [vmem:[%s22005_s20 + $0x88] ss:$16 sps:$4 sm:$0xff]  }
0x2820   :  { %13057 = vmatpush1.bf16.msra.mxu1 %v21501_v19  ;;  %13098 = vmatpush1.bf16.msra.mxu0 %v21371_v49  ;;  %12525 = vst [vmem:[#allocation2 + $0x1b] sm:$0x1] %v12521_v28  ;;  %v12876_v10 = vunpack.c.l.b16 %v12872_v25  ;;  %v21518_v49 = vld [vmem:[%s22005_s20 + $0xc] ss:$16 sps:$4 sm:$0xff]   ;;  %22259 = vst [vmem:[#allocation65_spill] sm:$0xff] %v21619_v58 }
0x2821   :  { %v12877_v60 = vrot.slane %v12875_v2, 3  ;;  %13479 = vmatprep.subr.bf16.mxu1 %v21513_v46  ;;  %13520 = vmatprep.subr.bf16.mxu0 %v21518_v49  ;;  %22260 = vst [vmem:[#allocation66_spill] sm:$0xff] %v21624_v40  ;;  %v21633_v53 = vld [vmem:[%s22005_s20 + $0xa4] ss:$16 sps:$4 sm:$0xff]   ;;  %v21638_v28 = vld [vmem:[%s22005_s20 + $0xac] ss:$16 sps:$4 sm:$0xff]  }
0x2822   :  { %v12878_v50 = vrot.slane %v12876_v10, 2  ;;  %22261 = vst [vmem:[#allocation67_spill] sm:$0xff] %v21633_v53  ;;  %22262 = vst [vmem:[#allocation68_spill] sm:$0xff] %v21638_v28  ;;  %v21643_v25 = vld [vmem:[%s22005_s20 + $0xa0] ss:$16 sps:$4 sm:$0xff]  }
0x2823   :  { %22263 = vst [vmem:[#allocation69_spill] sm:$0xff] %v21643_v25  ;;  %v21648_v2 = vld [vmem:[%s22005_s20 + $0xa8] ss:$16 sps:$4 sm:$0xff]   ;;  %v21657_v10 = vld [vmem:[%s22005_s20 + $0xc4] ss:$16 sps:$4 sm:$0xff]  }
0x2824   :  { %v12879_v17 = vsel %vm9570_vm7, %v12878_v50, %v12877_v60  ;;  %22264 = vst [vmem:[#allocation70_spill] sm:$0xff] %v21648_v2  ;;  %22265 = vst [vmem:[#allocation71_spill] sm:$0xff] %v21657_v10  ;;  %v21662_v60 = vld [vmem:[%s22005_s20 + $0xcc] ss:$16 sps:$4 sm:$0xff]   ;;  %v21667_v50 = vld [vmem:[%s22005_s20 + $0xc0] ss:$16 sps:$4 sm:$0xff]  }
0x2825   :  { %v12880_v35 = vpack.c.b16 %v12879_v17, %v12879_v17  ;;  %22266 = vst [vmem:[#allocation72_spill] sm:$0xff] %v21662_v60  ;;  %22267 = vst [vmem:[#allocation73_spill] sm:$0xff] %v21667_v50  ;;  %v21672_v17 = vld [vmem:[%s22005_s20 + $0xc8] ss:$16 sps:$4 sm:$0xff]  }
0x2826   :  { %22268 = vst [vmem:[#allocation74_spill] sm:$0xff] %v21672_v17 }
0x2827   :  { %13075 = vmatmul.mubr.bf16.vlgmr.msra.gmra.mrb[184].mxu1 %v12880_v35  ;;  %13116 = vmatmul.mubr.bf16.vlgmr.msra.gmra.mrb[208].mxu0 %v12880_v35  ;;  %v21681_v35 = vld [vmem:[%s22005_s20 + $0xe4] ss:$16 sps:$4 sm:$0xff]  }
0x2828   :  { %13511 = vmatprep.mubr.bf16.mxu1 %v22174_v30  ;;  %13552 = vmatprep.mubr.bf16.mxu0 %v22174_v30  ;;  %22269 = vst [vmem:[#allocation75_spill] sm:$0xff] %v21681_v35 }
0x2829   :  { %13480 = vmatpush1.bf16.msra.mxu1 %v21523_v63  ;;  %13521 = vmatpush1.bf16.msra.mxu0 %v21528_v9 }
0x282a   :  { %13481 = vmatprep.subr.bf16.mxu1 %v21537_v3  ;;  %13522 = vmatprep.subr.bf16.mxu0 %v21542_v34 }
0x282d   :  { %13482 = vmatpush1.bf16.msra.mxu1 %v21547_v51  ;;  %13523 = vmatpush1.bf16.msra.mxu0 %v21552_v14 }
0x282e   :  { %13483 = vmatprep.subr.bf16.mxu1 %v21561_v8  ;;  %13524 = vmatprep.subr.bf16.mxu0 %v21566_v32 }
0x2831   :  { %13484 = vmatpush1.bf16.msra.mxu1 %v21571_v56  ;;  %13525 = vmatpush1.bf16.msra.mxu0 %v21576_v12 }
0x2832   :  { %13485 = vmatprep.subr.bf16.mxu1 %v21585_v22  ;;  %13526 = vmatprep.subr.bf16.mxu0 %v21590_v39 }
0x2835   :  { %13486 = vmatpush1.bf16.msra.mxu1 %v21595_v62  ;;  %13527 = vmatpush1.bf16.msra.mxu0 %v21600_v26 }
0x2836   :  { %13487 = vmatprep.subr.bf16.mxu1 %v21609_v52  ;;  %13528 = vmatprep.subr.bf16.mxu0 %v21614_v18 }
0x2839   :  { %13488 = vmatpush1.bf16.msra.mxu1 %v21619_v58  ;;  %13529 = vmatpush1.bf16.msra.mxu0 %v21624_v40 }
0x283a   :  { %13489 = vmatprep.subr.bf16.mxu1 %v21633_v53  ;;  %13530 = vmatprep.subr.bf16.mxu0 %v21638_v28 }
0x283d   :  { %13490 = vmatpush1.bf16.msra.mxu1 %v21643_v25  ;;  %13531 = vmatpush1.bf16.msra.mxu0 %v21648_v2  ;;  %v21686_v2 = vld [vmem:[%s22005_s20 + $0xec] ss:$16 sps:$4 sm:$0xff]  }
0x283e   :  { %13491 = vmatprep.subr.bf16.mxu1 %v21657_v10  ;;  %13532 = vmatprep.subr.bf16.mxu0 %v21662_v60  ;;  %22270 = vst [vmem:[#allocation76_spill] sm:$0xff] %v21686_v2  ;;  %v21691_v10 = vld [vmem:[%s22005_s20 + $0xe0] ss:$16 sps:$4 sm:$0xff]  }
0x283f   :  { %22271 = vst [vmem:[#allocation51_spill] sm:$0xff] %v21691_v10 }
0x2841   :  { %13492 = vmatpush1.bf16.msra.mxu1 %v21667_v50  ;;  %13533 = vmatpush1.bf16.msra.mxu0 %v21672_v17  ;;  %v21696_v50 = vld [vmem:[%s22005_s20 + $0xe8] ss:$16 sps:$4 sm:$0xff]  }
0x2842   :  { %22272 = vst [vmem:[#allocation52_spill] sm:$0xff] %v21696_v50  ;;  %13493 = vmatprep.subr.bf16.mxu1 %v21681_v35  ;;  %13534 = vmatprep.subr.bf16.mxu0 %v21686_v2  ;;  %v21703_v17 = vld [vmem:[#allocation30 + $0xc] ss:$16 sps:$4 sm:$0xff]  }
0x2843   :  { %22273 = vst [vmem:[#allocation53_spill] sm:$0xff] %v21703_v17 }
0x2845   :  { %13494 = vmatpush1.bf16.msra.mxu1 %v21691_v10  ;;  %13535 = vmatpush1.bf16.msra.mxu0 %v21696_v50 }
0x2846   :  { %13792 = vmatprep.subr.bf16.mxu1 %v21413_v11  ;;  %13833 = vmatprep.subr.bf16.mxu0 %v21703_v17 }
0x28d6   :  { %v12763_v60 = vpop.f32.mrb[180].mxu1  ;;  %v12804_v25 = vpop.f32.mrb[204].mxu0 }
0x28d7   :  { %v12815_v28 = vrot.slane %v12763_v60, 3  ;;  %v12819_v53 = vrot.slane %v12763_v60, 4  ;;  %v12765_v40 = vpop.f32.mrb[181].mxu1  ;;  %v12806_v58 = vpop.f32.mrb[205].mxu0 }
0x28d8   :  { %v12816_v18 = vrot.slane %v12765_v40, 3  ;;  %v12820_v35 = vrot.slane %v12765_v40, 4  ;;  %v12767_v52 = vpop.f32.mrb[182].mxu1  ;;  %v12808_v2 = vpop.f32.mrb[206].mxu0  ;;  %v12818_v56 = vrot.slane %v12806_v58, 3  ;;  %v12822_v32 = vrot.slane %v12806_v58, 4 }
0x28d9   :  { %v12831_v10 = vadd.f32 %v12815_v28, %v20495_v27  ;;  %v12835_v50 = vadd.f32 %v12819_v53, %v20515_v42  ;;  %v12768_v26 = vpop.f32.mrb[183].mxu1  ;;  %v12809_v11 = vpop.f32.mrb[207].mxu0  ;;  %v12817_v52 = vrot.slane %v12804_v25, 3  ;;  %v12821_v40 = vrot.slane %v12804_v25, 4 }
0x28da   :  { %v12832_v62 = vadd.f32 %v12816_v18, %v20500_v33  ;;  %v12836_v17 = vadd.f32 %v12820_v35, %v20505_v21  ;;  %v12834_v53 = vadd.f32 %v12818_v56, %v20536_v29  ;;  %v12838_v26 = vadd.f32 %v12822_v32, %v20543_v6 }
0x28db   :  { %v16104_v39 = vmul.f32 -1.442695, %v12831_v10  ;;  %v16105_v22 = vmul.f32 -1.442695, %v12835_v50  ;;  %v12833_v18 = vadd.f32 %v12817_v52, %v20531_v4  ;;  %v12837_v28 = vadd.f32 %v12821_v40, %v22196_v1 }
0x28dc   :  { %v16106_v12 = vmul.f32 -1.442695, %v12832_v62  ;;  %v16107_v60 = vmul.f32 -1.442695, %v12836_v17  ;;  %v16108_v2 = vmul.f32 -1.442695, %v12834_v53 }
0x28dd   :  { %18338 = vpow2.f32 %v16104_v39  ;;  %v16109_v10 = vmul.f32 -1.442695, %v12838_v26  ;;  %v13192_v53 = vrot.slane %v21426_v13, 7 }
0x28de   :  { %18340 = vpow2.f32 %v16105_v22 }
0x28df   :  { %18342 = vpow2.f32 %v16106_v12 }
0x28e0   :  { %18344 = vpow2.f32 %v16107_v60 }
0x28e1   :  { %18346 = vtanh.f32 %v12833_v18 }
0x28e2   :  { %18348 = vtanh.f32 %v12837_v28 }
0x28e3   :  { %18350 = vpow2.f32 %v16108_v2  ;;  %v13193_v2 = vrot.slane %v21428_v48, 7 }
0x28e4   :  { %18352 = vpow2.f32 %v16109_v10 }
0x28e7   :  { %v18339_v62 = vpop.eup %18338 }
0x28e8   :  { %v18341_v39 = vpop.eup %18340  ;;  %v13158_v58 = vadd.f32 1.0, %v18339_v62 }
0x28e9   :  { %v18343_v22 = vpop.eup %18342  ;;  %v13159_v25 = vadd.f32 1.0, %v18341_v39 }
0x28ea   :  { %v18345_v12 = vpop.eup %18344  ;;  %18354 = vrcp.f32 %v13158_v58  ;;  %v13170_v56 = vadd.f32 1.0, %v18343_v22 }
0x28eb   :  { %18356 = vrcp.f32 %v13159_v25  ;;  %v13171_v32 = vadd.f32 1.0, %v18345_v12  ;;  %v18347_v50 = vpop.eup %18346 }
0x28ec   :  { %18358 = vrcp.f32 %v13170_v56  ;;  %v18349_v17 = vpop.eup %18348 }
0x28ed   :  { %18360 = vrcp.f32 %v13171_v32  ;;  %v18351_v35 = vpop.eup %18350 }
0x28ee   :  { %v18353_v11 = vpop.eup %18352  ;;  %v13184_v26 = vadd.f32 1.0, %v18351_v35 }
0x28ef   :  { %v13185_v10 = vadd.f32 1.0, %v18353_v11 }
0x28f0   :  { %18362 = vrcp.f32 %v13184_v26 }
0x28f1   :  { %18364 = vrcp.f32 %v13185_v10 }
0x28f4   :  { %v18355_v60 = vpop.eup %18354 }
0x28f5   :  { %v18357_v52 = vpop.eup %18356  ;;  %v13198_v40 = vmul.f32 %v18355_v60, %v18347_v50 }
0x28f6   :  { %v18359_v18 = vpop.eup %18358  ;;  %v13199_v28 = vmul.f32 %v18357_v52, %v18349_v17 }
0x28f7   :  { %v18361_v62 = vpop.eup %18360  ;;  %v13196_v39 = vmul.f32 %v18359_v18, %v13192_v53 }
0x28f8   :  { %v13197_v58 = vmul.f32 %v18361_v62, %v13193_v2 }
0x28f9   :  { %v21716_v22 = vadd.f32 %v13198_v40, %v13196_v39 }
0x28fa   :  { %v21718_v25 = vadd.f32 %v13199_v28, %v13197_v58  ;;  %v13076_v12 = vpop.f32.mrb[184].mxu1  ;;  %v13117_v56 = vpop.f32.mrb[208].mxu0 }
0x28fb   :  { %18366 = vtanh.f32 %v21716_v22  ;;  %v13128_v13 = vrot.slane %v13076_v12, 6  ;;  %v13132_v32 = vrot.slane %v13076_v12, 7  ;;  %v13078_v50 = vpop.f32.mrb[185].mxu1  ;;  %v13119_v17 = vpop.f32.mrb[209].mxu0 }
0x28fc   :  { %18368 = vtanh.f32 %v21718_v25  ;;  %v13129_v48 = vrot.slane %v13078_v50, 6  ;;  %v13133_v35 = vrot.slane %v13078_v50, 7  ;;  %v13080_v11 = vpop.f32.mrb[186].mxu1  ;;  %v13121_v60 = vpop.f32.mrb[210].mxu0  ;;  %v13131_v58 = vrot.slane %v13119_v17, 6 }
0x28fd   :  { %v13144_v52 = vadd.f32 %v13128_v13, %v20527_v31  ;;  %v13148_v40 = vadd.f32 %v13132_v32, %v20534_v0  ;;  %v13081_v53 = vpop.f32.mrb[187].mxu1  ;;  %v13122_v26 = vpop.f32.mrb[211].mxu0  ;;  %v13135_v12 = vrot.slane %v13119_v17, 7  ;;  %v13130_v50 = vrot.slane %v13117_v56, 6 }
0x28fe   :  { %v13145_v18 = vadd.f32 %v13129_v48, %v20547_v7  ;;  %v13149_v28 = vadd.f32 %v13133_v35, %v22197_v55  ;;  %v18363_v11 = vpop.eup %18362  ;;  %v13134_v60 = vrot.slane %v13117_v56, 7  ;;  %v13147_v32 = vadd.f32 %v13131_v58, %v22248_v59 }
0x28ff   :  { %v16110_v2 = vmul.f32 -1.442695, %v13144_v52  ;;  %v16111_v10 = vmul.f32 -1.442695, %v13148_v40  ;;  %v18365_v13 = vpop.eup %18364  ;;  %v13151_v48 = vadd.f32 %v13135_v12, %v22249_v37  ;;  %v13146_v52 = vadd.f32 %v13130_v50, %v22199_v57 }
0x2900   :  { %v16112_v62 = vmul.f32 -1.442695, %v13145_v18  ;;  %v16113_v39 = vmul.f32 -1.442695, %v13149_v28  ;;  %v13150_v26 = vadd.f32 %v13134_v60, %v20577_v44  ;;  %v16114_v17 = vmul.f32 -1.442695, %v13147_v32 }
0x2901   :  { %18370 = vpow2.f32 %v16110_v2 }
0x2902   :  { %18372 = vpow2.f32 %v16111_v10  ;;  %v16115_v10 = vmul.f32 -1.442695, %v13151_v48 }
0x2903   :  { %18374 = vpow2.f32 %v16112_v62 }
0x2904   :  { %18376 = vpow2.f32 %v16113_v39 }
0x2905   :  { %v18367_v53 = vpop.eup %18366  ;;  %18378 = vtanh.f32 %v13146_v52  ;;  %v21731_v52 = vld [vmem:[#allocation30 + $0x8] ss:$16 sps:$4 sm:$0xff]  }
0x2906   :  { %v18369_v35 = vpop.eup %18368  ;;  %v13204_v40 = vmul.f32 %v18367_v53, %v18363_v11  ;;  %18380 = vtanh.f32 %v13150_v26  ;;  %v21733_v26 = vld [vmem:[#allocation30 + $0x2c] ss:$16 sps:$4 sm:$0xff]  }
0x2907   :  { %v13205_v18 = vmul.f32 %v18369_v35, %v18365_v13  ;;  %18382 = vpow2.f32 %v16114_v17 }
0x2908   :  { %v13262_v28 = vrot.slane %v13204_v40, 5  ;;  %v13308_v2 = vpack.c.bf16 %v13204_v40, %v13204_v40  ;;  %18384 = vpow2.f32 %v16115_v10 }
0x2909   :  { %v13263_v56 = vrot.slane %v13205_v18, 5  ;;  %v13309_v62 = vpack.c.bf16 %v13205_v18, %v13205_v18  ;;  %v21741_v18 = vld [vmem:[#allocation30 + $0x4c] ss:$16 sps:$4 sm:$0xff]  }
0x290a   :  { %13266 = vst [vmem:[#allocation2 + $0x5] sm:$0x1] %v13262_v28  ;;  %v13312_v39 = vunpack.c.l.b16 %v13308_v2 }
0x290b   :  { %v18371_v58 = vpop.eup %18370  ;;  %13267 = vst [vmem:[#allocation2 + $0x15] sm:$0x1] %v13263_v56  ;;  %v13313_v12 = vunpack.c.l.b16 %v13309_v62  ;;  %v21753_v56 = vld [vmem:[#allocation30 + $0x6c] ss:$16 sps:$4 sm:$0xff]  }
0x290c   :  { %v18373_v37 = vpop.eup %18372  ;;  %v13212_v59 = vadd.f32 1.0, %v18371_v58  ;;  %v13314_v50 = vrot.slane %v13312_v39, 5  ;;  %v13246_v58 = vrot.slane %v21469_v16, 1  ;;  %v21765_v16 = vld [vmem:[#allocation30 + $0x8c] ss:$16 sps:$4 sm:$0xff]  }
0x290d   :  { %v18375_v11 = vpop.eup %18374  ;;  %v13213_v60 = vadd.f32 1.0, %v18373_v37  ;;  %v13315_v13 = vrot.slane %v13313_v12, 4  ;;  %v21737_v37 = vld [vmem:[#allocation30 + $0x28] ss:$16 sps:$4 sm:$0xff]  }
0x290e   :  { %v18377_v32 = vpop.eup %18376  ;;  %18386 = vrcp.f32 %v13212_v59  ;;  %v13224_v53 = vadd.f32 1.0, %v18375_v11  ;;  %v13247_v11 = vrot.slane %v21471_v43, 1 }
0x290f   :  { %18388 = vrcp.f32 %v13213_v60  ;;  %v13225_v48 = vadd.f32 1.0, %v18377_v32  ;;  %v13316_v35 = vsel %vm9570_vm7, %v13315_v13, %v13314_v50  ;;  %v18379_v59 = vpop.eup %18378 }
0x2910   :  { %18390 = vrcp.f32 %v13224_v53  ;;  %v13317_v40 = vpack.c.b16 %v13316_v35, %v13316_v35  ;;  %v18381_v17 = vpop.eup %18380  ;;  %v21761_v53 = vld [vmem:[#allocation30 + $0x68] ss:$16 sps:$4 sm:$0xff]  }
0x2911   :  { %18392 = vrcp.f32 %v13225_v48  ;;  %v18383_v28 = vpop.eup %18382 }
0x2912   :  { %13512 = vmatmul.mubr.bf16.vlgmr.msra.gmra.mrb[188].mxu1 %v13317_v40  ;;  %13553 = vmatmul.mubr.bf16.vlgmr.msra.gmra.mrb[212].mxu0 %v13317_v40  ;;  %v18385_v2 = vpop.eup %18384  ;;  %v13238_v12 = vadd.f32 1.0, %v18383_v28  ;;  %v21779_v40 = vld [vmem:[#allocation30 + $0xac] ss:$16 sps:$4 sm:$0xff]  }
0x2913   :  { %13793 = vmatpush1.bf16.msra.mxu1 %v21441_v20  ;;  %13834 = vmatpush1.bf16.msra.mxu0 %v21731_v52  ;;  %v21747_v20 = vld [vmem:[#allocation30 + $0x48] ss:$16 sps:$4 sm:$0xff]   ;;  %v13239_v60 = vadd.f32 1.0, %v18385_v2 }
0x2914   :  { %13794 = vmatprep.subr.bf16.mxu1 %v21443_v45  ;;  %13835 = vmatprep.subr.bf16.mxu0 %v21733_v26  ;;  %v21751_v45 = vld [vmem:[#allocation30 + $0x64] ss:$16 sps:$4 sm:$0xff]   ;;  %18394 = vrcp.f32 %v13238_v12 }
0x2915   :  { %13824 = vmatprep.mubr.bf16.mxu1 %v22174_v30  ;;  %13865 = vmatprep.mubr.bf16.mxu0 %v22174_v30  ;;  %18396 = vrcp.f32 %v13239_v60 }
0x2917   :  { %13795 = vmatpush1.bf16.msra.mxu1 %v21447_v54  ;;  %13836 = vmatpush1.bf16.msra.mxu0 %v21737_v37 }
0x2918   :  { %v18387_v10 = vpop.eup %18386  ;;  %13796 = vmatprep.subr.bf16.mxu1 %v21451_v38  ;;  %13837 = vmatprep.subr.bf16.mxu0 %v21741_v18  ;;  %v21759_v38 = vld [vmem:[#allocation30 + $0x60] ss:$16 sps:$4 sm:$0xff]  }
0x2919   :  { %v18389_v62 = vpop.eup %18388  ;;  %v13252_v39 = vmul.f32 %v18387_v10, %v18379_v59  ;;  %v21783_v59 = vld [vmem:[#allocation30 + $0xa8] ss:$16 sps:$4 sm:$0xff]  }
0x291a   :  { %v18391_v50 = vpop.eup %18390  ;;  %v13253_v54 = vmul.f32 %v18389_v62, %v18381_v17  ;;  %v21787_v17 = vld [vmem:[#allocation30 + $0xcc] ss:$16 sps:$4 sm:$0xff]  }
0x291b   :  { %v18393_v13 = vpop.eup %18392  ;;  %v13250_v32 = vmul.f32 %v18391_v50, %v13246_v58  ;;  %13797 = vmatpush1.bf16.msra.mxu1 %v21457_v61  ;;  %13838 = vmatpush1.bf16.msra.mxu0 %v21747_v20  ;;  %v21774_v61 = vld [vmem:[#allocation30 + $0x88] ss:$16 sps:$4 sm:$0xff]  }
0x291c   :  { %v13251_v48 = vmul.f32 %v18393_v13, %v13247_v11  ;;  %13798 = vmatprep.subr.bf16.mxu1 %v21751_v45  ;;  %13839 = vmatprep.subr.bf16.mxu0 %v21753_v56 }
0x291d   :  { %v21767_v35 = vadd.f32 %v13252_v39, %v13250_v32  ;;  %v21799_v39 = vld [vmem:[#allocation30 + $0xe8] ss:$16 sps:$4 sm:$0xff]   ;;  %v22281_v32 = vld [vmem:[#allocation63_spill] sm:$0xff] }
0x291e   :  { %v21769_v43 = vadd.f32 %v13253_v54, %v13251_v48  ;;  %v18395_v28 = vpop.eup %18394  ;;  %v22285_v48 = vld [vmem:[#allocation67_spill] sm:$0xff] }
0x291f   :  { %18398 = vtanh.f32 %v21767_v35  ;;  %13799 = vmatpush1.bf16.msra.mxu1 %v21759_v38  ;;  %13840 = vmatpush1.bf16.msra.mxu0 %v21761_v53  ;;  %v18397_v2 = vpop.eup %18396 }
0x2920   :  { %18400 = vtanh.f32 %v21769_v43  ;;  %13800 = vmatprep.subr.bf16.mxu1 %v21467_v15  ;;  %13841 = vmatprep.subr.bf16.mxu0 %v21765_v16  ;;  %v21791_v15 = vld [vmem:[#allocation30 + $0xc8] ss:$16 sps:$4 sm:$0xff]  }
0x2923   :  { %13801 = vmatpush1.bf16.msra.mxu1 %v21476_v5  ;;  %13842 = vmatpush1.bf16.msra.mxu0 %v21774_v61  ;;  %v21795_v5 = vld [vmem:[#allocation30 + $0xec] ss:$16 sps:$4 sm:$0xff]  }
0x2924   :  { %13802 = vmatprep.subr.bf16.mxu1 %v21481_v23  ;;  %13843 = vmatprep.subr.bf16.mxu0 %v21779_v40 }
0x2927   :  { %13803 = vmatpush1.bf16.msra.mxu1 %v21485_v24  ;;  %13844 = vmatpush1.bf16.msra.mxu0 %v21783_v59 }
0x2928   :  { %13804 = vmatprep.subr.bf16.mxu1 %v21489_v36  ;;  %13845 = vmatprep.subr.bf16.mxu0 %v21787_v17 }
0x2929   :  { %v18399_v10 = vpop.eup %18398 }
0x292a   :  { %v18401_v23 = vpop.eup %18400  ;;  %v13258_v62 = vmul.f32 %v18399_v10, %v18395_v28  ;;  %v22286_v28 = vld [vmem:[#allocation68_spill] sm:$0xff]  ;;  %v22288_v10 = vld [vmem:[#allocation70_spill] sm:$0xff] }
0x292b   :  { %13805 = vmatpush1.bf16.msra.mxu1 %v21493_v47  ;;  %13846 = vmatpush1.bf16.msra.mxu0 %v21791_v15  ;;  %v13259_v24 = vmul.f32 %v18401_v23, %v18397_v2  ;;  %v22287_v2 = vld [vmem:[#allocation69_spill] sm:$0xff]  ;;  %v22289_v23 = vld [vmem:[#allocation71_spill] sm:$0xff] }
0x292c   :  { %13806 = vmatprep.subr.bf16.mxu1 %v21497_v41  ;;  %13847 = vmatprep.subr.bf16.mxu0 %v21795_v5  ;;  %v13270_v58 = vrot.slane %v13258_v62, 2  ;;  %v13621_v36 = vpack.c.bf16 %v13258_v62, %v13258_v62  ;;  %v22290_v62 = vld [vmem:[#allocation72_spill] sm:$0xff] }
0x292d   :  { %v13271_v12 = vrot.slane %v13259_v24, 2  ;;  %v13622_v50 = vpack.c.bf16 %v13259_v24, %v13259_v24  ;;  %v22291_v24 = vld [vmem:[#allocation73_spill] sm:$0xff] }
0x292e   :  { %13274 = vst [vmem:[#allocation2 + $0xa] sm:$0x1] %v13270_v58  ;;  %v13625_v54 = vunpack.c.l.b16 %v13621_v36  ;;  %v22292_v58 = vld [vmem:[#allocation74_spill] sm:$0xff]  ;;  %v22293_v36 = vld [vmem:[#allocation75_spill] sm:$0xff] }
0x292f   :  { %13807 = vmatpush1.bf16.msra.mxu1 %v21501_v19  ;;  %13848 = vmatpush1.bf16.msra.mxu0 %v21799_v39  ;;  %13275 = vst [vmem:[#allocation2 + $0x1a] sm:$0x1] %v13271_v12  ;;  %v13626_v47 = vunpack.c.l.b16 %v13622_v50  ;;  %v22274_v19 = vld [vmem:[#allocation56_spill] sm:$0xff]  ;;  %v22295_v50 = vld [vmem:[#allocation51_spill] sm:$0xff] }
0x2930   :  { %v13627_v11 = vrot.slane %v13625_v54, 2  ;;  %14225 = vmatprep.subr.bf16.mxu1 %v21513_v46  ;;  %14266 = vmatprep.subr.bf16.mxu0 %v21518_v49  ;;  %v22275_v46 = vld [vmem:[#allocation57_spill] sm:$0xff]  ;;  %v22276_v49 = vld [vmem:[#allocation58_spill] sm:$0xff]  ;;  %v22294_v12 = vld [vmem:[#allocation76_spill] sm:$0xff] }
0x2931   :  { %v13628_v41 = vrot.slane %v13626_v47, 1  ;;  %v22296_v54 = vld [vmem:[#allocation52_spill] sm:$0xff]  ;;  %v22297_v47 = vld [vmem:[#allocation53_spill] sm:$0xff] }
0x2933   :  { %v13629_v60 = vsel %vm9570_vm7, %v13628_v41, %v13627_v11  ;;  %v17899_v11 = vld [vmem:[#allocation30 + $0x4] ss:$16 sps:$4 sm:$0xff]  }
0x2934   :  { %v13630_v13 = vpack.c.b16 %v13629_v60, %v13629_v60 }
0x2936   :  { %13825 = vmatmul.mubr.bf16.vlgmr.msra.gmra.mrb[192].mxu1 %v13630_v13  ;;  %13866 = vmatmul.mubr.bf16.vlgmr.msra.gmra.mrb[216].mxu0 %v13630_v13 }
0x2937   :  { %14226 = vmatpush1.bf16.msra.mxu1 %v21523_v63  ;;  %14267 = vmatpush1.bf16.msra.mxu0 %v21528_v9  ;;  %v22277_v63 = vld [vmem:[#allocation59_spill] sm:$0xff]  ;;  %v22278_v9 = vld [vmem:[#allocation60_spill] sm:$0xff] }
0x2938   :  { %14227 = vmatprep.subr.bf16.mxu1 %v21537_v3  ;;  %14268 = vmatprep.subr.bf16.mxu0 %v21542_v34  ;;  %v22279_v3 = vld [vmem:[#allocation61_spill] sm:$0xff]  ;;  %v22280_v34 = vld [vmem:[#allocation62_spill] sm:$0xff] }
0x2939   :  { %14257 = vmatprep.mubr.bf16.mxu1 %v22174_v30  ;;  %14298 = vmatprep.mubr.bf16.mxu0 %v22174_v30 }
0x293b   :  { %14228 = vmatpush1.bf16.msra.mxu1 %v21547_v51  ;;  %14269 = vmatpush1.bf16.msra.mxu0 %v21552_v14  ;;  %v22282_v51 = vld [vmem:[#allocation64_spill] sm:$0xff]  ;;  %v22283_v14 = vld [vmem:[#allocation65_spill] sm:$0xff] }
0x293c   :  { %14229 = vmatprep.subr.bf16.mxu1 %v21561_v8  ;;  %14270 = vmatprep.subr.bf16.mxu0 %v22274_v19  ;;  %v22284_v8 = vld [vmem:[#allocation66_spill] sm:$0xff] }
0x293f   :  { %14230 = vmatpush1.bf16.msra.mxu1 %v22275_v46  ;;  %14271 = vmatpush1.bf16.msra.mxu0 %v22276_v49 }
0x2940   :  { %14231 = vmatprep.subr.bf16.mxu1 %v22277_v63  ;;  %14272 = vmatprep.subr.bf16.mxu0 %v22278_v9 }
0x2943   :  { %14232 = vmatpush1.bf16.msra.mxu1 %v22279_v3  ;;  %14273 = vmatpush1.bf16.msra.mxu0 %v22280_v34 }
0x2944   :  { %14233 = vmatprep.subr.bf16.mxu1 %v22281_v32  ;;  %14274 = vmatprep.subr.bf16.mxu0 %v22282_v51 }
0x2947   :  { %14234 = vmatpush1.bf16.msra.mxu1 %v22283_v14  ;;  %14275 = vmatpush1.bf16.msra.mxu0 %v22284_v8 }
0x2948   :  { %14235 = vmatprep.subr.bf16.mxu1 %v22285_v48  ;;  %14276 = vmatprep.subr.bf16.mxu0 %v22286_v28 }
0x294b   :  { %14236 = vmatpush1.bf16.msra.mxu1 %v22287_v2  ;;  %14277 = vmatpush1.bf16.msra.mxu0 %v22288_v10 }
0x294c   :  { %14237 = vmatprep.subr.bf16.mxu1 %v22289_v23  ;;  %14278 = vmatprep.subr.bf16.mxu0 %v22290_v62 }
0x294f   :  { %14238 = vmatpush1.bf16.msra.mxu1 %v22291_v24  ;;  %14279 = vmatpush1.bf16.msra.mxu0 %v22292_v58 }
0x2950   :  { %14239 = vmatprep.subr.bf16.mxu1 %v22293_v36  ;;  %14280 = vmatprep.subr.bf16.mxu0 %v22294_v12 }
0x2953   :  { %14240 = vmatpush1.bf16.msra.mxu1 %v22295_v50  ;;  %14281 = vmatpush1.bf16.msra.mxu0 %v22296_v54 }
0x2954   :  { %14578 = vmatprep.subr.bf16.mxu0 %v22297_v47  ;;  %14537 = vmatprep.subr.bf16.mxu1 %v17899_v11 }
0x29e5   :  { %v13513_v41 = vpop.f32.mrb[188].mxu1  ;;  %v13554_v60 = vpop.f32.mrb[212].mxu0 }
0x29e6   :  { %v13565_v13 = vrot.slane %v13513_v41, 2  ;;  %v13569_v19 = vrot.slane %v13513_v41, 3  ;;  %v13515_v46 = vpop.f32.mrb[189].mxu1  ;;  %v13556_v49 = vpop.f32.mrb[213].mxu0  ;;  %v13567_v36 = vrot.slane %v13554_v60, 2  ;;  %v13571_v12 = vrot.slane %v13554_v60, 3 }
0x29e7   :  { %v13566_v63 = vrot.slane %v13515_v46, 2  ;;  %v13570_v9 = vrot.slane %v13515_v46, 3  ;;  %v13517_v3 = vpop.f32.mrb[190].mxu1  ;;  %v13558_v34 = vpop.f32.mrb[214].mxu0  ;;  %v13568_v24 = vrot.slane %v13556_v49, 2  ;;  %v13572_v58 = vrot.slane %v13556_v49, 3 }
0x29e8   :  { %v13581_v32 = vadd.f32 %v13565_v13, %v20495_v27  ;;  %v13585_v51 = vadd.f32 %v13569_v19, %v20515_v42  ;;  %v13518_v14 = vpop.f32.mrb[191].mxu1  ;;  %v13559_v8 = vpop.f32.mrb[215].mxu0  ;;  %v13583_v47 = vadd.f32 %v13567_v36, %v20531_v4  ;;  %v13587_v11 = vadd.f32 %v13571_v12, %v22196_v1 }
0x29e9   :  { %v13582_v48 = vadd.f32 %v13566_v63, %v20500_v33  ;;  %v13586_v28 = vadd.f32 %v13570_v9, %v20505_v21  ;;  %v13584_v50 = vadd.f32 %v13568_v24, %v20536_v29  ;;  %v13588_v54 = vadd.f32 %v13572_v58, %v20543_v6 }
0x29ea   :  { %v16180_v2 = vmul.f32 -1.442695, %v13581_v32  ;;  %v16181_v10 = vmul.f32 -1.442695, %v13585_v51  ;;  %v13939_v58 = vrot.slane %v21718_v25, 7 }
0x29eb   :  { %v16182_v23 = vmul.f32 -1.442695, %v13582_v48  ;;  %v16183_v62 = vmul.f32 -1.442695, %v13586_v28  ;;  %v16184_v41 = vmul.f32 -1.442695, %v13584_v50 }
0x29ec   :  { %18402 = vpow2.f32 %v16180_v2  ;;  %v16185_v13 = vmul.f32 -1.442695, %v13588_v54 }
0x29ed   :  { %18404 = vpow2.f32 %v16181_v10  ;;  %v13938_v10 = vrot.slane %v21716_v22, 7 }
0x29ee   :  { %18406 = vpow2.f32 %v16182_v23 }
0x29ef   :  { %18408 = vpow2.f32 %v16183_v62 }
0x29f0   :  { %18410 = vtanh.f32 %v13583_v47 }
0x29f1   :  { %18412 = vtanh.f32 %v13587_v11 }
0x29f2   :  { %18414 = vpow2.f32 %v16184_v41 }
0x29f3   :  { %18416 = vpow2.f32 %v16185_v13 }
0x29f6   :  { %v18403_v19 = vpop.eup %18402 }
0x29f7   :  { %v18405_v46 = vpop.eup %18404  ;;  %v13904_v49 = vadd.f32 1.0, %v18403_v19 }
0x29f8   :  { %v18407_v63 = vpop.eup %18406  ;;  %v13905_v60 = vadd.f32 1.0, %v18405_v46 }
0x29f9   :  { %v18409_v9 = vpop.eup %18408  ;;  %18418 = vrcp.f32 %v13904_v49  ;;  %v13916_v3 = vadd.f32 1.0, %v18407_v63 }
0x29fa   :  { %18420 = vrcp.f32 %v13905_v60  ;;  %v13917_v34 = vadd.f32 1.0, %v18409_v9  ;;  %v18411_v32 = vpop.eup %18410 }
0x29fb   :  { %18422 = vrcp.f32 %v13916_v3  ;;  %v18413_v51 = vpop.eup %18412 }
0x29fc   :  { %18424 = vrcp.f32 %v13917_v34  ;;  %v18415_v14 = vpop.eup %18414 }
0x29fd   :  { %v18417_v8 = vpop.eup %18416  ;;  %v13930_v23 = vadd.f32 1.0, %v18415_v14 }
0x29fe   :  { %v13931_v36 = vadd.f32 1.0, %v18417_v8 }
0x29ff   :  { %18426 = vrcp.f32 %v13930_v23 }
0x2a00   :  { %18428 = vrcp.f32 %v13931_v36 }
0x2a03   :  { %v18419_v48 = vpop.eup %18418 }
0x2a04   :  { %v18421_v28 = vpop.eup %18420  ;;  %v13944_v2 = vmul.f32 %v18419_v48, %v18411_v32 }
0x2a05   :  { %v18423_v62 = vpop.eup %18422  ;;  %v13945_v24 = vmul.f32 %v18421_v28, %v18413_v51 }
0x2a06   :  { %v18425_v12 = vpop.eup %18424  ;;  %v13942_v50 = vmul.f32 %v18423_v62, %v13938_v10  ;;  %v22298_v10 = vld [vmem:[#allocation54_spill] sm:$0xff] }
0x2a07   :  { %v13943_v54 = vmul.f32 %v18425_v12, %v13939_v58 }
0x2a08   :  { %v21851_v47 = vadd.f32 %v13944_v2, %v13942_v50 }
0x2a09   :  { %v21853_v11 = vadd.f32 %v13945_v24, %v13943_v54  ;;  %v13826_v41 = vpop.f32.mrb[192].mxu1  ;;  %v13867_v13 = vpop.f32.mrb[216].mxu0  ;;  %v22299_v24 = vld [vmem:[#allocation55_spill] sm:$0xff] }
0x2a0a   :  { %18430 = vtanh.f32 %v21851_v47  ;;  %v13878_v22 = vrot.slane %v13826_v41, 7  ;;  %v13894_v19 = vadd.f32 %v13826_v41, %v20534_v0  ;;  %v13828_v46 = vpop.f32.mrb[193].mxu1  ;;  %v13869_v49 = vpop.f32.mrb[217].mxu0  ;;  %v13880_v50 = vrot.slane %v13867_v13, 7 }
0x2a0b   :  { %18432 = vtanh.f32 %v21853_v11  ;;  %v13879_v25 = vrot.slane %v13828_v46, 7  ;;  %v13895_v63 = vadd.f32 %v13828_v46, %v22197_v55  ;;  %v13830_v60 = vpop.f32.mrb[194].mxu1  ;;  %v13871_v9 = vpop.f32.mrb[218].mxu0  ;;  %v13881_v8 = vrot.slane %v13869_v49, 7 }
0x2a0c   :  { %v13890_v3 = vadd.f32 %v13878_v22, %v20527_v31  ;;  %v16187_v34 = vmul.f32 -1.442695, %v13894_v19  ;;  %v13831_v32 = vpop.f32.mrb[195].mxu1  ;;  %v13872_v51 = vpop.f32.mrb[219].mxu0  ;;  %v13897_v58 = vadd.f32 %v13869_v49, %v22299_v24  ;;  %v13896_v54 = vadd.f32 %v13867_v13, %v20577_v44 }
0x2a0d   :  { %v13891_v14 = vadd.f32 %v13879_v25, %v20547_v7  ;;  %v16189_v28 = vmul.f32 -1.442695, %v13895_v63  ;;  %v13893_v23 = vadd.f32 %v13881_v8, %v22298_v10  ;;  %v18427_v62 = vpop.eup %18426 }
0x2a0e   :  { %v16186_v48 = vmul.f32 -1.442695, %v13890_v3  ;;  %18434 = vpow2.f32 %v16187_v34  ;;  %v18429_v36 = vpop.eup %18428  ;;  %v16191_v46 = vmul.f32 -1.442695, %v13897_v58  ;;  %v13892_v3 = vadd.f32 %v13880_v50, %v22199_v57 }
0x2a0f   :  { %v16188_v2 = vmul.f32 -1.442695, %v13891_v14  ;;  %v16190_v22 = vmul.f32 -1.442695, %v13893_v23 }
0x2a10   :  { %18436 = vpow2.f32 %v16186_v48 }
0x2a11   :  { %18438 = vpow2.f32 %v16188_v2 }
0x2a12   :  { %18440 = vpow2.f32 %v16189_v28 }
0x2a13   :  { %18442 = vtanh.f32 %v13896_v54  ;;  %v17902_v54 = vld [vmem:[#allocation30 + $0x24] ss:$16 sps:$4 sm:$0xff]  }
0x2a14   :  { %v18431_v12 = vpop.eup %18430  ;;  %18444 = vpow2.f32 %v16190_v22  ;;  %v17900_v22 = vld [vmem:[#allocation30 + $0x20] ss:$16 sps:$4 sm:$0xff]  }
0x2a15   :  { %v18433_v41 = vpop.eup %18432  ;;  %v13950_v19 = vmul.f32 %v18431_v12, %v18427_v62  ;;  %18446 = vpow2.f32 %v16191_v46  ;;  %v17897_v12 = vld [vmem:[#allocation30] ss:$16 sps:$4 sm:$0xff]   ;;  %v17905_v46 = vld [vmem:[#allocation30 + $0x44] ss:$16 sps:$4 sm:$0xff]  }
0x2a16   :  { %v13951_v25 = vmul.f32 %v18433_v41, %v18429_v36 }
0x2a17   :  { %v14008_v63 = vrot.slane %v13950_v19, 6  ;;  %v14054_v60 = vpack.c.bf16 %v13950_v19, %v13950_v19 }
0x2a18   :  { %v18435_v9 = vpop.eup %18434  ;;  %v14009_v34 = vrot.slane %v13951_v25, 6  ;;  %v14055_v32 = vpack.c.bf16 %v13951_v25, %v13951_v25 }
0x2a19   :  { %v13959_v51 = vadd.f32 1.0, %v18435_v9  ;;  %14012 = vst [vmem:[#allocation2 + $0x6] sm:$0x1] %v14008_v63  ;;  %v14058_v49 = vunpack.c.l.b16 %v14054_v60 }
0x2a1a   :  { %v18437_v14 = vpop.eup %18436  ;;  %14013 = vst [vmem:[#allocation2 + $0x16] sm:$0x1] %v14009_v34  ;;  %v14059_v13 = vunpack.c.l.b16 %v14055_v32 }
0x2a1b   :  { %v18439_v8 = vpop.eup %18438  ;;  %v13958_v48 = vadd.f32 1.0, %v18437_v14  ;;  %18448 = vrcp.f32 %v13959_v51  ;;  %v14060_v28 = vrot.slane %v14058_v49, 6  ;;  %v13993_v49 = vrot.slane %v21769_v43, 1  ;;  %v17911_v43 = vld [vmem:[#allocation30 + $0xa4] ss:$16 sps:$4 sm:$0xff]  }
0x2a1c   :  { %v18441_v2 = vpop.eup %18440  ;;  %18450 = vtanh.f32 %v13892_v3  ;;  %v13970_v23 = vadd.f32 1.0, %v18439_v8  ;;  %v14061_v62 = vrot.slane %v14059_v13, 5  ;;  %v17903_v3 = vld [vmem:[#allocation30 + $0x40] ss:$16 sps:$4 sm:$0xff]  }
0x2a1d   :  { %18452 = vrcp.f32 %v13958_v48  ;;  %v13971_v58 = vadd.f32 1.0, %v18441_v2  ;;  %v18443_v41 = vpop.eup %18442 }
0x2a1e   :  { %18454 = vrcp.f32 %v13970_v23  ;;  %v14062_v36 = vsel %vm9570_vm7, %v14061_v62, %v14060_v28  ;;  %v18445_v19 = vpop.eup %18444 }
0x2a1f   :  { %18456 = vrcp.f32 %v13971_v58  ;;  %v14063_v50 = vpack.c.b16 %v14062_v36, %v14062_v36  ;;  %v18447_v25 = vpop.eup %18446  ;;  %v13984_v32 = vadd.f32 1.0, %v18445_v19  ;;  %v17920_v19 = vld [vmem:[%s22301_s11 + $0x48] sm:$0xff]  }
0x2a20   :  { %v13985_v14 = vadd.f32 1.0, %v18447_v25  ;;  %v17922_v25 = vld [vmem:[%s22301_s11 + $0x50] sm:$0xff]  }
0x2a21   :  { %14258 = vmatmul.mubr.bf16.vlgmr.msra.gmra.mrb[196].mxu1 %v14063_v50  ;;  %14299 = vmatmul.mubr.bf16.vlgmr.msra.gmra.mrb[220].mxu0 %v14063_v50  ;;  %18458 = vrcp.f32 %v13984_v32  ;;  %v17929_v32 = vld [vmem:[%s22301_s11 + $0x28] sm:$0xff]  }
0x2a22   :  { %14538 = vmatpush1.bf16.msra.mxu1 %v17897_v12  ;;  %14579 = vmatpush1.bf16.msra.mxu0 %v21731_v52  ;;  %v13992_v52 = vrot.slane %v21767_v35, 1  ;;  %v17908_v35 = vld [vmem:[#allocation30 + $0x84] ss:$16 sps:$4 sm:$0xff]   ;;  %18460 = vrcp.f32 %v13985_v14  ;;  %v17933_v14 = vld [vmem:[%s22301_s11 + $0x38] sm:$0xff]  }
0x2a23   :  { %14539 = vmatprep.subr.bf16.mxu1 %v17902_v54  ;;  %14580 = vmatprep.subr.bf16.mxu0 %v21733_v26 }
0x2a24   :  { %14569 = vmatprep.mubr.bf16.mxu1 %v22174_v30  ;;  %14610 = vmatprep.mubr.bf16.mxu0 %v22174_v30 }
0x2a25   :  { %v18449_v63 = vpop.eup %18448 }
0x2a26   :  { %v18451_v60 = vpop.eup %18450  ;;  %v13999_v9 = vmul.f32 %v18449_v63, %v18443_v41  ;;  %14540 = vmatpush1.bf16.msra.mxu1 %v17900_v22  ;;  %14581 = vmatpush1.bf16.msra.mxu0 %v21737_v37  ;;  %v22300_v22 = vld [vmem:[#allocation48_spill] sm:$0xff]  ;;  %v17923_v63 = vld [vmem:[%s22301_s11 + $0x10] sm:$0xff]  }
0x2a27   :  { %v18453_v34 = vpop.eup %18452  ;;  %14541 = vmatprep.subr.bf16.mxu1 %v17905_v46  ;;  %14582 = vmatprep.subr.bf16.mxu0 %v21741_v18  ;;  %v17921_v46 = vld [vmem:[%s22301_s11 + $0x8] sm:$0xff]  }
0x2a28   :  { %v18455_v26 = vpop.eup %18454  ;;  %v13998_v51 = vmul.f32 %v18453_v34, %v18451_v60  ;;  %v17924_v60 = vld [vmem:[%s22301_s11 + $0x58] sm:$0xff]   ;;  %v17927_v34 = vld [vmem:[%s22301_s11 + $0x20] sm:$0xff]  }
0x2a29   :  { %v18457_v30 = vpop.eup %18456  ;;  %v13996_v13 = vmul.f32 %v18455_v26, %v13992_v52  ;;  %v17928_v52 = vld [vmem:[%s22301_s11 + $0x68] sm:$0xff]   ;;  %v17930_v26 = vld [vmem:[%s22301_s11 + $0x70] sm:$0xff]  }
0x2a2a   :  { %v13997_v8 = vmul.f32 %v18457_v30, %v13993_v49  ;;  %14542 = vmatpush1.bf16.msra.mxu1 %v17903_v3  ;;  %14583 = vmatpush1.bf16.msra.mxu0 %v21747_v20  ;;  %v17906_v20 = vld [vmem:[#allocation30 + $0x80] ss:$16 sps:$4 sm:$0xff]   ;;  %v17926_v3 = vld [vmem:[%s22301_s11 + $0x60] sm:$0xff]  }
0x2a2b   :  { %v21875_v37 = vadd.f32 %v13998_v51, %v13996_v13  ;;  %14543 = vmatprep.subr.bf16.mxu1 %v21751_v45  ;;  %14584 = vmatprep.subr.bf16.mxu0 %v21753_v56  ;;  %v17909_v45 = vld [vmem:[#allocation30 + $0xa0] ss:$16 sps:$4 sm:$0xff]   ;;  %v17914_v56 = vld [vmem:[#allocation30 + $0xc4] ss:$16 sps:$4 sm:$0xff]   ;;  %v18459_v48 = vpop.eup %18458 }
0x2a2c   :  { %v21879_v18 = vadd.f32 %v13999_v9, %v13997_v8  ;;  %v18461_v28 = vpop.eup %18460  ;;  %v17925_v9 = vld [vmem:[%s22301_s11 + $0x18] sm:$0xff]   ;;  %v17931_v51 = vld [vmem:[%s22301_s11 + $0x30] sm:$0xff]  }
0x2a2d   :  { %18462 = vtanh.f32 %v21875_v37  ;;  %v17932_v49 = vld [vmem:[%s22301_s11 + $0x78] sm:$0xff]  }
0x2a2e   :  { %18464 = vtanh.f32 %v21879_v18  ;;  %14544 = vmatpush1.bf16.msra.mxu1 %v21759_v38  ;;  %14585 = vmatpush1.bf16.msra.mxu0 %v21761_v53  ;;  %v17912_v38 = vld [vmem:[#allocation30 + $0xc0] ss:$16 sps:$4 sm:$0xff]  }
0x2a2f   :  { %14545 = vmatprep.subr.bf16.mxu1 %v17908_v35  ;;  %14586 = vmatprep.subr.bf16.mxu0 %v21765_v16  ;;  %v17917_v16 = vld [vmem:[#allocation30 + $0xe4] ss:$16 sps:$4 sm:$0xff]  }
0x2a32   :  { %14546 = vmatpush1.bf16.msra.mxu1 %v17906_v20  ;;  %14587 = vmatpush1.bf16.msra.mxu0 %v21774_v61  ;;  %v17915_v61 = vld [vmem:[#allocation30 + $0xe0] ss:$16 sps:$4 sm:$0xff]  }
0x2a33   :  { %14547 = vmatprep.subr.bf16.mxu1 %v17911_v43  ;;  %14588 = vmatprep.subr.bf16.mxu0 %v21779_v40 }
0x2a36   :  { %14548 = vmatpush1.bf16.msra.mxu1 %v17909_v45  ;;  %14589 = vmatpush1.bf16.msra.mxu0 %v21783_v59 }
0x2a37   :  { %v18463_v53 = vpop.eup %18462  ;;  %14549 = vmatprep.subr.bf16.mxu1 %v17914_v56  ;;  %14590 = vmatprep.subr.bf16.mxu0 %v21787_v17 }
0x2a38   :  { %v18465_v2 = vpop.eup %18464  ;;  %v14004_v23 = vmul.f32 %v18463_v53, %v18459_v48 }
0x2a39   :  { %v14005_v62 = vmul.f32 %v18465_v2, %v18461_v28 }
0x2a3a   :  { %14550 = vmatpush1.bf16.msra.mxu1 %v17912_v38  ;;  %14591 = vmatpush1.bf16.msra.mxu0 %v21791_v15  ;;  %v14016_v40 = vrot.slane %v14004_v23, 1  ;;  %v14367_v58 = vpack.c.bf16 %v14004_v23, %v14004_v23  ;;  %v19053_v15 = vmov 1  }
0x2a3b   :  { %14551 = vmatprep.subr.bf16.mxu1 %v17917_v16  ;;  %14592 = vmatprep.subr.bf16.mxu0 %v21795_v5  ;;  %v14017_v36 = vrot.slane %v14005_v62, 1  ;;  %v14368_v59 = vpack.c.bf16 %v14005_v62, %v14005_v62  ;;  %v17918_v5 = vld [vmem:[%s22301_s11 + $0x40] sm:$0xff]  }
0x2a3c   :  { %14020 = vst [vmem:[#allocation2 + $0x9] sm:$0x1] %v14016_v40  ;;  %v14371_v12 = vunpack.c.l.b16 %v14367_v58  ;;  %17141 = vset.pattern.permute.xlu1 %v19053_v15  ;;  %17142 = vset.pattern.permute.xlu0 %v19053_v15 }
0x2a3d   :  { %14021 = vst [vmem:[#allocation2 + $0x19] sm:$0x1] %v14017_v36  ;;  %v14372_v17 = vunpack.c.l.b16 %v14368_v59  ;;  %14970 = vperm.xlu1 %17141, %v22300_v22  }
0x2a3e   :  { %14552 = vmatpush1.bf16.msra.mxu1 %v17915_v61  ;;  %14593 = vmatpush1.bf16.msra.mxu0 %v21799_v39  ;;  %v14373_v50 = vrot.slane %v14371_v12, 1  ;;  %v17919_v39 = vld [vmem:[%s22301_s11] sm:$0xff]  }
0x2a3f   :  { %16749 = vmatprep.subr.bf16.mxu1 %v17918_v5 }
0x2a40   :  { %v14374_v54 = vsel %vm9570_vm7, %v14372_v17, %v14373_v50 }
0x2a41   :  { %v14375_v41 = vpack.c.b16 %v14374_v54, %v14374_v54 }
0x2a43   :  { %14570 = vmatmul.mubr.bf16.vlgmr.msra.gmra.mrb[200].mxu1 %v14375_v41  ;;  %14611 = vmatmul.mubr.bf16.vlgmr.msra.gmra.mrb[224].mxu0 %v14375_v41 }
0x2a44   :  { %16750 = vmatpush3.bf16.msra.mxu1 %v17919_v39 }
0x2a45   :  { %16751 = vmatprep.subr.bf16.mxu1 %v17920_v19 }
0x2a48   :  { %16752 = vmatpush3.bf16.msra.mxu1 %v17921_v46 }
0x2a49   :  { %16753 = vmatprep.subr.bf16.mxu1 %v17922_v25 }
0x2a4c   :  { %16754 = vmatpush3.bf16.msra.mxu1 %v17923_v63 }
0x2a4d   :  { %16755 = vmatprep.subr.bf16.mxu1 %v17924_v60 }
0x2a50   :  { %16756 = vmatpush3.bf16.msra.mxu1 %v17925_v9 }
0x2a51   :  { %16757 = vmatprep.subr.bf16.mxu1 %v17926_v3 }
0x2a54   :  { %16758 = vmatpush3.bf16.msra.mxu1 %v17927_v34  ;;  %v14683_v34 = vrot.slane %v21851_v47, 7 }
0x2a55   :  { %16759 = vmatprep.subr.bf16.mxu1 %v17928_v52 }
0x2a58   :  { %16760 = vmatpush3.bf16.msra.mxu1 %v17929_v32 }
0x2a59   :  { %16761 = vmatprep.subr.bf16.mxu1 %v17930_v26 }
0x2a5c   :  { %16762 = vmatpush3.bf16.msra.mxu1 %v17931_v51  ;;  %v14684_v51 = vrot.slane %v21853_v11, 7 }
0x2a5d   :  { %16763 = vmatprep.subr.bf16.mxu1 %v17932_v49 }
0x2a60   :  { %16764 = vmatpush3.bf16.msra.mxu1 %v17933_v14 }
0x2af4   :  { %v14259_v30 = vpop.f32.mrb[196].mxu1  ;;  %v14300_v13 = vpop.f32.mrb[220].mxu0 }
0x2af5   :  { %v14311_v8 = vrot.slane %v14259_v30, 1  ;;  %v14315_v35 = vrot.slane %v14259_v30, 2  ;;  %v14261_v20 = vpop.f32.mrb[197].mxu1  ;;  %v14302_v43 = vpop.f32.mrb[221].mxu0  ;;  %v14313_v17 = vrot.slane %v14300_v13, 1  ;;  %v14317_v50 = vrot.slane %v14300_v13, 2 }
0x2af6   :  { %v14312_v45 = vrot.slane %v14261_v20, 1  ;;  %v14316_v56 = vrot.slane %v14261_v20, 2  ;;  %v14263_v48 = vpop.f32.mrb[198].mxu1  ;;  %v14304_v28 = vpop.f32.mrb[222].mxu0  ;;  %v14314_v59 = vrot.slane %v14302_v43, 1  ;;  %v14318_v12 = vrot.slane %v14302_v43, 2 }
0x2af7   :  { %v14327_v38 = vadd.f32 %v14311_v8, %v20495_v27  ;;  %v14331_v53 = vadd.f32 %v14315_v35, %v20515_v42  ;;  %v14264_v16 = vpop.f32.mrb[199].mxu1  ;;  %v14305_v2 = vpop.f32.mrb[223].mxu0 }
0x2af8   :  { %v14328_v23 = vadd.f32 %v14312_v45, %v20500_v33  ;;  %v14332_v62 = vadd.f32 %v14316_v56, %v20505_v21  ;;  %v14330_v27 = vadd.f32 %v14314_v59, %v20536_v29  ;;  %v14334_v42 = vadd.f32 %v14318_v12, %v20543_v6 }
0x2af9   :  { %v16256_v61 = vmul.f32 -1.442695, %v14327_v38  ;;  %v16257_v40 = vmul.f32 -1.442695, %v14331_v53  ;;  %v14329_v33 = vadd.f32 %v14313_v17, %v20531_v4  ;;  %v14333_v21 = vadd.f32 %v14317_v50, %v22196_v1 }
0x2afa   :  { %v16258_v58 = vmul.f32 -1.442695, %v14328_v23  ;;  %v16259_v36 = vmul.f32 -1.442695, %v14332_v62  ;;  %v16260_v54 = vmul.f32 -1.442695, %v14330_v27 }
0x2afb   :  { %18466 = vpow2.f32 %v16256_v61  ;;  %v16261_v41 = vmul.f32 -1.442695, %v14334_v42 }
0x2afc   :  { %18468 = vpow2.f32 %v16257_v40 }
0x2afd   :  { %18470 = vpow2.f32 %v16258_v58 }
0x2afe   :  { %18472 = vpow2.f32 %v16259_v36 }
0x2aff   :  { %18474 = vtanh.f32 %v14329_v33 }
0x2b00   :  { %18476 = vtanh.f32 %v14333_v21 }
0x2b01   :  { %18478 = vpow2.f32 %v16260_v54 }
0x2b02   :  { %18480 = vpow2.f32 %v16261_v41 }
0x2b05   :  { %v18467_v15 = vpop.eup %18466 }
0x2b06   :  { %v18469_v22 = vpop.eup %18468  ;;  %v14649_v5 = vadd.f32 1.0, %v18467_v15 }
0x2b07   :  { %v18471_v39 = vpop.eup %18470  ;;  %v14650_v19 = vadd.f32 1.0, %v18469_v22 }
0x2b08   :  { %v18473_v46 = vpop.eup %18472  ;;  %18482 = vrcp.f32 %v14649_v5  ;;  %v14661_v29 = vadd.f32 1.0, %v18471_v39 }
0x2b09   :  { %18484 = vrcp.f32 %v14650_v19  ;;  %v14662_v6 = vadd.f32 1.0, %v18473_v46  ;;  %v18475_v4 = vpop.eup %18474 }
0x2b0a   :  { %18486 = vrcp.f32 %v14661_v29  ;;  %v18477_v1 = vpop.eup %18476 }
0x2b0b   :  { %18488 = vrcp.f32 %v14662_v6  ;;  %v18479_v25 = vpop.eup %18478 }
0x2b0c   :  { %v18481_v63 = vpop.eup %18480  ;;  %v14675_v52 = vadd.f32 1.0, %v18479_v25 }
0x2b0d   :  { %v14676_v49 = vadd.f32 1.0, %v18481_v63 }
0x2b0e   :  { %18490 = vrcp.f32 %v14675_v52 }
0x2b0f   :  { %18492 = vrcp.f32 %v14676_v49 }
0x2b12   :  { %v18483_v60 = vpop.eup %18482 }
0x2b13   :  { %v18485_v9 = vpop.eup %18484  ;;  %v14689_v3 = vmul.f32 %v18483_v60, %v18475_v4 }
0x2b14   :  { %v18487_v32 = vpop.eup %18486  ;;  %v14690_v26 = vmul.f32 %v18485_v9, %v18477_v1 }
0x2b15   :  { %v18489_v14 = vpop.eup %18488  ;;  %v14687_v30 = vmul.f32 %v18487_v32, %v14683_v34  ;;  %v14738_v32 = vrot.slane %v21879_v18, 1 }
0x2b16   :  { %v14688_v13 = vmul.f32 %v18489_v14, %v14684_v51  ;;  %v14571_v8 = vpop.f32.mrb[200].mxu1  ;;  %v14612_v35 = vpop.f32.mrb[224].mxu0 }
0x2b17   :  { %v14691_v20 = vadd.f32 %v14689_v3, %v14687_v30  ;;  %v14623_v43 = vrot.slane %v14571_v8, 1  ;;  %v14635_v45 = vadd.f32 %v14571_v8, %v20527_v31  ;;  %v14573_v56 = vpop.f32.mrb[201].mxu1  ;;  %v14614_v48 = vpop.f32.mrb[225].mxu0  ;;  %v14625_v59 = vrot.slane %v14612_v35, 1 }
0x2b18   :  { %v14692_v28 = vadd.f32 %v14690_v26, %v14688_v13  ;;  %v14624_v47 = vrot.slane %v14573_v56, 1  ;;  %v14636_v38 = vadd.f32 %v14573_v56, %v20547_v7  ;;  %v14575_v53 = vpop.f32.mrb[202].mxu1  ;;  %v14616_v11 = vpop.f32.mrb[226].mxu0  ;;  %v14626_v36 = vrot.slane %v14614_v48, 1 }
0x2b19   :  { %18494 = vtanh.f32 %v14691_v20  ;;  %v14639_v16 = vadd.f32 %v14623_v43, %v20534_v0  ;;  %v16262_v2 = vmul.f32 -1.442695, %v14635_v45  ;;  %v14576_v23 = vpop.f32.mrb[203].mxu1  ;;  %v14617_v62 = vpop.f32.mrb[227].mxu0  ;;  %v14638_v7 = vadd.f32 %v14614_v48, %v22298_v10  ;;  %v16268_v11 = vld [vmem:[#allocation32] ss:$0 sm:$0xff] }
0x2b1a   :  { %18496 = vtanh.f32 %v14692_v28  ;;  %v14640_v61 = vadd.f32 %v14624_v47, %v22197_v55  ;;  %v16264_v40 = vmul.f32 -1.442695, %v14636_v38  ;;  %v18491_v12 = vpop.eup %18490  ;;  %v14637_v0 = vadd.f32 %v14612_v35, %v22199_v57  ;;  %v15631_v62 = vld [vmem:[#allocation24] ss:$0 sm:$0xff] }
0x2b1b   :  { %18498 = vpow2.f32 %v16262_v2  ;;  %v16263_v31 = vmul.f32 -1.442695, %v14639_v16  ;;  %v14642_v17 = vadd.f32 %v14626_v36, %v22299_v24  ;;  %v18493_v50 = vpop.eup %18492  ;;  %v14641_v27 = vadd.f32 %v14625_v59, %v20577_v44  ;;  %v22302_v36 = vld [vmem:[#allocation49_spill] sm:$0xff] }
0x2b1c   :  { %v16265_v58 = vmul.f32 -1.442695, %v14640_v61  ;;  %v16266_v42 = vmul.f32 -1.442695, %v14638_v7  ;;  %v14737_v3 = vrot.slane %v21875_v37, 1  ;;  %v8507_v59 = vadd.f32 %v15631_v62, %v22302_v36  ;;  %v18530_v7 = vld [vmem:[%s22142_s10] sm:$0xff] }
0x2b1d   :  { %18500 = vpow2.f32 %v16263_v31  ;;  %v16267_v15 = vmul.f32 -1.442695, %v14642_v17  ;;  %v14971_v17 = vpop.permute.xlu1 %14970 }
0x2b1e   :  { %18502 = vpow2.f32 %v16264_v40 }
0x2b1f   :  { %18504 = vpow2.f32 %v16265_v58  ;;  %v14963_v58 = vpop.permute.xlu0 %14962 }
0x2b20   :  { %18506 = vtanh.f32 %v14637_v0 }
0x2b21   :  { %18508 = vtanh.f32 %v14641_v27 }
0x2b22   :  { %18510 = vpow2.f32 %v16266_v42 }
0x2b23   :  { %v18495_v55 = vpop.eup %18494 }
0x2b24   :  { %v18497_v33 = vpop.eup %18496  ;;  %v14695_v21 = vmul.f32 %v18495_v55, %v18491_v12  ;;  %v14965_v55 = vmul.f32 %v14963_v58, %v8507_v59 }
0x2b25   :  { %v18499_v54 = vpop.eup %18498  ;;  %v14696_v41 = vmul.f32 %v18497_v33, %v18493_v50  ;;  %v22303_v50 = vld [vmem:[#allocation50_spill] sm:$0xff]  ;;  %v18531_v33 = vld [vmem:[%s22142_s10 + $0x8] sm:$0xff] }
0x2b26   :  { %v14753_v22 = vrot.slane %v14695_v21, 7  ;;  %v14703_v5 = vadd.f32 1.0, %v18499_v54  ;;  %v8510_v27 = vadd.f32 %v15631_v62, %v22303_v50 }
0x2b27   :  { %v18501_v10 = vpop.eup %18500  ;;  %v14754_v39 = vrot.slane %v14696_v41, 7 }
0x2b28   :  { %14757 = vst [vmem:[#allocation2 + $0x7] sm:$0x1] %v14753_v22  ;;  %v14704_v57 = vadd.f32 1.0, %v18501_v10  ;;  %18512 = vrcp.f32 %v14703_v5  ;;  %v18503_v24 = vpop.eup %18502  ;;  %v14966_v54 = vmul.f32 %v14963_v58, %v8510_v27 }
0x2b29   :  { %14758 = vst [vmem:[#allocation2 + $0x17] sm:$0x1] %v14754_v39  ;;  %18514 = vpow2.f32 %v16267_v15  ;;  %v18505_v44 = vpop.eup %18504  ;;  %v14715_v19 = vadd.f32 1.0, %v18503_v24 }
0x2b2a   :  { %18516 = vrcp.f32 %v14704_v57  ;;  %v14716_v46 = vadd.f32 1.0, %v18505_v44  ;;  %v18507_v29 = vpop.eup %18506 }
0x2b2b   :  { %18518 = vrcp.f32 %v14715_v19  ;;  %v18509_v6 = vpop.eup %18508 }
0x2b2c   :  { %18520 = vrcp.f32 %v14716_v46  ;;  %v18511_v4 = vpop.eup %18510 }
0x2b2d   :  { %v14729_v34 = vadd.f32 1.0, %v18511_v4 }
0x2b2f   :  { %18522 = vrcp.f32 %v14729_v34  ;;  %v14761_v56 = vld [vmem:[#allocation2] sm:$0xff] }
0x2b30   :  { %v14763_v18 = vld [vmem:[#allocation2 + $0x10] sm:$0xff] }
0x2b31   :  { %v14798_v38 = vpack.c.bf16 %v14763_v18, %v14761_v56 }
0x2b32   :  { %v18513_v1 = vpop.eup %18512 }
0x2b33   :  { %v18515_v25 = vpop.eup %18514  ;;  %v14743_v63 = vmul.f32 %v18513_v1, %v18507_v29 }
0x2b34   :  { %v18517_v60 = vpop.eup %18516  ;;  %v14730_v26 = vadd.f32 1.0, %v18515_v25 }
0x2b35   :  { %v14744_v9 = vmul.f32 %v18517_v60, %v18509_v6  ;;  %v18519_v52 = vpop.eup %18518 }
0x2b36   :  { %v18521_v51 = vpop.eup %18520  ;;  %v14741_v49 = vmul.f32 %v18519_v52, %v14737_v3  ;;  %18524 = vrcp.f32 %v14730_v26 }
0x2b37   :  { %v14742_v14 = vmul.f32 %v18521_v51, %v14738_v32 }
0x2b38   :  { %v14745_v30 = vadd.f32 %v14743_v63, %v14741_v49 }
0x2b39   :  { %v14746_v13 = vadd.f32 %v14744_v9, %v14742_v14  ;;  %v18523_v8 = vpop.eup %18522 }
0x2b3a   :  { %18526 = vtanh.f32 %v14745_v30 }
0x2b3b   :  { %18528 = vtanh.f32 %v14746_v13 }
0x2b40   :  { %v18525_v35 = vpop.eup %18524 }
0x2b44   :  { %v18527_v20 = vpop.eup %18526 }
0x2b45   :  { %v18529_v43 = vpop.eup %18528  ;;  %v14749_v45 = vmul.f32 %v18527_v20, %v18523_v8 }
0x2b46   :  { %v14750_v37 = vmul.f32 %v18529_v43, %v18525_v35 }
0x2b47   :  { %14759 = vst [vmem:[#allocation2 + $0x8] sm:$0x1] %v14749_v45 }
0x2b48   :  { %14760 = vst [vmem:[#allocation2 + $0x18] sm:$0x1] %v14750_v37 }
0x2b4e   :  { %v14762_v48 = vld [vmem:[#allocation2 + $0x8] sm:$0xff] }
0x2b4f   :  { %v14764_v28 = vld [vmem:[#allocation2 + $0x18] sm:$0xff] }
0x2b50   :  { %v14799_v47 = vpack.c.bf16 %v14764_v28, %v14762_v48 }
0x2b52   :  { %14934 = vmatprep.mubr.bf16.mxu1 %v14799_v47 }
0x2b53   :  { %14935 = vmatmul.mubr.bf16.vlgmr.msra.gmra.mrb[204].mxu1 %v14798_v38 }
0x2c26   :  { %v16765_v53 = vpop.f32.mrb[204].mxu1 }
0x2c27   :  { %v16766_v16 = vpop.f32.mrb[205].mxu1 }
0x2c28   :  { %v16767_v2 = vadd.f32 %v16766_v16, %v16765_v53  ;;  %v16768_v23 = vpop.f32.mrb[206].mxu1 }
0x2c29   :  { %v16769_v61 = vpop.f32.mrb[207].mxu1 }
0x2c2a   :  { %v14937_v31 = vadd.f32 %v16767_v2, %v16268_v11  ;;  %v16770_v40 = vadd.f32 %v16769_v61, %v16768_v23 }
0x2c2c   :  { %v14967_v12 = vadd.f32 %v18530_v7, %v14937_v31  ;;  %v14940_v0 = vadd.f32 %v16770_v40, %v16268_v11 }
0x2c2e   :  { %v14973_v42 = vmul.f32 %v14971_v17, %v14967_v12  ;;  %v14968_v21 = vadd.f32 %v18531_v33, %v14940_v0 }
0x2c30   :  { %v14975_v41 = vadd.f32 %v14973_v42, %v14965_v55  ;;  %v14974_v15 = vmul.f32 %v14971_v17, %v14968_v21 }
0x2c32   :  { %14977 = vst.msk [vmem:[#allocation35] sm:$0xff] %vm373_vm1, %v14975_v41  ;;  %v14976_v22 = vadd.f32 %v14974_v15, %v14966_v54 }
0x2c34   :  { %14978 = vst.msk [vmem:[#allocation35 + $0x8] sm:$0xff] %vm373_vm1, %v14976_v22 }
0x2c35   :  { %18983 = shalt.err (!%p18980_p10)
}
0x2c36   :  { %s22304_s18 = sld [smem:[#allocation90_spill]] }
0x2c3c   :  { %s18984_s28 = scalar_lea.hbm %s22304_s18, 256 }
0x2c3d   :  { %p18985_p11 = scmp.ne.s32.totalorder %s22304_s18, %s18984_s28  ;;  %p18988_p12 = scmp.lt.u32.totalorder %s18984_s28, %s22304_s18 }
0x2c3f   :  { %p18990_p13 = pnand %p18988_p12, %p18985_p11 }
0x2c41   :  { %18993 = shalt.err (!%p18990_p13)
}
0x2c42   :  { %s19055_s14 = smov 128   ;;  %s19056_s24 = smov 8  }
0x2c43   :  { %14990 = dma.vmem_to_hbm [thread:$0]  %s14985_s13, 256, %s22304_s18, [#allocation5], %s19055_s14, %s19055_s14, %s19056_s24  }
0x2c44   :  { %19016 = dma.done.wait [#allocation5], 256  }
0x2c45   :  { %19017 = vsyncadd [#allocation5], 4294967040 }
0x2c46   :  { %14994 = vsyncpa [#allocation4], 1 }
0x2c47   :  { %14995 = vsyncpa [#allocation7], 1 }
0x2c48   :  { %14996 = vsyncpa [#allocation10], 1 }
0x2c49   :  { %14997 = vsyncpa [#allocation13], 1 }
0x2c4a   :  { %14998 = vsyncpa [#allocation16], 1 }
0x2c4b   :  { %14999 = vsyncpa [#allocation19], 1 }
0x2c4c   :  { %15000 = vsyncpa [#allocation22], 1 }
0x2c4d   :  { %15001 = vsyncpa [#allocation25], 1 }
0x2c4e   :  { %15002 = vsyncpa [#allocation28], 1 }
0x2c4f   :  { %15003 = vsyncpa [#allocation31], 1 }
0x2c50   :  { %15004 = vsyncpa [#allocation34], 1 }
0x2c51   :  { %15005 = vsyncpa [#allocation5], 1 }

</bundles_post_ra>
